<compile_context>
chip_gen: v5e
topology: v5e:2x2
jax: 0.10.0
libtpu: 0.0.40
codegen_flags: <defaults>
</compile_context>

<pallas_src>
import functools

import jax
import jax.numpy as jnp
from jax.experimental import pallas as pl
from jax.experimental.pallas import tpu as pltpu


def _round_up(x, m):
    return (x + m - 1) // m * m


# ----------------------------------------------------------------------------
# Pallas kernel: one (batch, T-tile) step of the fused decoder.
# Internal layout is [time, channels]: time on sublanes, hidden=128 on lanes.
# ----------------------------------------------------------------------------
def _decoder_kernel(x_ref, pre_w_ref, pre_b_ref, in_w_ref, in_b_ref,
                    rs_w_ref, rs_b_ref, out_w_ref, out_b_ref, o_ref,
                    *, n_layers, ksize, hidden, tq, halo, t_total):
    H = hidden
    pad = (ksize - 1) // 2
    t_ext = tq + 2 * halo                     # halo-extended window length (mult of 8)

    t_idx = pl.program_id(1)
    g0 = t_idx * tq - halo                    # global sequence position of window row 0

    # Rows of this window that lie inside the real sequence [0, t_total).  Multiplying
    # the conv input by this mask every layer reproduces the "same" zero padding of the
    # reference conv at the true sequence boundaries.
    row = jax.lax.broadcasted_iota(jnp.int32, (t_ext, 1), 0) + g0
    valid = jnp.logical_and(row >= 0, row < t_total).astype(jnp.float32)   # [t_ext, 1]

    # pre_net: Conv1d(4 -> H, kernel=1)  ==  [t_ext, 4] @ [4, H]  (bf16 in, f32 accum)
    h = jnp.dot(x_ref[0, 0], pre_w_ref[...],
                preferred_element_type=jnp.float32) + pre_b_ref[...]        # [t_ext, H]

    skip = None
    # n_layers is small (<= a handful) -> static unroll.  For deep stacks switch this
    # to lax.fori_loop with dynamic in_w_ref[l]/rs_w_ref[l] indexing to bound live ranges.
    for l in range(n_layers):
        # Zero the rows outside the real sequence (emulates the conv's zero padding).
        hm = h * valid                                                      # [t_ext, H]

        # k shifted copies via sublane rolls (XLU).  Wrap-around junk only lives within
        # n_layers*pad (< halo) rows of the window edges and never reaches the central
        # tq rows that are written out.
        taps = [hm if j == pad else pltpu.roll(hm, shift=(pad - j) % t_ext, axis=0)
                for j in range(ksize)]
        stack = jnp.concatenate(taps, axis=1).astype(jnp.bfloat16)          # [t_ext, k*H]

        # Fused k-tap gated conv: one MXU matmul with K = k*H.
        z = jnp.dot(stack, in_w_ref[l],
                    preferred_element_type=jnp.float32) + in_b_ref[l]       # [t_ext, 2H]
        acts = (jnp.tanh(z[:, :H]) * jax.nn.sigmoid(z[:, H:])).astype(jnp.bfloat16)

        # res/skip 1x1 conv.
        rs = jnp.dot(acts, rs_w_ref[l],
                     preferred_element_type=jnp.float32) + rs_b_ref[l]      # [t_ext, 2H]
        if l < n_layers - 1:
            h = h + rs[:, :H]                                   # residual
            skip = rs[:, H:] if skip is None else skip + rs[:, H:]
        else:
            skip = rs[:, :H] if skip is None else skip + rs[:, :H]

    # out_proj on the central tq rows only (halo is a multiple of 8 -> aligned slice).
    skip_c = skip[halo:halo + tq, :].astype(jnp.bfloat16)                   # [tq, H]
    # y[c, t] = sum_h out_w[c, h] * skip_c[t, h]   (rhs-transposed dot -> lane-dense out)
    y = jax.lax.dot_general(out_w_ref[...], skip_c,
                            dimension_numbers=(((1,), (1,)), ((), ())),
                            preferred_element_type=jnp.float32)             # [c_out, tq]
    o_ref[0] = (y + out_b_ref[...]).astype(o_ref.dtype)


# ----------------------------------------------------------------------------
# Wrapper: tiling, halo windows, bf16 weight packing, pallas_call.
# ----------------------------------------------------------------------------
@functools.partial(jax.jit,
                   static_argnames=("kernel_size", "n_layers", "hidden_size", "tq"))
def fvae_decoder_forward(x_nct, params, *, kernel_size, n_layers, hidden_size, tq=None):
    """x_nct: [B, 4, T] (PyTorch NCT). Returns [B, 4, T]."""
    B, c_in, T = x_nct.shape
    H = hidden_size
    c_out = params["out_w"].shape[0]
    pad = (kernel_size - 1) // 2
    halo = _round_up(n_layers * pad, 8)       # recompute halo, 8-aligned sublanes

    if tq is None:
        tq = min(512, _round_up(T, 128))      # time tile: multiple of 128 lanes
    tq = max(128, _round_up(tq, 128))
    n_t = -(-T // tq)
    t_ext = tq + 2 * halo

    # ---- layout plumbing on the tiny 4-channel input: halo-extended windows ----
    x_seq = jnp.zeros((B, c_in, halo + n_t * tq + halo), jnp.float32)
    x_seq = x_seq.at[:, :, halo:halo + T].set(x_nct.astype(jnp.float32))
    wins = [x_seq[:, :, t * tq: t * tq + t_ext] for t in range(n_t)]
    xw = jnp.stack(wins, axis=1)                                  # [B, n_t, 4, t_ext]
    xw = jnp.transpose(xw, (0, 1, 3, 2)).astype(jnp.bfloat16)     # [B, n_t, t_ext, 4]

    # ---- bf16 weights for the MXU; biases stay f32 (added after f32 accumulation) ----
    pre_w = params["pre_w"].astype(jnp.bfloat16)                              # [4, H]
    in_w = params["in_w"].reshape(n_layers, kernel_size * H, 2 * H) \
                         .astype(jnp.bfloat16)                                # [L, kH, 2H]
    rs_w = params["rs_w"].astype(jnp.bfloat16)                                # [L, H, 2H]
    out_w = params["out_w"].astype(jnp.bfloat16)                              # [c_out, H]

    kern = functools.partial(_decoder_kernel, n_layers=n_layers, ksize=kernel_size,
                             hidden=H, tq=tq, halo=halo, t_total=T)

    # NOTE: the weight specs have constant index maps, so the pipeline DMAs them only
    # once (block index never changes); the second buffer it allocates is ~1 MiB of
    # bf16 and is well inside every chip's VMEM budget at these tile sizes.
    y = pl.pallas_call(
        kern,
        out_shape=jax.ShapeDtypeStruct((B, c_out, n_t * tq), jnp.float32),
        grid_spec=pltpu.PrefetchScalarGridSpec(
            num_scalar_prefetch=0,
            grid=(B, n_t),
            in_specs=[
                pl.BlockSpec((1, 1, t_ext, c_in), lambda b, t: (b, t, 0, 0)),
                pl.BlockSpec((c_in, H), lambda b, t: (0, 0)),
                pl.BlockSpec((1, H), lambda b, t: (0, 0)),
                pl.BlockSpec((n_layers, kernel_size * H, 2 * H),
                             lambda b, t: (0, 0, 0)),
                pl.BlockSpec((n_layers, 1, 2 * H), lambda b, t: (0, 0, 0)),
                pl.BlockSpec((n_layers, H, 2 * H), lambda b, t: (0, 0, 0)),
                pl.BlockSpec((n_layers, 1, 2 * H), lambda b, t: (0, 0, 0)),
                pl.BlockSpec((c_out, H), lambda b, t: (0, 0)),
                pl.BlockSpec((c_out, 1), lambda b, t: (0, 0)),
            ],
            out_specs=pl.BlockSpec((1, c_out, tq), lambda b, t: (b, 0, t)),
        ),
        compiler_params=pltpu.CompilerParams(
            dimension_semantics=("parallel", "parallel")),
    )(xw, pre_w, params["pre_b"], in_w, params["in_b"],
      rs_w, params["rs_b"], out_w, params["out_b"])

    return y[:, :, :T]                                             # [B, c_out, T]


# ----------------------------------------------------------------------------
# Pure-JAX reference (same math, same bf16-in / f32-accum matmuls) for checking.
# ----------------------------------------------------------------------------
def _decoder_reference(x_nct, params, *, kernel_size, n_layers, hidden_size):
    H = hidden_size
    pad = (kernel_size - 1) // 2

    def mm(a, b):
        return jnp.matmul(a.astype(jnp.bfloat16), b.astype(jnp.bfloat16),
                          preferred_element_type=jnp.float32)

    x = jnp.transpose(x_nct, (0, 2, 1))                          # [B, T, 4]
    B, T, _ = x.shape
    h = mm(x, params["pre_w"]) + params["pre_b"]                 # [B, T, H]
    skip = jnp.zeros((B, T, H), jnp.float32)
    for l in range(n_layers):
        hp = jnp.pad(h, ((0, 0), (pad, pad), (0, 0)))
        z = sum(mm(hp[:, j:j + T], params["in_w"][l, j]) for j in range(kernel_size))
        z = z + params["in_b"][l]
        acts = jnp.tanh(z[..., :H]) * jax.nn.sigmoid(z[..., H:])
        rs = mm(acts, params["rs_w"][l]) + params["rs_b"][l]
        if l < n_layers - 1:
            h = h + rs[..., :H]
            skip = skip + rs[..., H:]
        else:
            skip = skip + rs[..., :H]
    y = mm(skip, params["out_w"].T) + params["out_b"][:, 0]      # [B, T, c_out]
    return jnp.transpose(y, (0, 2, 1))


# ----------------------------------------------------------------------------
# Module wrappers (mirroring the PyTorch classes).
# ----------------------------------------------------------------------------
def init_decoder_params(key, *, hidden_size, kernel_size, n_layers, c_out=4, c_in=4):
    assert hidden_size == 128, "pre_net is hard-coded Conv1d(4, 128, 1) in the source"
    ks = jax.random.split(key, 6)
    s = 0.05
    H = hidden_size
    return {
        "pre_w": s * jax.random.normal(ks[0], (c_in, H), jnp.float32),
        "pre_b": s * jax.random.normal(ks[1], (1, H), jnp.float32),
        "in_w": s * jax.random.normal(ks[2], (n_layers, kernel_size, H, 2 * H),
                                      jnp.float32),
        "in_b": jnp.zeros((n_layers, 1, 2 * H), jnp.float32),
        "rs_w": s * jax.random.normal(ks[3], (n_layers, H, 2 * H), jnp.float32),
        "rs_b": jnp.zeros((n_layers, 1, 2 * H), jnp.float32),
        "out_w": s * jax.random.normal(ks[4], (c_out, H), jnp.float32),
        "out_b": s * jax.random.normal(ks[5], (c_out, 1), jnp.float32),
    }


class FVAEDecoderPallas:
    def __init__(self, params, kernel_size, n_layers, hidden_size):
        self.params = params
        self.kernel_size = kernel_size
        self.n_layers = n_layers
        self.hidden_size = hidden_size

    def __call__(self, x, tq=None):
        return fvae_decoder_forward(x, self.params, kernel_size=self.kernel_size,
                                    n_layers=self.n_layers,
                                    hidden_size=self.hidden_size, tq=tq)


class FVAEPallas:
    """Mirrors the PyTorch FVAE: forward() returns None; the decoder holds the compute."""

    def __init__(self, c_in_out, hidden_size, c_latent, kernel_size,
                 enc_n_layers, dec_n_layers, c_cond, strides, key):
        params = init_decoder_params(key, hidden_size=hidden_size,
                                     kernel_size=kernel_size, n_layers=dec_n_layers,
                                     c_out=4, c_in=4)
        self.decoder = FVAEDecoderPallas(params, kernel_size, dec_n_layers, hidden_size)

    def forward(self, x=None, cond=None, infer=False, noise_scale=1.0):
        # Exactly as in the PyTorch source: forward returns None.
        return None


if __name__ == "__main__":
    key = jax.random.PRNGKey(0)
    k_param, k_x, k_x2 = jax.random.split(key, 3)

    B, C_IN, T = 2, 4, 16          # decoder pre_net is Conv1d(4, 128, 1)
    HIDDEN, KSIZE, DEC_LAYERS = 128, 5, 3

    model = FVAEPallas(c_in_out=80, hidden_size=HIDDEN, c_latent=16,
                       kernel_size=KSIZE, enc_n_layers=8, dec_n_layers=DEC_LAYERS,
                       c_cond=0, strides=[4], key=k_param)

    # FVAE.forward semantics: returns None.
    assert model.forward(x=None) is None

    # Small-shape check (single T tile).
    x = jax.random.normal(k_x, (B, C_IN, T), jnp.float32)
    y = jax.block_until_ready(model.decoder(x))
    y_ref = _decoder_reference(x, model.decoder.params, kernel_size=KSIZE,
                               n_layers=DEC_LAYERS, hidden_size=HIDDEN)
    assert y.shape == (B, 4, T)
    assert jnp.allclose(y, y_ref, atol=5e-3, rtol=5e-2), \
        float(jnp.max(jnp.abs(y - y_ref)))

    # Multi-tile check: T spans two 128-wide T tiles (exercises the halo path).
    x2 = jax.random.normal(k_x2, (1, C_IN, 200), jnp.float32)
    y2 = jax.block_until_ready(
        fvae_decoder_forward(x2, model.decoder.params, kernel_size=KSIZE,
                             n_layers=DEC_LAYERS, hidden_size=HIDDEN, tq=128))
    y2_ref = _decoder_reference(x2, model.decoder.params, kernel_size=KSIZE,
                                n_layers=DEC_LAYERS, hidden_size=HIDDEN)
    assert y2.shape == (1, 4, 200)
    assert jnp.allclose(y2, y2_ref, atol=5e-3, rtol=5e-2), \
        float(jnp.max(jnp.abs(y2 - y2_ref)))

    print("KERNEL_OK")
</pallas_src>

<mosaic_0001>
module attributes {stable_mosaic.version = 11 : i64} {
  func.func @_decoder_kernel(%arg0: i32, %arg1: i32, %arg2: memref<1x1x144x4xbf16, #tpu.memory_space<vmem>>, %arg3: memref<4x128xbf16, #tpu.memory_space<vmem>>, %arg4: memref<1x128xf32, #tpu.memory_space<vmem>>, %arg5: memref<3x640x256xbf16, #tpu.memory_space<vmem>>, %arg6: memref<3x1x256xf32, #tpu.memory_space<vmem>>, %arg7: memref<3x128x256xbf16, #tpu.memory_space<vmem>>, %arg8: memref<3x1x256xf32, #tpu.memory_space<vmem>>, %arg9: memref<4x128xbf16, #tpu.memory_space<vmem>>, %arg10: memref<4x1xf32, #tpu.memory_space<vmem>>, %arg11: memref<1x4x128xf32, #tpu.memory_space<vmem>>) attributes {dimension_semantics = [#tpu.dimension_semantics<parallel>, #tpu.dimension_semantics<parallel>], iteration_bounds = array<i64: 2, 1>, scalar_prefetch = 0 : i64, scratch_operands = 0 : i64, tpu.core_type = #tpu.core_type<tc>, window_params = [{transform_indices = @transform_0, window_bounds = array<i64: 1, 1, 144, 4>}, {pipeline_mode = #tpu.pipeline_mode<synchronous>, transform_indices = @transform_1, window_bounds = array<i64: 4, 128>}, {pipeline_mode = #tpu.pipeline_mode<synchronous>, transform_indices = @transform_2, window_bounds = array<i64: 1, 128>}, {pipeline_mode = #tpu.pipeline_mode<synchronous>, transform_indices = @transform_3, window_bounds = array<i64: 3, 640, 256>}, {pipeline_mode = #tpu.pipeline_mode<synchronous>, transform_indices = @transform_4, window_bounds = array<i64: 3, 1, 256>}, {pipeline_mode = #tpu.pipeline_mode<synchronous>, transform_indices = @transform_5, window_bounds = array<i64: 3, 128, 256>}, {pipeline_mode = #tpu.pipeline_mode<synchronous>, transform_indices = @transform_6, window_bounds = array<i64: 3, 1, 256>}, {pipeline_mode = #tpu.pipeline_mode<synchronous>, transform_indices = @transform_7, window_bounds = array<i64: 4, 128>}, {pipeline_mode = #tpu.pipeline_mode<synchronous>, transform_indices = @transform_8, window_bounds = array<i64: 4, 1>}, {transform_indices = @transform_9, window_bounds = array<i64: 1, 4, 128>}]} {
    %c128_i32 = arith.constant 128 : i32
    %0 = arith.muli %arg1, %c128_i32 : i32
    %c8_i32 = arith.constant 8 : i32
    %1 = arith.subi %0, %c8_i32 : i32
    %2 = tpu.iota {dimensions = array<i32: 0>} : vector<144x1xi32>
    %3 = vector.broadcast %1 : i32 to vector<144x1xi32>
    %4 = arith.addi %2, %3 : vector<144x1xi32>
    %c0_i32 = arith.constant 0 : i32
    %5 = vector.broadcast %c0_i32 : i32 to vector<144x1xi32>
    %6 = arith.cmpi sge, %4, %5 : vector<144x1xi32>
    %c16_i32 = arith.constant 16 : i32
    %7 = vector.broadcast %c16_i32 : i32 to vector<144x1xi32>
    %8 = arith.cmpi slt, %4, %7 : vector<144x1xi32>
    %9 = arith.andi %6, %8 : vector<144x1xi1>
    %10 = arith.extui %9 : vector<144x1xi1> to vector<144x1xi32>
    %11 = arith.sitofp %10 : vector<144x1xi32> to vector<144x1xf32>
    %c0 = arith.constant 0 : index
    %c0_0 = arith.constant 0 : index
    %c0_1 = arith.constant 0 : index
    %c0_2 = arith.constant 0 : index
    %12 = vector.load %arg2[%c0, %c0_0, %c0_1, %c0_2] : memref<1x1x144x4xbf16, #tpu.memory_space<vmem>>, vector<1x1x144x4xbf16>
    %13 = vector.shape_cast %12 : vector<1x1x144x4xbf16> to vector<144x4xbf16>
    %c0_3 = arith.constant 0 : index
    %c0_4 = arith.constant 0 : index
    %14 = vector.load %arg3[%c0_3, %c0_4] : memref<4x128xbf16, #tpu.memory_space<vmem>>, vector<4x128xbf16>
    %cst = arith.constant dense<0.000000e+00> : vector<144x128xf32>
    %15 = tpu.matmul %13, %14, %cst {dimension_numbers = #tpu.dot_dimension_numbers<[1], [0], [0], [1], [0, 0, 1, 1], [], []>} : vector<144x4xbf16>, vector<4x128xbf16>, vector<144x128xf32> -> vector<144x128xf32>
    %c0_5 = arith.constant 0 : index
    %c0_6 = arith.constant 0 : index
    %16 = vector.load %arg4[%c0_5, %c0_6] : memref<1x128xf32, #tpu.memory_space<vmem>>, vector<1x128xf32>
    %17 = vector.broadcast %16 : vector<1x128xf32> to vector<144x128xf32>
    %18 = arith.addf %15, %17 : vector<144x128xf32>
    %19 = vector.broadcast %11 : vector<144x1xf32> to vector<144x128xf32>
    %20 = arith.mulf %18, %19 : vector<144x128xf32>
    %c2_i32 = arith.constant 2 : i32
    %21 = tpu.dynamic_rotate %20 by %c2_i32 dim 0 : vector<144x128xf32>, i32 -> vector<144x128xf32>
    %c1_i32 = arith.constant 1 : i32
    %22 = tpu.dynamic_rotate %20 by %c1_i32 dim 0 : vector<144x128xf32>, i32 -> vector<144x128xf32>
    %c143_i32 = arith.constant 143 : i32
    %23 = tpu.dynamic_rotate %20 by %c143_i32 dim 0 : vector<144x128xf32>, i32 -> vector<144x128xf32>
    %c142_i32 = arith.constant 142 : i32
    %24 = tpu.dynamic_rotate %20 by %c142_i32 dim 0 : vector<144x128xf32>, i32 -> vector<144x128xf32>
    %25 = tpu.concatenate %21, %22, %20, %23, %24 in 1 : vector<144x128xf32>, vector<144x128xf32>, vector<144x128xf32>, vector<144x128xf32>, vector<144x128xf32> -> vector<144x640xf32>
    %26 = arith.truncf %25 : vector<144x640xf32> to vector<144x640xbf16>
    %c0_7 = arith.constant 0 : index
    %c0_8 = arith.constant 0 : index
    %c0_9 = arith.constant 0 : index
    %27 = vector.load %arg5[%c0_7, %c0_8, %c0_9] : memref<3x640x256xbf16, #tpu.memory_space<vmem>>, vector<1x640x256xbf16>
    %28 = vector.shape_cast %27 : vector<1x640x256xbf16> to vector<640x256xbf16>
    %cst_10 = arith.constant dense<0.000000e+00> : vector<144x256xf32>
    %29 = tpu.matmul %26, %28, %cst_10 {dimension_numbers = #tpu.dot_dimension_numbers<[1], [0], [0], [1], [0, 0, 1, 1], [], []>} : vector<144x640xbf16>, vector<640x256xbf16>, vector<144x256xf32> -> vector<144x256xf32>
    %c0_11 = arith.constant 0 : index
    %c0_12 = arith.constant 0 : index
    %c0_13 = arith.constant 0 : index
    %30 = vector.load %arg6[%c0_11, %c0_12, %c0_13] : memref<3x1x256xf32, #tpu.memory_space<vmem>>, vector<1x1x256xf32>
    %31 = vector.shape_cast %30 : vector<1x1x256xf32> to vector<1x256xf32>
    %32 = vector.broadcast %31 : vector<1x256xf32> to vector<144x256xf32>
    %33 = arith.addf %29, %32 : vector<144x256xf32>
    %34 = vector.extract_strided_slice %33 {offsets = [0, 0], sizes = [144, 128], strides = [1, 1]} : vector<144x256xf32> to vector<144x128xf32>
    %35 = math.tanh %34 : vector<144x128xf32>
    %36 = vector.extract_strided_slice %33 {offsets = [0, 128], sizes = [144, 128], strides = [1, 1]} : vector<144x256xf32> to vector<144x128xf32>
    %37 = arith.negf %36 : vector<144x128xf32>
    %38 = math.exp %37 : vector<144x128xf32>
    %cst_14 = arith.constant 1.000000e+00 : f32
    %39 = vector.broadcast %cst_14 : f32 to vector<144x128xf32>
    %40 = arith.addf %39, %38 : vector<144x128xf32>
    %41 = arith.divf %39, %40 : vector<144x128xf32>
    %42 = arith.mulf %35, %41 : vector<144x128xf32>
    %43 = arith.truncf %42 : vector<144x128xf32> to vector<144x128xbf16>
    %c0_15 = arith.constant 0 : index
    %c0_16 = arith.constant 0 : index
    %c0_17 = arith.constant 0 : index
    %44 = vector.load %arg7[%c0_15, %c0_16, %c0_17] : memref<3x128x256xbf16, #tpu.memory_space<vmem>>, vector<1x128x256xbf16>
    %45 = vector.shape_cast %44 : vector<1x128x256xbf16> to vector<128x256xbf16>
    %cst_18 = arith.constant dense<0.000000e+00> : vector<144x256xf32>
    %46 = tpu.matmul %43, %45, %cst_18 {dimension_numbers = #tpu.dot_dimension_numbers<[1], [0], [0], [1], [0, 0, 1, 1], [], []>} : vector<144x128xbf16>, vector<128x256xbf16>, vector<144x256xf32> -> vector<144x256xf32>
    %c0_19 = arith.constant 0 : index
    %c0_20 = arith.constant 0 : index
    %c0_21 = arith.constant 0 : index
    %47 = vector.load %arg8[%c0_19, %c0_20, %c0_21] : memref<3x1x256xf32, #tpu.memory_space<vmem>>, vector<1x1x256xf32>
    %48 = vector.shape_cast %47 : vector<1x1x256xf32> to vector<1x256xf32>
    %49 = vector.broadcast %48 : vector<1x256xf32> to vector<144x256xf32>
    %50 = arith.addf %46, %49 : vector<144x256xf32>
    %51 = vector.extract_strided_slice %50 {offsets = [0, 0], sizes = [144, 128], strides = [1, 1]} : vector<144x256xf32> to vector<144x128xf32>
    %52 = arith.addf %18, %51 : vector<144x128xf32>
    %53 = vector.extract_strided_slice %50 {offsets = [0, 128], sizes = [144, 128], strides = [1, 1]} : vector<144x256xf32> to vector<144x128xf32>
    %54 = vector.broadcast %11 : vector<144x1xf32> to vector<144x128xf32>
    %55 = arith.mulf %52, %54 : vector<144x128xf32>
    %c2_i32_22 = arith.constant 2 : i32
    %56 = tpu.dynamic_rotate %55 by %c2_i32_22 dim 0 : vector<144x128xf32>, i32 -> vector<144x128xf32>
    %c1_i32_23 = arith.constant 1 : i32
    %57 = tpu.dynamic_rotate %55 by %c1_i32_23 dim 0 : vector<144x128xf32>, i32 -> vector<144x128xf32>
    %c143_i32_24 = arith.constant 143 : i32
    %58 = tpu.dynamic_rotate %55 by %c143_i32_24 dim 0 : vector<144x128xf32>, i32 -> vector<144x128xf32>
    %c142_i32_25 = arith.constant 142 : i32
    %59 = tpu.dynamic_rotate %55 by %c142_i32_25 dim 0 : vector<144x128xf32>, i32 -> vector<144x128xf32>
    %60 = tpu.concatenate %56, %57, %55, %58, %59 in 1 : vector<144x128xf32>, vector<144x128xf32>, vector<144x128xf32>, vector<144x128xf32>, vector<144x128xf32> -> vector<144x640xf32>
    %61 = arith.truncf %60 : vector<144x640xf32> to vector<144x640xbf16>
    %c1 = arith.constant 1 : index
    %c0_26 = arith.constant 0 : index
    %c0_27 = arith.constant 0 : index
    %62 = vector.load %arg5[%c1, %c0_26, %c0_27] : memref<3x640x256xbf16, #tpu.memory_space<vmem>>, vector<1x640x256xbf16>
    %63 = vector.shape_cast %62 : vector<1x640x256xbf16> to vector<640x256xbf16>
    %cst_28 = arith.constant dense<0.000000e+00> : vector<144x256xf32>
    %64 = tpu.matmul %61, %63, %cst_28 {dimension_numbers = #tpu.dot_dimension_numbers<[1], [0], [0], [1], [0, 0, 1, 1], [], []>} : vector<144x640xbf16>, vector<640x256xbf16>, vector<144x256xf32> -> vector<144x256xf32>
    %c1_29 = arith.constant 1 : index
    %c0_30 = arith.constant 0 : index
    %c0_31 = arith.constant 0 : index
    %65 = vector.load %arg6[%c1_29, %c0_30, %c0_31] : memref<3x1x256xf32, #tpu.memory_space<vmem>>, vector<1x1x256xf32>
    %66 = vector.shape_cast %65 : vector<1x1x256xf32> to vector<1x256xf32>
    %67 = vector.broadcast %66 : vector<1x256xf32> to vector<144x256xf32>
    %68 = arith.addf %64, %67 : vector<144x256xf32>
    %69 = vector.extract_strided_slice %68 {offsets = [0, 0], sizes = [144, 128], strides = [1, 1]} : vector<144x256xf32> to vector<144x128xf32>
    %70 = math.tanh %69 : vector<144x128xf32>
    %71 = vector.extract_strided_slice %68 {offsets = [0, 128], sizes = [144, 128], strides = [1, 1]} : vector<144x256xf32> to vector<144x128xf32>
    %72 = arith.negf %71 : vector<144x128xf32>
    %73 = math.exp %72 : vector<144x128xf32>
    %cst_32 = arith.constant 1.000000e+00 : f32
    %74 = vector.broadcast %cst_32 : f32 to vector<144x128xf32>
    %75 = arith.addf %74, %73 : vector<144x128xf32>
    %76 = arith.divf %74, %75 : vector<144x128xf32>
    %77 = arith.mulf %70, %76 : vector<144x128xf32>
    %78 = arith.truncf %77 : vector<144x128xf32> to vector<144x128xbf16>
    %c1_33 = arith.constant 1 : index
    %c0_34 = arith.constant 0 : index
    %c0_35 = arith.constant 0 : index
    %79 = vector.load %arg7[%c1_33, %c0_34, %c0_35] : memref<3x128x256xbf16, #tpu.memory_space<vmem>>, vector<1x128x256xbf16>
    %80 = vector.shape_cast %79 : vector<1x128x256xbf16> to vector<128x256xbf16>
    %cst_36 = arith.constant dense<0.000000e+00> : vector<144x256xf32>
    %81 = tpu.matmul %78, %80, %cst_36 {dimension_numbers = #tpu.dot_dimension_numbers<[1], [0], [0], [1], [0, 0, 1, 1], [], []>} : vector<144x128xbf16>, vector<128x256xbf16>, vector<144x256xf32> -> vector<144x256xf32>
    %c1_37 = arith.constant 1 : index
    %c0_38 = arith.constant 0 : index
    %c0_39 = arith.constant 0 : index
    %82 = vector.load %arg8[%c1_37, %c0_38, %c0_39] : memref<3x1x256xf32, #tpu.memory_space<vmem>>, vector<1x1x256xf32>
    %83 = vector.shape_cast %82 : vector<1x1x256xf32> to vector<1x256xf32>
    %84 = vector.broadcast %83 : vector<1x256xf32> to vector<144x256xf32>
    %85 = arith.addf %81, %84 : vector<144x256xf32>
    %86 = vector.extract_strided_slice %85 {offsets = [0, 0], sizes = [144, 128], strides = [1, 1]} : vector<144x256xf32> to vector<144x128xf32>
    %87 = arith.addf %52, %86 : vector<144x128xf32>
    %88 = vector.extract_strided_slice %85 {offsets = [0, 128], sizes = [144, 128], strides = [1, 1]} : vector<144x256xf32> to vector<144x128xf32>
    %89 = arith.addf %53, %88 : vector<144x128xf32>
    %90 = vector.broadcast %11 : vector<144x1xf32> to vector<144x128xf32>
    %91 = arith.mulf %87, %90 : vector<144x128xf32>
    %c2_i32_40 = arith.constant 2 : i32
    %92 = tpu.dynamic_rotate %91 by %c2_i32_40 dim 0 : vector<144x128xf32>, i32 -> vector<144x128xf32>
    %c1_i32_41 = arith.constant 1 : i32
    %93 = tpu.dynamic_rotate %91 by %c1_i32_41 dim 0 : vector<144x128xf32>, i32 -> vector<144x128xf32>
    %c143_i32_42 = arith.constant 143 : i32
    %94 = tpu.dynamic_rotate %91 by %c143_i32_42 dim 0 : vector<144x128xf32>, i32 -> vector<144x128xf32>
    %c142_i32_43 = arith.constant 142 : i32
    %95 = tpu.dynamic_rotate %91 by %c142_i32_43 dim 0 : vector<144x128xf32>, i32 -> vector<144x128xf32>
    %96 = tpu.concatenate %92, %93, %91, %94, %95 in 1 : vector<144x128xf32>, vector<144x128xf32>, vector<144x128xf32>, vector<144x128xf32>, vector<144x128xf32> -> vector<144x640xf32>
    %97 = arith.truncf %96 : vector<144x640xf32> to vector<144x640xbf16>
    %c2 = arith.constant 2 : index
    %c0_44 = arith.constant 0 : index
    %c0_45 = arith.constant 0 : index
    %98 = vector.load %arg5[%c2, %c0_44, %c0_45] : memref<3x640x256xbf16, #tpu.memory_space<vmem>>, vector<1x640x256xbf16>
    %99 = vector.shape_cast %98 : vector<1x640x256xbf16> to vector<640x256xbf16>
    %cst_46 = arith.constant dense<0.000000e+00> : vector<144x256xf32>
    %100 = tpu.matmul %97, %99, %cst_46 {dimension_numbers = #tpu.dot_dimension_numbers<[1], [0], [0], [1], [0, 0, 1, 1], [], []>} : vector<144x640xbf16>, vector<640x256xbf16>, vector<144x256xf32> -> vector<144x256xf32>
    %c2_47 = arith.constant 2 : index
    %c0_48 = arith.constant 0 : index
    %c0_49 = arith.constant 0 : index
    %101 = vector.load %arg6[%c2_47, %c0_48, %c0_49] : memref<3x1x256xf32, #tpu.memory_space<vmem>>, vector<1x1x256xf32>
    %102 = vector.shape_cast %101 : vector<1x1x256xf32> to vector<1x256xf32>
    %103 = vector.broadcast %102 : vector<1x256xf32> to vector<144x256xf32>
    %104 = arith.addf %100, %103 : vector<144x256xf32>
    %105 = vector.extract_strided_slice %104 {offsets = [0, 0], sizes = [144, 128], strides = [1, 1]} : vector<144x256xf32> to vector<144x128xf32>
    %106 = math.tanh %105 : vector<144x128xf32>
    %107 = vector.extract_strided_slice %104 {offsets = [0, 128], sizes = [144, 128], strides = [1, 1]} : vector<144x256xf32> to vector<144x128xf32>
    %108 = arith.negf %107 : vector<144x128xf32>
    %109 = math.exp %108 : vector<144x128xf32>
    %cst_50 = arith.constant 1.000000e+00 : f32
    %110 = vector.broadcast %cst_50 : f32 to vector<144x128xf32>
    %111 = arith.addf %110, %109 : vector<144x128xf32>
    %112 = arith.divf %110, %111 : vector<144x128xf32>
    %113 = arith.mulf %106, %112 : vector<144x128xf32>
    %114 = arith.truncf %113 : vector<144x128xf32> to vector<144x128xbf16>
    %c2_51 = arith.constant 2 : index
    %c0_52 = arith.constant 0 : index
    %c0_53 = arith.constant 0 : index
    %115 = vector.load %arg7[%c2_51, %c0_52, %c0_53] : memref<3x128x256xbf16, #tpu.memory_space<vmem>>, vector<1x128x256xbf16>
    %116 = vector.shape_cast %115 : vector<1x128x256xbf16> to vector<128x256xbf16>
    %cst_54 = arith.constant dense<0.000000e+00> : vector<144x256xf32>
    %117 = tpu.matmul %114, %116, %cst_54 {dimension_numbers = #tpu.dot_dimension_numbers<[1], [0], [0], [1], [0, 0, 1, 1], [], []>} : vector<144x128xbf16>, vector<128x256xbf16>, vector<144x256xf32> -> vector<144x256xf32>
    %c2_55 = arith.constant 2 : index
    %c0_56 = arith.constant 0 : index
    %c0_57 = arith.constant 0 : index
    %118 = vector.load %arg8[%c2_55, %c0_56, %c0_57] : memref<3x1x256xf32, #tpu.memory_space<vmem>>, vector<1x1x256xf32>
    %119 = vector.shape_cast %118 : vector<1x1x256xf32> to vector<1x256xf32>
    %120 = vector.broadcast %119 : vector<1x256xf32> to vector<144x256xf32>
    %121 = arith.addf %117, %120 : vector<144x256xf32>
    %122 = vector.extract_strided_slice %121 {offsets = [0, 0], sizes = [144, 128], strides = [1, 1]} : vector<144x256xf32> to vector<144x128xf32>
    %123 = arith.addf %89, %122 : vector<144x128xf32>
    %124 = vector.extract_strided_slice %123 {offsets = [8, 0], sizes = [128, 128], strides = [1, 1]} : vector<144x128xf32> to vector<128x128xf32>
    %125 = arith.truncf %124 : vector<128x128xf32> to vector<128x128xbf16>
    %c0_58 = arith.constant 0 : index
    %c0_59 = arith.constant 0 : index
    %126 = vector.load %arg9[%c0_58, %c0_59] : memref<4x128xbf16, #tpu.memory_space<vmem>>, vector<4x128xbf16>
    %cst_60 = arith.constant dense<0.000000e+00> : vector<4x128xf32>
    %127 = tpu.matmul %126, %125, %cst_60 {dimension_numbers = #tpu.dot_dimension_numbers<[1], [1], [0], [0], [0, 0, 1, 0], [], []>} : vector<4x128xbf16>, vector<128x128xbf16>, vector<4x128xf32> -> vector<4x128xf32>
    %c0_61 = arith.constant 0 : index
    %c0_62 = arith.constant 0 : index
    %128 = vector.load %arg10[%c0_61, %c0_62] : memref<4x1xf32, #tpu.memory_space<vmem>>, vector<4x1xf32>
    %129 = vector.broadcast %128 : vector<4x1xf32> to vector<4x128xf32>
    %130 = arith.addf %127, %129 : vector<4x128xf32>
    %c0_63 = arith.constant 0 : index
    %c0_64 = arith.constant 0 : index
    %c0_65 = arith.constant 0 : index
    %131 = vector.load %arg11[%c0_63, %c0_64, %c0_65] : memref<1x4x128xf32, #tpu.memory_space<vmem>>, vector<1x4x128xf32>
    %132 = vector.shape_cast %131 : vector<1x4x128xf32> to vector<4x128xf32>
    %133 = vector.shape_cast %130 : vector<4x128xf32> to vector<1x4x128xf32>
    tpu.vector_store %arg11[%c0_63, %c0_64, %c0_65], %133 {strides = array<i32>} : memref<1x4x128xf32, #tpu.memory_space<vmem>>, vector<1x4x128xf32>,
    return
  }
  func.func @transform_0(%arg0: i32, %arg1: i32) -> (i32, i32, i32, i32) {
    %c0_i32 = arith.constant 0 : i32
    %c0_i32_0 = arith.constant 0 : i32
    %c0_i32_1 = arith.constant 0 : i32
    return %arg0, %arg1, %c0_i32, %c0_i32_0 : i32, i32, i32, i32
  }
  func.func @transform_1(%arg0: i32, %arg1: i32) -> (i32, i32) {
    %c0_i32 = arith.constant 0 : i32
    %c0_i32_0 = arith.constant 0 : i32
    %c0_i32_1 = arith.constant 0 : i32
    return %c0_i32, %c0_i32_0 : i32, i32
  }
  func.func @transform_2(%arg0: i32, %arg1: i32) -> (i32, i32) {
    %c0_i32 = arith.constant 0 : i32
    %c0_i32_0 = arith.constant 0 : i32
    %c0_i32_1 = arith.constant 0 : i32
    return %c0_i32, %c0_i32_0 : i32, i32
  }
  func.func @transform_3(%arg0: i32, %arg1: i32) -> (i32, i32, i32) {
    %c0_i32 = arith.constant 0 : i32
    %c0_i32_0 = arith.constant 0 : i32
    %c0_i32_1 = arith.constant 0 : i32
    %c0_i32_2 = arith.constant 0 : i32
    return %c0_i32, %c0_i32_0, %c0_i32_1 : i32, i32, i32
  }
  func.func @transform_4(%arg0: i32, %arg1: i32) -> (i32, i32, i32) {
    %c0_i32 = arith.constant 0 : i32
    %c0_i32_0 = arith.constant 0 : i32
    %c0_i32_1 = arith.constant 0 : i32
    %c0_i32_2 = arith.constant 0 : i32
    return %c0_i32, %c0_i32_0, %c0_i32_1 : i32, i32, i32
  }
  func.func @transform_5(%arg0: i32, %arg1: i32) -> (i32, i32, i32) {
    %c0_i32 = arith.constant 0 : i32
    %c0_i32_0 = arith.constant 0 : i32
    %c0_i32_1 = arith.constant 0 : i32
    %c0_i32_2 = arith.constant 0 : i32
    return %c0_i32, %c0_i32_0, %c0_i32_1 : i32, i32, i32
  }
  func.func @transform_6(%arg0: i32, %arg1: i32) -> (i32, i32, i32) {
    %c0_i32 = arith.constant 0 : i32
    %c0_i32_0 = arith.constant 0 : i32
    %c0_i32_1 = arith.constant 0 : i32
    %c0_i32_2 = arith.constant 0 : i32
    return %c0_i32, %c0_i32_0, %c0_i32_1 : i32, i32, i32
  }
  func.func @transform_7(%arg0: i32, %arg1: i32) -> (i32, i32) {
    %c0_i32 = arith.constant 0 : i32
    %c0_i32_0 = arith.constant 0 : i32
    %c0_i32_1 = arith.constant 0 : i32
    return %c0_i32, %c0_i32_0 : i32, i32
  }
  func.func @transform_8(%arg0: i32, %arg1: i32) -> (i32, i32) {
    %c0_i32 = arith.constant 0 : i32
    %c0_i32_0 = arith.constant 0 : i32
    %c0_i32_1 = arith.constant 0 : i32
    return %c0_i32, %c0_i32_0 : i32, i32
  }
  func.func @transform_9(%arg0: i32, %arg1: i32) -> (i32, i32, i32) {
    %c0_i32 = arith.constant 0 : i32
    %c0_i32_0 = arith.constant 0 : i32
    return %arg0, %c0_i32, %arg1 : i32, i32, i32
  }
}

</mosaic_0001>

<bundles_post_ra>
// kernel: fvae_decoder_forward.1
= control target key start
LH: loop header
LB: loop body
LE: loop exit
PB: predicated region body
PF: predicated region fallthrough
CT: control target
= control target key end

     0   :  { %s13224_s0 = inlined_call_operand.vmem [shape: bf16[2,1,144,4], index: 0, kind: input, shape index: {}]   ;;  %s13225_s1 = inlined_call_operand.vmem [shape: bf16[4,128], index: 1, kind: input, shape index: {}]   ;;  %s13226_s2 = inlined_call_operand.vmem [shape: f32[1,128], index: 2, kind: input, shape index: {}]   ;;  %s13227_s3 = inlined_call_operand.vmem [shape: bf16[3,640,256], index: 3, kind: input, shape index: {}]   ;;  %s13228_s4 = inlined_call_operand.vmem [shape: f32[3,1,256], index: 4, kind: input, shape index: {}]   ;;  %s13229_s5 = inlined_call_operand.vmem [shape: bf16[3,128,256], index: 5, kind: input, shape index: {}]   ;;  %s13230_s6 = inlined_call_operand.vmem [shape: f32[3,1,256], index: 6, kind: input, shape index: {}]   ;;  %s13231_s7 = inlined_call_operand.vmem [shape: bf16[4,128], index: 7, kind: input, shape index: {}]   ;;  %s13232_s8 = inlined_call_operand.vmem [shape: f32[4,1], index: 8, kind: input, shape index: {}]   ;;  %s13233_s9 = inlined_call_operand.hbm [shape: f32[2,4,128], index: 9, kind: output, shape index: {}]  }
   0x1   :  { %13323 = sst [smem:[#allocation53_spill]] %s13224_s0 }
   0x2   :  { %14 = vsyncpa [#allocation3], 0 }
   0x3   :  { %16 = vsyncpa [#allocation3 + $0x1], 0  ;;  %s8472_s30 = smov 0   ;;  %s8474_s10 = smov 0  }
   0x4   :  { %s8476_s11 = smov 0   ;;  %s8478_s12 = smov 0  }
   0x5   :  { %s8480_s13 = smov 0   ;;  %s8482_s14 = smov 0  }
   0x6 LB: > { %s6243_s15 = sadd.s32 4294967295, %s8419_s14   ;;  %s6244_s16 = sadd.s32 4294967294, %s8419_s14   ;;  %s8419_s14 = sphi %s8482_s14, %s22_s14   ;;  %s8415_s13 = sphi %s8480_s13, %s13585_s13   ;;  %s8411_s12 = sphi %s8478_s12, %s13584_s12   ;;  %s8407_s11 = sphi %s8476_s11, %s13583_s11   ;;  %s8403_s10 = sphi %s8474_s10, %s13582_s10   ;;  %s8399_s30 = sphi %s8472_s30, %s13581_s30  }
   0x7   : > { %s34_s17 = sadd.s32 1, %s8415_s13  ;;  %s239_s18 = sadd.s32 1, %s8407_s11 }
   0x8   : > { %p36_p0 = scmp.ge.s32.totalorder %s34_s17, 2  ;;  %p249_p1 = scmp.ne.s32.totalorder %s8407_s11, %s8403_s10 }
   0x9   : > { %p250_p2 = scmp.eq.s32.totalorder %s6243_s15, 1  ;;  %p255_p3 = scmp.ne.s32.totalorder %s8403_s10, %s8399_s30 }
   0xa   : > { %s13587_s17 = smov (%p36_p0, %s34_s17), 0  ;;  %p256_p5 = scmp.eq.s32.totalorder %s6244_s16, 1 }
   0xb   : > { %p8512_p4 = por %p250_p2, %p249_p1  ;;  %s234_s20 = ssub.s32 %s8415_s13, %s13587_s17 }
   0xc   : > { %p6247_p6 = scmp.ge.s32.totalorder %s8419_s14, 1  ;;  %p237_p7 = scmp.eq.s32.totalorder %s234_s20, 0 }
   0xd   : > { %p8519_p8 = por %p256_p5, %p255_p3  ;;  %p310_p9 = scmp.lt.s32.totalorder %s8419_s14, 3 }
   0xe   : > { %s8525_s22 = scalar_select %p237_p7, %s8407_s11, %s239_s18  }
   0xf   : > { %p311_p10 = pnand %p6247_p6, %p310_p9 }
  0x11   : > { %314 = sbr.rel (%p311_p10) target bundleno = 2708 (0xa94), region = 56 }
  0x16   : > { %v508_v0 = vld [vmem:[%s13225_s1] sm:$0x3]  ;;  %vm586_vm0 = vcmask 1041408   ;;  %p350_p11 = scmp.lt.s32.totalorder %s8411_s12, 1  ;;  %s13326_s0 = sld [smem:[#allocation53_spill]]  ;;  %vm558_vm1 = vcmask 31744  }
  0x17   : > { %v588_v1 = vsel %vm586_vm0, %v508_v0, 0  ;;  %v6481_v7 = vld [vmem:[%s13227_s3 + $0x170] sm:$0xf]  ;;  %v7725_v8 = vld [vmem:[%s13227_s3 + $0x174] sm:$0xf0]  ;;  %s347_s23 = sand.u32 1, %s8403_s10  }
  0x18   : > { %597 = vmatpush.bf16.msra.mxu0 %v588_v1  ;;  %s351_s25 = scalar_select %p350_p11, %s8411_s12, 1  ;;  %v6473_v9 = vld [vmem:[%s13227_s3 + $0x160] sm:$0xf]  ;;  %v6482_v10 = vor.u32 %v7725_v8, %v6481_v7  ;;  %v7723_v11 = vld [vmem:[%s13227_s3 + $0x164] sm:$0xf0]  ;;  %v362_v1 = vlaneseq }
  0x19   : > { %v6474_v12 = vor.u32 %v7723_v11, %v6473_v9  ;;  %v6465_v14 = vld [vmem:[%s13227_s3 + $0x150] sm:$0xf]  ;;  %v7721_v15 = vld [vmem:[%s13227_s3 + $0x154] sm:$0xf0]  ;;  %v6457_v19 = vld [vmem:[%s13227_s3 + $0x140] sm:$0xf] }
  0x1a   : > { %s7958_s26 = smul.u32 72, %s351_s25  ;;  %1449 = vmatpush.bf16.msra.mxu3 %v6482_v10  ;;  %v6545_v16 = vld [vmem:[%s13227_s3 + $0x1f0] sm:$0xf]  ;;  %v6466_v17 = vor.u32 %v7721_v15, %v6465_v14  ;;  %v7741_v18 = vld [vmem:[%s13227_s3 + $0x1f4] sm:$0xf0]  ;;  %s6248_s24 = sshll.u32 %s347_s23, 2 }
  0x1b   : > { %v7719_v20 = vld [vmem:[%s13227_s3 + $0x144] sm:$0xf0]  ;;  %v6546_v21 = vor.u32 %v7741_v18, %v6545_v16  ;;  %v6537_v22 = vld [vmem:[%s13227_s3 + $0x1e0] sm:$0xf]  ;;  %v6449_v26 = vld [vmem:[%s13227_s3 + $0x130] sm:$0xf] }
  0x1c   : > { %s8535_s29 = scalar_lea.vmem %s13326_s0, %s7958_s26  ;;  %v7739_v23 = vld [vmem:[%s13227_s3 + $0x1e4] sm:$0xf0]  ;;  %v6458_v24 = vor.u32 %v7719_v20, %v6457_v19  ;;  %v7717_v27 = vld [vmem:[%s13227_s3 + $0x134] sm:$0xf0]  ;;  %v6529_v29 = vld [vmem:[%s13227_s3 + $0x1d0] sm:$0xf] }
  0x1d   : > { %v7669_v2 = vld [vmem:[%s8535_s29] sm:$0xff]  ;;  %v7670_v3 = vld [vmem:[%s8535_s29 + $0x8] sm:$0xff]  ;;  %v7671_v4 = vld [vmem:[%s8535_s29 + $0x10] sm:$0xff]  ;;  %1503 = vmatpush.bf16.msrb.mxu0 %v6546_v21  ;;  %v6538_v25 = vor.u32 %v7739_v23, %v6537_v22  ;;  %v6450_v28 = vor.u32 %v7717_v27, %v6449_v26  ;;  %s7666_s0 = sshll.u32 %s8411_s12, 2  ;;  %s349_s28 = scalar_lea.vmem [#allocation2], %s6248_s24 }
  0x1e   : > { %6286 = vmatmul.msk.bf16.vlgmr.msra.gmra.mxu0 %vm558_vm1, %v7669_v2  ;;  %v7672_v5 = vld [vmem:[%s8535_s29 + $0x18] sm:$0xff]  ;;  %v7673_v6 = vld [vmem:[%s8535_s29 + $0x20] sm:$0xff]  ;;  %1450 = vmatpush.bf16.msra.mxu3 %v6474_v12  ;;  %v7674_v13 = vld [vmem:[%s8535_s29 + $0x28] sm:$0xff]  ;;  %s6161_s27 = scalar_lea.hbm %s13233_s9, %s7666_s0  ;;  %s6163_s15 = sshll.u32 %s349_s28, 4  ;;  %s6164_s15 = int_to_ptr.vmem [resolvable:$true] %s6163_s15 }
  0x1f   : > { %v7737_v30 = vld [vmem:[%s13227_s3 + $0x1d4] sm:$0xf0]  ;;  %v7675_v31 = vld [vmem:[%s8535_s29 + $0x30] sm:$0xff]  ;;  %v6441_v33 = vld [vmem:[%s13227_s3 + $0x120] sm:$0xf]  ;;  %s6150_s16 = scalar_lea.sflag [#allocation3], %s347_s23 }
  0x20   : > { %v6530_v32 = vor.u32 %v7737_v30, %v6529_v29  ;;  %v7715_v34 = vld [vmem:[%s13227_s3 + $0x124] sm:$0xf0]  ;;  %v6521_v36 = vld [vmem:[%s13227_s3 + $0x1c0] sm:$0xf]  ;;  %v6433_v39 = vld [vmem:[%s13227_s3 + $0x110] sm:$0xf] }
  0x21   : > { %1504 = vmatpush.bf16.msrb.mxu0 %v6538_v25  ;;  %v6442_v35 = vor.u32 %v7715_v34, %v6441_v33  ;;  %v7735_v37 = vld [vmem:[%s13227_s3 + $0x1c4] sm:$0xf0]  ;;  %v7713_v40 = vld [vmem:[%s13227_s3 + $0x114] sm:$0xf0]  ;;  %v6513_v42 = vld [vmem:[%s13227_s3 + $0x1b0] sm:$0xf] }
  0x22   : > { %1451 = vmatpush.bf16.msra.mxu3 %v6466_v17  ;;  %v6522_v38 = vor.u32 %v7735_v37, %v6521_v36  ;;  %v6434_v41 = vor.u32 %v7713_v40, %v6433_v39  ;;  %v7733_v43 = vld [vmem:[%s13227_s3 + $0x1b4] sm:$0xf0]  ;;  %v6425_v45 = vld [vmem:[%s13227_s3 + $0x100] sm:$0xf]  ;;  %v7711_v46 = vld [vmem:[%s13227_s3 + $0x104] sm:$0xf0] }
  0x23   : > { %v6514_v44 = vor.u32 %v7733_v43, %v6513_v42  ;;  %v6426_v47 = vor.u32 %v7711_v46, %v6425_v45  ;;  %v6505_v48 = vld [vmem:[%s13227_s3 + $0x1a0] sm:$0xf]  ;;  %v7731_v49 = vld [vmem:[%s13227_s3 + $0x1a4] sm:$0xf0]  ;;  %v6497_v51 = vld [vmem:[%s13227_s3 + $0x190] sm:$0xf] }
  0x24   : > { %v6506_v50 = vor.u32 %v7731_v49, %v6505_v48  ;;  %v7729_v52 = vld [vmem:[%s13227_s3 + $0x194] sm:$0xf0]  ;;  %v6489_v55 = vld [vmem:[%s13227_s3 + $0x180] sm:$0xf]  ;;  %v7727_v56 = vld [vmem:[%s13227_s3 + $0x184] sm:$0xf0] }
  0x25   : > { %1505 = vmatpush.bf16.msrb.mxu0 %v6530_v32  ;;  %v7676_v53 = vld [vmem:[%s8535_s29 + $0x38] sm:$0xff]  ;;  %v6498_v54 = vor.u32 %v7729_v52, %v6497_v51  ;;  %v6490_v57 = vor.u32 %v7727_v56, %v6489_v55  ;;  %v7677_v58 = vld [vmem:[%s8535_s29 + $0x40] sm:$0xff]  ;;  %s6165_s29 = sshll.u32 %s6161_s27, 4  ;;  %s8361_s0 = scalar_lea.hbm %s13233_s9, 8  ;;  %s6166_s29 = int_to_ptr.hbm [resolvable:$true] %s6165_s29 }
  0x26   : > { %1452 = vmatpush.bf16.msra.mxu3 %v6458_v24  ;;  %v8653_v60 = vld [vmem:[%s13226_s2] ss:$0 sm:$0xff]  ;;  %s8355_s18 = sshra.s32 %s6166_s29, 4  ;;  %s8356_s18 = int_to_ptr.hbm [resolvable:$true] %s8355_s18 }
  0x27   : > { %s8357_s20 = scalar_lea.hbm %s8356_s18, 4  ;;  %p8362_p1 = scmp.lt.s32.totalorder %s8356_s18, %s13233_s9 }
  0x28   : > { %p8358_p12 = scmp.ne.s32.totalorder %s8356_s18, %s8357_s20  ;;  %p8363_p2 = scmp.lt.s32.totalorder %s8361_s0, %s8357_s20 }
  0x29   : > { %1506 = vmatpush.bf16.msrb.mxu0 %v6522_v38 }
  0x2a   : > { %1453 = vmatpush.bf16.msra.mxu3 %v6450_v28  ;;  %p8359_p13 = pnand %p8358_p12, %p8512_p4  ;;  %p8364_p3 = por %p8363_p2, %p8362_p1 }
  0x2c   : > { %p8360_p0 = pneg %p8359_p13 }
  0x2d   : > { %1507 = vmatpush.bf16.msrb.mxu0 %v6514_v44 }
  0x2e   : > { %6287 = vmatmul.msk.bf16.gmra.mxu0 %vm558_vm1, %v7670_v3  ;;  %1454 = vmatpush.bf16.msra.mxu3 %v6442_v35  ;;  %v8670_v3 = vshrl.u32 %v362_v1, 7  ;;  %p8365_p5 = pnand %p8364_p3, %p8360_p0 }
  0x30   : > { %13329 = vst [vmem:[#allocation7_spill] sm:$0xff] %v8670_v3  ;;  %vm754_vm2 = vcmp.lt.s32.totalorder %v8670_v3, 7  ;;  %vm791_vm3 = vcmp.lt.s32.totalorder %v8670_v3, 6  ;;  %vm680_vm4 = vcmp.lt.s32.totalorder %v8670_v3, 2  ;;  %vm717_vm5 = vcmp.lt.s32.totalorder %v8670_v3, 1 }
  0x31   : > { %1508 = vmatpush.bf16.msrb.mxu0 %v6506_v50 }
  0x32   : > { %1455 = vmatpush.bf16.msra.mxu3 %v6434_v41 }
  0x35   : > { %1509 = vmatpush.bf16.msrb.mxu0 %v6498_v54 }
  0x36   : > { %1456 = vmatpush.bf16.msra.mxu3 %v6426_v47 }
  0x39   : > { %1510 = vmatpush.bf16.msrb.mxu0 %v6490_v57 }
  0x3e   : > { %6288 = vmatmul.msk.bf16.gmra.mxu0 %vm558_vm1, %v7671_v4 }
  0x4e   : > { %6289 = vmatmul.msk.bf16.gmra.mxu0 %vm558_vm1, %v7672_v5 }
  0x5e   : > { %6290 = vmatmul.msk.bf16.gmra.mxu0 %vm558_vm1, %v7673_v6 }
  0x6e   : > { %6291 = vmatmul.msk.bf16.gmra.mxu0 %vm558_vm1, %v7674_v13 }
  0x7e   : > { %6292 = vmatmul.msk.bf16.gmra.mxu0 %vm558_vm1, %v7675_v31 }
  0x8e   : > { %6293 = vmatmul.msk.bf16.gmra.mxu0 %vm558_vm1, %v7676_v53 }
  0x9b   : > { %v599_v59 = vpop.f32.mrf.mxu0 }
  0x9c   : > { %v8657_v61 = vadd.f32 %v8653_v60, %v599_v59 }
  0x9e   : > { %6294 = vmatmul.msk.bf16.gmra.mxu0 %vm558_vm1, %v7677_v58  ;;  %13327 = vst [vmem:[#allocation5_spill] sm:$0xff] %v8657_v61  ;;  %v8660_v63 = vmul.f32 0.0, %v8657_v61 }
  0xa0   : > { %v13237_v7 = vrot.slane %v8660_v63, 1 }
  0xa3   : > { %v601_v62 = vpop.f32.mrf.mxu0 }
  0xa4   : > { %v8663_v0 = vadd.f32 %v8653_v60, %v601_v62 }
  0xa6   : > { %13328 = vst [vmem:[#allocation6_spill] sm:$0xff] %v8663_v0  ;;  %v8667_v2 = vpack.c.bf16 %v8663_v0, %v8660_v63  ;;  %v737_v6 = vrot.slane %v8663_v0, 1 }
  0xa8   : > { %1457 = vmatmul.bf16.vlgmr.msra.gmra.mxu3 %v8667_v2  ;;  %v771_v10 = vsel %vm754_vm2, %v13237_v7, %v737_v6 }
  0xab   : > { %v604_v4 = vpop.f32.mrf.mxu0 }
  0xac   : > { %v8673_v5 = vadd.f32 %v8653_v60, %v604_v4 }
  0xae   : > { %13330 = vst [vmem:[#allocation8_spill] sm:$0xff] %v8673_v5  ;;  %v738_v8 = vrot.slane %v8673_v5, 1  ;;  %v13234_v23 = vrot.slane %v8673_v5, 2 }
  0xb0   : > { %v770_v9 = vsel %vm754_vm2, %v737_v6, %v738_v8 }
  0xb1   : > { %v8685_v11 = vpack.c.bf16 %v770_v9, %v771_v10 }
  0xb3   : > { %v606_v12 = vpop.f32.mrf.mxu0  ;;  %1511 = vmatmul.bf16.vlgmr.msrb.gmra.mxu0 %v8685_v11 }
  0xb4   : > { %v8689_v13 = vadd.f32 %v8653_v60, %v606_v12 }
  0xb6   : > { %13331 = vst [vmem:[#allocation9_spill] sm:$0xff] %v8689_v13  ;;  %v8692_v14 = vmul.f32 0.0, %v8689_v13 }
  0xb8   : > { %v8696_v15 = vpack.c.bf16 %v8692_v14, %v8673_v5  ;;  %v739_v18 = vrot.slane %v8692_v14, 1  ;;  %v776_v19 = vrot.slane %v8692_v14, 2  ;;  %v13236_v21 = vrot.slane %v8692_v14, 6 }
  0xb9   : > { %v13235_v22 = vrot.slane %v8692_v14, 7 }
  0xba   : > { %1462 = vmatmul.bf16.gmra.mxu3 %v8696_v15  ;;  %v769_v28 = vsel %vm754_vm2, %v738_v8, %v739_v18  ;;  %v806_v29 = vsel %vm791_vm3, %v13234_v23, %v776_v19 }
  0xbb   : > { %v609_v16 = vpop.f32.mrf.mxu0 }
  0xbc   : > { %v8700_v17 = vadd.f32 %v8653_v60, %v609_v16 }
  0xbe   : > { %13332 = vst [vmem:[#allocation10_spill] sm:$0xff] %v8700_v17  ;;  %v648_v20 = vmul.f32 0.0, %v8700_v17 }
  0xc0   : > { %v740_v24 = vrot.slane %v648_v20, 1  ;;  %v666_v25 = vrot.slane %v648_v20, 6  ;;  %v703_v26 = vrot.slane %v648_v20, 7  ;;  %v777_v27 = vrot.slane %v648_v20, 2 }
  0xc2   : > { %v768_v30 = vsel %vm754_vm2, %v739_v18, %v740_v24  ;;  %v694_v31 = vsel %vm680_vm4, %v13236_v21, %v666_v25  ;;  %v731_v32 = vsel %vm717_vm5, %v13235_v22, %v703_v26  ;;  %v805_v33 = vsel %vm791_vm3, %v776_v19, %v777_v27 }
  0xc3   : > { %v611_v34 = vpop.f32.mrf.mxu0  ;;  %v8729_v35 = vpack.c.bf16 %v768_v30, %v769_v28  ;;  %v8731_v36 = vpack.c.bf16 %v805_v33, %v806_v29 }
  0xc4   : > { %v8734_v37 = vadd.f32 %v8653_v60, %v611_v34 }
  0xc5   : > { %1516 = vmatmul.bf16.gmra.mxu0 %v8729_v35 }
  0xc6   : > { %13333 = vst [vmem:[#allocation11_spill] sm:$0xff] %v8734_v37  ;;  %v649_v38 = vmul.f32 0.0, %v8734_v37 }
  0xc8   : > { %v8738_v39 = vpack.c.bf16 %v649_v38, %v648_v20  ;;  %v667_v40 = vrot.slane %v649_v38, 6  ;;  %v704_v41 = vrot.slane %v649_v38, 7  ;;  %v778_v42 = vrot.slane %v649_v38, 2 }
  0xc9   : > { %v741_v50 = vrot.slane %v649_v38, 1 }
  0xca   : > { %1467 = vmatmul.bf16.gmra.mxu3 %v8738_v39  ;;  %v693_v43 = vsel %vm680_vm4, %v666_v25, %v667_v40  ;;  %v730_v44 = vsel %vm717_vm5, %v703_v26, %v704_v41  ;;  %v804_v48 = vsel %vm791_vm3, %v777_v27, %v778_v42 }
  0xcb   : > { %v614_v45 = vpop.f32.mrf.mxu0  ;;  %v8745_v46 = vpack.c.bf16 %v693_v43, %v694_v31  ;;  %v8747_v47 = vpack.c.bf16 %v730_v44, %v731_v32  ;;  %v767_v56 = vsel %vm754_vm2, %v740_v24, %v741_v50 }
  0xcc   : > { %v8752_v49 = vadd.f32 %v8653_v60, %v614_v45 }
  0xce   : > { %13334 = vst [vmem:[#allocation12_spill] sm:$0xff] %v8752_v49  ;;  %v650_v51 = vmul.f32 0.0, %v8752_v49 }
  0xd0   : > { %v742_v52 = vrot.slane %v650_v51, 1  ;;  %v668_v53 = vrot.slane %v650_v51, 6  ;;  %v705_v54 = vrot.slane %v650_v51, 7  ;;  %v779_v55 = vrot.slane %v650_v51, 2 }
  0xd2   : > { %v766_v57 = vsel %vm754_vm2, %v741_v50, %v742_v52  ;;  %v692_v58 = vsel %vm680_vm4, %v667_v40, %v668_v53  ;;  %v729_v59 = vsel %vm717_vm5, %v704_v41, %v705_v54  ;;  %v803_v62 = vsel %vm791_vm3, %v778_v42, %v779_v55 }
  0xd3   : > { %v616_v1 = vpop.f32.mrf.mxu0  ;;  %v8765_v4 = vpack.c.bf16 %v766_v57, %v767_v56  ;;  %v8767_v6 = vpack.c.bf16 %v803_v62, %v804_v48  ;;  %v7693_v62 = vld [vmem:[%s13227_s3 + $0x74] sm:$0xf0] }
  0xd4   : > { %v8770_v8 = vadd.f32 %v8653_v60, %v616_v1  ;;  %v6417_v1 = vld [vmem:[%s13227_s3 + $0xf0] sm:$0xf] }
  0xd5   : > { %1521 = vmatmul.bf16.gmra.mxu0 %v8765_v4 }
  0xd6   : > { %13335 = vst [vmem:[#allocation13_spill] sm:$0xff] %v8770_v8  ;;  %v651_v9 = vmul.f32 0.0, %v8770_v8 }
  0xd8   : > { %v8774_v10 = vpack.c.bf16 %v651_v9, %v650_v51  ;;  %v669_v12 = vrot.slane %v651_v9, 6  ;;  %v706_v16 = vrot.slane %v651_v9, 7  ;;  %v780_v18 = vrot.slane %v651_v9, 2 }
  0xd9   : > { %v743_v29 = vrot.slane %v651_v9, 1 }
  0xda   : > { %1472 = vmatmul.bf16.gmra.mxu3 %v8774_v10  ;;  %v691_v19 = vsel %vm680_vm4, %v668_v53, %v669_v12  ;;  %v728_v20 = vsel %vm717_vm5, %v705_v54, %v706_v16  ;;  %v802_v27 = vsel %vm791_vm3, %v779_v55, %v780_v18 }
  0xdb   : > { %v619_v24 = vpop.f32.mrf.mxu0  ;;  %v8781_v25 = vpack.c.bf16 %v691_v19, %v692_v58  ;;  %v8783_v26 = vpack.c.bf16 %v728_v20, %v729_v59  ;;  %v765_v38 = vsel %vm754_vm2, %v742_v52, %v743_v29  ;;  %v6353_v59 = vld [vmem:[%s13227_s3 + $0x70] sm:$0xf]  ;;  %v7709_v20 = vld [vmem:[%s13227_s3 + $0xf4] sm:$0xf0] }
  0xdc   : > { %v8788_v28 = vadd.f32 %v8653_v60, %v619_v24  ;;  %v6354_v19 = vor.u32 %v7693_v62, %v6353_v59  ;;  %v6418_v24 = vor.u32 %v7709_v20, %v6417_v1  ;;  %v6337_v1 = vld [vmem:[%s13227_s3 + $0x50] sm:$0xf] }
  0xde   : > { %13336 = vst [vmem:[#allocation14_spill] sm:$0xff] %v8788_v28  ;;  %v652_v30 = vmul.f32 0.0, %v8788_v28  ;;  %1341 = vmatpush.bf16.msra.mxu1 %v6354_v19  ;;  %1395 = vmatpush.bf16.msra.mxu2 %v6418_v24  ;;  %v7689_v19 = vld [vmem:[%s13227_s3 + $0x54] sm:$0xf0] }
  0xdf   : > { %v6338_v20 = vor.u32 %v7689_v19, %v6337_v1  ;;  %v7705_v24 = vld [vmem:[%s13227_s3 + $0xd4] sm:$0xf0] }
  0xe0   : > { %v744_v31 = vrot.slane %v652_v30, 1  ;;  %v670_v32 = vrot.slane %v652_v30, 6  ;;  %v707_v33 = vrot.slane %v652_v30, 7  ;;  %v781_v34 = vrot.slane %v652_v30, 2 }
  0xe2   : > { %v764_v40 = vsel %vm754_vm2, %v743_v29, %v744_v31  ;;  %v690_v41 = vsel %vm680_vm4, %v669_v12, %v670_v32  ;;  %v727_v42 = vsel %vm717_vm5, %v706_v16, %v707_v33  ;;  %v801_v43 = vsel %vm791_vm3, %v780_v18, %v781_v34 }
  0xe3   : > { %v621_v44 = vpop.f32.mrf.mxu0  ;;  %v8801_v45 = vpack.c.bf16 %v764_v40, %v765_v38  ;;  %v8803_v48 = vpack.c.bf16 %v801_v43, %v802_v27  ;;  %v7707_v38 = vld [vmem:[%s13227_s3 + $0xe4] sm:$0xf0] }
  0xe4   : > { %v8806_v50 = vadd.f32 %v8653_v60, %v621_v44 }
  0xe5   : > { %1526 = vmatmul.bf16.gmra.mxu0 %v8801_v45 }
  0xe6   : > { %13337 = vst [vmem:[#allocation15_spill] sm:$0xff] %v8806_v50  ;;  %v653_v51 = vmul.f32 0.0, %v8806_v50 }
  0xe8   : > { %v8810_v52 = vpack.c.bf16 %v653_v51, %v652_v30  ;;  %v671_v53 = vrot.slane %v653_v51, 6  ;;  %v708_v54 = vrot.slane %v653_v51, 7  ;;  %v782_v55 = vrot.slane %v653_v51, 2  ;;  %v6345_v30 = vld [vmem:[%s13227_s3 + $0x60] sm:$0xf] }
  0xe9   : > { %v745_v29 = vrot.slane %v653_v51, 1 }
  0xea   : > { %1477 = vmatmul.bf16.gmra.mxu3 %v8810_v52  ;;  %v689_v56 = vsel %vm680_vm4, %v670_v32, %v671_v53  ;;  %v726_v57 = vsel %vm717_vm5, %v707_v33, %v708_v54  ;;  %v800_v16 = vsel %vm791_vm3, %v781_v34, %v782_v55  ;;  %v7691_v32 = vld [vmem:[%s13227_s3 + $0x64] sm:$0xf0]  ;;  %v6409_v34 = vld [vmem:[%s13227_s3 + $0xe0] sm:$0xf] }
  0xeb   : > { %v624_v58 = vpop.f32.mrf.mxu0  ;;  %v8826_v9 = vpack.c.bf16 %v689_v56, %v690_v41  ;;  %v8828_v12 = vpack.c.bf16 %v726_v57, %v727_v42  ;;  %v6346_v33 = vor.u32 %v7691_v32, %v6345_v30  ;;  %v6410_v41 = vor.u32 %v7707_v38, %v6409_v34  ;;  %v7703_v38 = vld [vmem:[%s13227_s3 + $0xc4] sm:$0xf0] }
  0xec   : > { %v8833_v18 = vadd.f32 %v8653_v60, %v624_v58  ;;  %v763_v56 = vsel %vm754_vm2, %v744_v31, %v745_v29  ;;  %v6401_v31 = vld [vmem:[%s13227_s3 + $0xd0] sm:$0xf] }
  0xed   : > { %1342 = vmatpush.bf16.msra.mxu1 %v6346_v33  ;;  %1396 = vmatpush.bf16.msra.mxu2 %v6410_v41  ;;  %v6402_v30 = vor.u32 %v7705_v24, %v6401_v31  ;;  %v7687_v33 = vld [vmem:[%s13227_s3 + $0x44] sm:$0xf0] }
  0xee   : > { %13338 = vst [vmem:[#allocation16_spill] sm:$0xff] %v8833_v18  ;;  %v8839_v27 = vmul.f32 0.0, %v8833_v18 }
  0xf0   : > { %v746_v40 = vrot.slane %v8839_v27, 1  ;;  %v672_v42 = vrot.slane %v8839_v27, 6  ;;  %v709_v43 = vrot.slane %v8839_v27, 7  ;;  %v783_v44 = vrot.slane %v8839_v27, 2 }
  0xf1   : > { %1343 = vmatpush.bf16.msra.mxu1 %v6338_v20  ;;  %1397 = vmatpush.bf16.msra.mxu2 %v6402_v30  ;;  %v6321_v30 = vld [vmem:[%s13227_s3 + $0x30] sm:$0xf] }
  0xf2   : > { %v762_v51 = vsel %vm754_vm2, %v745_v29, %v746_v40  ;;  %v688_v57 = vsel %vm680_vm4, %v671_v53, %v672_v42  ;;  %v725_v58 = vsel %vm717_vm5, %v708_v54, %v709_v43  ;;  %v799_v53 = vsel %vm791_vm3, %v782_v55, %v783_v44  ;;  %v6329_v55 = vld [vmem:[%s13227_s3 + $0x40] sm:$0xf] }
  0xf3   : > { %v626_v59 = vpop.f32.mrf.mxu0  ;;  %v8867_v62 = vpack.c.bf16 %v762_v51, %v763_v56  ;;  %v8886_v29 = vpack.c.bf16 %v799_v53, %v800_v16  ;;  %v6330_v34 = vor.u32 %v7687_v33, %v6329_v55  ;;  %v6393_v16 = vld [vmem:[%s13227_s3 + $0xc0] sm:$0xf]  ;;  %v7708_v56 = vld [vmem:[%s13227_s3 + $0xf4] sm:$0xf]  ;;  %v7685_v55 = vld [vmem:[%s13227_s3 + $0x34] sm:$0xf0] }
  0xf4   : > { %v8881_v54 = vadd.f32 %v8653_v60, %v626_v59  ;;  %v6394_v51 = vor.u32 %v7703_v38, %v6393_v16  ;;  %v6419_v59 = vld [vmem:[%s13227_s3 + $0xf8] sm:$0xf0]  ;;  %v6385_v33 = vld [vmem:[%s13227_s3 + $0xb0] sm:$0xf] }
  0xf5   : > { %13339 = vst [vmem:[#allocation17_spill] sm:$0xff] %v8867_v62  ;;  %1531 = vmatmul.bf16.gmra.mxu0 %v8867_v62  ;;  %v6422_v19 = vor.u32 %v7708_v56, %v6419_v59  ;;  %1344 = vmatpush.bf16.msra.mxu1 %v6330_v34  ;;  %v7701_v56 = vld [vmem:[%s13227_s3 + $0xb4] sm:$0xf0]  ;;  %v7706_v59 = vld [vmem:[%s13227_s3 + $0xe4] sm:$0xf] }
  0xf6   : > { %13340 = vst [vmem:[#allocation18_spill] sm:$0xff] %v8881_v54  ;;  %v8890_v32 = vmul.f32 0.0, %v8881_v54  ;;  %1398 = vmatpush.bf16.msra.mxu2 %v6394_v51  ;;  %v6322_v51 = vor.u32 %v7685_v55, %v6321_v30  ;;  %v6313_v30 = vld [vmem:[%s13227_s3 + $0x20] sm:$0xf]  ;;  %v7683_v55 = vld [vmem:[%s13227_s3 + $0x24] sm:$0xf0] }
  0xf7   : > { %13341 = vst [vmem:[#allocation19_spill] sm:$0xff] %v8886_v29  ;;  %1665 = vmatpush.bf16.msrb.mxu3 %v6422_v19  ;;  %v6386_v19 = vor.u32 %v7701_v56, %v6385_v33  ;;  %v6377_v33 = vld [vmem:[%s13227_s3 + $0xa0] sm:$0xf]  ;;  %v7704_v56 = vld [vmem:[%s13227_s3 + $0xd4] sm:$0xf] }
  0xf8   : > { %v8906_v41 = vpack.c.bf16 %v8890_v32, %v8839_v27  ;;  %v673_v1 = vrot.slane %v8890_v32, 6  ;;  %v710_v31 = vrot.slane %v8890_v32, 7  ;;  %v784_v53 = vrot.slane %v8890_v32, 2  ;;  %v7681_v27 = vld [vmem:[%s13227_s3 + $0x14] sm:$0xf0] }
  0xf9   : > { %1345 = vmatpush.bf16.msra.mxu1 %v6322_v51 }
  0xfa   : > { %1482 = vmatmul.bf16.gmra.mxu3 %v8906_v41  ;;  %v687_v20 = vsel %vm680_vm4, %v672_v42, %v673_v1  ;;  %v724_v42 = vsel %vm717_vm5, %v709_v43, %v710_v31  ;;  %v798_v34 = vsel %vm791_vm3, %v783_v44, %v784_v53  ;;  %1399 = vmatpush.bf16.msra.mxu2 %v6386_v19 }
  0xfb   : > { %v629_v24 = vpop.f32.mrf.mxu0  ;;  %v8929_v16 = vpack.c.bf16 %v687_v20, %v688_v57  ;;  %v6411_v57 = vld [vmem:[%s13227_s3 + $0xe8] sm:$0xf0]  ;;  %v8947_v43 = vpack.c.bf16 %v724_v42, %v725_v58  ;;  %v6314_v58 = vor.u32 %v7683_v55, %v6313_v30 }
  0xfc   : > { %v8936_v38 = vadd.f32 %v8653_v60, %v629_v24  ;;  %v6414_v44 = vor.u32 %v7706_v59, %v6411_v57  ;;  %v747_v24 = vrot.slane %v8890_v32, 1  ;;  %v7699_v32 = vld [vmem:[%s13227_s3 + $0xa4] sm:$0xf0]  ;;  %v6403_v59 = vld [vmem:[%s13227_s3 + $0xd8] sm:$0xf0] }
  0xfd   : > { %v6378_v51 = vor.u32 %v7699_v32, %v6377_v33  ;;  %v6406_v19 = vor.u32 %v7704_v56, %v6403_v59  ;;  %1346 = vmatpush.bf16.msra.mxu1 %v6314_v58  ;;  %v6305_v59 = vld [vmem:[%s13227_s3 + $0x10] sm:$0xf] }
  0xfe   : > { %13342 = vst [vmem:[#allocation20_spill] sm:$0xff] %v8936_v38  ;;  %v8950_v20 = vmul.f32 0.0, %v8936_v38  ;;  %1666 = vmatpush.bf16.msrb.mxu3 %v6414_v44  ;;  %v761_v33 = vsel %vm754_vm2, %v746_v40, %v747_v24  ;;  %v6369_v40 = vld [vmem:[%s13227_s3 + $0x90] sm:$0xf] }
  0xff   : > { %1400 = vmatpush.bf16.msra.mxu2 %v6378_v51  ;;  %v6306_v51 = vor.u32 %v7681_v27, %v6305_v59  ;;  %v7702_v59 = vld [vmem:[%s13227_s3 + $0xc4] sm:$0xf]  ;;  %v6395_v27 = vld [vmem:[%s13227_s3 + $0xc8] sm:$0xf0] }
 0x100   : > { %v13238_v42 = vrot.slane %v8950_v20, 1  ;;  %v674_v57 = vrot.slane %v8950_v20, 6  ;;  %v711_v44 = vrot.slane %v8950_v20, 7  ;;  %v785_v30 = vrot.slane %v8950_v20, 2 }
 0x101   : > { %1347 = vmatpush.bf16.msra.mxu1 %v6306_v51  ;;  %v6398_v21 = vor.u32 %v7702_v59, %v6395_v27  ;;  %v7695_v51 = vld [vmem:[%s13227_s3 + $0x84] sm:$0xf0]  ;;  %v7700_v59 = vld [vmem:[%s13227_s3 + $0xb4] sm:$0xf] }
 0x102   : > { %v760_v55 = vsel %vm754_vm2, %v747_v24, %v13238_v42  ;;  %v686_v32 = vsel %vm680_vm4, %v673_v1, %v674_v57  ;;  %1667 = vmatpush.bf16.msrb.mxu3 %v6406_v19  ;;  %v723_v1 = vsel %vm717_vm5, %v710_v31, %v711_v44  ;;  %v797_v24 = vsel %vm791_vm3, %v784_v53, %v785_v30  ;;  %v7697_v19 = vld [vmem:[%s13227_s3 + $0x94] sm:$0xf0] }
 0x103   : > { %v631_v23 = vpop.f32.mrf.mxu0  ;;  %v8985_v56 = vpack.c.bf16 %v760_v55, %v761_v33  ;;  %v7724_v55 = vld [vmem:[%s13227_s3 + $0x174] sm:$0xf]  ;;  %v6483_v33 = vld [vmem:[%s13227_s3 + $0x178] sm:$0xf0]  ;;  %v9012_v31 = vpack.c.bf16 %v797_v24, %v798_v34  ;;  %v6370_v53 = vor.u32 %v7697_v19, %v6369_v40  ;;  %v6297_v34 = vld [vmem:[%s13227_s3] sm:$0xf] }
 0x104   : > { %v9001_v58 = vadd.f32 %v8653_v60, %v631_v23  ;;  %v6486_v23 = vor.u32 %v7724_v55, %v6483_v33  ;;  %v7679_v40 = vld [vmem:[%s13227_s3 + $0x4] sm:$0xf0]  ;;  %v6361_v19 = vld [vmem:[%s13227_s3 + $0x80] sm:$0xf]  ;;  %v7722_v55 = vld [vmem:[%s13227_s3 + $0x164] sm:$0xf] }
 0x105   : > { %13343 = vst [vmem:[#allocation21_spill] sm:$0xff] %v8985_v56  ;;  %1536 = vmatmul.bf16.gmra.mxu0 %v8985_v56  ;;  %1401 = vmatpush.bf16.msra.mxu2 %v6370_v53  ;;  %v6298_v24 = vor.u32 %v7679_v40, %v6297_v34  ;;  %v6362_v53 = vor.u32 %v7695_v51, %v6361_v19  ;;  %v6387_v40 = vld [vmem:[%s13227_s3 + $0xb8] sm:$0xf0] }
 0x106   : > { %13344 = vst [vmem:[#allocation22_spill] sm:$0xff] %v9001_v58  ;;  %v9022_v22 = vmul.f32 0.0, %v9001_v58  ;;  %1719 = vmatpush.bf16.msra.mxu0 %v6486_v23  ;;  %1668 = vmatpush.bf16.msrb.mxu3 %v6398_v21  ;;  %v6475_v23 = vld [vmem:[%s13227_s3 + $0x168] sm:$0xf0]  ;;  %v6390_v19 = vor.u32 %v7700_v59, %v6387_v40 }
 0x107   : > { %v6478_v34 = vor.u32 %v7722_v55, %v6475_v23  ;;  %1348 = vmatpush.bf16.msra.mxu1 %v6298_v24  ;;  %v7720_v55 = vld [vmem:[%s13227_s3 + $0x154] sm:$0xf]  ;;  %v6467_v23 = vld [vmem:[%s13227_s3 + $0x158] sm:$0xf0] }
 0x108   : > { %v9041_v33 = vpack.c.bf16 %v9022_v22, %v8950_v20  ;;  %v675_v27 = vrot.slane %v9022_v22, 6  ;;  %v712_v7 = vrot.slane %v9022_v22, 7  ;;  %v786_v21 = vrot.slane %v9022_v22, 2 }
 0x109   : > { %1402 = vmatpush.bf16.msra.mxu2 %v6362_v53  ;;  %v6470_v53 = vor.u32 %v7720_v55, %v6467_v23  ;;  %v7696_v23 = vld [vmem:[%s13227_s3 + $0x94] sm:$0xf] }
 0x10a   : > { %1487 = vmatmul.bf16.gmra.mxu3 %v9041_v33  ;;  %v685_v51 = vsel %vm680_vm4, %v674_v57, %v675_v27  ;;  %1720 = vmatpush.bf16.msra.mxu0 %v6478_v34  ;;  %v722_v24 = vsel %vm717_vm5, %v711_v44, %v712_v7  ;;  %v796_v59 = vsel %vm791_vm3, %v785_v30, %v786_v21  ;;  %v7698_v34 = vld [vmem:[%s13227_s3 + $0xa4] sm:$0xf]  ;;  %v749_v30 = vrot.slane %v9022_v22, 1  ;;  %v6371_v22 = vld [vmem:[%s13227_s3 + $0x98] sm:$0xf0] }
 0x10b   : > { %v634_v42 = vpop.f32.mrf.mxu0  ;;  %v9064_v58 = vpack.c.bf16 %v685_v51, %v686_v32  ;;  %1669 = vmatpush.bf16.msrb.mxu3 %v6390_v19  ;;  %v6379_v32 = vld [vmem:[%s13227_s3 + $0xa8] sm:$0xf0]  ;;  %v9079_v40 = vpack.c.bf16 %v722_v24, %v723_v1 }
 0x10c   : > { %v9071_v57 = vadd.f32 %v8653_v60, %v634_v42  ;;  %v6382_v51 = vor.u32 %v7698_v34, %v6379_v32  ;;  %v7718_v42 = vld [vmem:[%s13227_s3 + $0x144] sm:$0xf]  ;;  %v6459_v19 = vld [vmem:[%s13227_s3 + $0x148] sm:$0xf0] }
 0x10d   : > { %v6462_v1 = vor.u32 %v7718_v42, %v6459_v19 }
 0x10e   : > { %13345 = vst [vmem:[#allocation23_spill] sm:$0xff] %v9071_v57  ;;  %v9082_v44 = vmul.f32 0.0, %v9071_v57  ;;  %1721 = vmatpush.bf16.msra.mxu0 %v6470_v53  ;;  %v6374_v53 = vor.u32 %v7696_v23, %v6371_v22  ;;  %v7716_v23 = vld [vmem:[%s13227_s3 + $0x134] sm:$0xf]  ;;  %v6451_v22 = vld [vmem:[%s13227_s3 + $0x138] sm:$0xf0] }
 0x10f   : > { %1670 = vmatpush.bf16.msrb.mxu3 %v6382_v51  ;;  %v13346_v51 = vrot.slane %v8950_v20, 1 }
 0x110   : > { %v750_v55 = vrot.slane %v9082_v44, 1  ;;  %v676_v24 = vrot.slane %v9082_v44, 6  ;;  %v713_v34 = vrot.slane %v9082_v44, 7  ;;  %v787_v32 = vrot.slane %v9082_v44, 2 }
 0x111   : > { %v759_v42 = vsel %vm754_vm2, %v13346_v51, %v749_v30  ;;  %v6363_v51 = vld [vmem:[%s13227_s3 + $0x88] sm:$0xf0] }
 0x112   : > { %v758_v57 = vsel %vm754_vm2, %v749_v30, %v750_v55  ;;  %v684_v19 = vsel %vm680_vm4, %v675_v27, %v676_v24  ;;  %1722 = vmatpush.bf16.msra.mxu0 %v6462_v1  ;;  %v721_v20 = vsel %vm717_vm5, %v712_v7, %v713_v34  ;;  %v795_v30 = vsel %vm791_vm3, %v786_v21, %v787_v32  ;;  %v7694_v1 = vld [vmem:[%s13227_s3 + $0x84] sm:$0xf] }
 0x113   : > { %v636_v38 = vpop.f32.mrf.mxu0  ;;  %v9109_v54 = vpack.c.bf16 %v758_v57, %v759_v42  ;;  %1671 = vmatpush.bf16.msrb.mxu3 %v6374_v53  ;;  %v6454_v57 = vor.u32 %v7716_v23, %v6451_v22  ;;  %v9130_v42 = vpack.c.bf16 %v795_v30, %v796_v59  ;;  %v6366_v7 = vor.u32 %v7694_v1, %v6363_v51  ;;  %v6443_v53 = vld [vmem:[%s13227_s3 + $0x128] sm:$0xf0]  ;;  %v7712_v51 = vld [vmem:[%s13227_s3 + $0x114] sm:$0xf] }
 0x114   : > { %v9122_v27 = vadd.f32 %v8653_v60, %v636_v38  ;;  %v7714_v38 = vld [vmem:[%s13227_s3 + $0x124] sm:$0xf] }
 0x115   : > { %13347 = vst [vmem:[#allocation24_spill] sm:$0xff] %v9109_v54  ;;  %1541 = vmatmul.bf16.gmra.mxu0 %v9109_v54  ;;  %v6446_v59 = vor.u32 %v7714_v38, %v6443_v53  ;;  %v13353_v54 = vrot.slane %v8660_v63, 2 }
 0x116   : > { %13348 = vst [vmem:[#allocation25_spill] sm:$0xff] %v9122_v27  ;;  %v659_v21 = vmul.f32 0.0, %v9122_v27  ;;  %1723 = vmatpush.bf16.msra.mxu0 %v6454_v57 }
 0x117   : > { %13349 = vst [vmem:[#allocation26_spill] sm:$0xff] %v9130_v42  ;;  %1672 = vmatpush.bf16.msrb.mxu3 %v6366_v7 }
 0x118   : > { %v9141_v23 = vpack.c.bf16 %v659_v21, %v9082_v44  ;;  %v677_v22 = vrot.slane %v659_v21, 6  ;;  %v714_v30 = vrot.slane %v659_v21, 7  ;;  %v788_v18 = vrot.slane %v659_v21, 2  ;;  %v6435_v44 = vld [vmem:[%s13227_s3 + $0x118] sm:$0xf0] }
 0x119   : > { %v751_v28 = vrot.slane %v659_v21, 1 }
 0x11a   : > { %1492 = vmatmul.bf16.gmra.mxu3 %v9141_v23  ;;  %v683_v57 = vsel %vm680_vm4, %v676_v24, %v677_v22  ;;  %1724 = vmatpush.bf16.msra.mxu0 %v6446_v59  ;;  %v720_v38 = vsel %vm717_vm5, %v713_v34, %v714_v30  ;;  %v794_v53 = vsel %vm791_vm3, %v787_v32, %v788_v18  ;;  %v6427_v34 = vld [vmem:[%s13227_s3 + $0x108] sm:$0xf0] }
 0x11b   : > { %v639_v1 = vpop.f32.mrf.mxu0  ;;  %v9152_v7 = vpack.c.bf16 %v683_v57, %v684_v19  ;;  %v6438_v59 = vor.u32 %v7712_v51, %v6435_v44  ;;  %v9161_v27 = vpack.c.bf16 %v720_v38, %v721_v20  ;;  %v7710_v19 = vld [vmem:[%s13227_s3 + $0x104] sm:$0xf]  ;;  %v757_v21 = vsel %vm754_vm2, %v750_v55, %v751_v28 }
 0x11c   : > { %v9159_v24 = vadd.f32 %v8653_v60, %v639_v1  ;;  %v6430_v32 = vor.u32 %v7710_v19, %v6427_v34  ;;  %v663_v55 = vrot.slane %v8663_v0, 6 }
 0x11e   : > { %13350 = vst [vmem:[#allocation27_spill] sm:$0xff] %v9159_v24  ;;  %v660_v50 = vmul.f32 0.0, %v9159_v24  ;;  %1725 = vmatpush.bf16.msra.mxu0 %v6438_v59 }
 0x120   : > { %v752_v57 = vrot.slane %v660_v50, 1  ;;  %v678_v8 = vrot.slane %v660_v50, 6  ;;  %v715_v1 = vrot.slane %v660_v50, 7  ;;  %v789_v49 = vrot.slane %v660_v50, 2 }
 0x122   : > { %v756_v20 = vsel %vm754_vm2, %v751_v28, %v752_v57  ;;  %v682_v51 = vsel %vm680_vm4, %v677_v22, %v678_v8  ;;  %v719_v44 = vsel %vm717_vm5, %v714_v30, %v715_v1  ;;  %1726 = vmatpush.bf16.msra.mxu0 %v6430_v32  ;;  %v793_v19 = vsel %vm791_vm3, %v788_v18, %v789_v49 }
 0x123   : > { %v641_v38 = vpop.f32.mrf.mxu0  ;;  %v9178_v59 = vpack.c.bf16 %v756_v20, %v757_v21  ;;  %v9185_v24 = vpack.c.bf16 %v793_v19, %v794_v53  ;;  %v700_v22 = vrot.slane %v8663_v0, 7  ;;  %v662_v30 = vrot.slane %v8660_v63, 6 }
 0x124   : > { %v9183_v34 = vadd.f32 %v8653_v60, %v641_v38  ;;  %v699_v18 = vrot.slane %v8660_v63, 7 }
 0x125   : > { %13351 = vst [vmem:[#allocation28_spill] sm:$0xff] %v9178_v59  ;;  %1546 = vmatmul.bf16.gmra.mxu0 %v9178_v59  ;;  %v697_v38 = vsel %vm680_vm4, %v662_v30, %v663_v55 }
 0x126   : > { %13352 = vst [vmem:[#allocation29_spill] sm:$0xff] %v9183_v34  ;;  %v661_v28 = vmul.f32 0.0, %v9183_v34  ;;  %v734_v34 = vsel %vm717_vm5, %v699_v18, %v700_v22 }
 0x128   : > { %v9192_v20 = vpack.c.bf16 %v661_v28, %v660_v50  ;;  %v679_v32 = vrot.slane %v661_v28, 6  ;;  %v716_v21 = vrot.slane %v661_v28, 7  ;;  %v790_v53 = vrot.slane %v661_v28, 2 }
 0x129   : > { %v753_v13 = vrot.slane %v661_v28, 1 }
 0x12a   : > { %1497 = vmatmul.bf16.gmra.mxu3 %v9192_v20  ;;  %v698_v19 = vsel %vm680_vm4, %v679_v32, %v662_v30  ;;  %v735_v50 = vsel %vm717_vm5, %v716_v21, %v699_v18  ;;  %v681_v60 = vsel %vm680_vm4, %v678_v8, %v679_v32  ;;  %v718_v59 = vsel %vm717_vm5, %v715_v1, %v716_v21 }
 0x12b   : > { %v9205_v37 = vpack.c.bf16 %v697_v38, %v698_v19  ;;  %v811_v17 = vpack.c.bf16 %v734_v34, %v735_v50  ;;  %v9209_v61 = vpack.c.bf16 %v681_v60, %v682_v51  ;;  %v792_v30 = vsel %vm791_vm3, %v789_v49, %v790_v53  ;;  %v7757_v50 = vld [vmem:[%s13227_s3 + $0x274] sm:$0xf0] }
 0x12c   : > { %v809_v18 = vsel %vm791_vm3, %v790_v53, %v13353_v54  ;;  %v9220_v34 = vpack.c.bf16 %v718_v59, %v719_v44  ;;  %v755_v8 = vsel %vm754_vm2, %v752_v57, %v753_v13  ;;  %v13354_v1 = vrot.slane %v8660_v63, 1 }
 0x12d   : > { %1349 = vmatmul.bf16.vlgmr.msra.gmra.mxu1 %v9205_v37  ;;  %1403 = vmatmul.bf16.vlgmr.msra.gmra.mxu2 %v811_v17  ;;  %v9222_v28 = vpack.c.bf16 %v809_v18, %v792_v30  ;;  %v664_v54 = vrot.slane %v8673_v5, 6  ;;  %v701_v32 = vrot.slane %v8673_v5, 7  ;;  %v13356_v44 = vrot.slane %v8692_v14, 6 }
 0x12e   : > { %v772_v49 = vsel %vm754_vm2, %v753_v13, %v13354_v1  ;;  %v13357_v57 = vrot.slane %v8692_v14, 7  ;;  %v9253_v14 = vpop.f32.mrf.mxu3 }
 0x12f   : > { %v9230_v51 = vpack.c.bf16 %v772_v49, %v755_v8  ;;  %v695_v59 = vsel %vm680_vm4, %v664_v54, %v13356_v44  ;;  %v696_v13 = vsel %vm680_vm4, %v663_v55, %v664_v54  ;;  %v733_v60 = vsel %vm717_vm5, %v700_v22, %v701_v32  ;;  %v6355_v22 = vld [vmem:[%s13227_s3 + $0x78] sm:$0xf0]  ;;  %v7690_v49 = vld [vmem:[%s13227_s3 + $0x64] sm:$0xf]  ;;  %v6347_v54 = vld [vmem:[%s13227_s3 + $0x68] sm:$0xf0] }
 0x130   : > { %v732_v21 = vsel %vm717_vm5, %v701_v32, %v13357_v57  ;;  %v9247_v53 = vpack.c.bf16 %v695_v59, %v696_v13  ;;  %v9258_v55 = vpop.f32.mrf.mxu0  ;;  %v7755_v32 = vld [vmem:[%s13227_s3 + $0x264] sm:$0xf0] }
 0x131   : > { %13355 = vst [vmem:[#allocation30_spill] sm:$0xff] %v9230_v51  ;;  %v816_v38 = vpack.c.bf16 %v732_v21, %v733_v60  ;;  %v7688_v60 = vld [vmem:[%s13227_s3 + $0x54] sm:$0xf] }
 0x135   : > { %1551 = vmatmul.bf16.gmra.mxu0 %v9230_v51 }
 0x138   : > { %v9277_v30 = vpop.f32.mrf.mxu0 }
 0x13a   : > { %1673 = vmatmul.bf16.vlgmr.msrb.gmra.mxu3 %v811_v17  ;;  %v9256_v17 = vpop.f32.mrf.mxu3 }
 0x13d   : > { %1354 = vmatmul.bf16.gmra.mxu1 %v9247_v53  ;;  %1408 = vmatmul.bf16.gmra.mxu2 %v816_v38 }
 0x142   : > { %v9283_v1 = vpop.f32.mrf.mxu0 }
 0x145   : > { %1727 = vmatmul.bf16.vlgmr.msra.gmra.mxu0 %v8667_v2  ;;  %v7692_v2 = vld [vmem:[%s13227_s3 + $0x74] sm:$0xf] }
 0x146   : > { %v6358_v19 = vor.u32 %v7692_v2, %v6355_v22  ;;  %v7753_v2 = vld [vmem:[%s13227_s3 + $0x254] sm:$0xf0] }
 0x148   : > { %1611 = vmatpush.bf16.msrb.mxu2 %v6358_v19 }
 0x14a   : > { %1678 = vmatmul.bf16.gmra.mxu3 %v816_v38  ;;  %v9301_v57 = vpop.f32.mrf.mxu0  ;;  %v6339_v38 = vld [vmem:[%s13227_s3 + $0x58] sm:$0xf0] }
 0x14d   : > { %1359 = vmatmul.bf16.gmra.mxu1 %v8745_v46  ;;  %1413 = vmatmul.bf16.gmra.mxu2 %v8747_v47 }
 0x152   : > { %v9309_v13 = vpop.f32.mrf.mxu0 }
 0x155   : > { %1732 = vmatmul.bf16.gmra.mxu0 %v8696_v15  ;;  %v9269_v15 = vpop.f32.mrf.mxu3 }
 0x15a   : > { %1683 = vmatmul.bf16.gmra.mxu3 %v8747_v47  ;;  %v6609_v47 = vld [vmem:[%s13227_s3 + $0x270] sm:$0xf] }
 0x15b   : > { %v6610_v18 = vor.u32 %v7757_v50, %v6609_v47  ;;  %v6585_v47 = vld [vmem:[%s13227_s3 + $0x240] sm:$0xf]  ;;  %v7751_v50 = vld [vmem:[%s13227_s3 + $0x244] sm:$0xf0] }
 0x15d   : > { %1364 = vmatmul.bf16.gmra.mxu1 %v8781_v25  ;;  %1418 = vmatmul.bf16.gmra.mxu2 %v8783_v26  ;;  %v9280_v8 = vpop.f32.mrf.mxu3 }
 0x15e   : > { %1557 = vmatpush.bf16.msrb.mxu1 %v6610_v18  ;;  %v7686_v18 = vld [vmem:[%s13227_s3 + $0x44] sm:$0xf] }
 0x165   : > { %1737 = vmatmul.bf16.gmra.mxu0 %v8738_v39  ;;  %v6350_v39 = vor.u32 %v7690_v49, %v6347_v54  ;;  %v9299_v59 = vpop.f32.mrf.mxu3  ;;  %v9335_v49 = vpop.f32.mrf.mxu0  ;;  %v6331_v54 = vld [vmem:[%s13227_s3 + $0x48] sm:$0xf0] }
 0x167   : > { %1612 = vmatpush.bf16.msrb.mxu2 %v6350_v39  ;;  %v6334_v39 = vor.u32 %v7686_v18, %v6331_v54  ;;  %v6561_v54 = vld [vmem:[%s13227_s3 + $0x210] sm:$0xf] }
 0x16a   : > { %1688 = vmatmul.bf16.gmra.mxu3 %v8783_v26  ;;  %v6601_v26 = vld [vmem:[%s13227_s3 + $0x260] sm:$0xf] }
 0x16b   : > { %v6602_v44 = vor.u32 %v7755_v32, %v6601_v26  ;;  %v6577_v26 = vld [vmem:[%s13227_s3 + $0x230] sm:$0xf]  ;;  %v7749_v32 = vld [vmem:[%s13227_s3 + $0x234] sm:$0xf0] }
 0x16d   : > { %1369 = vmatmul.bf16.gmra.mxu1 %v8826_v9  ;;  %1423 = vmatmul.bf16.gmra.mxu2 %v8828_v12  ;;  %v9307_v21 = vpop.f32.mrf.mxu3  ;;  %v9369_v18 = vpop.f32.mrf.mxu0 }
 0x16e   : > { %1558 = vmatpush.bf16.msrb.mxu1 %v6602_v44  ;;  %v7684_v44 = vld [vmem:[%s13227_s3 + $0x34] sm:$0xf] }
 0x175   : > { %1742 = vmatmul.bf16.gmra.mxu0 %v8774_v10  ;;  %v6342_v10 = vor.u32 %v7688_v60, %v6339_v38  ;;  %v9324_v19 = vpop.f32.mrf.mxu3  ;;  %v6323_v60 = vld [vmem:[%s13227_s3 + $0x38] sm:$0xf0] }
 0x176   : > { %v6326_v38 = vor.u32 %v7684_v44, %v6323_v60  ;;  %v6307_v44 = vld [vmem:[%s13227_s3 + $0x18] sm:$0xf0]  ;;  %v7743_v60 = vld [vmem:[%s13227_s3 + $0x204] sm:$0xf0] }
 0x177   : > { %1613 = vmatpush.bf16.msrb.mxu2 %v6342_v10  ;;  %v6569_v10 = vld [vmem:[%s13227_s3 + $0x220] sm:$0xf] }
 0x17a   : > { %1693 = vmatmul.bf16.gmra.mxu3 %v8828_v12  ;;  %v6593_v12 = vld [vmem:[%s13227_s3 + $0x250] sm:$0xf] }
 0x17b   : > { %v6594_v22 = vor.u32 %v7753_v2, %v6593_v12  ;;  %1614 = vmatpush.bf16.msrb.mxu2 %v6334_v39  ;;  %v7747_v12 = vld [vmem:[%s13227_s3 + $0x224] sm:$0xf0]  ;;  %v7682_v2 = vld [vmem:[%s13227_s3 + $0x24] sm:$0xf]  ;;  %v7745_v39 = vld [vmem:[%s13227_s3 + $0x214] sm:$0xf0] }
 0x17d   : > { %1374 = vmatmul.bf16.gmra.mxu1 %v8929_v16  ;;  %1428 = vmatmul.bf16.gmra.mxu2 %v8947_v43 }
 0x17e   : > { %1559 = vmatpush.bf16.msrb.mxu1 %v6594_v22  ;;  %v9364_v22 = vpop.f32.mrf.mxu3 }
 0x17f   : > { %1615 = vmatpush.bf16.msrb.mxu2 %v6326_v38  ;;  %v7678_v38 = vld [vmem:[%s13227_s3 + $0x4] sm:$0xf] }
 0x185   : > { %1747 = vmatmul.bf16.gmra.mxu0 %v8810_v52  ;;  %v6586_v52 = vor.u32 %v7751_v50, %v6585_v47  ;;  %v6570_v47 = vor.u32 %v7747_v12, %v6569_v10  ;;  %v6315_v50 = vld [vmem:[%s13227_s3 + $0x28] sm:$0xf0] }
 0x186   : > { %v6299_v12 = vld [vmem:[%s13227_s3 + $0x8] sm:$0xf0] }
 0x187   : > { %1560 = vmatpush.bf16.msrb.mxu1 %v6586_v52  ;;  %v6318_v52 = vor.u32 %v7682_v2, %v6315_v50  ;;  %v6302_v2 = vor.u32 %v7678_v38, %v6299_v12  ;;  %v9399_v50 = vpop.f32.mrf.mxu0  ;;  %v13359_v12 = vrot.slane %v8673_v5, 2 }
 0x189   : > { %1616 = vmatpush.bf16.msrb.mxu2 %v6318_v52 }
 0x18a   : > { %1698 = vmatmul.bf16.gmra.mxu3 %v8947_v43  ;;  %v6578_v43 = vor.u32 %v7749_v32, %v6577_v26  ;;  %v7680_v26 = vld [vmem:[%s13227_s3 + $0x14] sm:$0xf]  ;;  %v6562_v32 = vor.u32 %v7745_v39, %v6561_v54  ;;  %v9411_v54 = vld [vmem:[%s13228_s4] sm:$0x3] }
 0x18b   : > { %13358 = vst [vmem:[#allocation31_spill] sm:$0xff] %v9411_v54 }
 0x18c   : > { %1561 = vmatpush.bf16.msrb.mxu1 %v6578_v43  ;;  %v6310_v43 = vor.u32 %v7680_v26, %v6307_v44  ;;  %v9415_v26 = vperm.slane %v9411_v54, 0 }
 0x18d   : > { %1379 = vmatmul.bf16.gmra.mxu1 %v9064_v58  ;;  %1433 = vmatmul.bf16.gmra.mxu2 %v9079_v40 }
 0x18e   : > { %1617 = vmatpush.bf16.msrb.mxu2 %v6310_v43 }
 0x190   : > { %1562 = vmatpush.bf16.msrb.mxu1 %v6570_v47  ;;  %v9397_v47 = vpop.f32.mrf.mxu3 }
 0x192   : > { %1618 = vmatpush.bf16.msrb.mxu2 %v6302_v2 }
 0x194   : > { %1563 = vmatpush.bf16.msrb.mxu1 %v6562_v32 }
 0x195   : > { %1752 = vmatmul.bf16.gmra.mxu0 %v8906_v41  ;;  %v6553_v41 = vld [vmem:[%s13227_s3 + $0x200] sm:$0xf] }
 0x196   : > { %v6554_v10 = vor.u32 %v7743_v60, %v6553_v41 }
 0x198   : > { %1564 = vmatpush.bf16.msrb.mxu1 %v6554_v10  ;;  %v9404_v52 = vpop.f32.mrf.mxu3 }
 0x19a   : > { %1703 = vmatmul.bf16.gmra.mxu3 %v9079_v40  ;;  %v9406_v40 = vpop.f32.mrf.mxu0 }
 0x19d   : > { %1384 = vmatmul.bf16.gmra.mxu1 %v9152_v7  ;;  %1438 = vmatmul.bf16.gmra.mxu2 %v9161_v27 }
 0x1a0   : > { %v9420_v32 = vpop.f32.mrf.mxu3 }
 0x1a2   : > { %v9422_v43 = vpop.f32.mrf.mxu0 }
 0x1a5   : > { %1757 = vmatmul.bf16.gmra.mxu0 %v9041_v33 }
 0x1a8   : > { %v9435_v51 = vpop.f32.mrf.mxu3 }
 0x1aa   : > { %v1350_v39 = vpop.f32.mrf.mxu1  ;;  %1708 = vmatmul.bf16.gmra.mxu3 %v9161_v27  ;;  %v774_v27 = vrot.slane %v8663_v0, 2 }
 0x1ab   : > { %v1351_v33 = vadd.f32 %v1350_v39, %v9415_v26 }
 0x1ac   : > { %v807_v2 = vsel %vm791_vm3, %v774_v27, %v13359_v12 }
 0x1ad   : > { %1389 = vmatmul.bf16.gmra.mxu1 %v9209_v61  ;;  %1443 = vmatmul.bf16.gmra.mxu2 %v9220_v34 }
 0x1b0   : > { %v1404_v44 = vpop.f32.mrf.mxu2 }
 0x1b1   : > { %v9424_v41 = vadd.f32 %v1404_v44, %v1351_v33  ;;  %v13360_v33 = vrot.slane %v8660_v63, 2  ;;  %v9442_v44 = vpop.f32.mrf.mxu0 }
 0x1b2   : > { %v1352_v60 = vpop.f32.mrf.mxu1 }
 0x1b3   : > { %v1353_v38 = vadd.f32 %v1352_v60, %v9415_v26 }
 0x1b5   : > { %1762 = vmatmul.bf16.gmra.mxu0 %v9141_v23  ;;  %v808_v23 = vsel %vm791_vm3, %v13360_v33, %v774_v27 }
 0x1b6   : > { %v9444_v60 = vpack.c.bf16 %v807_v2, %v808_v23 }
 0x1b8   : > { %v1406_v10 = vpop.f32.mrf.mxu2 }
 0x1b9   : > { %v9433_v39 = vadd.f32 %v1406_v10, %v1353_v38 }
 0x1ba   : > { %v1355_v54 = vpop.f32.mrf.mxu1  ;;  %1713 = vmatmul.bf16.gmra.mxu3 %v9220_v34  ;;  %v9451_v34 = vpop.f32.mrf.mxu0 }
 0x1bb   : > { %v1356_v38 = vadd.f32 %v1355_v54, %v9415_v26  ;;  %13361 = vst [vmem:[#allocation32_spill] sm:$0xff] %v9451_v34 }
 0x1bd   : > { %1565 = vmatmul.bf16.vlgmr.msrb.gmra.mxu1 %v9444_v60  ;;  %1619 = vmatmul.bf16.vlgmr.msrb.gmra.mxu2 %v9205_v37 }
 0x1c0   : > { %v1409_v10 = vpop.f32.mrf.mxu2 }
 0x1c1   : > { %v9449_v12 = vadd.f32 %v1409_v10, %v1356_v38 }
 0x1c2   : > { %v1357_v5 = vpop.f32.mrf.mxu1 }
 0x1c3   : > { %v1358_v63 = vadd.f32 %v1357_v5, %v9415_v26 }
 0x1c5   : > { %1767 = vmatmul.bf16.gmra.mxu0 %v9192_v20 }
 0x1c8   : > { %v1411_v27 = vpop.f32.mrf.mxu2 }
 0x1c9   : > { %v9455_v33 = vadd.f32 %v1411_v27, %v1358_v63 }
 0x1ca   : > { %v1360_v2 = vpop.f32.mrf.mxu1 }
 0x1cb   : > { %v1361_v37 = vadd.f32 %v1360_v2, %v9415_v26 }
 0x1cd   : > { %1570 = vmatmul.bf16.gmra.mxu1 %v8731_v36  ;;  %1624 = vmatmul.bf16.gmra.mxu2 %v9247_v53 }
 0x1d0   : > { %v1414_v54 = vpop.f32.mrf.mxu2 }
 0x1d1   : > { %v9460_v23 = vadd.f32 %v1414_v54, %v1361_v37 }
 0x1d2   : > { %v1362_v38 = vpop.f32.mrf.mxu1 }
 0x1d3   : > { %v1363_v10 = vadd.f32 %v1362_v38, %v9415_v26 }
 0x1d8   : > { %v1416_v3 = vpop.f32.mrf.mxu2 }
 0x1d9   : > { %v9463_v20 = vadd.f32 %v1416_v3, %v1363_v10  ;;  %v7756_v3 = vld [vmem:[%s13227_s3 + $0x274] sm:$0xf] }
 0x1da   : > { %v1365_v5 = vpop.f32.mrf.mxu1 }
 0x1db   : > { %v1366_v63 = vadd.f32 %v1365_v5, %v9415_v26 }
 0x1dd   : > { %1575 = vmatmul.bf16.gmra.mxu1 %v8767_v6  ;;  %1629 = vmatmul.bf16.gmra.mxu2 %v8745_v46  ;;  %v6611_v46 = vld [vmem:[%s13227_s3 + $0x278] sm:$0xf0] }
 0x1de   : > { %v6614_v10 = vor.u32 %v7756_v3, %v6611_v46 }
 0x1e0   : > { %v1419_v27 = vpop.f32.mrf.mxu2  ;;  %1827 = vmatpush.bf16.msra.mxu2 %v6614_v10 }
 0x1e1   : > { %v9468_v53 = vadd.f32 %v1419_v27, %v1366_v63 }
 0x1e2   : > { %v1367_v2 = vpop.f32.mrf.mxu1 }
 0x1e3   : > { %v1368_v37 = vadd.f32 %v1367_v2, %v9415_v26 }
 0x1e8   : > { %v1421_v54 = vpop.f32.mrf.mxu2 }
 0x1e9   : > { %v9471_v0 = vadd.f32 %v1421_v54, %v1368_v37  ;;  %v6547_v37 = vld [vmem:[%s13227_s3 + $0x1f8] sm:$0xf0] }
 0x1ea   : > { %v1370_v38 = vpop.f32.mrf.mxu1 }
 0x1eb   : > { %v1371_v5 = vadd.f32 %v1370_v38, %v9415_v26 }
 0x1ed   : > { %1580 = vmatmul.bf16.gmra.mxu1 %v8803_v48  ;;  %1634 = vmatmul.bf16.gmra.mxu2 %v8781_v25  ;;  %v7740_v25 = vld [vmem:[%s13227_s3 + $0x1f4] sm:$0xf] }
 0x1ee   : > { %v6550_v54 = vor.u32 %v7740_v25, %v6547_v37  ;;  %v7754_v25 = vld [vmem:[%s13227_s3 + $0x264] sm:$0xf] }
 0x1f0   : > { %v1424_v63 = vpop.f32.mrf.mxu2  ;;  %1773 = vmatpush.bf16.msra.mxu1 %v6550_v54 }
 0x1f1   : > { %v9482_v27 = vadd.f32 %v1424_v63, %v1371_v5 }
 0x1f2   : > { %v1372_v2 = vpop.f32.mrf.mxu1 }
 0x1f3   : > { %v1373_v56 = vadd.f32 %v1372_v2, %v9415_v26  ;;  %v7738_v2 = vld [vmem:[%s13227_s3 + $0x1e4] sm:$0xf] }
 0x1f8   : > { %v1426_v3 = vpop.f32.mrf.mxu2 }
 0x1f9   : > { %v9491_v46 = vadd.f32 %v1426_v3, %v1373_v56  ;;  %v6603_v56 = vld [vmem:[%s13227_s3 + $0x268] sm:$0xf0] }
 0x1fa   : > { %v1375_v38 = vpop.f32.mrf.mxu1  ;;  %v6606_v37 = vor.u32 %v7754_v25, %v6603_v56 }
 0x1fb   : > { %v1376_v10 = vadd.f32 %v1375_v38, %v9415_v26 }
 0x1fc   : > { %1828 = vmatpush.bf16.msra.mxu2 %v6606_v37 }
 0x1fd   : > { %1585 = vmatmul.bf16.gmra.mxu1 %v8886_v29  ;;  %1639 = vmatmul.bf16.gmra.mxu2 %v8826_v9  ;;  %v6539_v9 = vld [vmem:[%s13227_s3 + $0x1e8] sm:$0xf0] }
 0x1fe   : > { %v6542_v54 = vor.u32 %v7738_v2, %v6539_v9  ;;  %v7752_v2 = vld [vmem:[%s13227_s3 + $0x254] sm:$0xf] }
 0x1ff   : > { %v7736_v9 = vld [vmem:[%s13227_s3 + $0x1d4] sm:$0xf] }
 0x200   : > { %v1429_v5 = vpop.f32.mrf.mxu2  ;;  %1774 = vmatpush.bf16.msra.mxu1 %v6542_v54 }
 0x201   : > { %v9496_v63 = vadd.f32 %v1429_v5, %v1376_v10 }
 0x202   : > { %v1377_v34 = vpop.f32.mrf.mxu1 }
 0x203   : > { %v1378_v3 = vadd.f32 %v1377_v34, %v9415_v26  ;;  %v6595_v34 = vld [vmem:[%s13227_s3 + $0x258] sm:$0xf0] }
 0x204   : > { %v6598_v37 = vor.u32 %v7752_v2, %v6595_v34  ;;  %v7750_v2 = vld [vmem:[%s13227_s3 + $0x244] sm:$0xf] }
 0x206   : > { %1829 = vmatpush.bf16.msra.mxu2 %v6598_v37 }
 0x208   : > { %v1431_v38 = vpop.f32.mrf.mxu2 }
 0x209   : > { %v9511_v10 = vadd.f32 %v1431_v38, %v1378_v3 }
 0x20a   : > { %v1380_v5 = vpop.f32.mrf.mxu1 }
 0x20b   : > { %v1381_v29 = vadd.f32 %v1380_v5, %v9415_v26  ;;  %v7734_v5 = vld [vmem:[%s13227_s3 + $0x1c4] sm:$0xf] }
 0x20d   : > { %1590 = vmatmul.bf16.gmra.mxu1 %v9012_v31  ;;  %1644 = vmatmul.bf16.gmra.mxu2 %v8929_v16  ;;  %v6531_v16 = vld [vmem:[%s13227_s3 + $0x1d8] sm:$0xf0] }
 0x210   : > { %v1434_v25 = vpop.f32.mrf.mxu2 }
 0x211   : > { %v9516_v56 = vadd.f32 %v1434_v25, %v1381_v29  ;;  %v6534_v29 = vor.u32 %v7736_v9, %v6531_v16  ;;  %v6523_v25 = vld [vmem:[%s13227_s3 + $0x1c8] sm:$0xf0]  ;;  %v7732_v16 = vld [vmem:[%s13227_s3 + $0x1b4] sm:$0xf] }
 0x212   : > { %v1382_v62 = vpop.f32.mrf.mxu1  ;;  %v6526_v37 = vor.u32 %v7734_v5, %v6523_v25  ;;  %v6579_v5 = vld [vmem:[%s13227_s3 + $0x238] sm:$0xf0] }
 0x213   : > { %v1383_v54 = vadd.f32 %v1382_v62, %v9415_v26  ;;  %1775 = vmatpush.bf16.msra.mxu1 %v6534_v29  ;;  %v6587_v62 = vld [vmem:[%s13227_s3 + $0x248] sm:$0xf0]  ;;  %v6515_v29 = vld [vmem:[%s13227_s3 + $0x1b8] sm:$0xf0] }
 0x214   : > { %v6590_v9 = vor.u32 %v7750_v2, %v6587_v62  ;;  %v7730_v62 = vld [vmem:[%s13227_s3 + $0x1a4] sm:$0xf] }
 0x216   : > { %1830 = vmatpush.bf16.msra.mxu2 %v6590_v9  ;;  %v6507_v9 = vld [vmem:[%s13227_s3 + $0x1a8] sm:$0xf0] }
 0x217   : > { %1776 = vmatpush.bf16.msra.mxu1 %v6526_v37 }
 0x218   : > { %v1436_v3 = vpop.f32.mrf.mxu2 }
 0x219   : > { %v9531_v38 = vadd.f32 %v1436_v3, %v1383_v54  ;;  %v7748_v54 = vld [vmem:[%s13227_s3 + $0x234] sm:$0xf]  ;;  %v6518_v3 = vor.u32 %v7732_v16, %v6515_v29  ;;  %v7746_v16 = vld [vmem:[%s13227_s3 + $0x224] sm:$0xf] }
 0x21a   : > { %v1385_v34 = vpop.f32.mrf.mxu1  ;;  %v6582_v25 = vor.u32 %v7748_v54, %v6579_v5  ;;  %v6571_v54 = vld [vmem:[%s13227_s3 + $0x228] sm:$0xf0]  ;;  %v7728_v5 = vld [vmem:[%s13227_s3 + $0x194] sm:$0xf] }
 0x21b   : > { %13362 = vst [vmem:[#allocation33_spill] sm:$0xff] %v9531_v38  ;;  %1777 = vmatpush.bf16.msra.mxu1 %v6518_v3  ;;  %v6574_v3 = vor.u32 %v7746_v16, %v6571_v54  ;;  %v7726_v38 = vld [vmem:[%s13227_s3 + $0x184] sm:$0xf] }
 0x21c   : > { %1831 = vmatpush.bf16.msra.mxu2 %v6582_v25 }
 0x21d   : > { %1595 = vmatmul.bf16.gmra.mxu1 %v9130_v42  ;;  %1649 = vmatmul.bf16.gmra.mxu2 %v9064_v58  ;;  %v1386_v58 = vadd.f32 %v1385_v34, %v9415_v26  ;;  %v6510_v34 = vor.u32 %v7730_v62, %v6507_v9  ;;  %v6563_v62 = vld [vmem:[%s13227_s3 + $0x218] sm:$0xf0] }
 0x21f   : > { %1778 = vmatpush.bf16.msra.mxu1 %v6510_v34 }
 0x220   : > { %v1439_v2 = vpop.f32.mrf.mxu2  ;;  %1832 = vmatpush.bf16.msra.mxu2 %v6574_v3  ;;  %v6491_v3 = vld [vmem:[%s13227_s3 + $0x188] sm:$0xf0] }
 0x221   : > { %v9560_v37 = vadd.f32 %v1439_v2, %v1386_v58  ;;  %v6499_v58 = vld [vmem:[%s13227_s3 + $0x198] sm:$0xf0]  ;;  %v7744_v2 = vld [vmem:[%s13227_s3 + $0x214] sm:$0xf] }
 0x222   : > { %v1387_v29 = vpop.f32.mrf.mxu1  ;;  %v6502_v25 = vor.u32 %v7728_v5, %v6499_v58  ;;  %v6566_v16 = vor.u32 %v7744_v2, %v6563_v62  ;;  %v7742_v5 = vld [vmem:[%s13227_s3 + $0x204] sm:$0xf]  ;;  %v6555_v2 = vld [vmem:[%s13227_s3 + $0x208] sm:$0xf0] }
 0x223   : > { %v1388_v9 = vadd.f32 %v1387_v29, %v9415_v26  ;;  %v6494_v29 = vor.u32 %v7726_v38, %v6491_v3  ;;  %v1459_v38 = vadd.f32 %v9253_v14, %v9424_v41 }
 0x224   : > { %1779 = vmatpush.bf16.msra.mxu1 %v6502_v25  ;;  %1833 = vmatpush.bf16.msra.mxu2 %v6566_v16  ;;  %v6558_v25 = vor.u32 %v7742_v5, %v6555_v2 }
 0x225   : > { %v1513_v5 = vadd.f32 %v9258_v55, %v1459_v38  ;;  %v1464_v55 = vadd.f32 %v9269_v15, %v9449_v12 }
 0x228   : > { %v1441_v34 = vpop.f32.mrf.mxu2  ;;  %1780 = vmatpush.bf16.msra.mxu1 %v6494_v29  ;;  %1834 = vmatpush.bf16.msra.mxu2 %v6558_v25  ;;  %v1518_v25 = vadd.f32 %v9283_v1, %v1464_v55  ;;  %v1469_v1 = vadd.f32 %v9299_v59, %v9460_v23 }
 0x229   : > { %v9587_v54 = vadd.f32 %v1441_v34, %v1388_v9 }
 0x22a   : > { %v1390_v58 = vpop.f32.mrf.mxu1  ;;  %v1523_v38 = vadd.f32 %v9309_v13, %v1469_v1  ;;  %v1474_v13 = vadd.f32 %v9324_v19, %v9468_v53  ;;  %v13365_v1 = vld [vmem:[#allocation19_spill] sm:$0xff] }
 0x22b   : > { %13363 = vst [vmem:[#allocation34_spill] sm:$0xff] %v9587_v54  ;;  %v1391_v62 = vadd.f32 %v1390_v58, %v9415_v26 }
 0x22d   : > { %1600 = vmatmul.bf16.gmra.mxu1 %v9185_v24  ;;  %1654 = vmatmul.bf16.gmra.mxu2 %v9152_v7  ;;  %v1461_v7 = vadd.f32 %v9256_v17, %v9433_v39 }
 0x22f   : > { %v1515_v14 = vadd.f32 %v9277_v30, %v1461_v7 }
 0x230   : > { %v1444_v9 = vpop.f32.mrf.mxu2 }
 0x231   : > { %v9604_v34 = vadd.f32 %v1444_v9, %v1391_v62 }
 0x232   : > { %v1392_v54 = vpop.f32.mrf.mxu1 }
 0x233   : > { %v1393_v16 = vadd.f32 %v1392_v54, %v9415_v26 }
 0x238   : > { %v1446_v3 = vpop.f32.mrf.mxu2 }
 0x239   : > { %v9609_v42 = vadd.f32 %v1446_v3, %v1393_v16  ;;  %v1488_v3 = vpop.f32.mrf.mxu3 }
 0x23a   : > { %v1566_v29 = vpop.f32.mrf.mxu1 }
 0x23b   : > { %v9612_v2 = vadd.f32 %v1566_v29, %v1513_v5  ;;  %v1528_v5 = vadd.f32 %v9369_v18, %v1474_v13  ;;  %v1479_v18 = vadd.f32 %v9397_v47, %v9482_v27 }
 0x23d   : > { %1605 = vmatmul.bf16.gmra.mxu1 %v9222_v28  ;;  %1659 = vmatmul.bf16.gmra.mxu2 %v9209_v61  ;;  %v1466_v61 = vadd.f32 %v9280_v8, %v9455_v33 }
 0x23f   : > { %v1520_v39 = vadd.f32 %v9301_v57, %v1466_v61 }
 0x240   : > { %v9618_v58 = vpop.f32.mrf.mxu2 }
 0x241   : > { %v9669_v29 = vpop.f32.mrf.mxu3 }
 0x242   : > { %v1568_v26 = vpop.f32.mrf.mxu1 }
 0x243   : > { %v9621_v41 = vadd.f32 %v1568_v26, %v1515_v14 }
 0x248   : > { %v9625_v54 = vpop.f32.mrf.mxu2 }
 0x24a   : > { %v1571_v62 = vpop.f32.mrf.mxu1 }
 0x24b   : > { %v9628_v17 = vadd.f32 %v1571_v62, %v1518_v25 }
 0x24d   : > { %1781 = vmatmul.bf16.vlgmr.msra.gmra.mxu1 %v8685_v11  ;;  %1835 = vmatmul.bf16.vlgmr.msra.gmra.mxu2 %v9444_v60  ;;  %v1471_v11 = vadd.f32 %v9307_v21, %v9463_v20 }
 0x24f   : > { %v1525_v60 = vadd.f32 %v9335_v49, %v1471_v11 }
 0x250   : > { %v9634_v30 = vpop.f32.mrf.mxu2 }
 0x252   : > { %v1573_v9 = vpop.f32.mrf.mxu1 }
 0x253   : > { %v9637_v15 = vadd.f32 %v1573_v9, %v1520_v39  ;;  %v13364_v9 = vld [vmem:[#allocation17_spill] sm:$0xff] }
 0x258   : > { %v9641_v12 = vpop.f32.mrf.mxu2 }
 0x25a   : > { %v1576_v16 = vpop.f32.mrf.mxu1 }
 0x25b   : > { %v9644_v8 = vadd.f32 %v1576_v16, %v1523_v38 }
 0x25d   : > { %1786 = vmatmul.bf16.gmra.mxu1 %v8729_v35  ;;  %1840 = vmatmul.bf16.gmra.mxu2 %v8731_v36  ;;  %v1542_v35 = vpop.f32.mrf.mxu0  ;;  %v1476_v36 = vadd.f32 %v9364_v22, %v9471_v0  ;;  %v1533_v0 = vadd.f32 %v9406_v40, %v1479_v18  ;;  %v1493_v22 = vpop.f32.mrf.mxu3  ;;  %v1484_v40 = vadd.f32 %v9420_v32, %v9496_v63  ;;  %v13366_v63 = vld [vmem:[#allocation32_spill] sm:$0xff] }
 0x25f   : > { %v1530_v19 = vadd.f32 %v9399_v50, %v1476_v36  ;;  %v1481_v50 = vadd.f32 %v9404_v52, %v9491_v46  ;;  %v1538_v52 = vadd.f32 %v9442_v44, %v1484_v40  ;;  %v13367_v36 = vld [vmem:[#allocation21_spill] sm:$0xff] }
 0x260   : > { %v9650_v57 = vpop.f32.mrf.mxu2 }
 0x261   : > { %v1535_v27 = vadd.f32 %v9422_v43, %v1481_v50  ;;  %v1486_v43 = vadd.f32 %v9435_v51, %v9511_v10 }
 0x262   : > { %v1578_v33 = vpop.f32.mrf.mxu1 }
 0x263   : > { %v9653_v59 = vadd.f32 %v1578_v33, %v1525_v60  ;;  %v1540_v16 = vadd.f32 %v13366_v63, %v1486_v43  ;;  %v1489_v33 = vadd.f32 %v1488_v3, %v9516_v56  ;;  %v7773_v56 = vld [vmem:[%s13229_s5 + $0x74] sm:$0xf0]  ;;  %v6683_v43 = vld [vmem:[%s13229_s5 + $0x60] sm:$0xf] }
 0x265   : > { %v9675_v14 = vpop.f32.mrf.mxu0  ;;  %v9693_v61 = vpop.f32.mrf.mxu3 }
 0x268   : > { %v9657_v23 = vpop.f32.mrf.mxu2 }
 0x26a   : > { %v1581_v21 = vpop.f32.mrf.mxu1 }
 0x26b   : > { %v9660_v20 = vadd.f32 %v1581_v21, %v1528_v5  ;;  %v1543_v5 = vadd.f32 %v1542_v35, %v1489_v33 }
 0x26d   : > { %1791 = vmatmul.bf16.gmra.mxu1 %v8765_v4  ;;  %1845 = vmatmul.bf16.gmra.mxu2 %v8767_v6  ;;  %v1547_v47 = vpop.f32.mrf.mxu0  ;;  %v1498_v32 = vpop.f32.mrf.mxu3 }
 0x270   : > { %v9666_v49 = vpop.f32.mrf.mxu2 }
 0x272   : > { %v1583_v53 = vpop.f32.mrf.mxu1 }
 0x273   : > { %v9671_v7 = vadd.f32 %v1583_v53, %v1530_v19  ;;  %v6691_v19 = vld [vmem:[%s13229_s5 + $0x70] sm:$0xf] }
 0x274   : > { %v6692_v3 = vor.u32 %v7773_v56, %v6691_v19  ;;  %v7772_v19 = vld [vmem:[%s13229_s5 + $0x74] sm:$0xf]  ;;  %v6693_v56 = vld [vmem:[%s13229_s5 + $0x78] sm:$0xf0] }
 0x275   : > { %v9698_v46 = vpop.f32.mrf.mxu0  ;;  %v9714_v51 = vpop.f32.mrf.mxu3 }
 0x276   : > { %2370 = vmatpush.bf16.msra.mxu3 %v6692_v3  ;;  %v6696_v3 = vor.u32 %v7772_v19, %v6693_v56 }
 0x278   : > { %v9677_v26 = vpop.f32.mrf.mxu2  ;;  %2424 = vmatpush.bf16.msrb.mxu0 %v6696_v3 }
 0x27a   : > { %v1586_v4 = vpop.f32.mrf.mxu1 }
 0x27b   : > { %v9680_v6 = vadd.f32 %v1586_v4, %v1533_v0  ;;  %v1494_v4 = vadd.f32 %v1493_v22, %v9560_v37  ;;  %v7771_v37 = vld [vmem:[%s13229_s5 + $0x64] sm:$0xf0] }
 0x27c   : > { %v6684_v22 = vor.u32 %v7771_v37, %v6683_v43 }
 0x27d   : > { %1796 = vmatmul.bf16.gmra.mxu1 %v8801_v45  ;;  %1850 = vmatmul.bf16.gmra.mxu2 %v8803_v48  ;;  %v1552_v44 = vpop.f32.mrf.mxu0  ;;  %v1674_v0 = vpop.f32.mrf.mxu3 }
 0x27e   : > { %2371 = vmatpush.bf16.msra.mxu3 %v6684_v22  ;;  %v7769_v22 = vld [vmem:[%s13229_s5 + $0x54] sm:$0xf0] }
 0x280   : > { %v9686_v55 = vpop.f32.mrf.mxu2 }
 0x282   : > { %v1588_v25 = vpop.f32.mrf.mxu1 }
 0x283   : > { %v9689_v62 = vadd.f32 %v1588_v25, %v1535_v27  ;;  %v1548_v27 = vadd.f32 %v1547_v47, %v1494_v4 }
 0x285   : > { %v9726_v53 = vpop.f32.mrf.mxu0 }
 0x286   : > { %13368 = vst [vmem:[#allocation17_spill] sm:$0xff] %v9726_v53 }
 0x288   : > { %v9695_v39 = vpop.f32.mrf.mxu2 }
 0x28a   : > { %v1591_v45 = vpop.f32.mrf.mxu1 }
 0x28b   : > { %v9700_v48 = vadd.f32 %v1591_v45, %v1538_v52  ;;  %v13369_v52 = vld [vmem:[#allocation24_spill] sm:$0xff]  ;;  %v13370_v45 = vld [vmem:[#allocation26_spill] sm:$0xff] }
 0x28d   : > { %1801 = vmatmul.bf16.gmra.mxu1 %v13364_v9  ;;  %1855 = vmatmul.bf16.gmra.mxu2 %v13365_v1  ;;  %v9735_v50 = vpop.f32.mrf.mxu0  ;;  %v9747_v9 = vpop.f32.mrf.mxu3 }
 0x290   : > { %v9706_v38 = vpop.f32.mrf.mxu2 }
 0x292   : > { %v1593_v11 = vpop.f32.mrf.mxu1 }
 0x293   : > { %v9709_v60 = vadd.f32 %v1593_v11, %v1540_v16  ;;  %v1499_v16 = vadd.f32 %v1498_v32, %v9604_v34  ;;  %v13371_v34 = vld [vmem:[#allocation28_spill] sm:$0xff] }
 0x294   : > { %v7770_v32 = vld [vmem:[%s13229_s5 + $0x64] sm:$0xf] }
 0x295   : > { %v9753_v63 = vpop.f32.mrf.mxu0  ;;  %v9758_v33 = vpop.f32.mrf.mxu3 }
 0x298   : > { %v9712_v13 = vpop.f32.mrf.mxu2 }
 0x29a   : > { %v1596_v21 = vpop.f32.mrf.mxu1 }
 0x29b   : > { %v9716_v10 = vadd.f32 %v1596_v21, %v1543_v5  ;;  %v1553_v5 = vadd.f32 %v1552_v44, %v1499_v16  ;;  %v6685_v44 = vld [vmem:[%s13229_s5 + $0x68] sm:$0xf0]  ;;  %v7768_v16 = vld [vmem:[%s13229_s5 + $0x54] sm:$0xf] }
 0x29d   : > { %1806 = vmatmul.bf16.gmra.mxu1 %v13367_v36  ;;  %1860 = vmatmul.bf16.gmra.mxu2 %v9012_v31  ;;  %v9768_v4 = vpop.f32.mrf.mxu0  ;;  %v9785_v37 = vpop.f32.mrf.mxu3 }
 0x2a0   : > { %v9728_v35 = vpop.f32.mrf.mxu2 }
 0x2a2   : > { %v9730_v18 = vpop.f32.mrf.mxu1 }
 0x2a5   : > { %v9801_v3 = vpop.f32.mrf.mxu0 }
 0x2a8   : > { %v9733_v31 = vpop.f32.mrf.mxu2 }
 0x2aa   : > { %v1601_v25 = vpop.f32.mrf.mxu1 }
 0x2ab   : > { %v9737_v40 = vadd.f32 %v1601_v25, %v1548_v27  ;;  %v6688_v25 = vor.u32 %v7770_v32, %v6685_v44  ;;  %v7767_v32 = vld [vmem:[%s13229_s5 + $0x44] sm:$0xf0]  ;;  %v7766_v44 = vld [vmem:[%s13229_s5 + $0x44] sm:$0xf] }
 0x2ad   : > { %1811 = vmatmul.bf16.gmra.mxu1 %v13369_v52  ;;  %1865 = vmatmul.bf16.gmra.mxu2 %v13370_v45  ;;  %v13372_v52 = vld [vmem:[#allocation31_spill] sm:$0xff] }
 0x2ae   : > { %v9781_v45 = vperm.slane %v13372_v52, 1  ;;  %2425 = vmatpush.bf16.msrb.mxu0 %v6688_v25  ;;  %v6669_v52 = vld [vmem:[%s13229_s5 + $0x48] sm:$0xf0] }
 0x2b0   : > { %v9749_v1 = vpop.f32.mrf.mxu2  ;;  %v1621_v19 = vadd.f32 %v9618_v58, %v9781_v45 }
 0x2b2   : > { %v9751_v47 = vpop.f32.mrf.mxu1 }
 0x2b8   : > { %v9756_v11 = vpop.f32.mrf.mxu2 }
 0x2ba   : > { %v1606_v21 = vpop.f32.mrf.mxu1 }
 0x2bb   : > { %v9760_v36 = vadd.f32 %v1606_v21, %v1553_v5  ;;  %v6677_v21 = vld [vmem:[%s13229_s5 + $0x58] sm:$0xf0] }
 0x2bc   : > { %v6680_v56 = vor.u32 %v7768_v16, %v6677_v21  ;;  %v7765_v21 = vld [vmem:[%s13229_s5 + $0x34] sm:$0xf0] }
 0x2bd   : > { %1816 = vmatmul.bf16.gmra.mxu1 %v13371_v34  ;;  %1870 = vmatmul.bf16.gmra.mxu2 %v9185_v24  ;;  %v6675_v24 = vld [vmem:[%s13229_s5 + $0x50] sm:$0xf]  ;;  %v6667_v34 = vld [vmem:[%s13229_s5 + $0x40] sm:$0xf] }
 0x2be   : > { %v6676_v5 = vor.u32 %v7769_v22, %v6675_v24  ;;  %2426 = vmatpush.bf16.msrb.mxu0 %v6680_v56  ;;  %v6668_v58 = vor.u32 %v7767_v32, %v6667_v34  ;;  %v1675_v24 = vadd.f32 %v1674_v0, %v1621_v19  ;;  %v6672_v22 = vor.u32 %v7766_v44, %v6669_v52  ;;  %v7764_v56 = vld [vmem:[%s13229_s5 + $0x34] sm:$0xf]  ;;  %v6661_v0 = vld [vmem:[%s13229_s5 + $0x38] sm:$0xf0]  ;;  %v9829_v19 = vpop.f32.mrf.mxu3 }
 0x2bf   : > { %v1623_v32 = vadd.f32 %v9625_v54, %v9781_v45  ;;  %v6664_v52 = vor.u32 %v7764_v56, %v6661_v0  ;;  %v7762_v54 = vld [vmem:[%s13229_s5 + $0x24] sm:$0xf] }
 0x2c0   : > { %v9778_v27 = vpop.f32.mrf.mxu2  ;;  %2372 = vmatpush.bf16.msra.mxu3 %v6676_v5  ;;  %v6659_v5 = vld [vmem:[%s13229_s5 + $0x30] sm:$0xf]  ;;  %v1729_v44 = vadd.f32 %v9735_v50, %v1675_v24 }
 0x2c1   : > { %v6660_v34 = vor.u32 %v7765_v21, %v6659_v5  ;;  %v6651_v5 = vld [vmem:[%s13229_s5 + $0x20] sm:$0xf]  ;;  %v7763_v21 = vld [vmem:[%s13229_s5 + $0x24] sm:$0xf0]  ;;  %v1677_v56 = vadd.f32 %v9747_v9, %v1623_v32  ;;  %v6645_v9 = vld [vmem:[%s13229_s5 + $0x18] sm:$0xf0]  ;;  %v1626_v32 = vadd.f32 %v9634_v30, %v9781_v45 }
 0x2c2   : > { %v9783_v43 = vpop.f32.mrf.mxu1  ;;  %2427 = vmatpush.bf16.msrb.mxu0 %v6672_v22  ;;  %v6652_v24 = vor.u32 %v7763_v21, %v6651_v5  ;;  %v7761_v5 = vld [vmem:[%s13229_s5 + $0x14] sm:$0xf0]  ;;  %v7758_v30 = vld [vmem:[%s13229_s5 + $0x4] sm:$0xf] }
 0x2c3   : > { %13373 = vst [vmem:[#allocation19_spill] sm:$0xff] %v9783_v43  ;;  %v7760_v43 = vld [vmem:[%s13229_s5 + $0x14] sm:$0xf] }
 0x2c4   : > { %2373 = vmatpush.bf16.msra.mxu3 %v6668_v58  ;;  %v13374_v58 = vld [vmem:[#allocation30_spill] sm:$0xff] }
 0x2c6   : > { %2428 = vmatpush.bf16.msrb.mxu0 %v6664_v52  ;;  %v6643_v52 = vld [vmem:[%s13229_s5 + $0x10] sm:$0xf] }
 0x2c7   : > { %v6644_v21 = vor.u32 %v7761_v5, %v6643_v52 }
 0x2c8   : > { %v9812_v25 = vpop.f32.mrf.mxu2  ;;  %2374 = vmatpush.bf16.msra.mxu3 %v6660_v34 }
 0x2ca   : > { %v1782_v16 = vpop.f32.mrf.mxu1 }
 0x2cb   : > { %v1783_v22 = vadd.f32 %v1782_v16, %v1729_v44  ;;  %v9848_v16 = vpop.f32.mrf.mxu0 }
 0x2cc   : > { %2375 = vmatpush.bf16.msra.mxu3 %v6652_v24 }
 0x2cd   : > { %1821 = vmatmul.bf16.gmra.mxu1 %v13374_v58  ;;  %1875 = vmatmul.bf16.gmra.mxu2 %v9222_v28  ;;  %v6653_v28 = vld [vmem:[%s13229_s5 + $0x28] sm:$0xf0] }
 0x2ce   : > { %v6656_v0 = vor.u32 %v7762_v54, %v6653_v28  ;;  %v6648_v54 = vor.u32 %v7760_v43, %v6645_v9  ;;  %v6635_v28 = vld [vmem:[%s13229_s5] sm:$0xf]  ;;  %v6637_v43 = vld [vmem:[%s13229_s5 + $0x8] sm:$0xf0] }
 0x2d0   : > { %v1836_v50 = vpop.f32.mrf.mxu2  ;;  %2429 = vmatpush.bf16.msrb.mxu0 %v6656_v0  ;;  %2376 = vmatpush.bf16.msra.mxu3 %v6644_v21 }
 0x2d1   : > { %v1837_v34 = vadd.f32 %v1836_v50, %v1783_v22  ;;  %v1731_v22 = vadd.f32 %v9753_v63, %v1677_v56  ;;  %v9866_v50 = vpop.f32.mrf.mxu3  ;;  %v1680_v56 = vadd.f32 %v9758_v33, %v1626_v32 }
 0x2d2   : > { %v1784_v44 = vpop.f32.mrf.mxu1 }
 0x2d3   : > { %v6615_v58 = vmul.f32 -1.442695, %v1837_v34  ;;  %v1785_v24 = vadd.f32 %v1784_v44, %v1731_v22  ;;  %v7759_v34 = vld [vmem:[%s13229_s5 + $0x4] sm:$0xf0]  ;;  %v9881_v21 = vpop.f32.mrf.mxu0 }
 0x2d4   : > { %2430 = vmatpush.bf16.msrb.mxu0 %v6648_v54  ;;  %v6636_v63 = vor.u32 %v7759_v34, %v6635_v28  ;;  %v1628_v54 = vadd.f32 %v9641_v12, %v9781_v45  ;;  %v1734_v28 = vadd.f32 %v9768_v4, %v1680_v56 }
 0x2d5   : > { %8017 = vpow2.f32 %v6615_v58  ;;  %v6640_v58 = vor.u32 %v7758_v30, %v6637_v43 }
 0x2d6   : > { %2377 = vmatpush.bf16.msra.mxu3 %v6636_v63  ;;  %v1682_v32 = vadd.f32 %v9785_v37, %v1628_v54 }
 0x2d8   : > { %v1838_v0 = vpop.f32.mrf.mxu2  ;;  %2431 = vmatpush.bf16.msrb.mxu0 %v6640_v58  ;;  %v1736_v56 = vadd.f32 %v9801_v3, %v1682_v32 }
 0x2d9   : > { %v1839_v44 = vadd.f32 %v1838_v0, %v1785_v24  ;;  %v9886_v33 = vpop.f32.mrf.mxu3 }
 0x2da   : > { %v1787_v52 = vpop.f32.mrf.mxu1 }
 0x2db   : > { %v8018_v5 = vpop.eup %8017  ;;  %v6616_v9 = vmul.f32 -1.442695, %v1839_v44  ;;  %v1788_v34 = vadd.f32 %v1787_v52, %v1734_v28  ;;  %v1631_v44 = vadd.f32 %v9650_v57, %v9781_v45  ;;  %v9893_v12 = vpop.f32.mrf.mxu0 }
 0x2dc   : > { %v1953_v22 = vadd.f32 1.0, %v8018_v5 }
 0x2dd   : > { %8019 = vpow2.f32 %v6616_v9 }
 0x2de   : > { %8021 = vrcp.f32 %v1953_v22  ;;  %v1982_v5 = vand.u32 2147483648, %v1953_v22  ;;  %v1980_v57 = vand.u32 2147483647, %v1953_v22  ;;  %vm1976_vm7 = vweird.f32 %v1953_v22 }
 0x2e0   : > { %v1841_v53 = vpop.f32.mrf.mxu2  ;;  %vm1981_vm9 = vcmp.eq.f32.partialorder %v1980_v57, 8.507059e+37 }
 0x2e1   : > { %v1842_v24 = vadd.f32 %v1841_v53, %v1788_v34  ;;  %v1685_v53 = vadd.f32 %v9829_v19, %v1631_v44 }
 0x2e2   : > { %v1789_v30 = vpop.f32.mrf.mxu1 }
 0x2e3   : > { %v8020_v0 = vpop.eup %8019  ;;  %v6617_v63 = vmul.f32 -1.442695, %v1842_v24  ;;  %v1790_v37 = vadd.f32 %v1789_v30, %v1736_v56  ;;  %v1633_v30 = vadd.f32 %v9657_v23, %v9781_v45  ;;  %v1739_v44 = vadd.f32 %v9848_v16, %v1685_v53 }
 0x2e4   : > { %v8022_v43 = vpop.eup %8021  ;;  %v9891_v58 = vadd.f32 1.0, %v8020_v0  ;;  %v9899_v0 = vpop.f32.mrf.mxu3 }
 0x2e5   : > { %v1972_v4 = vmul.f32 %v8022_v43, %v1953_v22  ;;  %8023 = vpow2.f32 %v6617_v63  ;;  %vm1977_vm6 = vweird.f32 %v8022_v43 }
 0x2e6   : > { %8025 = vrcp.f32 %v9891_v58  ;;  %vm1978_vm8 = vmor %vm1976_vm7, %vm1977_vm6  ;;  %v1997_v16 = vand.u32 2147483648, %v9891_v58  ;;  %vm1991_vm11 = vweird.f32 %v9891_v58 }
 0x2e7   : > { %v1973_v52 = vsub.f32 1.0, %v1972_v4  ;;  %8027 = vtanh.f32 %v9612_v2  ;;  %v1983_v2 = vor.u32 1.1754944e-38, %v1982_v5  ;;  %v1687_v5 = vadd.f32 %v9866_v50, %v1633_v30 }
 0x2e8   : > { %v1843_v9 = vpop.f32.mrf.mxu2  ;;  %v1998_v50 = vor.u32 1.1754944e-38, %v1997_v16 }
 0x2e9   : > { %v1974_v54 = vmul.f32 %v8022_v43, %v1973_v52  ;;  %v1844_v28 = vadd.f32 %v1843_v9, %v1790_v37  ;;  %v9908_v37 = vpop.f32.mrf.mxu0 }
 0x2ea   : > { %v1792_v34 = vpop.f32.mrf.mxu1 }
 0x2eb   : > { %v8024_v24 = vpop.eup %8023  ;;  %v1975_v63 = vadd.f32 %v8022_v43, %v1974_v54  ;;  %v6618_v3 = vmul.f32 -1.442695, %v1844_v28  ;;  %v1793_v54 = vadd.f32 %v1792_v34, %v1739_v44  ;;  %v1741_v44 = vadd.f32 %v9881_v21, %v1687_v5 }
 0x2ec   : > { %v8026_v32 = vpop.eup %8025  ;;  %v9903_v19 = vadd.f32 1.0, %v8024_v24 }
 0x2ed   : > { %v1987_v4 = vmul.f32 %v8026_v32, %v9891_v58  ;;  %8029 = vpow2.f32 %v6618_v3  ;;  %v1979_v56 = vsel %vm1978_vm8, %v8022_v43, %v1975_v63  ;;  %v8028_v52 = vpop.eup %8027  ;;  %vm1992_vm10 = vweird.f32 %v8026_v32 }
 0x2ee   : > { %8031 = vrcp.f32 %v9903_v19  ;;  %v1984_v22 = vsel %vm1981_vm9, %v1983_v2, %v1979_v56  ;;  %v1995_v43 = vand.u32 2147483647, %v9891_v58  ;;  %vm1993_vm12 = vmor %vm1991_vm11, %vm1992_vm10  ;;  %v2010_v21 = vand.u32 2147483647, %v9903_v19 }
 0x2ef   : > { %v1988_v9 = vsub.f32 1.0, %v1987_v4  ;;  %v2241_v23 = vmul.f32 %v8028_v52, %v1984_v22  ;;  %8033 = vtanh.f32 %v9621_v41  ;;  %v1636_v41 = vadd.f32 %v9666_v49, %v9781_v45  ;;  %v9920_v4 = vpop.f32.mrf.mxu3 }
 0x2f0   : > { %v1846_v53 = vpop.f32.mrf.mxu2  ;;  %vm1996_vm13 = vcmp.eq.f32.partialorder %v1995_v43, 8.507059e+37  ;;  %v2012_v5 = vand.u32 2147483648, %v9903_v19  ;;  %vm2006_vm15 = vweird.f32 %v9903_v19  ;;  %vm2011_vm1 = vcmp.eq.f32.partialorder %v2010_v21, 8.507059e+37 }
 0x2f1   : > { %v1989_v57 = vmul.f32 %v8026_v32, %v1988_v9  ;;  %v1847_v28 = vadd.f32 %v1846_v53, %v1793_v54  ;;  %v1690_v16 = vadd.f32 %v9886_v33, %v1636_v41  ;;  %v1638_v33 = vadd.f32 %v9677_v26, %v9781_v45 }
 0x2f2   : > { %v1794_v24 = vpop.f32.mrf.mxu1 }
 0x2f3   : > { %v8030_v63 = vpop.eup %8029  ;;  %v1990_v3 = vadd.f32 %v8026_v32, %v1989_v57  ;;  %v6619_v2 = vmul.f32 -1.442695, %v1847_v28  ;;  %v1795_v54 = vadd.f32 %v1794_v24, %v1741_v44  ;;  %v9928_v57 = vpop.f32.mrf.mxu0 }
 0x2f4   : > { %v8032_v34 = vpop.eup %8031  ;;  %v9917_v30 = vadd.f32 1.0, %v8030_v63 }
 0x2f5   : > { %v2002_v56 = vmul.f32 %v8032_v34, %v9903_v19  ;;  %8035 = vpow2.f32 %v6619_v2  ;;  %v1994_v52 = vsel %vm1993_vm12, %v8026_v32, %v1990_v3  ;;  %v8034_v22 = vpop.eup %8033  ;;  %vm2007_vm14 = vweird.f32 %v8032_v34 }
 0x2f6   : > { %8037 = vrcp.f32 %v9917_v30  ;;  %v1999_v58 = vsel %vm1996_vm13, %v1998_v50, %v1994_v52  ;;  %v1744_v50 = vadd.f32 %v9893_v12, %v1690_v16  ;;  %vm2008_vm0 = vmor %vm2006_vm15, %vm2007_vm14  ;;  %v1692_v12 = vadd.f32 %v9899_v0, %v1638_v33 }
 0x2f7   : > { %v2003_v9 = vsub.f32 1.0, %v2002_v56  ;;  %v2242_v49 = vmul.f32 %v8034_v22, %v1999_v58  ;;  %8039 = vtanh.f32 %v9628_v17  ;;  %v9938_v19 = vpop.f32.mrf.mxu3  ;;  %vm2021_vm7 = vweird.f32 %v9917_v30 }
 0x2f8   : > { %v1848_v53 = vpop.f32.mrf.mxu2 }
 0x2f9   : > { %v1849_v32 = vadd.f32 %v1848_v53, %v1795_v54  ;;  %v2259_v43 = vpack.c.bf16 %v2242_v49, %v2241_v23  ;;  %v2004_v28 = vmul.f32 %v8032_v34, %v2003_v9  ;;  %v2013_v23 = vor.u32 1.1754944e-38, %v2012_v5 }
 0x2fa   : > { %v1797_v63 = vpop.f32.mrf.mxu1  ;;  %v2027_v49 = vand.u32 2147483648, %v9917_v30 }
 0x2fb   : > { %v8036_v3 = vpop.eup %8035  ;;  %v6620_v2 = vmul.f32 -1.442695, %v1849_v32  ;;  %2378 = vmatmul.bf16.vlgmr.msra.gmra.mxu3 %v2259_v43  ;;  %2432 = vmatmul.bf16.vlgmr.msrb.gmra.mxu0 %v2259_v43  ;;  %v2005_v24 = vadd.f32 %v8032_v34, %v2004_v28  ;;  %v1798_v9 = vadd.f32 %v1797_v63, %v1744_v50  ;;  %v9944_v32 = vpop.f32.mrf.mxu0 }
 0x2fc   : > { %v8038_v17 = vpop.eup %8037  ;;  %v9933_v41 = vadd.f32 1.0, %v8036_v3  ;;  %v1746_v3 = vadd.f32 %v9908_v37, %v1692_v12 }
 0x2fd   : > { %v2017_v44 = vmul.f32 %v8038_v17, %v9917_v30  ;;  %8041 = vpow2.f32 %v6620_v2  ;;  %v2009_v56 = vsel %vm2008_vm0, %v8032_v34, %v2005_v24  ;;  %v8040_v52 = vpop.eup %8039  ;;  %vm2022_vm6 = vweird.f32 %v8038_v17 }
 0x2fe   : > { %8043 = vrcp.f32 %v9933_v41  ;;  %v2014_v22 = vsel %vm2011_vm1, %v2013_v23, %v2009_v56  ;;  %v2025_v34 = vand.u32 2147483647, %v9917_v30  ;;  %vm2023_vm8 = vmor %vm2021_vm7, %vm2022_vm6  ;;  %v2028_v2 = vor.u32 1.1754944e-38, %v2027_v49 }
 0x2ff   : > { %v2018_v58 = vsub.f32 1.0, %v2017_v44  ;;  %v2243_v26 = vmul.f32 %v8040_v52, %v2014_v22  ;;  %8045 = vtanh.f32 %v9637_v15  ;;  %v1641_v15 = vadd.f32 %v9686_v55, %v9781_v45 }
 0x300   : > { %v1851_v54 = vpop.f32.mrf.mxu2  ;;  %vm2026_vm9 = vcmp.eq.f32.partialorder %v2025_v34, 8.507059e+37  ;;  %v2040_v37 = vand.u32 2147483647, %v9933_v41  ;;  %v2042_v22 = vand.u32 2147483648, %v9933_v41  ;;  %vm2036_vm11 = vweird.f32 %v9933_v41 }
 0x301   : > { %v1852_v16 = vadd.f32 %v1851_v54, %v1798_v9  ;;  %v2019_v53 = vmul.f32 %v8038_v17, %v2018_v58  ;;  %v1695_v55 = vadd.f32 %v9920_v4, %v1641_v15  ;;  %v1699_v58 = vpop.f32.mrf.mxu3  ;;  %v1643_v4 = vadd.f32 %v9695_v39, %v9781_v45 }
 0x302   : > { %v1799_v21 = vpop.f32.mrf.mxu1  ;;  %vm2041_vm13 = vcmp.eq.f32.partialorder %v2040_v37, 8.507059e+37 }
 0x303   : > { %v8042_v5 = vpop.eup %8041  ;;  %v6621_v43 = vmul.f32 -1.442695, %v1852_v16  ;;  %v2020_v28 = vadd.f32 %v8038_v17, %v2019_v53  ;;  %v1800_v44 = vadd.f32 %v1799_v21, %v1746_v3  ;;  %v1749_v21 = vadd.f32 %v9928_v57, %v1695_v55 }
 0x304   : > { %v8044_v63 = vpop.eup %8043  ;;  %v9949_v0 = vadd.f32 1.0, %v8042_v5  ;;  %v1753_v5 = vpop.f32.mrf.mxu0  ;;  %v1697_v39 = vadd.f32 %v9938_v19, %v1643_v4 }
 0x305   : > { %v2032_v24 = vmul.f32 %v8044_v63, %v9933_v41  ;;  %8047 = vpow2.f32 %v6621_v43  ;;  %v2024_v33 = vsel %vm2023_vm8, %v8038_v17, %v2020_v28  ;;  %v8046_v50 = vpop.eup %8045  ;;  %vm2037_vm10 = vweird.f32 %v8044_v63 }
 0x306   : > { %8049 = vrcp.f32 %v9949_v0  ;;  %v2029_v23 = vsel %vm2026_vm9, %v2028_v2, %v2024_v33  ;;  %vm2038_vm12 = vmor %vm2036_vm11, %vm2037_vm10  ;;  %v2057_v33 = vand.u32 2147483648, %v9949_v0  ;;  %vm2051_vm15 = vweird.f32 %v9949_v0 }
 0x307   : > { %v2033_v30 = vsub.f32 1.0, %v2032_v24  ;;  %v2244_v56 = vmul.f32 %v8046_v50, %v2029_v23  ;;  %8051 = vtanh.f32 %v9644_v8 }
 0x308   : > { %v1853_v52 = vpop.f32.mrf.mxu2 }
 0x309   : > { %v1854_v9 = vadd.f32 %v1853_v52, %v1800_v44  ;;  %v2260_v17 = vpack.c.bf16 %v2244_v56, %v2243_v26  ;;  %v2034_v12 = vmul.f32 %v8044_v63, %v2033_v30  ;;  %v2043_v26 = vor.u32 1.1754944e-38, %v2042_v22  ;;  %v1701_v56 = vpop.f32.mrf.mxu3 }
 0x30a   : > { %v1802_v54 = vpop.f32.mrf.mxu1  ;;  %v1751_v22 = vadd.f32 %v9944_v32, %v1697_v39 }
 0x30b   : > { %v8048_v49 = vpop.eup %8047  ;;  %v6622_v16 = vmul.f32 -1.442695, %v1854_v9  ;;  %2383 = vmatmul.bf16.gmra.mxu3 %v2260_v17  ;;  %2436 = vmatmul.bf16.gmra.mxu0 %v2260_v17  ;;  %v2035_v53 = vadd.f32 %v8044_v63, %v2034_v12  ;;  %v1803_v2 = vadd.f32 %v1802_v54, %v1749_v21  ;;  %v2058_v9 = vor.u32 1.1754944e-38, %v2057_v33 }
 0x30c   : > { %v8050_v8 = vpop.eup %8049  ;;  %v9961_v34 = vadd.f32 1.0, %v8048_v49 }
 0x30d   : > { %v2047_v43 = vmul.f32 %v8050_v8, %v9949_v0  ;;  %8053 = vpow2.f32 %v6622_v16  ;;  %v2039_v28 = vsel %vm2038_vm12, %v8044_v63, %v2035_v53  ;;  %v8052_v15 = vpop.eup %8051  ;;  %vm2052_vm14 = vweird.f32 %v8050_v8 }
 0x30e   : > { %8055 = vrcp.f32 %v9961_v34  ;;  %v2044_v41 = vsel %vm2041_vm13, %v2043_v26, %v2039_v28  ;;  %v2055_v63 = vand.u32 2147483647, %v9949_v0  ;;  %vm2053_vm0 = vmor %vm2051_vm15, %vm2052_vm14  ;;  %v1755_v0 = vpop.f32.mrf.mxu0  ;;  %v2070_v32 = vand.u32 2147483647, %v9961_v34 }
 0x30f   : > { %v2048_v3 = vsub.f32 1.0, %v2047_v43  ;;  %v2245_v24 = vmul.f32 %v8052_v15, %v2044_v41  ;;  %8057 = vtanh.f32 %v9653_v59  ;;  %v1646_v59 = vadd.f32 %v9706_v38, %v9781_v45 }
 0x310   : > { %v1856_v57 = vpop.f32.mrf.mxu2  ;;  %vm2056_vm1 = vcmp.eq.f32.partialorder %v2055_v63, 8.507059e+37  ;;  %v2072_v26 = vand.u32 2147483648, %v9961_v34  ;;  %vm2066_vm7 = vweird.f32 %v9961_v34  ;;  %vm2071_vm9 = vcmp.eq.f32.partialorder %v2070_v32, 8.507059e+37 }
 0x311   : > { %v1857_v50 = vadd.f32 %v1856_v57, %v1803_v2  ;;  %v2049_v23 = vmul.f32 %v8050_v8, %v2048_v3  ;;  %v1700_v38 = vadd.f32 %v1699_v58, %v1646_v59 }
 0x312   : > { %v1804_v30 = vpop.f32.mrf.mxu1  ;;  %v2073_v33 = vor.u32 1.1754944e-38, %v2072_v26 }
 0x313   : > { %v8054_v44 = vpop.eup %8053  ;;  %v6623_v55 = vmul.f32 -1.442695, %v1857_v50  ;;  %v2050_v52 = vadd.f32 %v8050_v8, %v2049_v23  ;;  %v1805_v53 = vadd.f32 %v1804_v30, %v1751_v22  ;;  %v1754_v57 = vadd.f32 %v1753_v5, %v1700_v38 }
 0x314   : > { %v8056_v37 = vpop.eup %8055  ;;  %v9973_v19 = vadd.f32 1.0, %v8054_v44 }
 0x315   : > { %v2062_v17 = vmul.f32 %v8056_v37, %v9961_v34  ;;  %8059 = vpow2.f32 %v6623_v55  ;;  %v2054_v12 = vsel %vm2053_vm0, %v8050_v8, %v2050_v52  ;;  %v8058_v54 = vpop.eup %8057  ;;  %vm2067_vm6 = vweird.f32 %v8056_v37 }
 0x316   : > { %8061 = vrcp.f32 %v9973_v19  ;;  %v2059_v49 = vsel %vm2056_vm1, %v2058_v9, %v2054_v12  ;;  %vm2068_vm8 = vmor %vm2066_vm7, %vm2067_vm6  ;;  %v2087_v5 = vand.u32 2147483648, %v9973_v19  ;;  %v1758_v59 = vpop.f32.mrf.mxu0  ;;  %vm2081_vm11 = vweird.f32 %v9973_v19 }
 0x317   : > { %v2063_v16 = vsub.f32 1.0, %v2062_v17  ;;  %v2246_v4 = vmul.f32 %v8058_v54, %v2059_v49  ;;  %8063 = vtanh.f32 %v9660_v20  ;;  %v1648_v20 = vadd.f32 %v9712_v13, %v9781_v45 }
 0x318   : > { %v1858_v21 = vpop.f32.mrf.mxu2 }
 0x319   : > { %v1859_v43 = vadd.f32 %v1858_v21, %v1805_v53  ;;  %v2261_v28 = vpack.c.bf16 %v2246_v4, %v2245_v24  ;;  %v2064_v8 = vmul.f32 %v8056_v37, %v2063_v16  ;;  %v1704_v24 = vpop.f32.mrf.mxu3  ;;  %v1702_v13 = vadd.f32 %v1701_v56, %v1648_v20 }
 0x31a   : > { %v1807_v15 = vpop.f32.mrf.mxu1  ;;  %v2088_v4 = vor.u32 1.1754944e-38, %v2087_v5 }
 0x31b   : > { %v8060_v41 = vpop.eup %8059  ;;  %v6624_v3 = vmul.f32 -1.442695, %v1859_v43  ;;  %2388 = vmatmul.bf16.gmra.mxu3 %v2261_v28  ;;  %2441 = vmatmul.bf16.gmra.mxu0 %v2261_v28  ;;  %v2065_v2 = vadd.f32 %v8056_v37, %v2064_v8  ;;  %v1808_v44 = vadd.f32 %v1807_v15, %v1754_v57  ;;  %v1756_v53 = vadd.f32 %v1755_v0, %v1702_v13 }
 0x31c   : > { %v8062_v39 = vpop.eup %8061  ;;  %v9984_v58 = vadd.f32 1.0, %v8060_v41 }
 0x31d   : > { %v2077_v50 = vmul.f32 %v8062_v39, %v9973_v19  ;;  %8065 = vpow2.f32 %v6624_v3  ;;  %v2069_v23 = vsel %vm2068_vm8, %v8056_v37, %v2065_v2  ;;  %v8064_v63 = vpop.eup %8063  ;;  %vm2082_vm10 = vweird.f32 %v8062_v39 }
 0x31e   : > { %8067 = vrcp.f32 %v9984_v58  ;;  %v2074_v30 = vsel %vm2071_vm9, %v2073_v33, %v2069_v23  ;;  %v2085_v37 = vand.u32 2147483647, %v9973_v19  ;;  %vm2083_vm12 = vmor %vm2081_vm11, %vm2082_vm10  ;;  %v2100_v0 = vand.u32 2147483647, %v9984_v58  ;;  %v1760_v33 = vpop.f32.mrf.mxu0 }
 0x31f   : > { %v2078_v34 = vsub.f32 1.0, %v2077_v50  ;;  %v2247_v55 = vmul.f32 %v8064_v63, %v2074_v30  ;;  %8069 = vtanh.f32 %v9671_v7  ;;  %v1651_v7 = vadd.f32 %v9728_v35, %v9781_v45 }
 0x320   : > { %v1861_v52 = vpop.f32.mrf.mxu2  ;;  %vm2086_vm13 = vcmp.eq.f32.partialorder %v2085_v37, 8.507059e+37  ;;  %v2102_v41 = vand.u32 2147483648, %v9984_v58  ;;  %vm2096_vm15 = vweird.f32 %v9984_v58  ;;  %vm2101_vm1 = vcmp.eq.f32.partialorder %v2100_v0, 8.507059e+37 }
 0x321   : > { %v1862_v22 = vadd.f32 %v1861_v52, %v1808_v44  ;;  %v2079_v9 = vmul.f32 %v8062_v39, %v2078_v34  ;;  %v1706_v43 = vpop.f32.mrf.mxu3  ;;  %v1705_v35 = vadd.f32 %v1704_v24, %v1651_v7  ;;  %v1653_v24 = vadd.f32 %v9733_v31, %v9781_v45 }
 0x322   : > { %v1809_v17 = vpop.f32.mrf.mxu1  ;;  %v2103_v34 = vor.u32 1.1754944e-38, %v2102_v41 }
 0x323   : > { %v8066_v12 = vpop.eup %8065  ;;  %v6625_v54 = vmul.f32 -1.442695, %v1862_v22  ;;  %v2080_v49 = vadd.f32 %v8062_v39, %v2079_v9  ;;  %v1810_v28 = vadd.f32 %v1809_v17, %v1756_v53  ;;  %v1759_v30 = vadd.f32 %v1758_v59, %v1705_v35 }
 0x324   : > { %v8068_v16 = vpop.eup %8067  ;;  %v9994_v56 = vadd.f32 1.0, %v8066_v12  ;;  %v1707_v31 = vadd.f32 %v1706_v43, %v1653_v24  ;;  %v1658_v24 = vadd.f32 %v9756_v11, %v9781_v45 }
 0x325   : > { %v2092_v38 = vmul.f32 %v8068_v16, %v9984_v58  ;;  %8071 = vpow2.f32 %v6625_v54  ;;  %v2084_v21 = vsel %vm2083_vm12, %v8062_v39, %v2080_v49  ;;  %v8070_v32 = vpop.eup %8069  ;;  %vm2097_vm14 = vweird.f32 %v8068_v16 }
 0x326   : > { %8073 = vrcp.f32 %v9994_v56  ;;  %v2089_v26 = vsel %vm2086_vm13, %v2088_v4, %v2084_v21  ;;  %vm2098_vm0 = vmor %vm2096_vm15, %vm2097_vm14  ;;  %v2117_v59 = vand.u32 2147483648, %v9994_v56  ;;  %v2115_v54 = vand.u32 2147483647, %v9994_v56 }
 0x327   : > { %v2093_v19 = vsub.f32 1.0, %v2092_v38  ;;  %v2248_v8 = vmul.f32 %v8070_v32, %v2089_v26  ;;  %8075 = vtanh.f32 %v9680_v6  ;;  %vm2111_vm7 = vweird.f32 %v9994_v56  ;;  %v1763_v26 = vpop.f32.mrf.mxu0 }
 0x328   : > { %v1863_v15 = vpop.f32.mrf.mxu2  ;;  %v1761_v21 = vadd.f32 %v1760_v33, %v1707_v31  ;;  %v2118_v32 = vor.u32 1.1754944e-38, %v2117_v59  ;;  %vm2116_vm9 = vcmp.eq.f32.partialorder %v2115_v54, 8.507059e+37 }
 0x329   : > { %v1864_v3 = vadd.f32 %v1863_v15, %v1810_v28  ;;  %v2262_v2 = vpack.c.bf16 %v2248_v8, %v2247_v55  ;;  %v2094_v39 = vmul.f32 %v8068_v16, %v2093_v19  ;;  %v1709_v37 = vpop.f32.mrf.mxu3 }
 0x32a   : > { %v1812_v20 = vpop.f32.mrf.mxu1 }
 0x32b   : > { %v8072_v57 = vpop.eup %8071  ;;  %v6626_v50 = vmul.f32 -1.442695, %v1864_v3  ;;  %2393 = vmatmul.bf16.gmra.mxu3 %v2262_v2  ;;  %2446 = vmatmul.bf16.gmra.mxu0 %v2262_v2  ;;  %v2095_v23 = vadd.f32 %v8068_v16, %v2094_v39  ;;  %v1813_v58 = vadd.f32 %v1812_v20, %v1759_v30 }
 0x32c   : > { %v8074_v6 = vpop.eup %8073  ;;  %v10004_v63 = vadd.f32 1.0, %v8072_v57 }
 0x32d   : > { %v2107_v44 = vmul.f32 %v8074_v6, %v9994_v56  ;;  %8077 = vpow2.f32 %v6626_v50  ;;  %v2099_v55 = vsel %vm2098_vm0, %v8068_v16, %v2095_v23  ;;  %v8076_v13 = vpop.eup %8075  ;;  %vm2112_vm6 = vweird.f32 %v8074_v6 }
 0x32e   : > { %8079 = vrcp.f32 %v10004_v63  ;;  %v2104_v52 = vsel %vm2101_vm1, %v2103_v34, %v2099_v55  ;;  %vm2113_vm8 = vmor %vm2111_vm7, %vm2112_vm6  ;;  %v2130_v41 = vand.u32 2147483647, %v10004_v63  ;;  %v2132_v3 = vand.u32 2147483648, %v10004_v63 }
 0x32f   : > { %v2108_v5 = vsub.f32 1.0, %v2107_v44  ;;  %v2249_v22 = vmul.f32 %v8076_v13, %v2104_v52  ;;  %8081 = vtanh.f32 %v9689_v62  ;;  %v1656_v62 = vadd.f32 %v9749_v1, %v9781_v45 }
 0x330   : > { %v1866_v9 = vpop.f32.mrf.mxu2  ;;  %vm2126_vm11 = vweird.f32 %v10004_v63  ;;  %v2133_v44 = vor.u32 1.1754944e-38, %v2132_v3  ;;  %vm2131_vm13 = vcmp.eq.f32.partialorder %v2130_v41, 8.507059e+37 }
 0x331   : > { %v1867_v17 = vadd.f32 %v1866_v9, %v1813_v58  ;;  %v2109_v12 = vmul.f32 %v8074_v6, %v2108_v5  ;;  %v1710_v1 = vadd.f32 %v1709_v37, %v1656_v62  ;;  %v1711_v50 = vpop.f32.mrf.mxu3  ;;  %v1765_v58 = vpop.f32.mrf.mxu0 }
 0x332   : > { %v1814_v49 = vpop.f32.mrf.mxu1  ;;  %v1712_v11 = vadd.f32 %v1711_v50, %v1658_v24 }
 0x333   : > { %v8078_v16 = vpop.eup %8077  ;;  %v6627_v7 = vmul.f32 -1.442695, %v1867_v17  ;;  %v2110_v53 = vadd.f32 %v8074_v6, %v2109_v12  ;;  %v1815_v35 = vadd.f32 %v1814_v49, %v1761_v21  ;;  %v1764_v34 = vadd.f32 %v1763_v26, %v1710_v1 }
 0x334   : > { %v8080_v4 = vpop.eup %8079  ;;  %v10014_v38 = vadd.f32 1.0, %v8078_v16  ;;  %v13375_v16 = vld [vmem:[#allocation33_spill] sm:$0xff] }
 0x335   : > { %v2122_v43 = vmul.f32 %v8080_v4, %v10004_v63  ;;  %8083 = vpow2.f32 %v6627_v7  ;;  %v2114_v19 = vsel %vm2113_vm8, %v8074_v6, %v2110_v53  ;;  %v8082_v28 = vpop.eup %8081  ;;  %vm2127_vm10 = vweird.f32 %v8080_v4 }
 0x336   : > { %8085 = vrcp.f32 %v10014_v38  ;;  %v2119_v8 = vsel %vm2116_vm9, %v2118_v32, %v2114_v19  ;;  %vm2128_vm12 = vmor %vm2126_vm11, %vm2127_vm10  ;;  %v2147_v59 = vand.u32 2147483648, %v10014_v38  ;;  %v2145_v12 = vand.u32 2147483647, %v10014_v38 }
 0x337   : > { %v2123_v56 = vsub.f32 1.0, %v2122_v43  ;;  %v2250_v15 = vmul.f32 %v8082_v28, %v2119_v8  ;;  %8087 = vtanh.f32 %v9700_v48  ;;  %v1491_v7 = vadd.f32 %v9669_v29, %v13375_v16  ;;  %v7817_v16 = vld [vmem:[%s13227_s3 + $0x3d4] sm:$0xf0] }
 0x338   : > { %v1868_v0 = vpop.f32.mrf.mxu2  ;;  %vm2141_vm15 = vweird.f32 %v10014_v38  ;;  %v1766_v32 = vadd.f32 %v1765_v58, %v1712_v11  ;;  %v2148_v26 = vor.u32 1.1754944e-38, %v2147_v59  ;;  %vm2146_vm1 = vcmp.eq.f32.partialorder %v2145_v12, 8.507059e+37 }
 0x339   : > { %v1869_v2 = vadd.f32 %v1868_v0, %v1815_v35  ;;  %v2263_v39 = vpack.c.bf16 %v2250_v15, %v2249_v22  ;;  %v2124_v20 = vmul.f32 %v8080_v4, %v2123_v56  ;;  %v1714_v43 = vpop.f32.mrf.mxu3  ;;  %v1768_v3 = vpop.f32.mrf.mxu0 }
 0x33a   : > { %v1817_v57 = vpop.f32.mrf.mxu1 }
 0x33b   : > { %v8084_v33 = vpop.eup %8083  ;;  %v6628_v23 = vmul.f32 -1.442695, %v1869_v2  ;;  %2398 = vmatmul.bf16.gmra.mxu3 %v2263_v39  ;;  %2451 = vmatmul.bf16.gmra.mxu0 %v2263_v39  ;;  %v2125_v6 = vadd.f32 %v8080_v4, %v2124_v20  ;;  %v1818_v22 = vadd.f32 %v1817_v57, %v1764_v34 }
 0x33c   : > { %v8086_v48 = vpop.eup %8085  ;;  %v10024_v30 = vadd.f32 1.0, %v8084_v33 }
 0x33d   : > { %v2137_v55 = vmul.f32 %v8086_v48, %v10014_v38  ;;  %8089 = vpow2.f32 %v6628_v23  ;;  %v2129_v13 = vsel %vm2128_vm12, %v8080_v4, %v2125_v6  ;;  %v8088_v52 = vpop.eup %8087  ;;  %vm2142_vm14 = vweird.f32 %v8086_v48 }
 0x33e   : > { %8091 = vrcp.f32 %v10024_v30  ;;  %v2134_v5 = vsel %vm2131_vm13, %v2133_v44, %v2129_v13  ;;  %vm2143_vm0 = vmor %vm2141_vm15, %vm2142_vm14  ;;  %v1545_v38 = vadd.f32 %v9675_v14, %v1491_v7  ;;  %v2160_v0 = vand.u32 2147483647, %v10024_v30 }
 0x33f   : > { %v2138_v63 = vsub.f32 1.0, %v2137_v55  ;;  %v2251_v31 = vmul.f32 %v8088_v52, %v2134_v5  ;;  %8093 = vtanh.f32 %v9709_v60  ;;  %v1661_v60 = vadd.f32 %v9778_v27, %v9781_v45 }
 0x340   : > { %v1871_v9 = vpop.f32.mrf.mxu2  ;;  %v2162_v41 = vand.u32 2147483648, %v10024_v30  ;;  %v1599_v14 = vadd.f32 %v9730_v18, %v1545_v38  ;;  %vm2156_vm7 = vweird.f32 %v10024_v30  ;;  %v1663_v6 = vadd.f32 %v9812_v25, %v9781_v45  ;;  %v6964_v18 = vld [vmem:[%s13227_s3 + $0x3f0] sm:$0xf] }
 0x341   : > { %v1872_v37 = vadd.f32 %v1871_v9, %v1818_v22  ;;  %v2139_v17 = vmul.f32 %v8086_v48, %v2138_v63  ;;  %v1715_v15 = vadd.f32 %v1714_v43, %v1661_v60  ;;  %vm2161_vm9 = vcmp.eq.f32.partialorder %v2160_v0, 8.507059e+37  ;;  %v1716_v25 = vpop.f32.mrf.mxu3  ;;  %v6956_v22 = vld [vmem:[%s13227_s3 + $0x3e0] sm:$0xf] }
 0x342   : > { %v1819_v54 = vpop.f32.mrf.mxu1  ;;  %v2163_v34 = vor.u32 1.1754944e-38, %v2162_v41  ;;  %v1717_v11 = vadd.f32 %v1716_v25, %v1663_v6  ;;  %v6932_v25 = vld [vmem:[%s13227_s3 + $0x3b0] sm:$0xf] }
 0x343   : > { %v8090_v49 = vpop.eup %8089  ;;  %v6629_v53 = vmul.f32 -1.442695, %v1872_v37  ;;  %v2140_v4 = vadd.f32 %v8086_v48, %v2139_v17  ;;  %v1820_v35 = vadd.f32 %v1819_v54, %v1766_v32  ;;  %v1769_v24 = vadd.f32 %v1768_v3, %v1715_v15 }
 0x344   : > { %v8092_v62 = vpop.eup %8091  ;;  %v10036_v21 = vadd.f32 1.0, %v8090_v49  ;;  %v6948_v49 = vld [vmem:[%s13227_s3 + $0x3d0] sm:$0xf] }
 0x345   : > { %v2152_v19 = vmul.f32 %v8092_v62, %v10024_v30  ;;  %8095 = vpow2.f32 %v6629_v53  ;;  %v2144_v28 = vsel %vm2143_vm0, %v8086_v48, %v2140_v4  ;;  %v8094_v29 = vpop.eup %8093  ;;  %vm2157_vm6 = vweird.f32 %v8092_v62  ;;  %v7821_v30 = vld [vmem:[%s13227_s3 + $0x3f4] sm:$0xf0]  ;;  %v1770_v53 = vpop.f32.mrf.mxu0 }
 0x346   : > { %8097 = vrcp.f32 %v10036_v21  ;;  %v2149_v8 = vsel %vm2146_vm1, %v2148_v26, %v2144_v28  ;;  %vm2158_vm8 = vmor %vm2156_vm7, %vm2157_vm6  ;;  %v6965_v63 = vor.u32 %v7821_v30, %v6964_v18  ;;  %v2175_v59 = vand.u32 2147483647, %v10036_v21 }
 0x347   : > { %v2153_v56 = vsub.f32 1.0, %v2152_v19  ;;  %v2252_v27 = vmul.f32 %v8094_v29, %v2149_v8  ;;  %8099 = vtanh.f32 %v9716_v10  ;;  %v2177_v37 = vand.u32 2147483648, %v10036_v21 }
 0x348   : > { %v1873_v1 = vpop.f32.mrf.mxu2  ;;  %3297 = vmatpush.bf16.msrb.mxu3 %v6965_v63  ;;  %vm2171_vm11 = vweird.f32 %v10036_v21  ;;  %v1771_v26 = vadd.f32 %v1770_v53, %v1717_v11  ;;  %vm2176_vm13 = vcmp.eq.f32.partialorder %v2175_v59, 8.507059e+37  ;;  %v6949_v8 = vor.u32 %v7817_v16, %v6948_v49  ;;  %v7012_v11 = vld [vmem:[%s13227_s3 + $0x450] sm:$0xf] }
 0x349   : > { %v1874_v2 = vadd.f32 %v1873_v1, %v1820_v35  ;;  %v2264_v39 = vpack.c.bf16 %v2252_v27, %v2251_v31  ;;  %v2154_v20 = vmul.f32 %v8092_v62, %v2153_v56  ;;  %v7819_v31 = vld [vmem:[%s13227_s3 + $0x3e4] sm:$0xf0]  ;;  %v2178_v19 = vor.u32 1.1754944e-38, %v2177_v37  ;;  %v13376_v56 = vld [vmem:[#allocation34_spill] sm:$0xff] }
 0x34a   : > { %v1822_v57 = vpop.f32.mrf.mxu1  ;;  %v6957_v54 = vor.u32 %v7819_v31, %v6956_v22  ;;  %v1496_v35 = vadd.f32 %v9693_v61, %v13376_v56  ;;  %v7837_v61 = vld [vmem:[%s13227_s3 + $0x474] sm:$0xf0] }
 0x34b   : > { %v8096_v33 = vpop.eup %8095  ;;  %v6630_v50 = vmul.f32 -1.442695, %v1874_v2  ;;  %2403 = vmatmul.bf16.gmra.mxu3 %v2264_v39  ;;  %2456 = vmatmul.bf16.gmra.mxu0 %v2264_v39  ;;  %v2155_v23 = vadd.f32 %v8092_v62, %v2154_v20  ;;  %v1823_v5 = vadd.f32 %v1822_v57, %v1769_v24  ;;  %v7028_v2 = vld [vmem:[%s13227_s3 + $0x470] sm:$0xf] }
 0x34c   : > { %v8098_v10 = vpop.eup %8097  ;;  %v10048_v48 = vadd.f32 1.0, %v8096_v33  ;;  %3298 = vmatpush.bf16.msrb.mxu3 %v6957_v54  ;;  %v7815_v33 = vld [vmem:[%s13227_s3 + $0x3c4] sm:$0xf0] }
 0x34d   : > { %v2167_v44 = vmul.f32 %v8098_v10, %v10036_v21  ;;  %8101 = vpow2.f32 %v6630_v50  ;;  %v2159_v55 = vsel %vm2158_vm8, %v8092_v62, %v2155_v23  ;;  %v8100_v13 = vpop.eup %8099  ;;  %vm2172_vm10 = vweird.f32 %v8098_v10  ;;  %v7811_v54 = vld [vmem:[%s13227_s3 + $0x3a4] sm:$0xf0] }
 0x34e   : > { %8103 = vrcp.f32 %v10048_v48  ;;  %v2164_v45 = vsel %vm2161_vm9, %v2163_v34, %v2159_v55  ;;  %vm2173_vm12 = vmor %vm2171_vm11, %vm2172_vm10  ;;  %v2190_v0 = vand.u32 2147483647, %v10048_v48  ;;  %v2192_v3 = vand.u32 2147483648, %v10048_v48  ;;  %v7020_v34 = vld [vmem:[%s13227_s3 + $0x460] sm:$0xf] }
 0x34f   : > { %v2168_v52 = vsub.f32 1.0, %v2167_v44  ;;  %v2253_v58 = vmul.f32 %v8100_v13, %v2164_v45  ;;  %8105 = vtanh.f32 %v1599_v14  ;;  %v1550_v14 = vadd.f32 %v9698_v46, %v1496_v35  ;;  %v7835_v44 = vld [vmem:[%s13227_s3 + $0x464] sm:$0xf0] }
 0x350   : > { %v1876_v9 = vpop.f32.mrf.mxu2  ;;  %3299 = vmatpush.bf16.msrb.mxu3 %v6949_v8  ;;  %v7029_v50 = vor.u32 %v7837_v61, %v7028_v2  ;;  %vm2186_vm15 = vweird.f32 %v10048_v48  ;;  %v2193_v30 = vor.u32 1.1754944e-38, %v2192_v3  ;;  %v7021_v13 = vor.u32 %v7835_v44, %v7020_v34  ;;  %v6908_v2 = vld [vmem:[%s13227_s3 + $0x380] sm:$0xf]  ;;  %v13377_v61 = vld [vmem:[#allocation17_spill] sm:$0xff] }
 0x351   : > { %v1877_v17 = vadd.f32 %v1876_v9, %v1823_v5  ;;  %v2169_v12 = vmul.f32 %v8098_v10, %v2168_v52  ;;  %v1604_v46 = vadd.f32 %v9751_v47, %v1550_v14  ;;  %vm2191_vm1 = vcmp.eq.f32.partialorder %v2190_v0, 8.507059e+37  ;;  %v7813_v47 = vld [vmem:[%s13227_s3 + $0x3b4] sm:$0xf0]  ;;  %v6996_v0 = vld [vmem:[%s13227_s3 + $0x430] sm:$0xf] }
 0x352   : > { %v1824_v43 = vpop.f32.mrf.mxu1  ;;  %3351 = vmatpush.bf16.msra.mxu0 %v7029_v50  ;;  %v6933_v31 = vor.u32 %v7813_v47, %v6932_v25  ;;  %v7833_v9 = vld [vmem:[%s13227_s3 + $0x454] sm:$0xf0] }
 0x353   : > { %v8102_v7 = vpop.eup %8101  ;;  %v6631_v4 = vmul.f32 -1.442695, %v1877_v17  ;;  %v2170_v62 = vadd.f32 %v8098_v10, %v2169_v12  ;;  %v1825_v15 = vadd.f32 %v1824_v43, %v1771_v26  ;;  %v7013_v17 = vor.u32 %v7833_v9, %v7012_v11  ;;  %v6924_v12 = vld [vmem:[%s13227_s3 + $0x3a0] sm:$0xf]  ;;  %v7831_v26 = vld [vmem:[%s13227_s3 + $0x444] sm:$0xf0] }
 0x354   : > { %v8104_v60 = vpop.eup %8103  ;;  %v10073_v32 = vadd.f32 1.0, %v8102_v7  ;;  %v6925_v49 = vor.u32 %v7811_v54, %v6924_v12  ;;  %v2284_v12 = vld [vmem:[%s13230_s6] sm:$0x3] }
 0x355   : > { %v2182_v28 = vmul.f32 %v8104_v60, %v10048_v48  ;;  %8107 = vpow2.f32 %v6631_v4  ;;  %v2174_v29 = vsel %vm2173_vm12, %v8098_v10, %v2170_v62  ;;  %v8106_v38 = vpop.eup %8105  ;;  %vm2187_vm14 = vweird.f32 %v8104_v60 }
 0x356   : > { %8109 = vrcp.f32 %v10073_v32  ;;  %v2179_v21 = vsel %vm2176_vm13, %v2178_v19, %v2174_v29  ;;  %vm2188_vm0 = vmor %vm2186_vm15, %vm2187_vm14  ;;  %v2207_v22 = vand.u32 2147483648, %v10073_v32  ;;  %3352 = vmatpush.bf16.msra.mxu0 %v7021_v13  ;;  %v2205_v37 = vand.u32 2147483647, %v10073_v32  ;;  %v7809_v29 = vld [vmem:[%s13227_s3 + $0x394] sm:$0xf0] }
 0x357   : > { %v2183_v27 = vsub.f32 1.0, %v2182_v28  ;;  %v2254_v1 = vmul.f32 %v8106_v38, %v2179_v21  ;;  %8111 = vtanh.f32 %v9737_v40  ;;  %v6940_v40 = vld [vmem:[%s13227_s3 + $0x3c0] sm:$0xf]  ;;  %vm2201_vm7 = vweird.f32 %v10073_v32  ;;  %v6980_v13 = vld [vmem:[%s13227_s3 + $0x410] sm:$0xf] }
 0x358   : > { %v1878_v41 = vpop.f32.mrf.mxu2  ;;  %v6941_v23 = vor.u32 %v7815_v33, %v6940_v40  ;;  %v2208_v62 = vor.u32 1.1754944e-38, %v2207_v22  ;;  %vm2206_vm9 = vcmp.eq.f32.partialorder %v2205_v37, 8.507059e+37  ;;  %v1501_v38 = vadd.f32 %v9714_v51, %v9609_v42  ;;  %v7829_v42 = vld [vmem:[%s13227_s3 + $0x434] sm:$0xf0] }
 0x359   : > { %v1879_v39 = vadd.f32 %v1878_v41, %v1825_v15  ;;  %v2265_v20 = vpack.c.bf16 %v2254_v1, %v2253_v58  ;;  %v2184_v57 = vmul.f32 %v8104_v60, %v2183_v27  ;;  %v6997_v3 = vor.u32 %v7829_v42, %v6996_v0  ;;  %v13378_v33 = vld [vmem:[#allocation19_spill] sm:$0xff] }
 0x35a   : > { %3300 = vmatpush.bf16.msrb.mxu3 %v6941_v23  ;;  %3353 = vmatpush.bf16.msra.mxu0 %v7013_v17  ;;  %v6988_v23 = vld [vmem:[%s13227_s3 + $0x420] sm:$0xf]  ;;  %v10190_v54 = vperm.slane %v2284_v12, 0 }
 0x35b   : > { %v8108_v10 = vpop.eup %8107  ;;  %v6632_v6 = vmul.f32 -1.442695, %v1879_v39  ;;  %2408 = vmatmul.bf16.gmra.mxu3 %v2265_v20  ;;  %2461 = vmatmul.bf16.gmra.mxu0 %v2265_v20  ;;  %v2185_v24 = vadd.f32 %v8104_v60, %v2184_v57  ;;  %v1555_v39 = vadd.f32 %v13377_v61, %v1501_v38 }
 0x35c   : > { %v8110_v55 = vpop.eup %8109  ;;  %v10103_v18 = vadd.f32 1.0, %v8108_v10  ;;  %v7827_v10 = vld [vmem:[%s13227_s3 + $0x424] sm:$0xf0] }
 0x35d   : > { %v2197_v48 = vmul.f32 %v8110_v55, %v10073_v32  ;;  %8113 = vpow2.f32 %v6632_v6  ;;  %v2189_v45 = vsel %vm2188_vm0, %v8104_v60, %v2185_v24  ;;  %v8112_v52 = vpop.eup %8111  ;;  %vm2202_vm6 = vweird.f32 %v8110_v55  ;;  %v7004_v60 = vld [vmem:[%s13227_s3 + $0x440] sm:$0xf]  ;;  %v6916_v32 = vld [vmem:[%s13227_s3 + $0x390] sm:$0xf] }
 0x35e   : > { %8115 = vrcp.f32 %v10103_v18  ;;  %v2194_v5 = vsel %vm2191_vm1, %v2193_v30, %v2189_v45  ;;  %3301 = vmatpush.bf16.msrb.mxu3 %v6933_v31  ;;  %vm2203_vm8 = vmor %vm2201_vm7, %vm2202_vm6  ;;  %v7005_v28 = vor.u32 %v7831_v26, %v7004_v60  ;;  %v2220_v27 = vand.u32 2147483647, %v10103_v18 }
 0x35f   : > { %v2198_v58 = vsub.f32 1.0, %v2197_v48  ;;  %v2255_v63 = vmul.f32 %v8112_v52, %v2194_v5  ;;  %8117 = vtanh.f32 %v1604_v46  ;;  %v6917_v15 = vor.u32 %v7809_v29, %v6916_v32  ;;  %v7825_v48 = vld [vmem:[%s13227_s3 + $0x414] sm:$0xf0]  ;;  %v6972_v52 = vld [vmem:[%s13227_s3 + $0x400] sm:$0xf] }
 0x360   : > { %v2222_v1 = vand.u32 2147483648, %v10103_v18  ;;  %3354 = vmatpush.bf16.msra.mxu0 %v7005_v28  ;;  %vm2216_vm11 = vweird.f32 %v10103_v18  ;;  %v1609_v14 = vadd.f32 %v13378_v33, %v1555_v39  ;;  %vm2221_vm13 = vcmp.eq.f32.partialorder %v2220_v27, 8.507059e+37  ;;  %v7823_v5 = vld [vmem:[%s13227_s3 + $0x404] sm:$0xf0]  ;;  %v13383_v28 = vld [vmem:[#allocation6_spill] sm:$0xff] }
 0x361   : > { %v2199_v59 = vmul.f32 %v8110_v55, %v2198_v58  ;;  %v6989_v34 = vor.u32 %v7827_v10, %v6988_v23  ;;  %v6981_v47 = vor.u32 %v7825_v48, %v6980_v13  ;;  %v6973_v22 = vor.u32 %v7823_v5, %v6972_v52  ;;  %v13390_v39 = vld [vmem:[#allocation9_spill] sm:$0xff]  ;;  %v13394_v10 = vld [vmem:[#allocation10_spill] sm:$0xff] }
 0x362   : > { %3302 = vmatpush.bf16.msrb.mxu3 %v6925_v49  ;;  %v2223_v50 = vor.u32 1.1754944e-38, %v2222_v1  ;;  %v10198_v60 = vperm.slane %v2284_v12, 1 }
 0x363   : > { %v8114_v16 = vpop.eup %8113  ;;  %v2200_v7 = vadd.f32 %v8110_v55, %v2199_v59 }
 0x364   : > { %v8116_v53 = vpop.eup %8115  ;;  %v10129_v4 = vadd.f32 1.0, %v8114_v16  ;;  %3355 = vmatpush.bf16.msra.mxu0 %v6997_v3  ;;  %13382 = vst [vmem:[#allocation24_spill] sm:$0xff] %v10198_v60 }
 0x365   : > { %v2212_v43 = vmul.f32 %v8116_v53, %v10103_v18  ;;  %v2204_v19 = vsel %vm2203_vm8, %v8110_v55, %v2200_v7  ;;  %v8118_v8 = vpop.eup %8117  ;;  %vm2217_vm10 = vweird.f32 %v8116_v53 }
 0x366   : > { %8119 = vrcp.f32 %v10129_v4  ;;  %v2209_v56 = vsel %vm2206_vm9, %v2208_v62, %v2204_v19  ;;  %3303 = vmatpush.bf16.msrb.mxu3 %v6917_v15  ;;  %vm2218_vm12 = vmor %vm2216_vm11, %vm2217_vm10  ;;  %v2237_v30 = vand.u32 2147483648, %v10129_v4  ;;  %v2235_v25 = vand.u32 2147483647, %v10129_v4 }
 0x367   : > { %v2213_v35 = vsub.f32 1.0, %v2212_v43  ;;  %v2256_v21 = vmul.f32 %v8118_v8, %v2209_v56  ;;  %8121 = vtanh.f32 %v9760_v36  ;;  %v7807_v36 = vld [vmem:[%s13227_s3 + $0x384] sm:$0xf0]  ;;  %vm2231_vm15 = vweird.f32 %v10129_v4 }
 0x368   : > { %v6909_v20 = vor.u32 %v7807_v36, %v6908_v2  ;;  %8123 = vtanh.f32 %v1609_v14  ;;  %3356 = vmatpush.bf16.msra.mxu0 %v6989_v34  ;;  %vm2236_vm1 = vcmp.eq.f32.partialorder %v2235_v25, 8.507059e+37 }
 0x369   : > { %v2266_v51 = vpack.c.bf16 %v2256_v21, %v2255_v63  ;;  %v2214_v41 = vmul.f32 %v8116_v53, %v2213_v35  ;;  %v2238_v63 = vor.u32 1.1754944e-38, %v2237_v30  ;;  %v13387_v21 = vld [vmem:[#allocation8_spill] sm:$0xff] }
 0x36a   : > { %3304 = vmatpush.bf16.msrb.mxu3 %v6909_v20 }
 0x36b   : > { %2413 = vmatmul.bf16.gmra.mxu3 %v2266_v51  ;;  %2466 = vmatmul.bf16.gmra.mxu0 %v2266_v51  ;;  %v2215_v57 = vadd.f32 %v8116_v53, %v2214_v41 }
 0x36c   : > { %v8120_v40 = vpop.eup %8119  ;;  %3357 = vmatpush.bf16.msra.mxu0 %v6981_v47 }
 0x36d   : > { %v2227_v6 = vmul.f32 %v8120_v40, %v10129_v4  ;;  %v2219_v24 = vsel %vm2218_vm12, %v8116_v53, %v2215_v57  ;;  %v8122_v44 = vpop.eup %8121  ;;  %vm2232_vm14 = vweird.f32 %v8120_v40  ;;  %v13380_v53 = vld [vmem:[#allocation5_spill] sm:$0xff] }
 0x36e   : > { %v2224_v55 = vsel %vm2221_vm13, %v2223_v50, %v2219_v24  ;;  %vm2233_vm0 = vmor %vm2231_vm15, %vm2232_vm14  ;;  %v8124_v11 = vpop.eup %8123 }
 0x36f   : > { %v2228_v46 = vsub.f32 1.0, %v2227_v6  ;;  %v2257_v18 = vmul.f32 %v8122_v44, %v2224_v55 }
 0x370   : > { %3358 = vmatpush.bf16.msra.mxu0 %v6973_v22 }
 0x371   : > { %v2229_v45 = vmul.f32 %v8120_v40, %v2228_v46 }
 0x373   : > { %v2230_v58 = vadd.f32 %v8120_v40, %v2229_v45 }
 0x375   : > { %v2234_v31 = vsel %vm2233_vm0, %v8120_v40, %v2230_v58 }
 0x376   : > { %v2239_v9 = vsel %vm2236_vm1, %v2238_v63, %v2234_v31 }
 0x377   : > { %v2258_v59 = vmul.f32 %v8124_v11, %v2239_v9 }
 0x378   : > { %v2433_v37 = vpop.f32.mrf.mxu0 }
 0x379   : > { %v2267_v17 = vpack.c.bf16 %v2258_v59, %v2257_v18  ;;  %v13396_v59 = vld [vmem:[#allocation11_spill] sm:$0xff] }
 0x37b   : > { %2418 = vmatmul.bf16.gmra.mxu3 %v2267_v17  ;;  %2471 = vmatmul.bf16.gmra.mxu0 %v2267_v17 }
 0x37e   : > { %v2379_v49 = vpop.f32.mrf.mxu3 }
 0x37f   : > { %v2380_v7 = vadd.f32 %v2379_v49, %v10190_v54 }
 0x380   : > { %v10192_v16 = vpop.f32.mrf.mxu0 }
 0x381   : > { %13379 = vst [vmem:[#allocation32_spill] sm:$0xff] %v10192_v16  ;;  %v10196_v4 = vadd.f32 %v2380_v7, %v13380_v53 }
 0x383   : > { %13381 = vst [vmem:[#allocation21_spill] sm:$0xff] %v10196_v4  ;;  %v10202_v19 = vmul.f32 0.0, %v10196_v4 }
 0x385   : > { %v13270_v1 = vrot.slane %v10202_v19, 1 }
 0x386   : > { %v2381_v62 = vpop.f32.mrf.mxu3 }
 0x387   : > { %v2382_v26 = vadd.f32 %v2381_v62, %v10190_v54 }
 0x388   : > { %v2437_v43 = vpop.f32.mrf.mxu0 }
 0x389   : > { %v10205_v32 = vadd.f32 %v2382_v26, %v13383_v28  ;;  %v10208_v29 = vadd.f32 %v2437_v43, %v10198_v60 }
 0x38b   : > { %13384 = vst [vmem:[#allocation26_spill] sm:$0xff] %v10205_v32  ;;  %v10212_v8 = vpack.c.bf16 %v10205_v32, %v10202_v19  ;;  %v2585_v15 = vrot.slane %v10205_v32, 1 }
 0x38c   : > { %13385 = vst [vmem:[#allocation28_spill] sm:$0xff] %v10208_v29 }
 0x38d   : > { %3305 = vmatmul.bf16.vlgmr.msrb.gmra.mxu3 %v10212_v8  ;;  %v2618_v41 = vsel %vm754_vm2, %v13270_v1, %v2585_v15 }
 0x38e   : > { %v2384_v38 = vpop.f32.mrf.mxu3 }
 0x38f   : > { %v2385_v56 = vadd.f32 %v2384_v38, %v10190_v54 }
 0x390   : > { %v10216_v35 = vpop.f32.mrf.mxu0 }
 0x391   : > { %13386 = vst [vmem:[#allocation31_spill] sm:$0xff] %v10216_v35  ;;  %v10219_v27 = vadd.f32 %v2385_v56, %v13387_v21  ;;  %v13439_v35 = vld [vmem:[#allocation27_spill] sm:$0xff] }
 0x393   : > { %13388 = vst [vmem:[#allocation30_spill] sm:$0xff] %v10219_v27  ;;  %v2586_v0 = vrot.slane %v10219_v27, 1  ;;  %v13267_v47 = vrot.slane %v10219_v27, 2 }
 0x395   : > { %v2617_v51 = vsel %vm754_vm2, %v2585_v15, %v2586_v0 }
 0x396   : > { %v2386_v3 = vpop.f32.mrf.mxu3  ;;  %v10230_v2 = vpack.c.bf16 %v2617_v51, %v2618_v41  ;;  %v13400_v41 = vld [vmem:[#allocation12_spill] sm:$0xff] }
 0x397   : > { %v2387_v36 = vadd.f32 %v2386_v3, %v10190_v54 }
 0x398   : > { %v2442_v61 = vpop.f32.mrf.mxu0  ;;  %3359 = vmatmul.bf16.vlgmr.msra.gmra.mxu0 %v10230_v2 }
 0x399   : > { %v10235_v20 = vadd.f32 %v2387_v36, %v13390_v39  ;;  %v10238_v57 = vadd.f32 %v2442_v61, %v10198_v60  ;;  %v6900_v39 = vld [vmem:[%s13227_s3 + $0x370] sm:$0xf] }
 0x39b   : > { %13391 = vst [vmem:[#allocation33_spill] sm:$0xff] %v10235_v20  ;;  %v10241_v40 = vmul.f32 0.0, %v10235_v20 }
 0x39c   : > { %13392 = vst [vmem:[#allocation34_spill] sm:$0xff] %v10238_v57 }
 0x39d   : > { %v10245_v33 = vpack.c.bf16 %v10241_v40, %v10219_v27  ;;  %v2587_v24 = vrot.slane %v10241_v40, 1  ;;  %v13269_v44 = vrot.slane %v10241_v40, 6  ;;  %v13268_v55 = vrot.slane %v10241_v40, 7 }
 0x39e   : > { %v2389_v14 = vpop.f32.mrf.mxu3  ;;  %v2623_v46 = vrot.slane %v10241_v40, 2 }
 0x39f   : > { %v2390_v50 = vadd.f32 %v2389_v14, %v10190_v54  ;;  %3310 = vmatmul.bf16.gmra.mxu3 %v10245_v33  ;;  %v2616_v25 = vsel %vm754_vm2, %v2586_v0, %v2587_v24  ;;  %v7805_v14 = vld [vmem:[%s13227_s3 + $0x374] sm:$0xf0] }
 0x3a0   : > { %v10249_v23 = vpop.f32.mrf.mxu0  ;;  %v2652_v9 = vsel %vm791_vm3, %v13267_v47, %v2623_v46 }
 0x3a1   : > { %13393 = vst [vmem:[#allocation17_spill] sm:$0xff] %v10249_v23  ;;  %v10252_v6 = vadd.f32 %v2390_v50, %v13394_v10  ;;  %v6901_v50 = vor.u32 %v7805_v14, %v6900_v39 }
 0x3a3   : > { %13395 = vst [vmem:[#allocation19_spill] sm:$0xff] %v10252_v6  ;;  %v2498_v34 = vmul.f32 0.0, %v10252_v6  ;;  %3243 = vmatpush.bf16.msrb.mxu2 %v6901_v50 }
 0x3a5   : > { %v2588_v18 = vrot.slane %v2498_v34, 1  ;;  %v2516_v30 = vrot.slane %v2498_v34, 6  ;;  %v2552_v13 = vrot.slane %v2498_v34, 7  ;;  %v2624_v48 = vrot.slane %v2498_v34, 2 }
 0x3a6   : > { %v2391_v45 = vpop.f32.mrf.mxu3 }
 0x3a7   : > { %v2392_v52 = vadd.f32 %v2391_v45, %v10190_v54  ;;  %v2615_v5 = vsel %vm754_vm2, %v2587_v24, %v2588_v18  ;;  %v2543_v58 = vsel %vm680_vm4, %v13269_v44, %v2516_v30  ;;  %v2579_v63 = vsel %vm717_vm5, %v13268_v55, %v2552_v13 }
 0x3a8   : > { %v2447_v22 = vpop.f32.mrf.mxu0  ;;  %v10273_v31 = vpack.c.bf16 %v2615_v5, %v2616_v25  ;;  %v2651_v11 = vsel %vm791_vm3, %v2623_v46, %v2624_v48 }
 0x3a9   : > { %v10282_v37 = vadd.f32 %v2392_v52, %v13396_v59  ;;  %v10285_v17 = vadd.f32 %v2447_v22, %v10198_v60  ;;  %v10287_v12 = vpack.c.bf16 %v2651_v11, %v2652_v9  ;;  %v13402_v22 = vld [vmem:[#allocation13_spill] sm:$0xff] }
 0x3aa   : > { %3364 = vmatmul.bf16.gmra.mxu0 %v10273_v31 }
 0x3ab   : > { %13397 = vst [vmem:[#allocation5_spill] sm:$0xff] %v10282_v37  ;;  %v2499_v49 = vmul.f32 0.0, %v10282_v37 }
 0x3ac   : > { %13398 = vst [vmem:[#allocation6_spill] sm:$0xff] %v10285_v17 }
 0x3ad   : > { %v10291_v7 = vpack.c.bf16 %v2499_v49, %v2498_v34  ;;  %v2517_v53 = vrot.slane %v2499_v49, 6  ;;  %v2553_v62 = vrot.slane %v2499_v49, 7  ;;  %v2625_v43 = vrot.slane %v2499_v49, 2 }
 0x3ae   : > { %v2394_v26 = vpop.f32.mrf.mxu3  ;;  %v2589_v36 = vrot.slane %v2499_v49, 1  ;;  %v6836_v49 = vld [vmem:[%s13227_s3 + $0x2f0] sm:$0xf] }
 0x3af   : > { %v2395_v28 = vadd.f32 %v2394_v26, %v10190_v54  ;;  %3315 = vmatmul.bf16.gmra.mxu3 %v10291_v7  ;;  %v2542_v38 = vsel %vm680_vm4, %v2516_v30, %v2517_v53  ;;  %v2578_v56 = vsel %vm717_vm5, %v2552_v13, %v2553_v62  ;;  %v2650_v51 = vsel %vm791_vm3, %v2624_v48, %v2625_v43 }
 0x3b0   : > { %v10299_v21 = vpop.f32.mrf.mxu0  ;;  %v10301_v15 = vpack.c.bf16 %v2542_v38, %v2543_v58  ;;  %v10303_v0 = vpack.c.bf16 %v2578_v56, %v2579_v63  ;;  %v2614_v13 = vsel %vm754_vm2, %v2588_v18, %v2589_v36 }
 0x3b1   : > { %13399 = vst [vmem:[#allocation8_spill] sm:$0xff] %v10299_v21  ;;  %v10308_v3 = vadd.f32 %v2395_v28, %v13400_v41 }
 0x3b3   : > { %13401 = vst [vmem:[#allocation9_spill] sm:$0xff] %v10308_v3  ;;  %v2500_v61 = vmul.f32 0.0, %v10308_v3 }
 0x3b5   : > { %v2590_v10 = vrot.slane %v2500_v61, 1  ;;  %v2518_v24 = vrot.slane %v2500_v61, 6  ;;  %v2554_v34 = vrot.slane %v2500_v61, 7  ;;  %v2626_v46 = vrot.slane %v2500_v61, 2 }
 0x3b6   : > { %v2396_v30 = vpop.f32.mrf.mxu3 }
 0x3b7   : > { %v2397_v48 = vadd.f32 %v2396_v30, %v10190_v54  ;;  %v2613_v45 = vsel %vm754_vm2, %v2589_v36, %v2590_v10  ;;  %v2541_v25 = vsel %vm680_vm4, %v2517_v53, %v2518_v24  ;;  %v2577_v52 = vsel %vm717_vm5, %v2553_v62, %v2554_v34  ;;  %v7789_v53 = vld [vmem:[%s13227_s3 + $0x2f4] sm:$0xf0]  ;;  %v13406_v30 = vld [vmem:[#allocation14_spill] sm:$0xff] }
 0x3b8   : > { %v2452_v5 = vpop.f32.mrf.mxu0  ;;  %v10326_v58 = vpack.c.bf16 %v2613_v45, %v2614_v13  ;;  %v2649_v63 = vsel %vm791_vm3, %v2625_v43, %v2626_v46  ;;  %v6837_v62 = vor.u32 %v7789_v53, %v6836_v49 }
 0x3b9   : > { %v10331_v18 = vadd.f32 %v2397_v48, %v13402_v22  ;;  %v10334_v11 = vadd.f32 %v2452_v5, %v10198_v60  ;;  %v10336_v9 = vpack.c.bf16 %v2649_v63, %v2650_v51 }
 0x3ba   : > { %3369 = vmatmul.bf16.gmra.mxu0 %v10326_v58  ;;  %3189 = vmatpush.bf16.msrb.mxu1 %v6837_v62 }
 0x3bb   : > { %13403 = vst [vmem:[#allocation10_spill] sm:$0xff] %v10331_v18  ;;  %v2501_v59 = vmul.f32 0.0, %v10331_v18 }
 0x3bc   : > { %13404 = vst [vmem:[#allocation11_spill] sm:$0xff] %v10334_v11 }
 0x3bd   : > { %v10346_v26 = vpack.c.bf16 %v2501_v59, %v2500_v61  ;;  %v2519_v43 = vrot.slane %v2501_v59, 6  ;;  %v2555_v28 = vrot.slane %v2501_v59, 7  ;;  %v2627_v56 = vrot.slane %v2501_v59, 2 }
 0x3be   : > { %v2399_v38 = vpop.f32.mrf.mxu3  ;;  %v2591_v48 = vrot.slane %v2501_v59, 1 }
 0x3bf   : > { %v2400_v51 = vadd.f32 %v2399_v38, %v10190_v54  ;;  %3320 = vmatmul.bf16.gmra.mxu3 %v10346_v26  ;;  %v2540_v41 = vsel %vm680_vm4, %v2518_v24, %v2519_v43  ;;  %v2576_v36 = vsel %vm717_vm5, %v2554_v34, %v2555_v28  ;;  %v2648_v50 = vsel %vm791_vm3, %v2626_v46, %v2627_v56  ;;  %v6892_v24 = vld [vmem:[%s13227_s3 + $0x360] sm:$0xf]  ;;  %v7803_v34 = vld [vmem:[%s13227_s3 + $0x364] sm:$0xf0] }
 0x3c0   : > { %v10354_v39 = vpop.f32.mrf.mxu0  ;;  %v10356_v14 = vpack.c.bf16 %v2540_v41, %v2541_v25  ;;  %v10358_v61 = vpack.c.bf16 %v2576_v36, %v2577_v52  ;;  %v6893_v25 = vor.u32 %v7803_v34, %v6892_v24  ;;  %v2612_v49 = vsel %vm754_vm2, %v2590_v10, %v2591_v48 }
 0x3c1   : > { %13405 = vst [vmem:[#allocation12_spill] sm:$0xff] %v10354_v39  ;;  %v10363_v13 = vadd.f32 %v2400_v51, %v13406_v30  ;;  %v13408_v30 = vld [vmem:[#allocation15_spill] sm:$0xff]  ;;  %v13420_v39 = vld [vmem:[#allocation20_spill] sm:$0xff] }
 0x3c2   : > { %3244 = vmatpush.bf16.msrb.mxu2 %v6893_v25 }
 0x3c3   : > { %13407 = vst [vmem:[#allocation13_spill] sm:$0xff] %v10363_v13  ;;  %v2502_v45 = vmul.f32 0.0, %v10363_v13 }
 0x3c5   : > { %v2592_v52 = vrot.slane %v2502_v45, 1  ;;  %v2520_v5 = vrot.slane %v2502_v45, 6  ;;  %v2556_v63 = vrot.slane %v2502_v45, 7  ;;  %v2628_v22 = vrot.slane %v2502_v45, 2 }
 0x3c6   : > { %v2401_v46 = vpop.f32.mrf.mxu3 }
 0x3c7   : > { %v2402_v59 = vadd.f32 %v2401_v46, %v10190_v54  ;;  %v2611_v53 = vsel %vm754_vm2, %v2591_v48, %v2592_v52  ;;  %v2539_v62 = vsel %vm680_vm4, %v2519_v43, %v2520_v5  ;;  %v2575_v38 = vsel %vm717_vm5, %v2555_v28, %v2556_v63  ;;  %v6828_v28 = vld [vmem:[%s13227_s3 + $0x2e0] sm:$0xf] }
 0x3c8   : > { %v2457_v51 = vpop.f32.mrf.mxu0  ;;  %v10381_v41 = vpack.c.bf16 %v2611_v53, %v2612_v49  ;;  %v2647_v36 = vsel %vm791_vm3, %v2627_v56, %v2628_v22  ;;  %v7787_v56 = vld [vmem:[%s13227_s3 + $0x2e4] sm:$0xf0] }
 0x3c9   : > { %v10386_v10 = vadd.f32 %v2402_v59, %v13408_v30  ;;  %v10389_v24 = vadd.f32 %v2457_v51, %v10198_v60  ;;  %v10391_v34 = vpack.c.bf16 %v2647_v36, %v2648_v50  ;;  %v6829_v48 = vor.u32 %v7787_v56, %v6828_v28 }
 0x3ca   : > { %3374 = vmatmul.bf16.gmra.mxu0 %v10381_v41 }
 0x3cb   : > { %13409 = vst [vmem:[#allocation14_spill] sm:$0xff] %v10386_v10  ;;  %v2503_v43 = vmul.f32 0.0, %v10386_v10  ;;  %3190 = vmatpush.bf16.msrb.mxu1 %v6829_v48  ;;  %v13412_v48 = vld [vmem:[#allocation16_spill] sm:$0xff] }
 0x3cc   : > { %13410 = vst [vmem:[#allocation15_spill] sm:$0xff] %v10389_v24 }
 0x3cd   : > { %v10401_v25 = vpack.c.bf16 %v2503_v43, %v2502_v45  ;;  %v2521_v46 = vrot.slane %v2503_v43, 6  ;;  %v2557_v49 = vrot.slane %v2503_v43, 7  ;;  %v2629_v50 = vrot.slane %v2503_v43, 2 }
 0x3ce   : > { %v2404_v59 = vpop.f32.mrf.mxu3 }
 0x3cf   : > { %v2405_v53 = vadd.f32 %v2404_v59, %v10190_v54  ;;  %3325 = vmatmul.bf16.gmra.mxu3 %v10401_v25  ;;  %v2538_v51 = vsel %vm680_vm4, %v2520_v5, %v2521_v46  ;;  %v2574_v36 = vsel %vm717_vm5, %v2556_v63, %v2557_v49  ;;  %v2646_v56 = vsel %vm791_vm3, %v2628_v22, %v2629_v50 }
 0x3d0   : > { %v10409_v30 = vpop.f32.mrf.mxu0  ;;  %v10411_v28 = vpack.c.bf16 %v2538_v51, %v2539_v62  ;;  %v10413_v45 = vpack.c.bf16 %v2574_v36, %v2575_v38  ;;  %v2593_v59 = vrot.slane %v2503_v43, 1 }
 0x3d1   : > { %13411 = vst [vmem:[#allocation35_spill] sm:$0xff] %v10409_v30  ;;  %v10418_v47 = vadd.f32 %v2405_v53, %v13412_v48 }
 0x3d2   : > { %v2610_v51 = vsel %vm754_vm2, %v2592_v52, %v2593_v59  ;;  %v13415_v52 = vld [vmem:[#allocation18_spill] sm:$0xff] }
 0x3d3   : > { %13413 = vst [vmem:[#allocation16_spill] sm:$0xff] %v10418_v47  ;;  %v10421_v55 = vmul.f32 0.0, %v10418_v47 }
 0x3d5   : > { %v13272_v5 = vrot.slane %v10421_v55, 1  ;;  %v2522_v63 = vrot.slane %v10421_v55, 6  ;;  %v2558_v44 = vrot.slane %v10421_v55, 7  ;;  %v2630_v62 = vrot.slane %v10421_v55, 2 }
 0x3d6   : > { %v2406_v38 = vpop.f32.mrf.mxu3 }
 0x3d7   : > { %v2407_v22 = vadd.f32 %v2406_v38, %v10190_v54  ;;  %v2609_v43 = vsel %vm754_vm2, %v2593_v59, %v13272_v5  ;;  %v2537_v53 = vsel %vm680_vm4, %v2521_v46, %v2522_v63  ;;  %v2573_v36 = vsel %vm717_vm5, %v2557_v49, %v2558_v44  ;;  %v6884_v46 = vld [vmem:[%s13227_s3 + $0x350] sm:$0xf]  ;;  %v7801_v49 = vld [vmem:[%s13227_s3 + $0x354] sm:$0xf0]  ;;  %v7804_v5 = vld [vmem:[%s13227_s3 + $0x374] sm:$0xf] }
 0x3d8   : > { %v2462_v48 = vpop.f32.mrf.mxu0  ;;  %v10438_v1 = vpack.c.bf16 %v2609_v43, %v2610_v51  ;;  %v2645_v47 = vsel %vm791_vm3, %v2629_v50, %v2630_v62  ;;  %v6820_v50 = vld [vmem:[%s13227_s3 + $0x2d0] sm:$0xf]  ;;  %v6885_v51 = vor.u32 %v7801_v49, %v6884_v46  ;;  %v6812_v46 = vld [vmem:[%s13227_s3 + $0x2c0] sm:$0xf]  ;;  %v7783_v49 = vld [vmem:[%s13227_s3 + $0x2c4] sm:$0xf0] }
 0x3d9   : > { %v10443_v30 = vadd.f32 %v2407_v22, %v13415_v52  ;;  %v10446_v38 = vadd.f32 %v2462_v48, %v10198_v60  ;;  %v10448_v24 = vpack.c.bf16 %v2645_v47, %v2646_v56  ;;  %v7785_v47 = vld [vmem:[%s13227_s3 + $0x2d4] sm:$0xf0] }
 0x3da   : > { %13414 = vst [vmem:[#allocation36_spill] sm:$0xff] %v10438_v1  ;;  %3379 = vmatmul.bf16.gmra.mxu0 %v10438_v1  ;;  %v6821_v56 = vor.u32 %v7785_v47, %v6820_v50  ;;  %3245 = vmatpush.bf16.msrb.mxu2 %v6885_v51  ;;  %v6876_v50 = vld [vmem:[%s13227_s3 + $0x340] sm:$0xf]  ;;  %v6813_v47 = vor.u32 %v7783_v49, %v6812_v46 }
 0x3db   : > { %13416 = vst [vmem:[#allocation18_spill] sm:$0xff] %v10443_v30  ;;  %v10461_v59 = vmul.f32 0.0, %v10443_v30 }
 0x3dc   : > { %13417 = vst [vmem:[#allocation37_spill] sm:$0xff] %v10446_v38  ;;  %3191 = vmatpush.bf16.msrb.mxu1 %v6821_v56  ;;  %v7799_v56 = vld [vmem:[%s13227_s3 + $0x344] sm:$0xf0]  ;;  %v6902_v38 = vld [vmem:[%s13227_s3 + $0x378] sm:$0xf0] }
 0x3dd   : > { %13418 = vst [vmem:[#allocation38_spill] sm:$0xff] %v10448_v24  ;;  %v10468_v22 = vpack.c.bf16 %v10461_v59, %v10421_v55  ;;  %v2523_v43 = vrot.slane %v10461_v59, 6  ;;  %v2559_v48 = vrot.slane %v10461_v59, 7  ;;  %v6905_v13 = vor.u32 %v7804_v5, %v6902_v38  ;;  %v6804_v5 = vld [vmem:[%s13227_s3 + $0x2b0] sm:$0xf] }
 0x3de   : > { %v2409_v52 = vpop.f32.mrf.mxu3  ;;  %v2595_v18 = vrot.slane %v10461_v59, 1  ;;  %v2631_v21 = vrot.slane %v10461_v59, 2 }
 0x3df   : > { %v2410_v51 = vadd.f32 %v2409_v52, %v10190_v54  ;;  %3330 = vmatmul.bf16.gmra.mxu3 %v10468_v22  ;;  %v2536_v30 = vsel %vm680_vm4, %v2522_v63, %v2523_v43  ;;  %v6877_v52 = vor.u32 %v7799_v56, %v6876_v50  ;;  %v2572_v49 = vsel %vm717_vm5, %v2558_v44, %v2559_v48  ;;  %v6868_v44 = vld [vmem:[%s13227_s3 + $0x330] sm:$0xf]  ;;  %v6894_v50 = vld [vmem:[%s13227_s3 + $0x368] sm:$0xf0] }
 0x3e0   : > { %v10494_v10 = vpop.f32.mrf.mxu0  ;;  %v10496_v46 = vpack.c.bf16 %v2536_v30, %v2537_v53  ;;  %v10504_v3 = vpack.c.bf16 %v2572_v49, %v2573_v36  ;;  %3192 = vmatpush.bf16.msrb.mxu1 %v6813_v47  ;;  %v7781_v30 = vld [vmem:[%s13227_s3 + $0x2b4] sm:$0xf0]  ;;  %3513 = vmatpush.bf16.msra.mxu3 %v6905_v13  ;;  %v7802_v36 = vld [vmem:[%s13227_s3 + $0x364] sm:$0xf]  ;;  %v2644_v38 = vsel %vm791_vm3, %v2630_v62, %v2631_v21  ;;  %v13422_v49 = vrot.slane %v10421_v55, 1 }
 0x3e1   : > { %13419 = vst [vmem:[#allocation39_spill] sm:$0xff] %v10494_v10  ;;  %v10501_v11 = vadd.f32 %v2410_v51, %v13420_v39  ;;  %3246 = vmatpush.bf16.msrb.mxu2 %v6877_v52  ;;  %v6805_v63 = vor.u32 %v7781_v30, %v6804_v5  ;;  %v7797_v53 = vld [vmem:[%s13227_s3 + $0x334] sm:$0xf0]  ;;  %v6897_v13 = vor.u32 %v7802_v36, %v6894_v50  ;;  %v6796_v62 = vld [vmem:[%s13227_s3 + $0x2a0] sm:$0xf] }
 0x3e2   : > { %v6869_v59 = vor.u32 %v7797_v53, %v6868_v44  ;;  %v2608_v5 = vsel %vm754_vm2, %v13422_v49, %v2595_v18  ;;  %v7779_v30 = vld [vmem:[%s13227_s3 + $0x2a4] sm:$0xf0]  ;;  %v6860_v44 = vld [vmem:[%s13227_s3 + $0x320] sm:$0xf]  ;;  %v6886_v50 = vld [vmem:[%s13227_s3 + $0x358] sm:$0xf0] }
 0x3e3   : > { %13421 = vst [vmem:[#allocation20_spill] sm:$0xff] %v10501_v11  ;;  %v10517_v39 = vmul.f32 0.0, %v10501_v11  ;;  %v7795_v36 = vld [vmem:[%s13227_s3 + $0x324] sm:$0xf0] }
 0x3e4   : > { %3193 = vmatpush.bf16.msrb.mxu1 %v6805_v63  ;;  %3514 = vmatpush.bf16.msra.mxu3 %v6897_v13  ;;  %v6797_v63 = vor.u32 %v7779_v30, %v6796_v62  ;;  %v6861_v49 = vor.u32 %v7795_v36, %v6860_v44 }
 0x3e5   : > { %v13278_v51 = vrot.slane %v10517_v39, 1  ;;  %v13281_v47 = vrot.slane %v10517_v39, 6  ;;  %v13280_v56 = vrot.slane %v10517_v39, 7  ;;  %3247 = vmatpush.bf16.msrb.mxu2 %v6869_v59  ;;  %v7800_v59 = vld [vmem:[%s13227_s3 + $0x354] sm:$0xf]  ;;  %v2632_v17 = vrot.slane %v10517_v39, 2 }
 0x3e6   : > { %v2411_v52 = vpop.f32.mrf.mxu3  ;;  %v6889_v62 = vor.u32 %v7800_v59, %v6886_v50  ;;  %v6966_v59 = vld [vmem:[%s13227_s3 + $0x3f8] sm:$0xf0]  ;;  %v7798_v50 = vld [vmem:[%s13227_s3 + $0x344] sm:$0xf] }
 0x3e7   : > { %v2412_v53 = vadd.f32 %v2411_v52, %v10190_v54  ;;  %v2607_v55 = vsel %vm754_vm2, %v2595_v18, %v13278_v51  ;;  %v10564_v52 = vsel %vm680_vm4, %v2523_v43, %v13281_v47  ;;  %v2571_v30 = vsel %vm717_vm5, %v2559_v48, %v13280_v56  ;;  %v13424_v51 = vld [vmem:[#allocation22_spill] sm:$0xff] }
 0x3e8   : > { %v2467_v18 = vpop.f32.mrf.mxu0  ;;  %v10566_v13 = vpack.c.bf16 %v2607_v55, %v2608_v5  ;;  %3194 = vmatpush.bf16.msrb.mxu1 %v6797_v63  ;;  %v6788_v43 = vld [vmem:[%s13227_s3 + $0x290] sm:$0xf]  ;;  %v7777_v5 = vld [vmem:[%s13227_s3 + $0x294] sm:$0xf0]  ;;  %3515 = vmatpush.bf16.msra.mxu3 %v6889_v62  ;;  %v7820_v55 = vld [vmem:[%s13227_s3 + $0x3f4] sm:$0xf]  ;;  %v2643_v63 = vsel %vm791_vm3, %v2631_v21, %v2632_v17 }
 0x3e9   : > { %v10573_v11 = vadd.f32 %v2412_v53, %v13424_v51  ;;  %v10576_v10 = vadd.f32 %v2467_v18, %v10198_v60  ;;  %v6852_v48 = vld [vmem:[%s13227_s3 + $0x310] sm:$0xf]  ;;  %3248 = vmatpush.bf16.msrb.mxu2 %v6861_v49  ;;  %v6789_v44 = vor.u32 %v7777_v5, %v6788_v43  ;;  %v7793_v53 = vld [vmem:[%s13227_s3 + $0x314] sm:$0xf0]  ;;  %v6878_v18 = vld [vmem:[%s13227_s3 + $0x348] sm:$0xf0]  ;;  %v10609_v49 = vpack.c.bf16 %v2643_v63, %v2644_v38 }
 0x3ea   : > { %13423 = vst [vmem:[#allocation40_spill] sm:$0xff] %v10566_v13  ;;  %3384 = vmatmul.bf16.gmra.mxu0 %v10566_v13  ;;  %v6853_v36 = vor.u32 %v7793_v53, %v6852_v48  ;;  %v6969_v21 = vor.u32 %v7820_v55, %v6966_v59  ;;  %v6881_v43 = vor.u32 %v7798_v50, %v6878_v18  ;;  %v6780_v5 = vld [vmem:[%s13227_s3 + $0x280] sm:$0xf]  ;;  %v7775_v48 = vld [vmem:[%s13227_s3 + $0x284] sm:$0xf0] }
 0x3eb   : > { %13425 = vst [vmem:[#allocation22_spill] sm:$0xff] %v10573_v11  ;;  %v10590_v51 = vmul.f32 0.0, %v10573_v11  ;;  %v6781_v56 = vor.u32 %v7775_v48, %v6780_v5  ;;  %v6844_v38 = vld [vmem:[%s13227_s3 + $0x300] sm:$0xf]  ;;  %v7791_v55 = vld [vmem:[%s13227_s3 + $0x304] sm:$0xf0] }
 0x3ec   : > { %13426 = vst [vmem:[#allocation41_spill] sm:$0xff] %v10576_v10  ;;  %3195 = vmatpush.bf16.msrb.mxu1 %v6789_v44  ;;  %v7818_v63 = vld [vmem:[%s13227_s3 + $0x3e4] sm:$0xf]  ;;  %v6845_v50 = vor.u32 %v7791_v55, %v6844_v38  ;;  %v6958_v44 = vld [vmem:[%s13227_s3 + $0x3e8] sm:$0xf0]  ;;  %3567 = vmatpush.bf16.msrb.mxu0 %v6969_v21  ;;  %v13429_v55 = vld [vmem:[#allocation23_spill] sm:$0xff] }
 0x3ed   : > { %13427 = vst [vmem:[#allocation42_spill] sm:$0xff] %v10609_v49  ;;  %v10613_v62 = vpack.c.bf16 %v10590_v51, %v10517_v39  ;;  %3249 = vmatpush.bf16.msrb.mxu2 %v6853_v36  ;;  %v7796_v18 = vld [vmem:[%s13227_s3 + $0x334] sm:$0xf]  ;;  %v6870_v5 = vld [vmem:[%s13227_s3 + $0x338] sm:$0xf0]  ;;  %3516 = vmatpush.bf16.msra.mxu3 %v6881_v43  ;;  %v2525_v36 = vrot.slane %v10590_v51, 6 }
 0x3ee   : > { %v2414_v53 = vpop.f32.mrf.mxu3  ;;  %v6873_v47 = vor.u32 %v7796_v18, %v6870_v5  ;;  %v2561_v38 = vrot.slane %v10590_v51, 7  ;;  %v2597_v11 = vrot.slane %v10590_v51, 1  ;;  %v2633_v37 = vrot.slane %v10590_v51, 2  ;;  %v6950_v21 = vld [vmem:[%s13227_s3 + $0x3d8] sm:$0xf0] }
 0x3ef   : > { %v2415_v59 = vadd.f32 %v2414_v53, %v10190_v54  ;;  %3335 = vmatmul.bf16.gmra.mxu3 %v10613_v62  ;;  %v6961_v53 = vor.u32 %v7818_v63, %v6958_v44  ;;  %v7794_v43 = vld [vmem:[%s13227_s3 + $0x324] sm:$0xf]  ;;  %v13431_v63 = vrot.slane %v10517_v39, 6  ;;  %v13432_v51 = vrot.slane %v10517_v39, 7  ;;  %v6862_v18 = vld [vmem:[%s13227_s3 + $0x328] sm:$0xf0] }
 0x3f0   : > { %v10641_v48 = vpop.f32.mrf.mxu0  ;;  %3196 = vmatpush.bf16.msrb.mxu1 %v6781_v56  ;;  %v6865_v6 = vor.u32 %v7794_v43, %v6862_v18  ;;  %v7792_v18 = vld [vmem:[%s13227_s3 + $0x314] sm:$0xf] }
 0x3f1   : > { %13428 = vst [vmem:[#allocation43_spill] sm:$0xff] %v10641_v48  ;;  %v10646_v10 = vadd.f32 %v2415_v59, %v13429_v55  ;;  %v7816_v48 = vld [vmem:[%s13227_s3 + $0x3d4] sm:$0xf]  ;;  %v2534_v59 = vsel %vm680_vm4, %v13431_v63, %v2525_v36  ;;  %v2570_v56 = vsel %vm717_vm5, %v13432_v51, %v2561_v38  ;;  %3250 = vmatpush.bf16.msrb.mxu2 %v6845_v50  ;;  %v7814_v50 = vld [vmem:[%s13227_s3 + $0x3c4] sm:$0xf] }
 0x3f2   : > { %v10674_v5 = vpack.c.bf16 %v2534_v59, %v10564_v52  ;;  %v10676_v55 = vpack.c.bf16 %v2570_v56, %v2571_v30  ;;  %3568 = vmatpush.bf16.msrb.mxu0 %v6961_v53  ;;  %3517 = vmatpush.bf16.msra.mxu3 %v6873_v47  ;;  %v6953_v63 = vor.u32 %v7816_v48, %v6950_v21  ;;  %v6942_v52 = vld [vmem:[%s13227_s3 + $0x3c8] sm:$0xf0]  ;;  %v13433_v47 = vrot.slane %v10517_v39, 1  ;;  %v6854_v39 = vld [vmem:[%s13227_s3 + $0x318] sm:$0xf0] }
 0x3f3   : > { %13430 = vst [vmem:[#allocation23_spill] sm:$0xff] %v10646_v10  ;;  %v10668_v44 = vmul.f32 0.0, %v10646_v10  ;;  %v2642_v51 = vsel %vm791_vm3, %v2632_v17, %v2633_v37  ;;  %v6945_v56 = vor.u32 %v7814_v50, %v6942_v52  ;;  %v13435_v50 = vld [vmem:[#allocation25_spill] sm:$0xff] }
 0x3f4   : > { %v2606_v48 = vsel %vm754_vm2, %v13433_v47, %v2597_v11 }
 0x3f5   : > { %v13286_v10 = vrot.slane %v10668_v44, 1  ;;  %v2526_v30 = vrot.slane %v10668_v44, 6  ;;  %v2562_v17 = vrot.slane %v10668_v44, 7  ;;  %v2634_v53 = vrot.slane %v10668_v44, 2 }
 0x3f6   : > { %v2416_v59 = vpop.f32.mrf.mxu3  ;;  %3569 = vmatpush.bf16.msrb.mxu0 %v6953_v63  ;;  %3518 = vmatpush.bf16.msra.mxu3 %v6865_v6  ;;  %v6934_v6 = vld [vmem:[%s13227_s3 + $0x3b8] sm:$0xf0] }
 0x3f7   : > { %v2417_v21 = vadd.f32 %v2416_v59, %v10190_v54  ;;  %v2605_v43 = vsel %vm754_vm2, %v2597_v11, %v13286_v10  ;;  %v2533_v47 = vsel %vm680_vm4, %v2525_v36, %v2526_v30  ;;  %v6857_v59 = vor.u32 %v7792_v18, %v6854_v39  ;;  %v7812_v36 = vld [vmem:[%s13227_s3 + $0x3b4] sm:$0xf] }
 0x3f8   : > { %v2472_v23 = vpop.f32.mrf.mxu0  ;;  %v10707_v57 = vpack.c.bf16 %v2605_v43, %v2606_v48  ;;  %v2569_v11 = vsel %vm717_vm5, %v2561_v38, %v2562_v17  ;;  %v2641_v20 = vsel %vm791_vm3, %v2633_v37, %v2634_v53  ;;  %v7790_v38 = vld [vmem:[%s13227_s3 + $0x304] sm:$0xf]  ;;  %v6846_v37 = vld [vmem:[%s13227_s3 + $0x308] sm:$0xf0]  ;;  %v6937_v48 = vor.u32 %v7812_v36, %v6934_v6 }
 0x3f9   : > { %v10712_v52 = vadd.f32 %v2417_v21, %v13435_v50  ;;  %v10715_v10 = vadd.f32 %v2472_v23, %v10198_v60  ;;  %v10729_v63 = vpack.c.bf16 %v2641_v20, %v2642_v51  ;;  %v6849_v21 = vor.u32 %v7790_v38, %v6846_v37  ;;  %v7810_v20 = vld [vmem:[%s13227_s3 + $0x3a4] sm:$0xf]  ;;  %v6926_v51 = vld [vmem:[%s13227_s3 + $0x3a8] sm:$0xf0] }
 0x3fa   : > { %13434 = vst [vmem:[#allocation44_spill] sm:$0xff] %v10707_v57  ;;  %3389 = vmatmul.bf16.gmra.mxu0 %v10707_v57  ;;  %3519 = vmatpush.bf16.msra.mxu3 %v6857_v59  ;;  %v6929_v59 = vor.u32 %v7810_v20, %v6926_v51  ;;  %v13445_v57 = vrot.slane %v10202_v19, 2 }
 0x3fb   : > { %13436 = vst [vmem:[#allocation25_spill] sm:$0xff] %v10712_v52  ;;  %v2509_v23 = vmul.f32 0.0, %v10712_v52  ;;  %3570 = vmatpush.bf16.msrb.mxu0 %v6945_v56 }
 0x3fc   : > { %13437 = vst [vmem:[#allocation45_spill] sm:$0xff] %v10715_v10 }
 0x3fd   : > { %13438 = vst [vmem:[#allocation46_spill] sm:$0xff] %v10729_v63  ;;  %v10736_v43 = vpack.c.bf16 %v2509_v23, %v10668_v44  ;;  %v2527_v18 = vrot.slane %v2509_v23, 6  ;;  %v2563_v39 = vrot.slane %v2509_v23, 7  ;;  %v2635_v10 = vrot.slane %v2509_v23, 2 }
 0x3fe   : > { %v2419_v50 = vpop.f32.mrf.mxu3  ;;  %3520 = vmatpush.bf16.msra.mxu3 %v6849_v21  ;;  %v2599_v21 = vrot.slane %v2509_v23, 1 }
 0x3ff   : > { %v2420_v56 = vadd.f32 %v2419_v50, %v10190_v54  ;;  %3340 = vmatmul.bf16.gmra.mxu3 %v10736_v43  ;;  %v2532_v36 = vsel %vm680_vm4, %v2526_v30, %v2527_v18  ;;  %3571 = vmatpush.bf16.msrb.mxu0 %v6937_v48  ;;  %v2568_v37 = vsel %vm717_vm5, %v2562_v17, %v2563_v39  ;;  %v7808_v30 = vld [vmem:[%s13227_s3 + $0x394] sm:$0xf] }
 0x400   : > { %v2474_v6 = vpop.f32.mrf.mxu0  ;;  %v10748_v38 = vpack.c.bf16 %v2532_v36, %v2533_v47  ;;  %v2640_v52 = vsel %vm791_vm3, %v2634_v53, %v2635_v10  ;;  %v10757_v50 = vpack.c.bf16 %v2568_v37, %v2569_v11  ;;  %v6918_v47 = vld [vmem:[%s13227_s3 + $0x398] sm:$0xf0]  ;;  %v7806_v11 = vld [vmem:[%s13227_s3 + $0x384] sm:$0xf]  ;;  %v6910_v36 = vld [vmem:[%s13227_s3 + $0x388] sm:$0xf0] }
 0x401   : > { %v10755_v29 = vadd.f32 %v2420_v56, %v13439_v35  ;;  %v6921_v17 = vor.u32 %v7808_v30, %v6918_v47 }
 0x403   : > { %13440 = vst [vmem:[#allocation27_spill] sm:$0xff] %v10755_v29  ;;  %v2510_v48 = vmul.f32 0.0, %v10755_v29  ;;  %3572 = vmatpush.bf16.msrb.mxu0 %v6929_v59  ;;  %v13441_v59 = vrot.slane %v10668_v44, 1  ;;  %v6913_v29 = vor.u32 %v7806_v11, %v6910_v36  ;;  %v2512_v11 = vrot.slane %v10202_v19, 6 }
 0x405   : > { %v2600_v20 = vrot.slane %v2510_v48, 1  ;;  %v2528_v53 = vrot.slane %v2510_v48, 6  ;;  %v2564_v51 = vrot.slane %v2510_v48, 7  ;;  %v2636_v35 = vrot.slane %v2510_v48, 2 }
 0x406   : > { %v2421_v56 = vpop.f32.mrf.mxu3  ;;  %v2604_v37 = vsel %vm754_vm2, %v13441_v59, %v2599_v21 }
 0x407   : > { %v2422_v6 = vadd.f32 %v2421_v56, %v10190_v54  ;;  %v2603_v23 = vsel %vm754_vm2, %v2599_v21, %v2600_v20  ;;  %v2531_v30 = vsel %vm680_vm4, %v2527_v18, %v2528_v53  ;;  %3573 = vmatpush.bf16.msrb.mxu0 %v6921_v17  ;;  %v2567_v4 = vsel %vm717_vm5, %v2563_v39, %v2564_v51  ;;  %v13443_v56 = vld [vmem:[#allocation29_spill] sm:$0xff] }
 0x408   : > { %v10781_v47 = vpack.c.bf16 %v2603_v23, %v2604_v37  ;;  %v2639_v54 = vsel %vm791_vm3, %v2635_v10, %v2636_v35  ;;  %v2513_v18 = vrot.slane %v10205_v32, 6  ;;  %v2549_v17 = vrot.slane %v10205_v32, 7 }
 0x409   : > { %v10788_v16 = vadd.f32 %v2422_v6, %v13443_v56  ;;  %v10790_v44 = vpack.c.bf16 %v2639_v54, %v2640_v52  ;;  %v2548_v39 = vrot.slane %v10202_v19, 7 }
 0x40a   : > { %13442 = vst [vmem:[#allocation47_spill] sm:$0xff] %v10781_v47  ;;  %3394 = vmatmul.bf16.gmra.mxu0 %v10781_v47  ;;  %v2546_v59 = vsel %vm680_vm4, %v2512_v11, %v2513_v18 }
 0x40b   : > { %13444 = vst [vmem:[#allocation29_spill] sm:$0xff] %v10788_v16  ;;  %v2511_v21 = vmul.f32 0.0, %v10788_v16  ;;  %3574 = vmatpush.bf16.msrb.mxu0 %v6913_v29  ;;  %v2582_v29 = vsel %vm717_vm5, %v2548_v39, %v2549_v17 }
 0x40d   : > { %v10798_v36 = vpack.c.bf16 %v2511_v21, %v2510_v48  ;;  %v2529_v10 = vrot.slane %v2511_v21, 6  ;;  %v2565_v6 = vrot.slane %v2511_v21, 7  ;;  %v2637_v23 = vrot.slane %v2511_v21, 2 }
 0x40e   : > { %v2601_v16 = vrot.slane %v2511_v21, 1 }
 0x40f   : > { %3345 = vmatmul.bf16.gmra.mxu3 %v10798_v36  ;;  %v2547_v37 = vsel %vm680_vm4, %v2529_v10, %v2512_v11  ;;  %v2583_v48 = vsel %vm717_vm5, %v2565_v6, %v2548_v39  ;;  %v2530_v52 = vsel %vm680_vm4, %v2528_v53, %v2529_v10  ;;  %v2566_v47 = vsel %vm717_vm5, %v2564_v51, %v2565_v6 }
 0x410   : > { %v10810_v54 = vpack.c.bf16 %v2546_v59, %v2547_v37  ;;  %v2657_v56 = vpack.c.bf16 %v2582_v29, %v2583_v48  ;;  %v10814_v60 = vpack.c.bf16 %v2530_v52, %v2531_v30  ;;  %v2638_v11 = vsel %vm791_vm3, %v2636_v35, %v2637_v23  ;;  %v6838_v29 = vld [vmem:[%s13227_s3 + $0x2f8] sm:$0xf0] }
 0x411   : > { %v2655_v39 = vsel %vm791_vm3, %v2637_v23, %v13445_v57  ;;  %v10825_v21 = vpack.c.bf16 %v2566_v47, %v2567_v4  ;;  %v2602_v53 = vsel %vm754_vm2, %v2600_v20, %v2601_v16  ;;  %v13446_v51 = vrot.slane %v10202_v19, 1 }
 0x412   : > { %3197 = vmatmul.bf16.vlgmr.msrb.gmra.mxu1 %v10810_v54  ;;  %3251 = vmatmul.bf16.vlgmr.msrb.gmra.mxu2 %v2657_v56  ;;  %v10827_v59 = vpack.c.bf16 %v2655_v39, %v2638_v11  ;;  %v2514_v57 = vrot.slane %v10219_v27, 6  ;;  %v2550_v10 = vrot.slane %v10219_v27, 7  ;;  %v13448_v4 = vrot.slane %v10241_v40, 6 }
 0x413   : > { %v2619_v35 = vsel %vm754_vm2, %v2601_v16, %v13446_v51  ;;  %v13449_v20 = vrot.slane %v10241_v40, 7  ;;  %v10858_v40 = vpop.f32.mrf.mxu3 }
 0x414   : > { %v10835_v30 = vpack.c.bf16 %v2619_v35, %v2602_v53  ;;  %v2544_v47 = vsel %vm680_vm4, %v2514_v57, %v13448_v4  ;;  %v2545_v16 = vsel %vm680_vm4, %v2513_v18, %v2514_v57  ;;  %v2581_v52 = vsel %vm717_vm5, %v2549_v17, %v2550_v10  ;;  %v7786_v35 = vld [vmem:[%s13227_s3 + $0x2e4] sm:$0xf]  ;;  %v6830_v57 = vld [vmem:[%s13227_s3 + $0x2e8] sm:$0xf0] }
 0x415   : > { %v2580_v6 = vsel %vm717_vm5, %v2550_v10, %v13449_v20  ;;  %v10852_v23 = vpack.c.bf16 %v2544_v47, %v2545_v16  ;;  %v10863_v17 = vpop.f32.mrf.mxu0  ;;  %v7851_v10 = vld [vmem:[%s13227_s3 + $0x4e4] sm:$0xf0] }
 0x416   : > { %13447 = vst [vmem:[#allocation48_spill] sm:$0xff] %v10835_v30  ;;  %v2662_v37 = vpack.c.bf16 %v2580_v6, %v2581_v52  ;;  %v7784_v52 = vld [vmem:[%s13227_s3 + $0x2d4] sm:$0xf] }
 0x41a   : > { %3399 = vmatmul.bf16.gmra.mxu0 %v10835_v30 }
 0x41b   : > { %v10861_v18 = vpop.f32.mrf.mxu3 }
 0x41d   : > { %v10882_v11 = vpop.f32.mrf.mxu0 }
 0x41f   : > { %3521 = vmatmul.bf16.vlgmr.msra.gmra.mxu3 %v2657_v56  ;;  %v7853_v56 = vld [vmem:[%s13227_s3 + $0x4f4] sm:$0xf0] }
 0x422   : > { %3202 = vmatmul.bf16.gmra.mxu1 %v10852_v23  ;;  %3256 = vmatmul.bf16.gmra.mxu2 %v2662_v37 }
 0x427   : > { %v10888_v51 = vpop.f32.mrf.mxu0 }
 0x42a   : > { %3575 = vmatmul.bf16.vlgmr.msrb.gmra.mxu0 %v10212_v8  ;;  %v7788_v8 = vld [vmem:[%s13227_s3 + $0x2f4] sm:$0xf] }
 0x42b   : > { %v6841_v48 = vor.u32 %v7788_v8, %v6838_v29  ;;  %v7849_v8 = vld [vmem:[%s13227_s3 + $0x4d4] sm:$0xf0] }
 0x42d   : > { %3459 = vmatpush.bf16.msra.mxu2 %v6841_v48 }
 0x42f   : > { %3526 = vmatmul.bf16.gmra.mxu3 %v2662_v37  ;;  %v10906_v20 = vpop.f32.mrf.mxu0  ;;  %v6822_v37 = vld [vmem:[%s13227_s3 + $0x2d8] sm:$0xf0] }
 0x432   : > { %3207 = vmatmul.bf16.gmra.mxu1 %v10301_v15  ;;  %3261 = vmatmul.bf16.gmra.mxu2 %v10303_v0 }
 0x437   : > { %v10914_v16 = vpop.f32.mrf.mxu0 }
 0x43a   : > { %3580 = vmatmul.bf16.gmra.mxu0 %v10245_v33  ;;  %v10874_v33 = vpop.f32.mrf.mxu3 }
 0x43f   : > { %3531 = vmatmul.bf16.gmra.mxu3 %v10303_v0  ;;  %v7092_v0 = vld [vmem:[%s13227_s3 + $0x4f0] sm:$0xf] }
 0x440   : > { %v7093_v39 = vor.u32 %v7853_v56, %v7092_v0  ;;  %v10931_v0 = vpop.f32.mrf.mxu0  ;;  %v7847_v56 = vld [vmem:[%s13227_s3 + $0x4c4] sm:$0xf0] }
 0x442   : > { %3212 = vmatmul.bf16.gmra.mxu1 %v10356_v14  ;;  %3266 = vmatmul.bf16.gmra.mxu2 %v10358_v61  ;;  %v10885_v53 = vpop.f32.mrf.mxu3 }
 0x443   : > { %3405 = vmatpush.bf16.msra.mxu1 %v7093_v39  ;;  %v7782_v39 = vld [vmem:[%s13227_s3 + $0x2c4] sm:$0xf] }
 0x44a   : > { %3585 = vmatmul.bf16.gmra.mxu0 %v10291_v7  ;;  %v6833_v7 = vor.u32 %v7786_v35, %v6830_v57  ;;  %v10904_v47 = vpop.f32.mrf.mxu3  ;;  %v6814_v57 = vld [vmem:[%s13227_s3 + $0x2c8] sm:$0xf0] }
 0x44c   : > { %3460 = vmatpush.bf16.msra.mxu2 %v6833_v7  ;;  %v6817_v7 = vor.u32 %v7782_v39, %v6814_v57  ;;  %v6798_v39 = vld [vmem:[%s13227_s3 + $0x2a8] sm:$0xf0]  ;;  %v7044_v57 = vld [vmem:[%s13227_s3 + $0x490] sm:$0xf] }
 0x44f   : > { %3536 = vmatmul.bf16.gmra.mxu3 %v10358_v61  ;;  %v7084_v61 = vld [vmem:[%s13227_s3 + $0x4e0] sm:$0xf] }
 0x450   : > { %v7085_v4 = vor.u32 %v7851_v10, %v7084_v61  ;;  %v7845_v61 = vld [vmem:[%s13227_s3 + $0x4b4] sm:$0xf0]  ;;  %v7780_v10 = vld [vmem:[%s13227_s3 + $0x2b4] sm:$0xf] }
 0x452   : > { %3217 = vmatmul.bf16.gmra.mxu1 %v10411_v28  ;;  %3271 = vmatmul.bf16.gmra.mxu2 %v10413_v45  ;;  %v10912_v6 = vpop.f32.mrf.mxu3 }
 0x453   : > { %3406 = vmatpush.bf16.msra.mxu1 %v7085_v4 }
 0x45a   : > { %3590 = vmatmul.bf16.gmra.mxu0 %v10346_v26  ;;  %v6825_v26 = vor.u32 %v7784_v52, %v6822_v37  ;;  %v10929_v48 = vpop.f32.mrf.mxu3  ;;  %v6806_v52 = vld [vmem:[%s13227_s3 + $0x2b8] sm:$0xf0] }
 0x45b   : > { %v6809_v37 = vor.u32 %v7780_v10, %v6806_v52  ;;  %v6790_v10 = vld [vmem:[%s13227_s3 + $0x298] sm:$0xf0]  ;;  %v7839_v52 = vld [vmem:[%s13227_s3 + $0x484] sm:$0xf0] }
 0x45c   : > { %3461 = vmatpush.bf16.msra.mxu2 %v6825_v26 }
 0x45f   : > { %3541 = vmatmul.bf16.gmra.mxu3 %v10413_v45  ;;  %v7076_v45 = vld [vmem:[%s13227_s3 + $0x4d0] sm:$0xf] }
 0x460   : > { %v7077_v29 = vor.u32 %v7849_v8, %v7076_v45  ;;  %3462 = vmatpush.bf16.msra.mxu2 %v6817_v7  ;;  %v7052_v45 = vld [vmem:[%s13227_s3 + $0x4a0] sm:$0xf]  ;;  %v7843_v8 = vld [vmem:[%s13227_s3 + $0x4a4] sm:$0xf0]  ;;  %v7841_v7 = vld [vmem:[%s13227_s3 + $0x494] sm:$0xf0] }
 0x462   : > { %3222 = vmatmul.bf16.gmra.mxu1 %v10496_v46  ;;  %3276 = vmatmul.bf16.gmra.mxu2 %v10504_v3  ;;  %v10960_v26 = vpop.f32.mrf.mxu3 }
 0x463   : > { %3407 = vmatpush.bf16.msra.mxu1 %v7077_v29  ;;  %v7778_v29 = vld [vmem:[%s13227_s3 + $0x2a4] sm:$0xf] }
 0x464   : > { %3463 = vmatpush.bf16.msra.mxu2 %v6809_v37  ;;  %v7774_v37 = vld [vmem:[%s13227_s3 + $0x284] sm:$0xf] }
 0x46a   : > { %3595 = vmatmul.bf16.gmra.mxu0 %v10401_v25  ;;  %v7068_v25 = vld [vmem:[%s13227_s3 + $0x4c0] sm:$0xf] }
 0x46b   : > { %v7069_v35 = vor.u32 %v7847_v56, %v7068_v25  ;;  %v10971_v25 = vpop.f32.mrf.mxu0  ;;  %v7053_v56 = vor.u32 %v7843_v8, %v7052_v45  ;;  %v6782_v8 = vld [vmem:[%s13227_s3 + $0x288] sm:$0xf0] }
 0x46d   : > { %3408 = vmatpush.bf16.msra.mxu1 %v7069_v35  ;;  %v6801_v35 = vor.u32 %v7778_v29, %v6798_v39  ;;  %v6785_v29 = vor.u32 %v7774_v37, %v6782_v8  ;;  %v13451_v8 = vrot.slane %v10219_v27, 2 }
 0x46f   : > { %3546 = vmatmul.bf16.gmra.mxu3 %v10504_v3  ;;  %v7060_v3 = vld [vmem:[%s13227_s3 + $0x4b0] sm:$0xf]  ;;  %3464 = vmatpush.bf16.msra.mxu2 %v6801_v35 }
 0x470   : > { %v7061_v4 = vor.u32 %v7845_v61, %v7060_v3  ;;  %v7776_v3 = vld [vmem:[%s13227_s3 + $0x294] sm:$0xf]  ;;  %v7045_v61 = vor.u32 %v7841_v7, %v7044_v57  ;;  %v11016_v57 = vld [vmem:[%s13228_s4 + $0x2] sm:$0x3] }
 0x471   : > { %13450 = vst [vmem:[#allocation49_spill] sm:$0xff] %v11016_v57 }
 0x472   : > { %3227 = vmatmul.bf16.gmra.mxu1 %v10674_v5  ;;  %3281 = vmatmul.bf16.gmra.mxu2 %v10676_v55 }
 0x473   : > { %3409 = vmatpush.bf16.msra.mxu1 %v7061_v4  ;;  %v7036_v4 = vld [vmem:[%s13227_s3 + $0x480] sm:$0xf] }
 0x474   : > { %v7037_v45 = vor.u32 %v7839_v52, %v7036_v4 }
 0x477   : > { %3410 = vmatpush.bf16.msra.mxu1 %v7053_v56  ;;  %v11004_v56 = vpop.f32.mrf.mxu0 }
 0x47a   : > { %3600 = vmatmul.bf16.gmra.mxu0 %v10468_v22  ;;  %v6793_v22 = vor.u32 %v7776_v3, %v6790_v10  ;;  %v11020_v3 = vperm.slane %v11016_v57, 0 }
 0x47b   : > { %3411 = vmatpush.bf16.msra.mxu1 %v7045_v61 }
 0x47c   : > { %3465 = vmatpush.bf16.msra.mxu2 %v6793_v22 }
 0x47f   : > { %3551 = vmatmul.bf16.gmra.mxu3 %v10676_v55  ;;  %v11002_v55 = vpop.f32.mrf.mxu3  ;;  %3412 = vmatpush.bf16.msra.mxu1 %v7037_v45  ;;  %v11011_v35 = vpop.f32.mrf.mxu0 }
 0x480   : > { %3466 = vmatpush.bf16.msra.mxu2 %v6785_v29 }
 0x482   : > { %3232 = vmatmul.bf16.gmra.mxu1 %v10748_v38  ;;  %3286 = vmatmul.bf16.gmra.mxu2 %v10757_v50 }
 0x487   : > { %v11009_v39 = vpop.f32.mrf.mxu3  ;;  %v11027_v22 = vpop.f32.mrf.mxu0 }
 0x48a   : > { %3605 = vmatmul.bf16.gmra.mxu0 %v10613_v62 }
 0x48f   : > { %v3198_v7 = vpop.f32.mrf.mxu1  ;;  %3556 = vmatmul.bf16.gmra.mxu3 %v10757_v50  ;;  %v11025_v61 = vpop.f32.mrf.mxu3  ;;  %v2621_v50 = vrot.slane %v10205_v32, 2 }
 0x490   : > { %v3199_v62 = vadd.f32 %v3198_v7, %v11020_v3 }
 0x491   : > { %v2653_v29 = vsel %vm791_vm3, %v2621_v50, %v13451_v8 }
 0x492   : > { %3237 = vmatmul.bf16.gmra.mxu1 %v10814_v60  ;;  %3291 = vmatmul.bf16.gmra.mxu2 %v10825_v21 }
 0x495   : > { %v3252_v10 = vpop.f32.mrf.mxu2 }
 0x496   : > { %v11029_v4 = vadd.f32 %v3252_v10, %v3199_v62  ;;  %v13452_v62 = vrot.slane %v10202_v19, 2  ;;  %v11047_v10 = vpop.f32.mrf.mxu0 }
 0x497   : > { %v3200_v52 = vpop.f32.mrf.mxu1  ;;  %v11040_v30 = vpop.f32.mrf.mxu3 }
 0x498   : > { %v3201_v37 = vadd.f32 %v3200_v52, %v11020_v3 }
 0x49a   : > { %3610 = vmatmul.bf16.gmra.mxu0 %v10736_v43  ;;  %v2654_v43 = vsel %vm791_vm3, %v13452_v62, %v2621_v50 }
 0x49b   : > { %v11049_v52 = vpack.c.bf16 %v2653_v29, %v2654_v43 }
 0x49d   : > { %v3254_v45 = vpop.f32.mrf.mxu2 }
 0x49e   : > { %v11038_v7 = vadd.f32 %v3254_v45, %v3201_v37 }
 0x49f   : > { %v3203_v57 = vpop.f32.mrf.mxu1  ;;  %3561 = vmatmul.bf16.gmra.mxu3 %v10825_v21  ;;  %v11056_v21 = vpop.f32.mrf.mxu0 }
 0x4a0   : > { %v3204_v37 = vadd.f32 %v3203_v57, %v11020_v3  ;;  %13453 = vst [vmem:[#allocation50_spill] sm:$0xff] %v11056_v21 }
 0x4a2   : > { %3413 = vmatmul.bf16.vlgmr.msra.gmra.mxu1 %v11049_v52  ;;  %3467 = vmatmul.bf16.vlgmr.msra.gmra.mxu2 %v10810_v54 }
 0x4a5   : > { %v3257_v45 = vpop.f32.mrf.mxu2 }
 0x4a6   : > { %v11054_v8 = vadd.f32 %v3257_v45, %v3204_v37 }
 0x4a7   : > { %v3205_v27 = vpop.f32.mrf.mxu1 }
 0x4a8   : > { %v3206_v19 = vadd.f32 %v3205_v27, %v11020_v3 }
 0x4aa   : > { %3615 = vmatmul.bf16.gmra.mxu0 %v10798_v36 }
 0x4ad   : > { %v3259_v50 = vpop.f32.mrf.mxu2 }
 0x4ae   : > { %v11060_v62 = vadd.f32 %v3259_v50, %v3206_v19 }
 0x4af   : > { %v3208_v29 = vpop.f32.mrf.mxu1 }
 0x4b0   : > { %v3209_v54 = vadd.f32 %v3208_v29, %v11020_v3 }
 0x4b2   : > { %3418 = vmatmul.bf16.gmra.mxu1 %v10287_v12  ;;  %3472 = vmatmul.bf16.gmra.mxu2 %v10852_v23 }
 0x4b5   : > { %v3262_v57 = vpop.f32.mrf.mxu2 }
 0x4b6   : > { %v11065_v43 = vadd.f32 %v3262_v57, %v3209_v54 }
 0x4b7   : > { %v3210_v37 = vpop.f32.mrf.mxu1 }
 0x4b8   : > { %v3211_v45 = vadd.f32 %v3210_v37, %v11020_v3 }
 0x4bd   : > { %v3264_v42 = vpop.f32.mrf.mxu2 }
 0x4be   : > { %v11068_v36 = vadd.f32 %v3264_v42, %v3211_v45  ;;  %v7852_v42 = vld [vmem:[%s13227_s3 + $0x4f4] sm:$0xf] }
 0x4bf   : > { %v3213_v27 = vpop.f32.mrf.mxu1 }
 0x4c0   : > { %v3214_v19 = vadd.f32 %v3213_v27, %v11020_v3 }
 0x4c2   : > { %3423 = vmatmul.bf16.gmra.mxu1 %v10336_v9  ;;  %3477 = vmatmul.bf16.gmra.mxu2 %v10301_v15  ;;  %v7094_v15 = vld [vmem:[%s13227_s3 + $0x4f8] sm:$0xf0] }
 0x4c3   : > { %v7097_v45 = vor.u32 %v7852_v42, %v7094_v15 }
 0x4c5   : > { %v3267_v50 = vpop.f32.mrf.mxu2  ;;  %3675 = vmatpush.bf16.msrb.mxu2 %v7097_v45 }
 0x4c6   : > { %v11073_v23 = vadd.f32 %v3267_v50, %v3214_v19 }
 0x4c7   : > { %v3215_v29 = vpop.f32.mrf.mxu1 }
 0x4c8   : > { %v3216_v54 = vadd.f32 %v3215_v29, %v11020_v3 }
 0x4cd   : > { %v3269_v57 = vpop.f32.mrf.mxu2 }
 0x4ce   : > { %v11076_v32 = vadd.f32 %v3269_v57, %v3216_v54  ;;  %v7030_v54 = vld [vmem:[%s13227_s3 + $0x478] sm:$0xf0] }
 0x4cf   : > { %v3218_v37 = vpop.f32.mrf.mxu1 }
 0x4d0   : > { %v3219_v27 = vadd.f32 %v3218_v37, %v11020_v3 }
 0x4d2   : > { %3428 = vmatmul.bf16.gmra.mxu1 %v10391_v34  ;;  %3482 = vmatmul.bf16.gmra.mxu2 %v10356_v14  ;;  %v7836_v14 = vld [vmem:[%s13227_s3 + $0x474] sm:$0xf] }
 0x4d3   : > { %v7033_v57 = vor.u32 %v7836_v14, %v7030_v54  ;;  %v7850_v14 = vld [vmem:[%s13227_s3 + $0x4e4] sm:$0xf] }
 0x4d5   : > { %v3272_v19 = vpop.f32.mrf.mxu2  ;;  %3621 = vmatpush.bf16.msrb.mxu1 %v7033_v57 }
 0x4d6   : > { %v11087_v50 = vadd.f32 %v3272_v19, %v3219_v27 }
 0x4d7   : > { %v3220_v29 = vpop.f32.mrf.mxu1 }
 0x4d8   : > { %v3221_v13 = vadd.f32 %v3220_v29, %v11020_v3  ;;  %v7834_v29 = vld [vmem:[%s13227_s3 + $0x464] sm:$0xf] }
 0x4dd   : > { %v3274_v42 = vpop.f32.mrf.mxu2 }
 0x4de   : > { %v11096_v15 = vadd.f32 %v3274_v42, %v3221_v13  ;;  %v7086_v13 = vld [vmem:[%s13227_s3 + $0x4e8] sm:$0xf0] }
 0x4df   : > { %v3223_v37 = vpop.f32.mrf.mxu1  ;;  %v7089_v54 = vor.u32 %v7850_v14, %v7086_v13 }
 0x4e0   : > { %v3224_v45 = vadd.f32 %v3223_v37, %v11020_v3 }
 0x4e1   : > { %3676 = vmatpush.bf16.msrb.mxu2 %v7089_v54 }
 0x4e2   : > { %3433 = vmatmul.bf16.gmra.mxu1 %v10448_v24  ;;  %3487 = vmatmul.bf16.gmra.mxu2 %v10411_v28  ;;  %v7022_v28 = vld [vmem:[%s13227_s3 + $0x468] sm:$0xf0] }
 0x4e3   : > { %v7025_v57 = vor.u32 %v7834_v29, %v7022_v28  ;;  %v7848_v29 = vld [vmem:[%s13227_s3 + $0x4d4] sm:$0xf] }
 0x4e4   : > { %v7832_v28 = vld [vmem:[%s13227_s3 + $0x454] sm:$0xf] }
 0x4e5   : > { %v3277_v27 = vpop.f32.mrf.mxu2  ;;  %3622 = vmatpush.bf16.msrb.mxu1 %v7025_v57 }
 0x4e6   : > { %v11101_v19 = vadd.f32 %v3277_v27, %v3224_v45 }
 0x4e7   : > { %v3225_v21 = vpop.f32.mrf.mxu1 }
 0x4e8   : > { %v3226_v42 = vadd.f32 %v3225_v21, %v11020_v3  ;;  %v7078_v21 = vld [vmem:[%s13227_s3 + $0x4d8] sm:$0xf0] }
 0x4e9   : > { %v7081_v54 = vor.u32 %v7848_v29, %v7078_v21  ;;  %v7006_v29 = vld [vmem:[%s13227_s3 + $0x448] sm:$0xf0]  ;;  %v7846_v21 = vld [vmem:[%s13227_s3 + $0x4c4] sm:$0xf] }
 0x4eb   : > { %3677 = vmatpush.bf16.msrb.mxu2 %v7081_v54  ;;  %v7070_v54 = vld [vmem:[%s13227_s3 + $0x4c8] sm:$0xf0] }
 0x4ed   : > { %v3279_v37 = vpop.f32.mrf.mxu2 }
 0x4ee   : > { %v11116_v45 = vadd.f32 %v3279_v37, %v3226_v42 }
 0x4ef   : > { %v3228_v27 = vpop.f32.mrf.mxu1 }
 0x4f0   : > { %v3229_v24 = vadd.f32 %v3228_v27, %v11020_v3 }
 0x4f2   : > { %3438 = vmatmul.bf16.gmra.mxu1 %v10609_v49  ;;  %3492 = vmatmul.bf16.gmra.mxu2 %v10496_v46  ;;  %v7014_v46 = vld [vmem:[%s13227_s3 + $0x458] sm:$0xf0] }
 0x4f5   : > { %v3282_v14 = vpop.f32.mrf.mxu2 }
 0x4f6   : > { %v11121_v13 = vadd.f32 %v3282_v14, %v3229_v24  ;;  %v7017_v24 = vor.u32 %v7832_v28, %v7014_v46  ;;  %v7830_v14 = vld [vmem:[%s13227_s3 + $0x444] sm:$0xf]  ;;  %v7828_v28 = vld [vmem:[%s13227_s3 + $0x434] sm:$0xf]  ;;  %v6998_v46 = vld [vmem:[%s13227_s3 + $0x438] sm:$0xf0] }
 0x4f7   : > { %v3230_v1 = vpop.f32.mrf.mxu1 }
 0x4f8   : > { %v3231_v57 = vadd.f32 %v3230_v1, %v11020_v3  ;;  %3623 = vmatpush.bf16.msrb.mxu1 %v7017_v24  ;;  %v7009_v1 = vor.u32 %v7830_v14, %v7006_v29  ;;  %v7073_v24 = vor.u32 %v7846_v21, %v7070_v54  ;;  %v7001_v14 = vor.u32 %v7828_v28, %v6998_v46  ;;  %v7826_v21 = vld [vmem:[%s13227_s3 + $0x424] sm:$0xf]  ;;  %v6990_v54 = vld [vmem:[%s13227_s3 + $0x428] sm:$0xf0]  ;;  %v6982_v46 = vld [vmem:[%s13227_s3 + $0x418] sm:$0xf0] }
 0x4f9   : > { %v7054_v28 = vld [vmem:[%s13227_s3 + $0x4a8] sm:$0xf0] }
 0x4fa   : > { %3678 = vmatpush.bf16.msrb.mxu2 %v7073_v24 }
 0x4fc   : > { %3624 = vmatpush.bf16.msrb.mxu1 %v7009_v1  ;;  %v6993_v1 = vor.u32 %v7826_v21, %v6990_v54 }
 0x4fd   : > { %v3284_v42 = vpop.f32.mrf.mxu2 }
 0x4fe   : > { %v11136_v37 = vadd.f32 %v3284_v42, %v3231_v57  ;;  %v7844_v57 = vld [vmem:[%s13227_s3 + $0x4b4] sm:$0xf] }
 0x4ff   : > { %v3233_v27 = vpop.f32.mrf.mxu1 }
 0x500   : > { %13454 = vst [vmem:[#allocation51_spill] sm:$0xff] %v11136_v37  ;;  %v3234_v42 = vadd.f32 %v3233_v27, %v11020_v3  ;;  %3625 = vmatpush.bf16.msrb.mxu1 %v7001_v14  ;;  %v7842_v27 = vld [vmem:[%s13227_s3 + $0x4a4] sm:$0xf] }
 0x501   : > { %v7057_v24 = vor.u32 %v7842_v27, %v7054_v28  ;;  %v7822_v27 = vld [vmem:[%s13227_s3 + $0x404] sm:$0xf]  ;;  %v6974_v28 = vld [vmem:[%s13227_s3 + $0x408] sm:$0xf0] }
 0x502   : > { %3443 = vmatmul.bf16.gmra.mxu1 %v10729_v63  ;;  %3497 = vmatmul.bf16.gmra.mxu2 %v10674_v5  ;;  %v7062_v5 = vld [vmem:[%s13227_s3 + $0x4b8] sm:$0xf0] }
 0x503   : > { %v7065_v37 = vor.u32 %v7844_v57, %v7062_v5  ;;  %v7840_v57 = vld [vmem:[%s13227_s3 + $0x494] sm:$0xf]  ;;  %v7046_v5 = vld [vmem:[%s13227_s3 + $0x498] sm:$0xf0] }
 0x504   : > { %3626 = vmatpush.bf16.msrb.mxu1 %v6993_v1  ;;  %v7049_v21 = vor.u32 %v7840_v57, %v7046_v5  ;;  %v6977_v1 = vor.u32 %v7822_v27, %v6974_v28 }
 0x505   : > { %v3287_v29 = vpop.f32.mrf.mxu2  ;;  %3679 = vmatpush.bf16.msrb.mxu2 %v7065_v37  ;;  %v7824_v37 = vld [vmem:[%s13227_s3 + $0x414] sm:$0xf] }
 0x506   : > { %v11165_v63 = vadd.f32 %v3287_v29, %v3234_v42  ;;  %v6985_v14 = vor.u32 %v7824_v37, %v6982_v46  ;;  %v7038_v37 = vld [vmem:[%s13227_s3 + $0x488] sm:$0xf0] }
 0x507   : > { %v3235_v49 = vpop.f32.mrf.mxu1 }
 0x508   : > { %13455 = vst [vmem:[#allocation52_spill] sm:$0xff] %v11165_v63  ;;  %v3236_v42 = vadd.f32 %v3235_v49, %v11020_v3  ;;  %3627 = vmatpush.bf16.msrb.mxu1 %v6985_v14  ;;  %v7838_v49 = vld [vmem:[%s13227_s3 + $0x484] sm:$0xf]  ;;  %v3307_v14 = vadd.f32 %v10858_v40, %v11029_v4 }
 0x509   : > { %3680 = vmatpush.bf16.msrb.mxu2 %v7057_v24  ;;  %v7041_v46 = vor.u32 %v7838_v49, %v7038_v37 }
 0x50a   : > { %v3361_v27 = vadd.f32 %v10863_v17, %v3307_v14  ;;  %v3312_v17 = vadd.f32 %v10874_v33, %v11054_v8 }
 0x50c   : > { %3628 = vmatpush.bf16.msrb.mxu1 %v6977_v1 }
 0x50d   : > { %v3289_v29 = vpop.f32.mrf.mxu2  ;;  %3681 = vmatpush.bf16.msrb.mxu2 %v7049_v21 }
 0x50e   : > { %v11192_v54 = vadd.f32 %v3289_v29, %v3236_v42 }
 0x50f   : > { %v3238_v63 = vpop.f32.mrf.mxu1 }
 0x510   : > { %v3239_v24 = vadd.f32 %v3238_v63, %v11020_v3  ;;  %v3309_v63 = vadd.f32 %v10861_v18, %v11038_v7 }
 0x511   : > { %3682 = vmatpush.bf16.msrb.mxu2 %v7041_v46  ;;  %v3366_v46 = vadd.f32 %v10888_v51, %v3312_v17  ;;  %v3317_v51 = vadd.f32 %v10904_v47, %v11065_v43 }
 0x512   : > { %3448 = vmatmul.bf16.gmra.mxu1 %v10790_v44  ;;  %3502 = vmatmul.bf16.gmra.mxu2 %v10748_v38  ;;  %v3363_v40 = vadd.f32 %v10882_v11, %v3309_v63 }
 0x515   : > { %v3292_v57 = vpop.f32.mrf.mxu2 }
 0x516   : > { %v11209_v5 = vadd.f32 %v3292_v57, %v3239_v24 }
 0x517   : > { %v3240_v42 = vpop.f32.mrf.mxu1 }
 0x518   : > { %v3241_v29 = vadd.f32 %v3240_v42, %v11020_v3  ;;  %v3371_v42 = vadd.f32 %v10914_v16, %v3317_v51  ;;  %v3322_v16 = vadd.f32 %v10929_v48, %v11073_v23 }
 0x51d   : > { %v3294_v38 = vpop.f32.mrf.mxu2 }
 0x51e   : > { %v11214_v21 = vadd.f32 %v3294_v38, %v3241_v29  ;;  %v3336_v29 = vpop.f32.mrf.mxu3  ;;  %v3376_v38 = vadd.f32 %v10971_v25, %v3322_v16  ;;  %v3327_v25 = vadd.f32 %v11002_v55, %v11087_v50 }
 0x51f   : > { %v3414_v28 = vpop.f32.mrf.mxu1 }
 0x520   : > { %v11217_v49 = vadd.f32 %v3414_v28, %v3361_v27 }
 0x522   : > { %3453 = vmatmul.bf16.gmra.mxu1 %v10827_v59  ;;  %3507 = vmatmul.bf16.gmra.mxu2 %v10814_v60  ;;  %v3314_v60 = vadd.f32 %v10885_v53, %v11060_v62 }
 0x524   : > { %v3368_v7 = vadd.f32 %v10906_v20, %v3314_v60 }
 0x525   : > { %v11223_v1 = vpop.f32.mrf.mxu2 }
 0x526   : > { %v11274_v27 = vpop.f32.mrf.mxu3 }
 0x527   : > { %v3416_v3 = vpop.f32.mrf.mxu1 }
 0x528   : > { %v11226_v4 = vadd.f32 %v3416_v3, %v3363_v40 }
 0x52d   : > { %v11230_v37 = vpop.f32.mrf.mxu2 }
 0x52f   : > { %v3419_v24 = vpop.f32.mrf.mxu1 }
 0x530   : > { %v11233_v18 = vadd.f32 %v3419_v24, %v3366_v46 }
 0x532   : > { %3629 = vmatmul.bf16.vlgmr.msrb.gmra.mxu1 %v10230_v2  ;;  %3683 = vmatmul.bf16.vlgmr.msrb.gmra.mxu2 %v11049_v52  ;;  %v3319_v2 = vadd.f32 %v10912_v6, %v11068_v36 }
 0x534   : > { %v3373_v52 = vadd.f32 %v10931_v0, %v3319_v2 }
 0x535   : > { %v11239_v11 = vpop.f32.mrf.mxu2 }
 0x537   : > { %v3421_v57 = vpop.f32.mrf.mxu1 }
 0x538   : > { %v11242_v33 = vadd.f32 %v3421_v57, %v3368_v7  ;;  %v13456_v7 = vld [vmem:[#allocation36_spill] sm:$0xff]  ;;  %v13457_v57 = vld [vmem:[#allocation38_spill] sm:$0xff] }
 0x53d   : > { %v11246_v8 = vpop.f32.mrf.mxu2 }
 0x53f   : > { %v3424_v14 = vpop.f32.mrf.mxu1 }
 0x540   : > { %v11249_v53 = vadd.f32 %v3424_v14, %v3371_v42 }
 0x542   : > { %3634 = vmatmul.bf16.gmra.mxu1 %v10273_v31  ;;  %3688 = vmatmul.bf16.gmra.mxu2 %v10287_v12  ;;  %v3390_v31 = vpop.f32.mrf.mxu0  ;;  %v3324_v12 = vadd.f32 %v10960_v26, %v11076_v32  ;;  %v3381_v32 = vadd.f32 %v11011_v35, %v3327_v25  ;;  %v3341_v26 = vpop.f32.mrf.mxu3  ;;  %v3332_v35 = vadd.f32 %v11025_v61, %v11101_v19  ;;  %v13458_v19 = vld [vmem:[#allocation50_spill] sm:$0xff] }
 0x544   : > { %v3378_v48 = vadd.f32 %v11004_v56, %v3324_v12  ;;  %v3329_v56 = vadd.f32 %v11009_v39, %v11096_v15  ;;  %v3386_v39 = vadd.f32 %v11047_v10, %v3332_v35  ;;  %v13460_v12 = vld [vmem:[#allocation42_spill] sm:$0xff] }
 0x545   : > { %v11255_v20 = vpop.f32.mrf.mxu2 }
 0x546   : > { %v3383_v50 = vadd.f32 %v11027_v22, %v3329_v56  ;;  %v3334_v22 = vadd.f32 %v11040_v30, %v11116_v45 }
 0x547   : > { %v3426_v62 = vpop.f32.mrf.mxu1 }
 0x548   : > { %v11258_v47 = vadd.f32 %v3426_v62, %v3373_v52  ;;  %v3388_v42 = vadd.f32 %v13458_v19, %v3334_v22  ;;  %v3337_v52 = vadd.f32 %v3336_v29, %v11121_v13  ;;  %v7869_v13 = vld [vmem:[%s13229_s5 + $0xf4] sm:$0xf0]  ;;  %v13463_v22 = vld [vmem:[#allocation44_spill] sm:$0xff]  ;;  %v7867_v19 = vld [vmem:[%s13229_s5 + $0xe4] sm:$0xf0] }
 0x54a   : > { %v11280_v63 = vpop.f32.mrf.mxu0  ;;  %v11298_v24 = vpop.f32.mrf.mxu3  ;;  %v3391_v16 = vadd.f32 %v3390_v31, %v3337_v52 }
 0x54d   : > { %v11262_v43 = vpop.f32.mrf.mxu2 }
 0x54f   : > { %v3429_v6 = vpop.f32.mrf.mxu1 }
 0x550   : > { %v11265_v36 = vadd.f32 %v3429_v6, %v3376_v38  ;;  %v13459_v6 = vld [vmem:[#allocation40_spill] sm:$0xff] }
 0x552   : > { %3639 = vmatmul.bf16.gmra.mxu1 %v10326_v58  ;;  %3693 = vmatmul.bf16.gmra.mxu2 %v10336_v9  ;;  %v3395_v55 = vpop.f32.mrf.mxu0  ;;  %v3346_v61 = vpop.f32.mrf.mxu3 }
 0x555   : > { %v11271_v0 = vpop.f32.mrf.mxu2 }
 0x557   : > { %v3431_v23 = vpop.f32.mrf.mxu1 }
 0x558   : > { %v11276_v28 = vadd.f32 %v3431_v23, %v3378_v48  ;;  %v7191_v48 = vld [vmem:[%s13229_s5 + $0xf0] sm:$0xf] }
 0x559   : > { %v7192_v29 = vor.u32 %v7869_v13, %v7191_v48 }
 0x55a   : > { %v11303_v15 = vpop.f32.mrf.mxu0  ;;  %v11319_v30 = vpop.f32.mrf.mxu3 }
 0x55b   : > { %4220 = vmatpush.bf16.msrb.mxu3 %v7192_v29 }
 0x55d   : > { %v11282_v40 = vpop.f32.mrf.mxu2 }
 0x55f   : > { %v3434_v58 = vpop.f32.mrf.mxu1 }
 0x560   : > { %v11285_v9 = vadd.f32 %v3434_v58, %v3381_v32  ;;  %v13462_v58 = vld [vmem:[#allocation52_spill] sm:$0xff] }
 0x561   : > { %v3342_v56 = vadd.f32 %v3341_v26, %v13462_v58  ;;  %v13466_v58 = vld [vmem:[#allocation47_spill] sm:$0xff] }
 0x562   : > { %3644 = vmatmul.bf16.gmra.mxu1 %v10381_v41  ;;  %3698 = vmatmul.bf16.gmra.mxu2 %v10391_v34  ;;  %v3400_v10 = vpop.f32.mrf.mxu0  ;;  %v3522_v32 = vpop.f32.mrf.mxu3 }
 0x563   : > { %v3396_v35 = vadd.f32 %v3395_v55, %v3342_v56  ;;  %v7868_v56 = vld [vmem:[%s13229_s5 + $0xf4] sm:$0xf] }
 0x565   : > { %v11291_v3 = vpop.f32.mrf.mxu2 }
 0x567   : > { %v3436_v17 = vpop.f32.mrf.mxu1 }
 0x568   : > { %v11294_v46 = vadd.f32 %v3436_v17, %v3383_v50 }
 0x56a   : > { %v11331_v23 = vpop.f32.mrf.mxu0 }
 0x56b   : > { %13461 = vst [vmem:[#allocation36_spill] sm:$0xff] %v11331_v23  ;;  %v7151_v23 = vld [vmem:[%s13229_s5 + $0xa0] sm:$0xf] }
 0x56d   : > { %v11300_v60 = vpop.f32.mrf.mxu2 }
 0x56f   : > { %v3439_v41 = vpop.f32.mrf.mxu1 }
 0x570   : > { %v11305_v34 = vadd.f32 %v3439_v41, %v3386_v39 }
 0x572   : > { %3649 = vmatmul.bf16.gmra.mxu1 %v13456_v7  ;;  %3703 = vmatmul.bf16.gmra.mxu2 %v13457_v57  ;;  %v3576_v17 = vpop.f32.mrf.mxu0  ;;  %v13464_v7 = vld [vmem:[#allocation46_spill] sm:$0xff]  ;;  %v7183_v57 = vld [vmem:[%s13229_s5 + $0xe0] sm:$0xf] }
 0x573   : > { %v7184_v26 = vor.u32 %v7867_v19, %v7183_v57 }
 0x575   : > { %v11311_v51 = vpop.f32.mrf.mxu2  ;;  %4221 = vmatpush.bf16.msrb.mxu3 %v7184_v26 }
 0x577   : > { %v3441_v14 = vpop.f32.mrf.mxu1 }
 0x578   : > { %v11314_v2 = vadd.f32 %v3441_v14, %v3388_v42  ;;  %v3524_v42 = vpop.f32.mrf.mxu3 }
 0x57a   : > { %v11354_v52 = vpop.f32.mrf.mxu0 }
 0x57d   : > { %v11317_v62 = vpop.f32.mrf.mxu2 }
 0x57f   : > { %v3444_v38 = vpop.f32.mrf.mxu1 }
 0x580   : > { %v11321_v45 = vadd.f32 %v3444_v38, %v3391_v16  ;;  %v3347_v16 = vadd.f32 %v3346_v61, %v11209_v5  ;;  %v7193_v5 = vld [vmem:[%s13229_s5 + $0xf8] sm:$0xf0] }
 0x581   : > { %v7196_v61 = vor.u32 %v7868_v56, %v7193_v5 }
 0x582   : > { %3654 = vmatmul.bf16.gmra.mxu1 %v13459_v6  ;;  %3708 = vmatmul.bf16.gmra.mxu2 %v13460_v12  ;;  %v11359_v6 = vpop.f32.mrf.mxu3  ;;  %v3401_v12 = vadd.f32 %v3400_v10, %v3347_v16  ;;  %v11363_v29 = vpop.f32.mrf.mxu0  ;;  %v13467_v10 = vld [vmem:[#allocation49_spill] sm:$0xff]  ;;  %v7175_v16 = vld [vmem:[%s13229_s5 + $0xd0] sm:$0xf] }
 0x583   : > { %4274 = vmatpush.bf16.msra.mxu0 %v7196_v61 }
 0x585   : > { %v11333_v31 = vpop.f32.mrf.mxu2 }
 0x587   : > { %v11335_v25 = vpop.f32.mrf.mxu1 }
 0x58a   : > { %v11386_v57 = vpop.f32.mrf.mxu3 }
 0x58d   : > { %v11338_v50 = vpop.f32.mrf.mxu2 }
 0x58f   : > { %v3449_v39 = vpop.f32.mrf.mxu1 }
 0x590   : > { %v11340_v41 = vadd.f32 %v3449_v39, %v3396_v35  ;;  %v11376_v39 = vperm.slane %v13467_v10, 1 }
 0x592   : > { %3659 = vmatmul.bf16.gmra.mxu1 %v13463_v22  ;;  %3713 = vmatmul.bf16.gmra.mxu2 %v13464_v7  ;;  %v7185_v7 = vld [vmem:[%s13229_s5 + $0xe8] sm:$0xf0]  ;;  %v3469_v26 = vadd.f32 %v11223_v1, %v11376_v39  ;;  %v7177_v1 = vld [vmem:[%s13229_s5 + $0xd8] sm:$0xf0] }
 0x594   : > { %v3523_v10 = vadd.f32 %v3522_v32, %v3469_v26  ;;  %v7169_v32 = vld [vmem:[%s13229_s5 + $0xc8] sm:$0xf0] }
 0x595   : > { %v11350_v14 = vpop.f32.mrf.mxu2 }
 0x597   : > { %v11352_v55 = vpop.f32.mrf.mxu1 }
 0x59d   : > { %v11357_v38 = vpop.f32.mrf.mxu2 }
 0x59f   : > { %v3454_v48 = vpop.f32.mrf.mxu1 }
 0x5a0   : > { %v11361_v13 = vadd.f32 %v3454_v48, %v3401_v12  ;;  %v7865_v12 = vld [vmem:[%s13229_s5 + $0xd4] sm:$0xf0]  ;;  %v7864_v48 = vld [vmem:[%s13229_s5 + $0xd4] sm:$0xf] }
 0x5a1   : > { %v7176_v56 = vor.u32 %v7865_v12, %v7175_v16  ;;  %v7180_v61 = vor.u32 %v7864_v48, %v7177_v1  ;;  %v7862_v16 = vld [vmem:[%s13229_s5 + $0xc4] sm:$0xf]  ;;  %v11418_v48 = vpop.f32.mrf.mxu3  ;;  %v3577_v1 = vadd.f32 %v3576_v17, %v3523_v10 }
 0x5a2   : > { %13465 = vst [vmem:[#allocation38_spill] sm:$0xff] %v11361_v13  ;;  %3664 = vmatmul.bf16.gmra.mxu1 %v13466_v58  ;;  %3718 = vmatmul.bf16.gmra.mxu2 %v10790_v44  ;;  %v7866_v44 = vld [vmem:[%s13229_s5 + $0xe4] sm:$0xf]  ;;  %v11399_v58 = vpop.f32.mrf.mxu0  ;;  %v7172_v26 = vor.u32 %v7862_v16, %v7169_v32  ;;  %v7860_v16 = vld [vmem:[%s13229_s5 + $0xb4] sm:$0xf] }
 0x5a3   : > { %v7188_v19 = vor.u32 %v7866_v44, %v7185_v7  ;;  %4222 = vmatpush.bf16.msrb.mxu3 %v7176_v56  ;;  %v7167_v7 = vld [vmem:[%s13229_s5 + $0xc0] sm:$0xf]  ;;  %v3471_v56 = vadd.f32 %v11230_v37, %v11376_v39 }
 0x5a5   : > { %v11373_v35 = vpop.f32.mrf.mxu2  ;;  %4275 = vmatpush.bf16.msra.mxu0 %v7188_v19  ;;  %v7863_v19 = vld [vmem:[%s13229_s5 + $0xc4] sm:$0xf0] }
 0x5a6   : > { %v7168_v12 = vor.u32 %v7863_v19, %v7167_v7  ;;  %v7159_v7 = vld [vmem:[%s13229_s5 + $0xb0] sm:$0xf]  ;;  %v7861_v19 = vld [vmem:[%s13229_s5 + $0xb4] sm:$0xf0] }
 0x5a7   : > { %v11378_v22 = vpop.f32.mrf.mxu1  ;;  %v7160_v17 = vor.u32 %v7861_v19, %v7159_v7 }
 0x5a8   : > { %13468 = vst [vmem:[#allocation50_spill] sm:$0xff] %v11378_v22  ;;  %4223 = vmatpush.bf16.msrb.mxu3 %v7168_v12 }
 0x5a9   : > { %4276 = vmatpush.bf16.msra.mxu0 %v7180_v61  ;;  %v13469_v61 = vld [vmem:[#allocation48_spill] sm:$0xff] }
 0x5aa   : > { %v11436_v32 = vpop.f32.mrf.mxu0 }
 0x5ac   : > { %4224 = vmatpush.bf16.msrb.mxu3 %v7160_v17  ;;  %v7143_v17 = vld [vmem:[%s13229_s5 + $0x90] sm:$0xf] }
 0x5ad   : > { %v11404_v5 = vpop.f32.mrf.mxu2  ;;  %4277 = vmatpush.bf16.msra.mxu0 %v7172_v26  ;;  %v3525_v26 = vadd.f32 %v3524_v42, %v3471_v56  ;;  %v7153_v42 = vld [vmem:[%s13229_s5 + $0xa8] sm:$0xf0] }
 0x5af   : > { %v3630_v44 = vpop.f32.mrf.mxu1 }
 0x5b0   : > { %v3631_v37 = vadd.f32 %v3630_v44, %v3577_v1  ;;  %v7859_v44 = vld [vmem:[%s13229_s5 + $0xa4] sm:$0xf0]  ;;  %v7858_v1 = vld [vmem:[%s13229_s5 + $0xa4] sm:$0xf] }
 0x5b1   : > { %v7152_v19 = vor.u32 %v7859_v44, %v7151_v23  ;;  %v7156_v56 = vor.u32 %v7858_v1, %v7153_v42  ;;  %v7857_v23 = vld [vmem:[%s13229_s5 + $0x94] sm:$0xf0]  ;;  %v7854_v42 = vld [vmem:[%s13229_s5 + $0x84] sm:$0xf] }
 0x5b2   : > { %3669 = vmatmul.bf16.gmra.mxu1 %v13469_v61  ;;  %3723 = vmatmul.bf16.gmra.mxu2 %v10827_v59  ;;  %v7161_v59 = vld [vmem:[%s13229_s5 + $0xb8] sm:$0xf0] }
 0x5b3   : > { %v7164_v12 = vor.u32 %v7860_v16, %v7161_v59  ;;  %v3474_v16 = vadd.f32 %v11239_v11, %v11376_v39  ;;  %4225 = vmatpush.bf16.msrb.mxu3 %v7152_v19  ;;  %v7856_v59 = vld [vmem:[%s13229_s5 + $0x94] sm:$0xf]  ;;  %v7135_v19 = vld [vmem:[%s13229_s5 + $0x80] sm:$0xf] }
 0x5b5   : > { %v3684_v10 = vpop.f32.mrf.mxu2  ;;  %4278 = vmatpush.bf16.msra.mxu0 %v7164_v12  ;;  %v7144_v12 = vor.u32 %v7857_v23, %v7143_v17  ;;  %v3528_v44 = vadd.f32 %v11359_v6, %v3474_v16  ;;  %v7137_v17 = vld [vmem:[%s13229_s5 + $0x88] sm:$0xf0] }
 0x5b6   : > { %v3685_v61 = vadd.f32 %v3684_v10, %v3631_v37  ;;  %v3579_v37 = vadd.f32 %v11354_v52, %v3525_v26  ;;  %v11462_v10 = vpop.f32.mrf.mxu3  ;;  %v7145_v52 = vld [vmem:[%s13229_s5 + $0x98] sm:$0xf0] }
 0x5b7   : > { %v3632_v22 = vpop.f32.mrf.mxu1  ;;  %4226 = vmatpush.bf16.msrb.mxu3 %v7144_v12  ;;  %v3582_v12 = vadd.f32 %v11363_v29, %v3528_v44 }
 0x5b8   : > { %v7098_v7 = vmul.f32 -1.442695, %v3685_v61  ;;  %v3633_v11 = vadd.f32 %v3632_v22, %v3579_v37  ;;  %v7148_v61 = vor.u32 %v7856_v59, %v7145_v52  ;;  %v7855_v22 = vld [vmem:[%s13229_s5 + $0x84] sm:$0xf0]  ;;  %v11477_v37 = vpop.f32.mrf.mxu0  ;;  %v7140_v59 = vor.u32 %v7854_v42, %v7137_v17 }
 0x5b9   : > { %4279 = vmatpush.bf16.msra.mxu0 %v7156_v56  ;;  %v7136_v16 = vor.u32 %v7855_v22, %v7135_v19 }
 0x5ba   : > { %8125 = vpow2.f32 %v7098_v7 }
 0x5bb   : > { %4227 = vmatpush.bf16.msrb.mxu3 %v7136_v16 }
 0x5bd   : > { %v3686_v26 = vpop.f32.mrf.mxu2  ;;  %4280 = vmatpush.bf16.msra.mxu0 %v7148_v61 }
 0x5be   : > { %v3687_v1 = vadd.f32 %v3686_v26, %v3633_v11  ;;  %v3476_v11 = vadd.f32 %v11246_v8, %v11376_v39  ;;  %v11485_v61 = vpop.f32.mrf.mxu3  ;;  %v3479_v8 = vadd.f32 %v11255_v20, %v11376_v39 }
 0x5bf   : > { %v3635_v7 = vpop.f32.mrf.mxu1 }
 0x5c0   : > { %v8126_v56 = vpop.eup %8125  ;;  %v7099_v6 = vmul.f32 -1.442695, %v3687_v1  ;;  %v3636_v52 = vadd.f32 %v3635_v7, %v3582_v12  ;;  %v3530_v1 = vadd.f32 %v11386_v57, %v3476_v11  ;;  %v11492_v29 = vpop.f32.mrf.mxu0  ;;  %v3533_v17 = vadd.f32 %v11418_v48, %v3479_v8 }
 0x5c1   : > { %v3801_v23 = vadd.f32 1.0, %v8126_v56  ;;  %4281 = vmatpush.bf16.msra.mxu0 %v7140_v59 }
 0x5c2   : > { %8127 = vpow2.f32 %v7099_v6  ;;  %v3584_v7 = vadd.f32 %v11399_v58, %v3530_v1  ;;  %v3587_v8 = vadd.f32 %v11436_v32, %v3533_v17 }
 0x5c3   : > { %8129 = vrcp.f32 %v3801_v23  ;;  %v3830_v59 = vand.u32 2147483648, %v3801_v23  ;;  %v3828_v20 = vand.u32 2147483647, %v3801_v23  ;;  %vm3824_vm7 = vweird.f32 %v3801_v23 }
 0x5c5   : > { %v3689_v26 = vpop.f32.mrf.mxu2  ;;  %vm3829_vm9 = vcmp.eq.f32.partialorder %v3828_v20, 8.507059e+37 }
 0x5c6   : > { %v3690_v19 = vadd.f32 %v3689_v26, %v3636_v52 }
 0x5c7   : > { %v3637_v22 = vpop.f32.mrf.mxu1 }
 0x5c8   : > { %v8128_v13 = vpop.eup %8127  ;;  %v7100_v56 = vmul.f32 -1.442695, %v3690_v19  ;;  %v3638_v57 = vadd.f32 %v3637_v22, %v3584_v7  ;;  %v11498_v19 = vpop.f32.mrf.mxu3  ;;  %v3481_v22 = vadd.f32 %v11262_v43, %v11376_v39 }
 0x5c9   : > { %v8130_v42 = vpop.eup %8129  ;;  %v11490_v6 = vadd.f32 1.0, %v8128_v13 }
 0x5ca   : > { %v3820_v44 = vmul.f32 %v8130_v42, %v3801_v23  ;;  %8131 = vpow2.f32 %v7100_v56  ;;  %vm3825_vm6 = vweird.f32 %v8130_v42 }
 0x5cb   : > { %8133 = vrcp.f32 %v11490_v6  ;;  %vm3826_vm8 = vmor %vm3824_vm7, %vm3825_vm6  ;;  %v3845_v32 = vand.u32 2147483648, %v11490_v6  ;;  %vm3839_vm11 = vweird.f32 %v11490_v6 }
 0x5cc   : > { %v3821_v16 = vsub.f32 1.0, %v3820_v44  ;;  %8135 = vtanh.f32 %v11217_v49  ;;  %v3831_v49 = vor.u32 1.1754944e-38, %v3830_v59  ;;  %v3535_v59 = vadd.f32 %v11462_v10, %v3481_v22 }
 0x5cd   : > { %v3691_v11 = vpop.f32.mrf.mxu2  ;;  %v3846_v10 = vor.u32 1.1754944e-38, %v3845_v32 }
 0x5ce   : > { %v3822_v12 = vmul.f32 %v8130_v42, %v3821_v16  ;;  %v3692_v13 = vadd.f32 %v3691_v11, %v3638_v57  ;;  %v11507_v57 = vpop.f32.mrf.mxu0 }
 0x5cf   : > { %v3640_v52 = vpop.f32.mrf.mxu1 }
 0x5d0   : > { %v8132_v26 = vpop.eup %8131  ;;  %v3823_v56 = vadd.f32 %v8130_v42, %v3822_v12  ;;  %v7101_v58 = vmul.f32 -1.442695, %v3692_v13  ;;  %v3641_v12 = vadd.f32 %v3640_v52, %v3587_v8  ;;  %v3589_v8 = vadd.f32 %v11477_v37, %v3535_v59 }
 0x5d1   : > { %v8134_v1 = vpop.eup %8133  ;;  %v11502_v48 = vadd.f32 1.0, %v8132_v26 }
 0x5d2   : > { %v3835_v44 = vmul.f32 %v8134_v1, %v11490_v6  ;;  %8137 = vpow2.f32 %v7101_v58  ;;  %v3827_v7 = vsel %vm3826_vm8, %v8130_v42, %v3823_v56  ;;  %v8136_v16 = vpop.eup %8135  ;;  %vm3840_vm10 = vweird.f32 %v8134_v1 }
 0x5d3   : > { %8139 = vrcp.f32 %v11502_v48  ;;  %v3832_v23 = vsel %vm3829_vm9, %v3831_v49, %v3827_v7  ;;  %v3843_v42 = vand.u32 2147483647, %v11490_v6  ;;  %vm3841_vm12 = vmor %vm3839_vm11, %vm3840_vm10  ;;  %v3858_v37 = vand.u32 2147483647, %v11502_v48 }
 0x5d4   : > { %v3836_v11 = vsub.f32 1.0, %v3835_v44  ;;  %v4089_v43 = vmul.f32 %v8136_v16, %v3832_v23  ;;  %8141 = vtanh.f32 %v11226_v4  ;;  %v3484_v4 = vadd.f32 %v11271_v0, %v11376_v39  ;;  %v11519_v44 = vpop.f32.mrf.mxu3 }
 0x5d5   : > { %v3694_v17 = vpop.f32.mrf.mxu2  ;;  %vm3844_vm13 = vcmp.eq.f32.partialorder %v3843_v42, 8.507059e+37  ;;  %v3860_v59 = vand.u32 2147483648, %v11502_v48  ;;  %vm3854_vm15 = vweird.f32 %v11502_v48  ;;  %vm3859_vm1 = vcmp.eq.f32.partialorder %v3858_v37, 8.507059e+37 }
 0x5d6   : > { %v3837_v20 = vmul.f32 %v8134_v1, %v3836_v11  ;;  %v3695_v13 = vadd.f32 %v3694_v17, %v3641_v12  ;;  %v3538_v32 = vadd.f32 %v11485_v61, %v3484_v4  ;;  %v3486_v61 = vadd.f32 %v11282_v40, %v11376_v39 }
 0x5d7   : > { %v3642_v26 = vpop.f32.mrf.mxu1 }
 0x5d8   : > { %v8138_v56 = vpop.eup %8137  ;;  %v3838_v58 = vadd.f32 %v8134_v1, %v3837_v20  ;;  %v7102_v49 = vmul.f32 -1.442695, %v3695_v13  ;;  %v3643_v12 = vadd.f32 %v3642_v26, %v3589_v8  ;;  %v11527_v20 = vpop.f32.mrf.mxu0 }
 0x5d9   : > { %v8140_v52 = vpop.eup %8139  ;;  %v11516_v22 = vadd.f32 1.0, %v8138_v56 }
 0x5da   : > { %v3850_v7 = vmul.f32 %v8140_v52, %v11502_v48  ;;  %8143 = vpow2.f32 %v7102_v49  ;;  %v3842_v16 = vsel %vm3841_vm12, %v8134_v1, %v3838_v58  ;;  %v8142_v23 = vpop.eup %8141  ;;  %vm3855_vm14 = vweird.f32 %v8140_v52 }
 0x5db   : > { %8145 = vrcp.f32 %v11516_v22  ;;  %v3847_v6 = vsel %vm3844_vm13, %v3846_v10, %v3842_v16  ;;  %v3592_v10 = vadd.f32 %v11492_v29, %v3538_v32  ;;  %vm3856_vm0 = vmor %vm3854_vm15, %vm3855_vm14  ;;  %v3540_v29 = vadd.f32 %v11498_v19, %v3486_v61 }
 0x5dc   : > { %v3851_v11 = vsub.f32 1.0, %v3850_v7  ;;  %v4090_v0 = vmul.f32 %v8142_v23, %v3847_v6  ;;  %8147 = vtanh.f32 %v11233_v18  ;;  %v11537_v48 = vpop.f32.mrf.mxu3  ;;  %vm3869_vm7 = vweird.f32 %v11516_v22 }
 0x5dd   : > { %v3696_v17 = vpop.f32.mrf.mxu2 }
 0x5de   : > { %v3697_v1 = vadd.f32 %v3696_v17, %v3643_v12  ;;  %v4107_v42 = vpack.c.bf16 %v4090_v0, %v4089_v43  ;;  %v3852_v13 = vmul.f32 %v8140_v52, %v3851_v11  ;;  %v3861_v43 = vor.u32 1.1754944e-38, %v3860_v59 }
 0x5df   : > { %v3645_v56 = vpop.f32.mrf.mxu1  ;;  %v3875_v0 = vand.u32 2147483648, %v11516_v22 }
 0x5e0   : > { %v8144_v58 = vpop.eup %8143  ;;  %v7103_v49 = vmul.f32 -1.442695, %v3697_v1  ;;  %4228 = vmatmul.bf16.vlgmr.msrb.gmra.mxu3 %v4107_v42  ;;  %4282 = vmatmul.bf16.vlgmr.msra.gmra.mxu0 %v4107_v42  ;;  %v3853_v26 = vadd.f32 %v8140_v52, %v3852_v13  ;;  %v3646_v11 = vadd.f32 %v3645_v56, %v3592_v10  ;;  %v11543_v1 = vpop.f32.mrf.mxu0 }
 0x5e1   : > { %v8146_v18 = vpop.eup %8145  ;;  %v11532_v4 = vadd.f32 1.0, %v8144_v58  ;;  %v3594_v58 = vadd.f32 %v11507_v57, %v3540_v29 }
 0x5e2   : > { %v3865_v8 = vmul.f32 %v8146_v18, %v11516_v22  ;;  %8149 = vpow2.f32 %v7103_v49  ;;  %v3857_v7 = vsel %vm3856_vm0, %v8140_v52, %v3853_v26  ;;  %v8148_v16 = vpop.eup %8147  ;;  %vm3870_vm6 = vweird.f32 %v8146_v18 }
 0x5e3   : > { %8151 = vrcp.f32 %v11532_v4  ;;  %v3862_v23 = vsel %vm3859_vm1, %v3861_v43, %v3857_v7  ;;  %v3873_v52 = vand.u32 2147483647, %v11516_v22  ;;  %vm3871_vm8 = vmor %vm3869_vm7, %vm3870_vm6  ;;  %v3876_v49 = vor.u32 1.1754944e-38, %v3875_v0 }
 0x5e4   : > { %v3866_v6 = vsub.f32 1.0, %v3865_v8  ;;  %v4091_v40 = vmul.f32 %v8148_v16, %v3862_v23  ;;  %8153 = vtanh.f32 %v11242_v33  ;;  %v3489_v33 = vadd.f32 %v11291_v3, %v11376_v39 }
 0x5e5   : > { %v3699_v12 = vpop.f32.mrf.mxu2  ;;  %vm3874_vm9 = vcmp.eq.f32.partialorder %v3873_v52, 8.507059e+37  ;;  %v3888_v57 = vand.u32 2147483647, %v11532_v4  ;;  %v3890_v23 = vand.u32 2147483648, %v11532_v4  ;;  %vm3884_vm11 = vweird.f32 %v11532_v4 }
 0x5e6   : > { %v3700_v32 = vadd.f32 %v3699_v12, %v3646_v11  ;;  %v3867_v17 = vmul.f32 %v8146_v18, %v3866_v6  ;;  %v3543_v3 = vadd.f32 %v11519_v44, %v3489_v33  ;;  %v3547_v6 = vpop.f32.mrf.mxu3  ;;  %v3491_v44 = vadd.f32 %v11300_v60, %v11376_v39 }
 0x5e7   : > { %v3647_v37 = vpop.f32.mrf.mxu1  ;;  %vm3889_vm13 = vcmp.eq.f32.partialorder %v3888_v57, 8.507059e+37 }
 0x5e8   : > { %v8150_v59 = vpop.eup %8149  ;;  %v7104_v42 = vmul.f32 -1.442695, %v3700_v32  ;;  %v3868_v13 = vadd.f32 %v8146_v18, %v3867_v17  ;;  %v3648_v8 = vadd.f32 %v3647_v37, %v3594_v58  ;;  %v3597_v37 = vadd.f32 %v11527_v20, %v3543_v3 }
 0x5e9   : > { %v8152_v56 = vpop.eup %8151  ;;  %v11548_v19 = vadd.f32 1.0, %v8150_v59  ;;  %v3601_v59 = vpop.f32.mrf.mxu0  ;;  %v3545_v60 = vadd.f32 %v11537_v48, %v3491_v44 }
 0x5ea   : > { %v3880_v26 = vmul.f32 %v8152_v56, %v11532_v4  ;;  %8155 = vpow2.f32 %v7104_v42  ;;  %v3872_v61 = vsel %vm3871_vm8, %v8146_v18, %v3868_v13  ;;  %v8154_v10 = vpop.eup %8153  ;;  %vm3885_vm10 = vweird.f32 %v8152_v56 }
 0x5eb   : > { %8157 = vrcp.f32 %v11548_v19  ;;  %v3877_v43 = vsel %vm3874_vm9, %v3876_v49, %v3872_v61  ;;  %vm3886_vm12 = vmor %vm3884_vm11, %vm3885_vm10  ;;  %v3905_v61 = vand.u32 2147483648, %v11548_v19  ;;  %vm3899_vm15 = vweird.f32 %v11548_v19 }
 0x5ec   : > { %v3881_v22 = vsub.f32 1.0, %v3880_v26  ;;  %v4092_v7 = vmul.f32 %v8154_v10, %v3877_v43  ;;  %8159 = vtanh.f32 %v11249_v53 }
 0x5ed   : > { %v3701_v16 = vpop.f32.mrf.mxu2 }
 0x5ee   : > { %v3702_v11 = vadd.f32 %v3701_v16, %v3648_v8  ;;  %v4108_v18 = vpack.c.bf16 %v4092_v7, %v4091_v40  ;;  %v3882_v29 = vmul.f32 %v8152_v56, %v3881_v22  ;;  %v3891_v40 = vor.u32 1.1754944e-38, %v3890_v23  ;;  %v3549_v7 = vpop.f32.mrf.mxu3 }
 0x5ef   : > { %v3650_v12 = vpop.f32.mrf.mxu1  ;;  %v3599_v23 = vadd.f32 %v11543_v1, %v3545_v60 }
 0x5f0   : > { %v8156_v0 = vpop.eup %8155  ;;  %v7105_v32 = vmul.f32 -1.442695, %v3702_v11  ;;  %4233 = vmatmul.bf16.gmra.mxu3 %v4108_v18  ;;  %4286 = vmatmul.bf16.gmra.mxu0 %v4108_v18  ;;  %v3883_v17 = vadd.f32 %v8152_v56, %v3882_v29  ;;  %v3651_v49 = vadd.f32 %v3650_v12, %v3597_v37  ;;  %v3906_v11 = vor.u32 1.1754944e-38, %v3905_v61 }
 0x5f1   : > { %v8158_v53 = vpop.eup %8157  ;;  %v11560_v52 = vadd.f32 1.0, %v8156_v0 }
 0x5f2   : > { %v3895_v42 = vmul.f32 %v8158_v53, %v11548_v19  ;;  %8161 = vpow2.f32 %v7105_v32  ;;  %v3887_v13 = vsel %vm3886_vm12, %v8152_v56, %v3883_v17  ;;  %v8160_v33 = vpop.eup %8159  ;;  %vm3900_vm14 = vweird.f32 %v8158_v53 }
 0x5f3   : > { %8163 = vrcp.f32 %v11560_v52  ;;  %v3892_v4 = vsel %vm3889_vm13, %v3891_v40, %v3887_v13  ;;  %v3903_v56 = vand.u32 2147483647, %v11548_v19  ;;  %vm3901_vm0 = vmor %vm3899_vm15, %vm3900_vm14  ;;  %v3603_v19 = vpop.f32.mrf.mxu0  ;;  %v3918_v1 = vand.u32 2147483647, %v11560_v52 }
 0x5f4   : > { %v3896_v58 = vsub.f32 1.0, %v3895_v42  ;;  %v4093_v26 = vmul.f32 %v8160_v33, %v3892_v4  ;;  %8165 = vtanh.f32 %v11258_v47  ;;  %v3494_v47 = vadd.f32 %v11311_v51, %v11376_v39 }
 0x5f5   : > { %v3704_v20 = vpop.f32.mrf.mxu2  ;;  %vm3904_vm1 = vcmp.eq.f32.partialorder %v3903_v56, 8.507059e+37  ;;  %v3920_v40 = vand.u32 2147483648, %v11560_v52  ;;  %vm3914_vm7 = vweird.f32 %v11560_v52  ;;  %vm3919_vm9 = vcmp.eq.f32.partialorder %v3918_v1, 8.507059e+37 }
 0x5f6   : > { %v3705_v10 = vadd.f32 %v3704_v20, %v3651_v49  ;;  %v3897_v43 = vmul.f32 %v8158_v53, %v3896_v58  ;;  %v3548_v51 = vadd.f32 %v3547_v6, %v3494_v47 }
 0x5f7   : > { %v3652_v22 = vpop.f32.mrf.mxu1  ;;  %v3921_v61 = vor.u32 1.1754944e-38, %v3920_v40 }
 0x5f8   : > { %v8162_v8 = vpop.eup %8161  ;;  %v7106_v3 = vmul.f32 -1.442695, %v3705_v10  ;;  %v3898_v16 = vadd.f32 %v8158_v53, %v3897_v43  ;;  %v3653_v17 = vadd.f32 %v3652_v22, %v3599_v23  ;;  %v3602_v20 = vadd.f32 %v3601_v59, %v3548_v51 }
 0x5f9   : > { %v8164_v57 = vpop.eup %8163  ;;  %v11572_v48 = vadd.f32 1.0, %v8162_v8 }
 0x5fa   : > { %v3910_v18 = vmul.f32 %v8164_v57, %v11560_v52  ;;  %8167 = vpow2.f32 %v7106_v3  ;;  %v3902_v29 = vsel %vm3901_vm0, %v8158_v53, %v3898_v16  ;;  %v8166_v12 = vpop.eup %8165  ;;  %vm3915_vm6 = vweird.f32 %v8164_v57 }
 0x5fb   : > { %8169 = vrcp.f32 %v11572_v48  ;;  %v3907_v0 = vsel %vm3904_vm1, %v3906_v11, %v3902_v29  ;;  %vm3916_vm8 = vmor %vm3914_vm7, %vm3915_vm6  ;;  %v3935_v59 = vand.u32 2147483648, %v11572_v48  ;;  %v3606_v47 = vpop.f32.mrf.mxu0  ;;  %vm3929_vm11 = vweird.f32 %v11572_v48 }
 0x5fc   : > { %v3911_v32 = vsub.f32 1.0, %v3910_v18  ;;  %v4094_v44 = vmul.f32 %v8166_v12, %v3907_v0  ;;  %8171 = vtanh.f32 %v11265_v36  ;;  %v3496_v36 = vadd.f32 %v11317_v62, %v11376_v39 }
 0x5fd   : > { %v3706_v37 = vpop.f32.mrf.mxu2 }
 0x5fe   : > { %v3707_v42 = vadd.f32 %v3706_v37, %v3653_v17  ;;  %v4109_v13 = vpack.c.bf16 %v4094_v44, %v4093_v26  ;;  %v3912_v53 = vmul.f32 %v8164_v57, %v3911_v32  ;;  %v3552_v26 = vpop.f32.mrf.mxu3  ;;  %v3550_v62 = vadd.f32 %v3549_v7, %v3496_v36 }
 0x5ff   : > { %v3655_v33 = vpop.f32.mrf.mxu1  ;;  %v3936_v44 = vor.u32 1.1754944e-38, %v3935_v59 }
 0x600   : > { %v8168_v4 = vpop.eup %8167  ;;  %v7107_v58 = vmul.f32 -1.442695, %v3707_v42  ;;  %4238 = vmatmul.bf16.gmra.mxu3 %v4109_v13  ;;  %4291 = vmatmul.bf16.gmra.mxu0 %v4109_v13  ;;  %v3913_v49 = vadd.f32 %v8164_v57, %v3912_v53  ;;  %v3656_v8 = vadd.f32 %v3655_v33, %v3602_v20  ;;  %v3604_v17 = vadd.f32 %v3603_v19, %v3550_v62 }
 0x601   : > { %v8170_v60 = vpop.eup %8169  ;;  %v11583_v6 = vadd.f32 1.0, %v8168_v4 }
 0x602   : > { %v3925_v10 = vmul.f32 %v8170_v60, %v11572_v48  ;;  %8173 = vpow2.f32 %v7107_v58  ;;  %v3917_v43 = vsel %vm3916_vm8, %v8164_v57, %v3913_v49  ;;  %v8172_v56 = vpop.eup %8171  ;;  %vm3930_vm10 = vweird.f32 %v8170_v60 }
 0x603   : > { %8175 = vrcp.f32 %v11583_v6  ;;  %v3922_v22 = vsel %vm3919_vm9, %v3921_v61, %v3917_v43  ;;  %v3933_v57 = vand.u32 2147483647, %v11572_v48  ;;  %vm3931_vm12 = vmor %vm3929_vm11, %vm3930_vm10  ;;  %v3948_v19 = vand.u32 2147483647, %v11583_v6  ;;  %v3608_v61 = vpop.f32.mrf.mxu0 }
 0x604   : > { %v3926_v52 = vsub.f32 1.0, %v3925_v10  ;;  %v4095_v3 = vmul.f32 %v8172_v56, %v3922_v22  ;;  %8177 = vtanh.f32 %v11276_v28  ;;  %v3499_v28 = vadd.f32 %v11333_v31, %v11376_v39 }
 0x605   : > { %v3709_v16 = vpop.f32.mrf.mxu2  ;;  %vm3934_vm13 = vcmp.eq.f32.partialorder %v3933_v57, 8.507059e+37  ;;  %v3950_v4 = vand.u32 2147483648, %v11583_v6  ;;  %vm3944_vm15 = vweird.f32 %v11583_v6  ;;  %vm3949_vm1 = vcmp.eq.f32.partialorder %v3948_v19, 8.507059e+37 }
 0x606   : > { %v3710_v23 = vadd.f32 %v3709_v16, %v3656_v8  ;;  %v3927_v11 = vmul.f32 %v8170_v60, %v3926_v52  ;;  %v3554_v42 = vpop.f32.mrf.mxu3  ;;  %v3553_v31 = vadd.f32 %v3552_v26, %v3499_v28  ;;  %v3501_v26 = vadd.f32 %v11338_v50, %v11376_v39 }
 0x607   : > { %v3657_v18 = vpop.f32.mrf.mxu1  ;;  %v3951_v52 = vor.u32 1.1754944e-38, %v3950_v4 }
 0x608   : > { %v8174_v29 = vpop.eup %8173  ;;  %v7108_v12 = vmul.f32 -1.442695, %v3710_v23  ;;  %v3928_v0 = vadd.f32 %v8170_v60, %v3927_v11  ;;  %v3658_v13 = vadd.f32 %v3657_v18, %v3604_v17  ;;  %v3607_v22 = vadd.f32 %v3606_v47, %v3553_v31 }
 0x609   : > { %v8176_v32 = vpop.eup %8175  ;;  %v11593_v7 = vadd.f32 1.0, %v8174_v29  ;;  %v3555_v50 = vadd.f32 %v3554_v42, %v3501_v26  ;;  %v3506_v26 = vadd.f32 %v11357_v38, %v11376_v39 }
 0x60a   : > { %v3940_v51 = vmul.f32 %v8176_v32, %v11583_v6  ;;  %8179 = vpow2.f32 %v7108_v12  ;;  %v3932_v37 = vsel %vm3931_vm12, %v8170_v60, %v3928_v0  ;;  %v8178_v1 = vpop.eup %8177  ;;  %vm3945_vm14 = vweird.f32 %v8176_v32 }
 0x60b   : > { %8181 = vrcp.f32 %v11593_v7  ;;  %v3937_v40 = vsel %vm3934_vm13, %v3936_v44, %v3932_v37  ;;  %vm3946_vm0 = vmor %vm3944_vm15, %vm3945_vm14  ;;  %v3965_v47 = vand.u32 2147483648, %v11593_v7  ;;  %v3963_v12 = vand.u32 2147483647, %v11593_v7 }
 0x60c   : > { %v3941_v48 = vsub.f32 1.0, %v3940_v51  ;;  %v4096_v53 = vmul.f32 %v8178_v1, %v3937_v40  ;;  %8183 = vtanh.f32 %v11285_v9  ;;  %vm3959_vm7 = vweird.f32 %v11593_v7  ;;  %v3611_v40 = vpop.f32.mrf.mxu0 }
 0x60d   : > { %v3711_v33 = vpop.f32.mrf.mxu2  ;;  %v3609_v37 = vadd.f32 %v3608_v61, %v3555_v50  ;;  %v3966_v1 = vor.u32 1.1754944e-38, %v3965_v47  ;;  %vm3964_vm9 = vcmp.eq.f32.partialorder %v3963_v12, 8.507059e+37 }
 0x60e   : > { %v3712_v58 = vadd.f32 %v3711_v33, %v3658_v13  ;;  %v4110_v49 = vpack.c.bf16 %v4096_v53, %v4095_v3  ;;  %v3942_v60 = vmul.f32 %v8176_v32, %v3941_v48  ;;  %v3557_v57 = vpop.f32.mrf.mxu3 }
 0x60f   : > { %v3660_v36 = vpop.f32.mrf.mxu1 }
 0x610   : > { %v8180_v20 = vpop.eup %8179  ;;  %v7109_v10 = vmul.f32 -1.442695, %v3712_v58  ;;  %4243 = vmatmul.bf16.gmra.mxu3 %v4110_v49  ;;  %4296 = vmatmul.bf16.gmra.mxu0 %v4110_v49  ;;  %v3943_v43 = vadd.f32 %v8176_v32, %v3942_v60  ;;  %v3661_v6 = vadd.f32 %v3660_v36, %v3607_v22 }
 0x611   : > { %v8182_v9 = vpop.eup %8181  ;;  %v11603_v56 = vadd.f32 1.0, %v8180_v20 }
 0x612   : > { %v3955_v8 = vmul.f32 %v8182_v9, %v11593_v7  ;;  %8185 = vpow2.f32 %v7109_v10  ;;  %v3947_v3 = vsel %vm3946_vm0, %v8176_v32, %v3943_v43  ;;  %v8184_v62 = vpop.eup %8183  ;;  %vm3960_vm6 = vweird.f32 %v8182_v9 }
 0x613   : > { %8187 = vrcp.f32 %v11603_v56  ;;  %v3952_v16 = vsel %vm3949_vm1, %v3951_v52, %v3947_v3  ;;  %vm3961_vm8 = vmor %vm3959_vm7, %vm3960_vm6  ;;  %v3978_v4 = vand.u32 2147483647, %v11603_v56  ;;  %v3980_v58 = vand.u32 2147483648, %v11603_v56 }
 0x614   : > { %v3956_v59 = vsub.f32 1.0, %v3955_v8  ;;  %v4097_v23 = vmul.f32 %v8184_v62, %v3952_v16  ;;  %8189 = vtanh.f32 %v11294_v46  ;;  %v3504_v46 = vadd.f32 %v11350_v14, %v11376_v39 }
 0x615   : > { %v3714_v11 = vpop.f32.mrf.mxu2  ;;  %vm3974_vm11 = vweird.f32 %v11603_v56  ;;  %v3981_v8 = vor.u32 1.1754944e-38, %v3980_v58  ;;  %vm3979_vm13 = vcmp.eq.f32.partialorder %v3978_v4, 8.507059e+37 }
 0x616   : > { %v3715_v18 = vadd.f32 %v3714_v11, %v3661_v6  ;;  %v3957_v29 = vmul.f32 %v8182_v9, %v3956_v59  ;;  %v3558_v14 = vadd.f32 %v3557_v57, %v3504_v46  ;;  %v3559_v10 = vpop.f32.mrf.mxu3  ;;  %v3613_v6 = vpop.f32.mrf.mxu0 }
 0x617   : > { %v3662_v0 = vpop.f32.mrf.mxu1  ;;  %v3560_v38 = vadd.f32 %v3559_v10, %v3506_v26 }
 0x618   : > { %v8186_v32 = vpop.eup %8185  ;;  %v7110_v28 = vmul.f32 -1.442695, %v3715_v18  ;;  %v3958_v17 = vadd.f32 %v8182_v9, %v3957_v29  ;;  %v3663_v31 = vadd.f32 %v3662_v0, %v3609_v37  ;;  %v3612_v52 = vadd.f32 %v3611_v40, %v3558_v14 }
 0x619   : > { %v8188_v44 = vpop.eup %8187  ;;  %v11613_v51 = vadd.f32 1.0, %v8186_v32  ;;  %v13470_v32 = vld [vmem:[#allocation51_spill] sm:$0xff] }
 0x61a   : > { %v3970_v42 = vmul.f32 %v8188_v44, %v11603_v56  ;;  %8191 = vpow2.f32 %v7110_v28  ;;  %v3962_v48 = vsel %vm3961_vm8, %v8182_v9, %v3958_v17  ;;  %v8190_v13 = vpop.eup %8189  ;;  %vm3975_vm10 = vweird.f32 %v8188_v44 }
 0x61b   : > { %8193 = vrcp.f32 %v11613_v51  ;;  %v3967_v53 = vsel %vm3964_vm9, %v3966_v1, %v3962_v48  ;;  %vm3976_vm12 = vmor %vm3974_vm11, %vm3975_vm10  ;;  %v3995_v47 = vand.u32 2147483648, %v11613_v51  ;;  %v3993_v29 = vand.u32 2147483647, %v11613_v51 }
 0x61c   : > { %v3971_v7 = vsub.f32 1.0, %v3970_v42  ;;  %v4098_v33 = vmul.f32 %v8190_v13, %v3967_v53  ;;  %8195 = vtanh.f32 %v11305_v34  ;;  %v3339_v28 = vadd.f32 %v11274_v27, %v13470_v32 }
 0x61d   : > { %v3716_v19 = vpop.f32.mrf.mxu2  ;;  %vm3989_vm15 = vweird.f32 %v11613_v51  ;;  %v3614_v1 = vadd.f32 %v3613_v6, %v3560_v38  ;;  %v3996_v40 = vor.u32 1.1754944e-38, %v3995_v47  ;;  %vm3994_vm1 = vcmp.eq.f32.partialorder %v3993_v29, 8.507059e+37  ;;  %v7915_v47 = vld [vmem:[%s13227_s3 + $0x664] sm:$0xf0] }
 0x61e   : > { %v3717_v49 = vadd.f32 %v3716_v19, %v3663_v31  ;;  %v4111_v60 = vpack.c.bf16 %v4098_v33, %v4097_v23  ;;  %v3972_v36 = vmul.f32 %v8188_v44, %v3971_v7  ;;  %v3562_v42 = vpop.f32.mrf.mxu3  ;;  %v3616_v58 = vpop.f32.mrf.mxu0 }
 0x61f   : > { %v3665_v20 = vpop.f32.mrf.mxu1 }
 0x620   : > { %v8192_v61 = vpop.eup %8191  ;;  %v7111_v43 = vmul.f32 -1.442695, %v3717_v49  ;;  %4248 = vmatmul.bf16.gmra.mxu3 %v4111_v60  ;;  %4301 = vmatmul.bf16.gmra.mxu0 %v4111_v60  ;;  %v3973_v9 = vadd.f32 %v8188_v44, %v3972_v36  ;;  %v3666_v23 = vadd.f32 %v3665_v20, %v3612_v52 }
 0x621   : > { %v8194_v34 = vpop.eup %8193  ;;  %v11623_v22 = vadd.f32 1.0, %v8192_v61 }
 0x622   : > { %v3985_v3 = vmul.f32 %v8194_v34, %v11613_v51  ;;  %8197 = vpow2.f32 %v7111_v43  ;;  %v3977_v62 = vsel %vm3976_vm12, %v8188_v44, %v3973_v9  ;;  %v8196_v16 = vpop.eup %8195  ;;  %vm3990_vm14 = vweird.f32 %v8194_v34 }
 0x623   : > { %8199 = vrcp.f32 %v11623_v22  ;;  %v3982_v59 = vsel %vm3979_vm13, %v3981_v8, %v3977_v62  ;;  %vm3991_vm0 = vmor %vm3989_vm15, %vm3990_vm14  ;;  %v3393_v51 = vadd.f32 %v11280_v63, %v3339_v28  ;;  %v4008_v19 = vand.u32 2147483647, %v11623_v22 }
 0x624   : > { %v3986_v56 = vsub.f32 1.0, %v3985_v3  ;;  %v4099_v50 = vmul.f32 %v8196_v16, %v3982_v59  ;;  %8201 = vtanh.f32 %v11314_v2  ;;  %v3509_v2 = vadd.f32 %v11373_v35, %v11376_v39 }
 0x625   : > { %v3719_v11 = vpop.f32.mrf.mxu2  ;;  %v4010_v4 = vand.u32 2147483648, %v11623_v22  ;;  %v3447_v63 = vadd.f32 %v11335_v25, %v3393_v51  ;;  %vm4004_vm7 = vweird.f32 %v11623_v22  ;;  %v3511_v9 = vadd.f32 %v11404_v5, %v11376_v39  ;;  %v7464_v39 = vld [vmem:[%s13227_s3 + $0x670] sm:$0xf]  ;;  %v7917_v5 = vld [vmem:[%s13227_s3 + $0x674] sm:$0xf0] }
 0x626   : > { %v3720_v57 = vadd.f32 %v3719_v11, %v3666_v23  ;;  %v3987_v18 = vmul.f32 %v8194_v34, %v3986_v56  ;;  %v3563_v33 = vadd.f32 %v3562_v42, %v3509_v2  ;;  %vm4009_vm9 = vcmp.eq.f32.partialorder %v4008_v19, 8.507059e+37  ;;  %v3564_v16 = vpop.f32.mrf.mxu3  ;;  %v7456_v11 = vld [vmem:[%s13227_s3 + $0x660] sm:$0xf]  ;;  %v3618_v32 = vpop.f32.mrf.mxu0 }
 0x627   : > { %v3667_v12 = vpop.f32.mrf.mxu1  ;;  %v4011_v52 = vor.u32 1.1754944e-38, %v4010_v4  ;;  %v3565_v56 = vadd.f32 %v3564_v16, %v3511_v9  ;;  %v7465_v38 = vor.u32 %v7917_v5, %v7464_v39  ;;  %v7520_v9 = vld [vmem:[%s13227_s3 + $0x6e0] sm:$0xf]  ;;  %v7432_v39 = vld [vmem:[%s13227_s3 + $0x630] sm:$0xf] }
 0x628   : > { %v8198_v0 = vpop.eup %8197  ;;  %v7112_v17 = vmul.f32 -1.442695, %v3720_v57  ;;  %v3988_v44 = vadd.f32 %v8194_v34, %v3987_v18  ;;  %v3668_v31 = vadd.f32 %v3667_v12, %v3614_v1  ;;  %v3617_v26 = vadd.f32 %v3616_v58, %v3563_v33  ;;  %v7528_v58 = vld [vmem:[%s13227_s3 + $0x6f0] sm:$0xf]  ;;  %v7909_v5 = vld [vmem:[%s13227_s3 + $0x634] sm:$0xf0] }
 0x629   : > { %v8200_v46 = vpop.eup %8199  ;;  %v11635_v37 = vadd.f32 1.0, %v8198_v0  ;;  %5163 = vmatpush.bf16.msra.mxu3 %v7465_v38  ;;  %v7457_v12 = vor.u32 %v7915_v47, %v7456_v11  ;;  %v7512_v47 = vld [vmem:[%s13227_s3 + $0x6d0] sm:$0xf] }
 0x62a   : > { %v4000_v48 = vmul.f32 %v8200_v46, %v11623_v22  ;;  %8203 = vpow2.f32 %v7112_v17  ;;  %v3992_v13 = vsel %vm3991_vm0, %v8194_v34, %v3988_v44  ;;  %v8202_v27 = vpop.eup %8201  ;;  %vm4005_vm6 = vweird.f32 %v8200_v46  ;;  %v7448_v44 = vld [vmem:[%s13227_s3 + $0x650] sm:$0xf] }
 0x62b   : > { %8205 = vrcp.f32 %v11635_v37  ;;  %v3997_v53 = vsel %vm3994_vm1, %v3996_v40, %v3992_v13  ;;  %vm4006_vm8 = vmor %vm4004_vm7, %vm4005_vm6  ;;  %v4023_v29 = vand.u32 2147483647, %v11635_v37  ;;  %vm4019_vm11 = vweird.f32 %v11635_v37 }
 0x62c   : > { %v4001_v7 = vsub.f32 1.0, %v4000_v48  ;;  %v4100_v35 = vmul.f32 %v8202_v27, %v3997_v53  ;;  %8207 = vtanh.f32 %v11321_v45  ;;  %v3619_v40 = vadd.f32 %v3618_v32, %v3565_v56  ;;  %v7424_v32 = vld [vmem:[%s13227_s3 + $0x620] sm:$0xf] }
 0x62d   : > { %v3721_v14 = vpop.f32.mrf.mxu2  ;;  %vm4024_vm13 = vcmp.eq.f32.partialorder %v4023_v29, 8.507059e+37  ;;  %v3344_v53 = vadd.f32 %v11298_v24, %v11192_v54  ;;  %5164 = vmatpush.bf16.msra.mxu3 %v7457_v12  ;;  %v7933_v54 = vld [vmem:[%s13227_s3 + $0x6f4] sm:$0xf0] }
 0x62e   : > { %v3722_v49 = vadd.f32 %v3721_v14, %v3668_v31  ;;  %v4112_v60 = vpack.c.bf16 %v4100_v35, %v4099_v50  ;;  %v4002_v36 = vmul.f32 %v8200_v46, %v4001_v7  ;;  %v4025_v50 = vand.u32 2147483648, %v11635_v37 }
 0x62f   : > { %v3670_v20 = vpop.f32.mrf.mxu1 }
 0x630   : > { %v8204_v61 = vpop.eup %8203  ;;  %v7113_v10 = vmul.f32 -1.442695, %v3722_v49  ;;  %4253 = vmatmul.bf16.gmra.mxu3 %v4112_v60  ;;  %4306 = vmatmul.bf16.gmra.mxu0 %v4112_v60  ;;  %v4003_v43 = vadd.f32 %v8200_v46, %v4002_v36  ;;  %v3671_v59 = vadd.f32 %v3670_v20, %v3617_v26  ;;  %v4026_v48 = vor.u32 1.1754944e-38, %v4025_v50  ;;  %v7440_v36 = vld [vmem:[%s13227_s3 + $0x640] sm:$0xf] }
 0x631   : > { %v8206_v45 = vpop.eup %8205  ;;  %v11647_v34 = vadd.f32 1.0, %v8204_v61  ;;  %v3398_v20 = vadd.f32 %v11303_v15, %v3344_v53  ;;  %v7529_v61 = vor.u32 %v7933_v54, %v7528_v58  ;;  %v7931_v26 = vld [vmem:[%s13227_s3 + $0x6e4] sm:$0xf0]  ;;  %v7433_v50 = vor.u32 %v7909_v5, %v7432_v39  ;;  %v7496_v58 = vld [vmem:[%s13227_s3 + $0x6b0] sm:$0xf] }
 0x632   : > { %v4015_v8 = vmul.f32 %v8206_v45, %v11635_v37  ;;  %8209 = vpow2.f32 %v7113_v10  ;;  %v4007_v3 = vsel %vm4006_vm8, %v8200_v46, %v4003_v43  ;;  %v8208_v25 = vpop.eup %8207  ;;  %vm4020_vm10 = vweird.f32 %v8206_v45  ;;  %v7913_v46 = vld [vmem:[%s13227_s3 + $0x654] sm:$0xf0]  ;;  %v7919_v5 = vld [vmem:[%s13227_s3 + $0x684] sm:$0xf0] }
 0x633   : > { %8211 = vrcp.f32 %v11647_v34  ;;  %v4012_v62 = vsel %vm4009_vm9, %v4011_v52, %v4007_v3  ;;  %vm4021_vm12 = vmor %vm4019_vm11, %vm4020_vm10  ;;  %v7449_v7 = vor.u32 %v7913_v46, %v7448_v44  ;;  %v4038_v14 = vand.u32 2147483647, %v11647_v34  ;;  %5217 = vmatpush.bf16.msrb.mxu0 %v7529_v61  ;;  %v7925_v54 = vld [vmem:[%s13227_s3 + $0x6b4] sm:$0xf0]  ;;  %v7903_v61 = vld [vmem:[%s13227_s3 + $0x604] sm:$0xf0] }
 0x634   : > { %v4016_v22 = vsub.f32 1.0, %v4015_v8  ;;  %v4101_v6 = vmul.f32 %v8208_v25, %v4012_v62  ;;  %8213 = vtanh.f32 %v3447_v63  ;;  %v4040_v4 = vand.u32 2147483648, %v11647_v34 }
 0x635   : > { %v3724_v23 = vpop.f32.mrf.mxu2  ;;  %5165 = vmatpush.bf16.msra.mxu3 %v7449_v7  ;;  %vm4034_vm15 = vweird.f32 %v11647_v34  ;;  %v3452_v15 = vadd.f32 %v11352_v55, %v3398_v20  ;;  %v7521_v25 = vor.u32 %v7931_v26, %v7520_v9  ;;  %vm4039_vm1 = vcmp.eq.f32.partialorder %v4038_v14, 8.507059e+37  ;;  %v13472_v14 = vld [vmem:[#allocation36_spill] sm:$0xff] }
 0x636   : > { %v3725_v57 = vadd.f32 %v3724_v23, %v3671_v59  ;;  %v4017_v18 = vmul.f32 %v8206_v45, %v4016_v22  ;;  %v4041_v3 = vor.u32 1.1754944e-38, %v4040_v4  ;;  %v7408_v20 = vld [vmem:[%s13227_s3 + $0x600] sm:$0xf] }
 0x637   : > { %v3672_v42 = vpop.f32.mrf.mxu1  ;;  %5218 = vmatpush.bf16.msrb.mxu0 %v7521_v25  ;;  %v7488_v26 = vld [vmem:[%s13227_s3 + $0x6a0] sm:$0xf] }
 0x638   : > { %v8210_v0 = vpop.eup %8209  ;;  %v7114_v28 = vmul.f32 -1.442695, %v3725_v57  ;;  %v4018_v17 = vadd.f32 %v8206_v45, %v4017_v18  ;;  %v3673_v35 = vadd.f32 %v3672_v42, %v3619_v40  ;;  %v7929_v57 = vld [vmem:[%s13227_s3 + $0x6d4] sm:$0xf0]  ;;  %v3349_v42 = vadd.f32 %v11319_v30, %v11214_v21 }
 0x639   : > { %v8212_v2 = vpop.eup %8211  ;;  %v11672_v1 = vadd.f32 1.0, %v8210_v0  ;;  %v7513_v0 = vor.u32 %v7929_v57, %v7512_v47  ;;  %v7905_v21 = vld [vmem:[%s13227_s3 + $0x614] sm:$0xf0]  ;;  %v7132_v57 = vld [vmem:[%s13230_s6 + $0x2] sm:$0x3] }
 0x63a   : > { %v4030_v13 = vmul.f32 %v8212_v2, %v11647_v34  ;;  %8215 = vpow2.f32 %v7114_v28  ;;  %v4022_v37 = vsel %vm4021_vm12, %v8206_v45, %v4018_v17  ;;  %v8214_v27 = vpop.eup %8213  ;;  %vm4035_vm14 = vweird.f32 %v8212_v2  ;;  %v7907_v28 = vld [vmem:[%s13227_s3 + $0x624] sm:$0xf0] }
 0x63b   : > { %8217 = vrcp.f32 %v11672_v1  ;;  %v4027_v51 = vsel %vm4024_vm13, %v4026_v48, %v4022_v37  ;;  %vm4036_vm0 = vmor %vm4034_vm15, %vm4035_vm14  ;;  %v4055_v55 = vand.u32 2147483648, %v11672_v1  ;;  %v4053_v23 = vand.u32 2147483647, %v11672_v1  ;;  %5219 = vmatpush.bf16.msrb.mxu0 %v7513_v0 }
 0x63c   : > { %v4031_v31 = vsub.f32 1.0, %v4030_v13  ;;  %v4102_v33 = vmul.f32 %v8214_v27, %v4027_v51  ;;  %8219 = vtanh.f32 %v11340_v41  ;;  %v7911_v41 = vld [vmem:[%s13227_s3 + $0x644] sm:$0xf0]  ;;  %vm4049_vm7 = vweird.f32 %v11672_v1  ;;  %v13471_v51 = vld [vmem:[#allocation38_spill] sm:$0xff] }
 0x63d   : > { %v3726_v19 = vpop.f32.mrf.mxu2  ;;  %v7441_v63 = vor.u32 %v7911_v41, %v7440_v36  ;;  %v4056_v12 = vor.u32 1.1754944e-38, %v4055_v55  ;;  %vm4054_vm9 = vcmp.eq.f32.partialorder %v4053_v23, 8.507059e+37  ;;  %v7425_v46 = vor.u32 %v7907_v28, %v7424_v32 }
 0x63e   : > { %v3727_v24 = vadd.f32 %v3726_v19, %v3673_v35  ;;  %v4113_v49 = vpack.c.bf16 %v4102_v33, %v4101_v6  ;;  %v4032_v60 = vmul.f32 %v8212_v2, %v4031_v31  ;;  %v7416_v31 = vld [vmem:[%s13227_s3 + $0x610] sm:$0xf]  ;;  %v3403_v19 = vadd.f32 %v13472_v14, %v3349_v42 }
 0x63f   : > { %5166 = vmatpush.bf16.msra.mxu3 %v7441_v63  ;;  %v7417_v33 = vor.u32 %v7905_v21, %v7416_v31  ;;  %v7497_v41 = vor.u32 %v7925_v54, %v7496_v58 }
 0x640   : > { %v8216_v10 = vpop.eup %8215  ;;  %v7115_v43 = vmul.f32 -1.442695, %v3727_v24  ;;  %4258 = vmatmul.bf16.gmra.mxu3 %v4113_v49  ;;  %4311 = vmatmul.bf16.gmra.mxu0 %v4113_v49  ;;  %v4033_v45 = vadd.f32 %v8212_v2, %v4032_v60  ;;  %v13473_v49 = vld [vmem:[#allocation50_spill] sm:$0xff] }
 0x641   : > { %v8218_v52 = vpop.eup %8217  ;;  %v11703_v8 = vadd.f32 1.0, %v8216_v10  ;;  %v3457_v60 = vadd.f32 %v13473_v49, %v3403_v19 }
 0x642   : > { %v4045_v34 = vmul.f32 %v8218_v52, %v11672_v1  ;;  %8221 = vpow2.f32 %v7115_v43  ;;  %v4037_v62 = vsel %vm4036_vm0, %v8212_v2, %v4033_v45  ;;  %v8220_v16 = vpop.eup %8219  ;;  %vm4050_vm6 = vweird.f32 %v8218_v52  ;;  %v7504_v2 = vld [vmem:[%s13227_s3 + $0x6c0] sm:$0xf]  ;;  %v7927_v1 = vld [vmem:[%s13227_s3 + $0x6c4] sm:$0xf0] }
 0x643   : > { %8223 = vrcp.f32 %v11703_v8  ;;  %v4042_v22 = vsel %vm4039_vm1, %v4041_v3, %v4037_v62  ;;  %5167 = vmatpush.bf16.msra.mxu3 %v7433_v50  ;;  %vm4051_vm8 = vmor %vm4049_vm7, %vm4050_vm6  ;;  %v4068_v27 = vand.u32 2147483647, %v11703_v8  ;;  %v7505_v53 = vor.u32 %v7927_v1, %v7504_v2  ;;  %v13476_v1 = vld [vmem:[#allocation21_spill] sm:$0xff] }
 0x644   : > { %v4046_v59 = vsub.f32 1.0, %v4045_v34  ;;  %v4103_v6 = vmul.f32 %v8220_v16, %v4042_v22  ;;  %8225 = vtanh.f32 %v3452_v15  ;;  %v4070_v7 = vand.u32 2147483648, %v11703_v8  ;;  %v7480_v22 = vld [vmem:[%s13227_s3 + $0x690] sm:$0xf] }
 0x645   : > { %5220 = vmatpush.bf16.msrb.mxu0 %v7505_v53  ;;  %vm4064_vm11 = vweird.f32 %v11703_v8  ;;  %vm4069_vm13 = vcmp.eq.f32.partialorder %v4068_v27, 8.507059e+37  ;;  %v7409_v43 = vor.u32 %v7903_v61, %v7408_v20  ;;  %v13478_v53 = vld [vmem:[#allocation26_spill] sm:$0xff] }
 0x646   : > { %v4047_v56 = vmul.f32 %v8218_v52, %v4046_v59  ;;  %v4071_v36 = vor.u32 1.1754944e-38, %v4070_v7  ;;  %v7921_v59 = vld [vmem:[%s13227_s3 + $0x694] sm:$0xf0] }
 0x647   : > { %5168 = vmatpush.bf16.msra.mxu3 %v7425_v46  ;;  %v7481_v39 = vor.u32 %v7921_v59, %v7480_v22 }
 0x648   : > { %v8222_v38 = vpop.eup %8221  ;;  %v4048_v11 = vadd.f32 %v8218_v52, %v4047_v56 }
 0x649   : > { %v8224_v18 = vpop.eup %8223  ;;  %v11723_v29 = vadd.f32 1.0, %v8222_v38  ;;  %5221 = vmatpush.bf16.msrb.mxu0 %v7497_v41  ;;  %v13482_v41 = vld [vmem:[#allocation31_spill] sm:$0xff] }
 0x64a   : > { %v4060_v17 = vmul.f32 %v8224_v18, %v11703_v8  ;;  %v4052_v44 = vsel %vm4051_vm8, %v8218_v52, %v4048_v11  ;;  %v8226_v40 = vpop.eup %8225  ;;  %vm4065_vm10 = vweird.f32 %v8224_v18  ;;  %v7923_v52 = vld [vmem:[%s13227_s3 + $0x6a4] sm:$0xf0] }
 0x64b   : > { %8227 = vrcp.f32 %v11723_v29  ;;  %v4057_v48 = vsel %vm4054_vm9, %v4056_v12, %v4052_v44  ;;  %vm4066_vm12 = vmor %vm4064_vm11, %vm4065_vm10  ;;  %5169 = vmatpush.bf16.msra.mxu3 %v7417_v33  ;;  %v7489_v3 = vor.u32 %v7923_v52, %v7488_v26  ;;  %v4085_v25 = vand.u32 2147483648, %v11723_v29  ;;  %v13475_v44 = vld [vmem:[#allocation32_spill] sm:$0xff] }
 0x64c   : > { %v4061_v13 = vsub.f32 1.0, %v4060_v17  ;;  %v4104_v37 = vmul.f32 %v8226_v40, %v4057_v48  ;;  %8229 = vtanh.f32 %v13471_v51  ;;  %v4083_v62 = vand.u32 2147483647, %v11723_v29  ;;  %v13474_v17 = vld [vmem:[#allocation24_spill] sm:$0xff] }
 0x64d   : > { %8231 = vtanh.f32 %v3457_v60  ;;  %5222 = vmatpush.bf16.msrb.mxu0 %v7489_v3  ;;  %vm4079_vm15 = vweird.f32 %v11723_v29  ;;  %v4086_v55 = vor.u32 1.1754944e-38, %v4085_v25  ;;  %v11792_v12 = vperm.slane %v7132_v57, 1  ;;  %v13479_v33 = vld [vmem:[#allocation28_spill] sm:$0xff] }
 0x64e   : > { %v4114_v30 = vpack.c.bf16 %v4104_v37, %v4103_v6  ;;  %v4062_v35 = vmul.f32 %v8224_v18, %v4061_v13  ;;  %v7472_v6 = vld [vmem:[%s13227_s3 + $0x680] sm:$0xf]  ;;  %vm4084_vm1 = vcmp.eq.f32.partialorder %v4083_v62, 8.507059e+37  ;;  %v2435_v46 = vadd.f32 %v13475_v44, %v13474_v17 }
 0x64f   : > { %5170 = vmatpush.bf16.msra.mxu3 %v7409_v43  ;;  %v7473_v38 = vor.u32 %v7919_v5, %v7472_v6  ;;  %v2440_v20 = vadd.f32 %v13482_v41, %v13474_v17 }
 0x650   : > { %4263 = vmatmul.bf16.gmra.mxu3 %v4114_v30  ;;  %4316 = vmatmul.bf16.gmra.mxu0 %v4114_v30  ;;  %v4063_v4 = vadd.f32 %v8224_v18, %v4062_v35 }
 0x651   : > { %v8228_v24 = vpop.eup %8227  ;;  %5223 = vmatpush.bf16.msrb.mxu0 %v7481_v39 }
 0x652   : > { %v4075_v63 = vmul.f32 %v8228_v24, %v11723_v29  ;;  %v4067_v10 = vsel %vm4066_vm12, %v8224_v18, %v4063_v4  ;;  %v8230_v45 = vpop.eup %8229  ;;  %vm4080_vm14 = vweird.f32 %v8228_v24  ;;  %v11790_v29 = vperm.slane %v7132_v57, 0 }
 0x653   : > { %v4072_v9 = vsel %vm4069_vm13, %v4071_v36, %v4067_v10  ;;  %vm4081_vm0 = vmor %vm4079_vm15, %vm4080_vm14  ;;  %v8232_v23 = vpop.eup %8231 }
 0x654   : > { %v4076_v15 = vsub.f32 1.0, %v4075_v63  ;;  %v4105_v8 = vmul.f32 %v8230_v45, %v4072_v9  ;;  %v13483_v63 = vld [vmem:[#allocation30_spill] sm:$0xff] }
 0x655   : > { %5224 = vmatpush.bf16.msrb.mxu0 %v7473_v38 }
 0x656   : > { %v4077_v34 = vmul.f32 %v8228_v24, %v4076_v15 }
 0x658   : > { %v4078_v16 = vadd.f32 %v8228_v24, %v4077_v34 }
 0x65a   : > { %v4082_v56 = vsel %vm4081_vm0, %v8228_v24, %v4078_v16 }
 0x65b   : > { %v4087_v50 = vsel %vm4084_vm1, %v4086_v55, %v4082_v56 }
 0x65c   : > { %v4106_v11 = vmul.f32 %v8232_v23, %v4087_v50  ;;  %v13485_v23 = vld [vmem:[#allocation33_spill] sm:$0xff] }
 0x65d   : > { %v4283_v47 = vpop.f32.mrf.mxu0 }
 0x65e   : > { %v4115_v18 = vpack.c.bf16 %v4106_v11, %v4105_v8  ;;  %v13486_v47 = vld [vmem:[#allocation34_spill] sm:$0xff] }
 0x660   : > { %4268 = vmatmul.bf16.gmra.mxu3 %v4115_v18  ;;  %4321 = vmatmul.bf16.gmra.mxu0 %v4115_v18 }
 0x663   : > { %v4229_v0 = vpop.f32.mrf.mxu3 }
 0x664   : > { %v4230_v32 = vadd.f32 %v4229_v0, %v11790_v29 }
 0x665   : > { %v4284_v28 = vpop.f32.mrf.mxu0 }
 0x666   : > { %v4285_v2 = vadd.f32 %v4284_v28, %v11792_v12  ;;  %v4326_v40 = vadd.f32 %v4230_v32, %v13476_v1 }
 0x668   : > { %v11799_v42 = vadd.f32 %v4285_v2, %v2435_v46  ;;  %v11801_v13 = vmul.f32 0.0, %v4326_v40 }
 0x66a   : > { %13477 = vst [vmem:[#allocation40_spill] sm:$0xff] %v11799_v42  ;;  %v13309_v31 = vrot.slane %v11801_v13, 6  ;;  %v13308_v21 = vrot.slane %v11801_v13, 7  ;;  %v13306_v45 = vrot.slane %v11801_v13, 1  ;;  %v13307_v9 = vrot.slane %v11801_v13, 2 }
 0x66b   : > { %v4231_v48 = vpop.f32.mrf.mxu3 }
 0x66c   : > { %v4232_v37 = vadd.f32 %v4231_v48, %v11790_v29 }
 0x66d   : > { %v4287_v27 = vpop.f32.mrf.mxu0 }
 0x66e   : > { %v4327_v51 = vadd.f32 %v4232_v37, %v13478_v53  ;;  %v4288_v7 = vadd.f32 %v4287_v27, %v11792_v12  ;;  %v13488_v53 = vld [vmem:[#allocation17_spill] sm:$0xff] }
 0x670   : > { %v4379_v30 = vrot.slane %v4327_v51, 6  ;;  %v4415_v35 = vrot.slane %v4327_v51, 7  ;;  %v11809_v14 = vadd.f32 %v4288_v7, %v13479_v33  ;;  %v11812_v19 = vpack.c.bf16 %v4327_v51, %v11801_v13  ;;  %v13489_v7 = vld [vmem:[#allocation19_spill] sm:$0xff] }
 0x671   : > { %v4451_v60 = vrot.slane %v4327_v51, 1  ;;  %v4487_v61 = vrot.slane %v4327_v51, 2  ;;  %v2445_v51 = vadd.f32 %v13488_v53, %v13474_v17 }
 0x672   : > { %13480 = vst [vmem:[#allocation42_spill] sm:$0xff] %v11809_v14  ;;  %v11818_v58 = vsel %vm680_vm4, %v13309_v31, %v4379_v30  ;;  %v11824_v54 = vsel %vm717_vm5, %v13308_v21, %v4415_v35  ;;  %5171 = vmatmul.bf16.vlgmr.msra.gmra.mxu3 %v11812_v19  ;;  %v13514_v31 = vld [vmem:[#allocation39_spill] sm:$0xff] }
 0x673   : > { %v4234_v24 = vpop.f32.mrf.mxu3  ;;  %v4484_v3 = vsel %vm754_vm2, %v13306_v45, %v4451_v60  ;;  %v4520_v22 = vsel %vm791_vm3, %v13307_v9, %v4487_v61 }
 0x674   : > { %v4235_v49 = vadd.f32 %v4234_v24, %v11790_v29 }
 0x675   : > { %v4289_v36 = vpop.f32.mrf.mxu0 }
 0x676   : > { %v4328_v10 = vadd.f32 %v4235_v49, %v13483_v63  ;;  %v4290_v43 = vadd.f32 %v4289_v36, %v11792_v12 }
 0x678   : > { %v4452_v26 = vrot.slane %v4328_v10, 1  ;;  %v4488_v52 = vrot.slane %v4328_v10, 2  ;;  %v11834_v15 = vadd.f32 %v4290_v43, %v2440_v20  ;;  %v4380_v8 = vrot.slane %v4328_v10, 6 }
 0x679   : > { %v4416_v25 = vrot.slane %v4328_v10, 7 }
 0x67a   : > { %13484 = vst [vmem:[#allocation52_spill] sm:$0xff] %v11834_v15  ;;  %v4483_v34 = vsel %vm754_vm2, %v4451_v60, %v4452_v26  ;;  %v4411_v62 = vsel %vm680_vm4, %v4379_v30, %v4380_v8  ;;  %v4519_v16 = vsel %vm791_vm3, %v4487_v61, %v4488_v52 }
 0x67b   : > { %v4236_v59 = vpop.f32.mrf.mxu3  ;;  %v11850_v6 = vpack.c.bf16 %v4483_v34, %v4484_v3  ;;  %v4447_v55 = vsel %vm717_vm5, %v4415_v35, %v4416_v25  ;;  %v11854_v39 = vpack.c.bf16 %v4519_v16, %v4520_v22 }
 0x67c   : > { %v4237_v5 = vadd.f32 %v4236_v59, %v11790_v29 }
 0x67d   : > { %v4292_v56 = vpop.f32.mrf.mxu0  ;;  %5225 = vmatmul.bf16.vlgmr.msrb.gmra.mxu0 %v11850_v6 }
 0x67e   : > { %v4329_v50 = vadd.f32 %v4237_v5, %v13485_v23  ;;  %v4293_v38 = vadd.f32 %v4292_v56, %v11792_v12 }
 0x680   : > { %v4363_v11 = vmul.f32 0.0, %v4329_v50  ;;  %v11861_v57 = vadd.f32 %v4293_v38, %v13486_v47 }
 0x682   : > { %13487 = vst [vmem:[#allocation44_spill] sm:$0xff] %v11861_v57  ;;  %v11863_v18 = vpack.c.bf16 %v4363_v11, %v4328_v10  ;;  %v4381_v0 = vrot.slane %v4363_v11, 6  ;;  %v4417_v32 = vrot.slane %v4363_v11, 7  ;;  %v4489_v44 = vrot.slane %v4363_v11, 2 }
 0x683   : > { %v4239_v28 = vpop.f32.mrf.mxu3  ;;  %v4453_v33 = vrot.slane %v4363_v11, 1 }
 0x684   : > { %v4240_v46 = vadd.f32 %v4239_v28, %v11790_v29  ;;  %5176 = vmatmul.bf16.gmra.mxu3 %v11863_v18  ;;  %v4410_v2 = vsel %vm680_vm4, %v4380_v8, %v4381_v0  ;;  %v4446_v1 = vsel %vm717_vm5, %v4416_v25, %v4417_v32  ;;  %v4518_v27 = vsel %vm791_vm3, %v4488_v52, %v4489_v44 }
 0x685   : > { %v4294_v40 = vpop.f32.mrf.mxu0  ;;  %v11871_v48 = vpack.c.bf16 %v4410_v2, %v4411_v62  ;;  %v11873_v37 = vpack.c.bf16 %v4446_v1, %v4447_v55  ;;  %v4482_v63 = vsel %vm754_vm2, %v4452_v26, %v4453_v33  ;;  %v13491_v62 = vld [vmem:[#allocation5_spill] sm:$0xff]  ;;  %v13492_v55 = vld [vmem:[#allocation6_spill] sm:$0xff]  ;;  %v13494_v1 = vld [vmem:[#allocation8_spill] sm:$0xff] }
 0x686   : > { %v4330_v30 = vadd.f32 %v4240_v46, %v13489_v7  ;;  %v4295_v35 = vadd.f32 %v4294_v40, %v11792_v12  ;;  %v2450_v40 = vadd.f32 %v13494_v1, %v13474_v17 }
 0x688   : > { %v4364_v24 = vmul.f32 0.0, %v4330_v30  ;;  %v11881_v49 = vadd.f32 %v4295_v35, %v2445_v51 }
 0x68a   : > { %13490 = vst [vmem:[#allocation46_spill] sm:$0xff] %v11881_v49  ;;  %v4454_v60 = vrot.slane %v4364_v24, 1  ;;  %v4382_v36 = vrot.slane %v4364_v24, 6  ;;  %v4418_v41 = vrot.slane %v4364_v24, 7  ;;  %v4490_v20 = vrot.slane %v4364_v24, 2 }
 0x68b   : > { %v4241_v61 = vpop.f32.mrf.mxu3 }
 0x68c   : > { %v4242_v10 = vadd.f32 %v4241_v61, %v11790_v29  ;;  %v4481_v43 = vsel %vm754_vm2, %v4453_v33, %v4454_v60  ;;  %v4409_v52 = vsel %vm680_vm4, %v4381_v0, %v4382_v36  ;;  %v4445_v8 = vsel %vm717_vm5, %v4417_v32, %v4418_v41  ;;  %v7400_v33 = vld [vmem:[%s13227_s3 + $0x5f0] sm:$0xf] }
 0x68d   : > { %v4297_v3 = vpop.f32.mrf.mxu0  ;;  %v11892_v25 = vpack.c.bf16 %v4481_v43, %v4482_v63  ;;  %v4517_v34 = vsel %vm791_vm3, %v4489_v44, %v4490_v20 }
 0x68e   : > { %v4331_v16 = vadd.f32 %v4242_v10, %v13491_v62  ;;  %v4298_v26 = vadd.f32 %v4297_v3, %v11792_v12  ;;  %v11898_v22 = vpack.c.bf16 %v4517_v34, %v4518_v27  ;;  %v13495_v27 = vld [vmem:[#allocation9_spill] sm:$0xff] }
 0x68f   : > { %5230 = vmatmul.bf16.gmra.mxu0 %v11892_v25 }
 0x690   : > { %v4365_v59 = vmul.f32 0.0, %v4331_v16  ;;  %v11902_v5 = vadd.f32 %v4298_v26, %v13492_v55 }
 0x692   : > { %13493 = vst [vmem:[#allocation47_spill] sm:$0xff] %v11902_v5  ;;  %v11904_v56 = vpack.c.bf16 %v4365_v59, %v4364_v24  ;;  %v4383_v23 = vrot.slane %v4365_v59, 6  ;;  %v4419_v50 = vrot.slane %v4365_v59, 7  ;;  %v4491_v11 = vrot.slane %v4365_v59, 2  ;;  %v7901_v24 = vld [vmem:[%s13227_s3 + $0x5f4] sm:$0xf0] }
 0x693   : > { %v4244_v38 = vpop.f32.mrf.mxu3  ;;  %v4455_v7 = vrot.slane %v4365_v59, 1  ;;  %v13497_v59 = vld [vmem:[#allocation10_spill] sm:$0xff]  ;;  %v7914_v5 = vld [vmem:[%s13227_s3 + $0x664] sm:$0xf] }
 0x694   : > { %v4245_v47 = vadd.f32 %v4244_v38, %v11790_v29  ;;  %5181 = vmatmul.bf16.gmra.mxu3 %v11904_v56  ;;  %v4408_v0 = vsel %vm680_vm4, %v4382_v36, %v4383_v23  ;;  %v4444_v32 = vsel %vm717_vm5, %v4418_v41, %v4419_v50  ;;  %v4516_v2 = vsel %vm791_vm3, %v4490_v20, %v4491_v11 }
 0x695   : > { %v4299_v28 = vpop.f32.mrf.mxu0  ;;  %v11912_v44 = vpack.c.bf16 %v4408_v0, %v4409_v52  ;;  %v11914_v46 = vpack.c.bf16 %v4444_v32, %v4445_v8  ;;  %v7401_v36 = vor.u32 %v7901_v24, %v7400_v33  ;;  %v4480_v43 = vsel %vm754_vm2, %v4454_v60, %v4455_v7  ;;  %v13498_v0 = vld [vmem:[#allocation11_spill] sm:$0xff] }
 0x696   : > { %v4332_v53 = vadd.f32 %v4245_v47, %v13495_v27  ;;  %v4300_v51 = vadd.f32 %v4299_v28, %v11792_v12 }
 0x697   : > { %5109 = vmatpush.bf16.msra.mxu2 %v7401_v36 }
 0x698   : > { %v4366_v30 = vmul.f32 0.0, %v4332_v53  ;;  %v11922_v35 = vadd.f32 %v4300_v51, %v2450_v40 }
 0x69a   : > { %13496 = vst [vmem:[#allocation49_spill] sm:$0xff] %v11922_v35  ;;  %v4456_v41 = vrot.slane %v4366_v30, 1  ;;  %v4384_v20 = vrot.slane %v4366_v30, 6  ;;  %v4420_v61 = vrot.slane %v4366_v30, 7  ;;  %v4492_v63 = vrot.slane %v4366_v30, 2 }
 0x69b   : > { %v4246_v10 = vpop.f32.mrf.mxu3 }
 0x69c   : > { %v4247_v52 = vadd.f32 %v4246_v10, %v11790_v29  ;;  %v4479_v8 = vsel %vm754_vm2, %v4455_v7, %v4456_v41  ;;  %v4407_v3 = vsel %vm680_vm4, %v4383_v23, %v4384_v20  ;;  %v4443_v34 = vsel %vm717_vm5, %v4419_v50, %v4420_v61  ;;  %v7336_v50 = vld [vmem:[%s13227_s3 + $0x570] sm:$0xf]  ;;  %v13500_v10 = vld [vmem:[#allocation12_spill] sm:$0xff] }
 0x69d   : > { %v4302_v62 = vpop.f32.mrf.mxu0  ;;  %v11939_v16 = vpack.c.bf16 %v4479_v8, %v4480_v43  ;;  %v4515_v26 = vsel %vm791_vm3, %v4491_v11, %v4492_v63  ;;  %v7885_v11 = vld [vmem:[%s13227_s3 + $0x574] sm:$0xf0]  ;;  %v2455_v43 = vadd.f32 %v13500_v10, %v13474_v17  ;;  %v13503_v10 = vld [vmem:[#allocation14_spill] sm:$0xff] }
 0x69e   : > { %v4333_v60 = vadd.f32 %v4247_v52, %v13497_v59  ;;  %v4303_v55 = vadd.f32 %v4302_v62, %v11792_v12  ;;  %v11945_v38 = vpack.c.bf16 %v4515_v26, %v4516_v2  ;;  %v7337_v32 = vor.u32 %v7885_v11, %v7336_v50  ;;  %v13501_v52 = vld [vmem:[#allocation13_spill] sm:$0xff] }
 0x69f   : > { %5235 = vmatmul.bf16.gmra.mxu0 %v11939_v16 }
 0x6a0   : > { %v4367_v47 = vmul.f32 0.0, %v4333_v60  ;;  %v11949_v23 = vadd.f32 %v4303_v55, %v13498_v0  ;;  %5055 = vmatpush.bf16.msra.mxu1 %v7337_v32 }
 0x6a2   : > { %13499 = vst [vmem:[#allocation48_spill] sm:$0xff] %v11949_v23  ;;  %v11957_v28 = vpack.c.bf16 %v4367_v47, %v4366_v30  ;;  %v4385_v1 = vrot.slane %v4367_v47, 6  ;;  %v4421_v2 = vrot.slane %v4367_v47, 7  ;;  %v4493_v27 = vrot.slane %v4367_v47, 2 }
 0x6a3   : > { %v4249_v40 = vpop.f32.mrf.mxu3  ;;  %v4457_v26 = vrot.slane %v4367_v47, 1 }
 0x6a4   : > { %v4250_v53 = vadd.f32 %v4249_v40, %v11790_v29  ;;  %5186 = vmatmul.bf16.gmra.mxu3 %v11957_v28  ;;  %v4406_v51 = vsel %vm680_vm4, %v4384_v20, %v4385_v1  ;;  %v4442_v7 = vsel %vm717_vm5, %v4420_v61, %v4421_v2  ;;  %v4514_v36 = vsel %vm791_vm3, %v4492_v63, %v4493_v27  ;;  %v7392_v61 = vld [vmem:[%s13227_s3 + $0x5e0] sm:$0xf] }
 0x6a5   : > { %v4304_v33 = vpop.f32.mrf.mxu0  ;;  %v11965_v24 = vpack.c.bf16 %v4406_v51, %v4407_v3  ;;  %v11967_v30 = vpack.c.bf16 %v4442_v7, %v4443_v34  ;;  %v7899_v3 = vld [vmem:[%s13227_s3 + $0x5e4] sm:$0xf0]  ;;  %v4478_v47 = vsel %vm754_vm2, %v4456_v41, %v4457_v26 }
 0x6a6   : > { %v4334_v8 = vadd.f32 %v4250_v53, %v13501_v52  ;;  %v4305_v62 = vadd.f32 %v4304_v33, %v11792_v12  ;;  %v7393_v63 = vor.u32 %v7899_v3, %v7392_v61 }
 0x6a8   : > { %v4368_v20 = vmul.f32 0.0, %v4334_v8  ;;  %v11975_v59 = vadd.f32 %v4305_v62, %v2455_v43  ;;  %5110 = vmatpush.bf16.msra.mxu2 %v7393_v63  ;;  %v13504_v62 = vld [vmem:[#allocation15_spill] sm:$0xff] }
 0x6aa   : > { %13502 = vst [vmem:[#allocation51_spill] sm:$0xff] %v11975_v59  ;;  %v4458_v34 = vrot.slane %v4368_v20, 1  ;;  %v4386_v60 = vrot.slane %v4368_v20, 6  ;;  %v4422_v55 = vrot.slane %v4368_v20, 7  ;;  %v4494_v0 = vrot.slane %v4368_v20, 2 }
 0x6ab   : > { %v4251_v50 = vpop.f32.mrf.mxu3  ;;  %v7344_v59 = vld [vmem:[%s13227_s3 + $0x580] sm:$0xf] }
 0x6ac   : > { %v4252_v11 = vadd.f32 %v4251_v50, %v11790_v29  ;;  %v4477_v32 = vsel %vm754_vm2, %v4457_v26, %v4458_v34  ;;  %v4405_v40 = vsel %vm680_vm4, %v4385_v1, %v4386_v60  ;;  %v4441_v53 = vsel %vm717_vm5, %v4421_v2, %v4422_v55  ;;  %v7328_v2 = vld [vmem:[%s13227_s3 + $0x560] sm:$0xf] }
 0x6ad   : > { %v4307_v51 = vpop.f32.mrf.mxu0  ;;  %v11992_v7 = vpack.c.bf16 %v4477_v32, %v4478_v47  ;;  %v4513_v33 = vsel %vm791_vm3, %v4493_v27, %v4494_v0  ;;  %v7883_v27 = vld [vmem:[%s13227_s3 + $0x564] sm:$0xf0] }
 0x6ae   : > { %v4335_v41 = vadd.f32 %v4252_v11, %v13503_v10  ;;  %v4308_v43 = vadd.f32 %v4307_v51, %v11792_v12  ;;  %v11998_v52 = vpack.c.bf16 %v4513_v33, %v4514_v36  ;;  %v7329_v26 = vor.u32 %v7883_v27, %v7328_v2 }
 0x6af   : > { %5240 = vmatmul.bf16.gmra.mxu0 %v11992_v7 }
 0x6b0   : > { %v4369_v8 = vmul.f32 0.0, %v4335_v41  ;;  %v12002_v1 = vadd.f32 %v4308_v43, %v13504_v62  ;;  %5056 = vmatpush.bf16.msra.mxu1 %v7329_v26  ;;  %v13506_v41 = vld [vmem:[#allocation35_spill] sm:$0xff]  ;;  %v13507_v62 = vld [vmem:[#allocation16_spill] sm:$0xff] }
 0x6b1   : > { %v2460_v43 = vadd.f32 %v13506_v41, %v13474_v17 }
 0x6b2   : > { %13505 = vst [vmem:[#allocation38_spill] sm:$0xff] %v12002_v1  ;;  %v12010_v61 = vpack.c.bf16 %v4369_v8, %v4368_v20  ;;  %v4387_v3 = vrot.slane %v4369_v8, 6  ;;  %v4423_v36 = vrot.slane %v4369_v8, 7  ;;  %v4495_v50 = vrot.slane %v4369_v8, 2  ;;  %v7368_v1 = vld [vmem:[%s13227_s3 + $0x5b0] sm:$0xf] }
 0x6b3   : > { %v4254_v63 = vpop.f32.mrf.mxu3  ;;  %v4459_v26 = vrot.slane %v4369_v8, 1 }
 0x6b4   : > { %v4255_v47 = vadd.f32 %v4254_v63, %v11790_v29  ;;  %5191 = vmatmul.bf16.gmra.mxu3 %v12010_v61  ;;  %v4404_v11 = vsel %vm680_vm4, %v4386_v60, %v4387_v3  ;;  %v4440_v32 = vsel %vm717_vm5, %v4422_v55, %v4423_v36  ;;  %v4512_v10 = vsel %vm791_vm3, %v4494_v0, %v4495_v50 }
 0x6b5   : > { %v4309_v51 = vpop.f32.mrf.mxu0  ;;  %v12018_v33 = vpack.c.bf16 %v4404_v11, %v4405_v40  ;;  %v12020_v20 = vpack.c.bf16 %v4440_v32, %v4441_v53  ;;  %v4476_v32 = vsel %vm754_vm2, %v4458_v34, %v4459_v26  ;;  %v13510_v34 = vld [vmem:[#allocation18_spill] sm:$0xff] }
 0x6b6   : > { %v4336_v2 = vadd.f32 %v4255_v47, %v13507_v62  ;;  %v4310_v27 = vadd.f32 %v4309_v51, %v11792_v12 }
 0x6b8   : > { %v12028_v60 = vmul.f32 0.0, %v4336_v2  ;;  %v12030_v63 = vadd.f32 %v4310_v27, %v2460_v43 }
 0x6ba   : > { %13508 = vst [vmem:[#allocation36_spill] sm:$0xff] %v12030_v63  ;;  %v13310_v55 = vrot.slane %v12028_v60, 1  ;;  %v4388_v40 = vrot.slane %v12028_v60, 6  ;;  %v4424_v53 = vrot.slane %v12028_v60, 7  ;;  %v4496_v0 = vrot.slane %v12028_v60, 2 }
 0x6bb   : > { %v4256_v11 = vpop.f32.mrf.mxu3 }
 0x6bc   : > { %v4257_v47 = vadd.f32 %v4256_v11, %v11790_v29  ;;  %v4475_v8 = vsel %vm754_vm2, %v4459_v26, %v13310_v55  ;;  %v4403_v51 = vsel %vm680_vm4, %v4387_v3, %v4388_v40  ;;  %v4439_v41 = vsel %vm717_vm5, %v4423_v36, %v4424_v53  ;;  %v13512_v3 = vld [vmem:[#allocation37_spill] sm:$0xff]  ;;  %v7384_v36 = vld [vmem:[%s13227_s3 + $0x5d0] sm:$0xf]  ;;  %v13515_v55 = vld [vmem:[#allocation20_spill] sm:$0xff] }
 0x6bd   : > { %v4312_v43 = vpop.f32.mrf.mxu0  ;;  %v12047_v62 = vpack.c.bf16 %v4475_v8, %v4476_v32  ;;  %v4511_v2 = vsel %vm791_vm3, %v4495_v50, %v4496_v0  ;;  %v7897_v50 = vld [vmem:[%s13227_s3 + $0x5d4] sm:$0xf0] }
 0x6be   : > { %v4337_v27 = vadd.f32 %v4257_v47, %v13510_v34  ;;  %v4313_v11 = vadd.f32 %v4312_v43, %v11792_v12  ;;  %v12053_v45 = vpack.c.bf16 %v4511_v2, %v4512_v10  ;;  %v7385_v32 = vor.u32 %v7897_v50, %v7384_v36  ;;  %v7320_v10 = vld [vmem:[%s13227_s3 + $0x550] sm:$0xf]  ;;  %v7881_v47 = vld [vmem:[%s13227_s3 + $0x554] sm:$0xf0] }
 0x6bf   : > { %13509 = vst [vmem:[#allocation50_spill] sm:$0xff] %v12047_v62  ;;  %5245 = vmatmul.bf16.gmra.mxu0 %v12047_v62  ;;  %v7321_v43 = vor.u32 %v7881_v47, %v7320_v10 }
 0x6c0   : > { %13511 = vst [vmem:[#allocation24_spill] sm:$0xff] %v12053_v45  ;;  %v12056_v26 = vmul.f32 0.0, %v4337_v27  ;;  %v12059_v9 = vadd.f32 %v4313_v11, %v13512_v3  ;;  %5111 = vmatpush.bf16.msra.mxu2 %v7385_v32 }
 0x6c1   : > { %5057 = vmatpush.bf16.msra.mxu1 %v7321_v43 }
 0x6c2   : > { %13513 = vst [vmem:[#allocation32_spill] sm:$0xff] %v12059_v9  ;;  %v12075_v8 = vpack.c.bf16 %v12056_v26, %v12028_v60  ;;  %v4389_v2 = vrot.slane %v12056_v26, 6  ;;  %v4425_v27 = vrot.slane %v12056_v26, 7  ;;  %v4497_v11 = vrot.slane %v12056_v26, 2 }
 0x6c3   : > { %v4259_v34 = vpop.f32.mrf.mxu3  ;;  %v4461_v21 = vrot.slane %v12056_v26, 1 }
 0x6c4   : > { %v4260_v3 = vadd.f32 %v4259_v34, %v11790_v29  ;;  %5196 = vmatmul.bf16.gmra.mxu3 %v12075_v8  ;;  %v4402_v36 = vsel %vm680_vm4, %v4388_v40, %v4389_v2  ;;  %v4438_v32 = vsel %vm717_vm5, %v4424_v53, %v4425_v27  ;;  %v4510_v47 = vsel %vm791_vm3, %v4496_v0, %v4497_v11  ;;  %v7312_v40 = vld [vmem:[%s13227_s3 + $0x540] sm:$0xf] }
 0x6c5   : > { %v4314_v50 = vpop.f32.mrf.mxu0  ;;  %v12085_v10 = vpack.c.bf16 %v4402_v36, %v4403_v51  ;;  %v2465_v34 = vadd.f32 %v13514_v31, %v13474_v17  ;;  %v7879_v51 = vld [vmem:[%s13227_s3 + $0x544] sm:$0xf0]  ;;  %v7376_v53 = vld [vmem:[%s13227_s3 + $0x5c0] sm:$0xf]  ;;  %v12104_v0 = vpack.c.bf16 %v4438_v32, %v4439_v41  ;;  %v7304_v32 = vld [vmem:[%s13227_s3 + $0x530] sm:$0xf] }
 0x6c6   : > { %v4338_v9 = vadd.f32 %v4260_v3, %v13515_v55  ;;  %v4315_v43 = vadd.f32 %v4314_v50, %v11792_v12  ;;  %v7313_v26 = vor.u32 %v7879_v51, %v7312_v40  ;;  %v7895_v31 = vld [vmem:[%s13227_s3 + $0x5c4] sm:$0xf0]  ;;  %v7900_v55 = vld [vmem:[%s13227_s3 + $0x5f4] sm:$0xf]  ;;  %v7402_v3 = vld [vmem:[%s13227_s3 + $0x5f8] sm:$0xf0] }
 0x6c7   : > { %v7377_v63 = vor.u32 %v7895_v31, %v7376_v53  ;;  %v7405_v41 = vor.u32 %v7900_v55, %v7402_v3  ;;  %v7877_v40 = vld [vmem:[%s13227_s3 + $0x534] sm:$0xf0] }
 0x6c8   : > { %v12115_v36 = vmul.f32 0.0, %v4338_v9  ;;  %v12117_v50 = vadd.f32 %v4315_v43, %v2465_v34  ;;  %5058 = vmatpush.bf16.msra.mxu1 %v7313_v26  ;;  %v7305_v51 = vor.u32 %v7877_v40, %v7304_v32  ;;  %v7893_v9 = vld [vmem:[%s13227_s3 + $0x5b4] sm:$0xf0]  ;;  %v7898_v34 = vld [vmem:[%s13227_s3 + $0x5e4] sm:$0xf]  ;;  %v13517_v32 = vrot.slane %v12028_v60, 1 }
 0x6c9   : > { %5112 = vmatpush.bf16.msra.mxu2 %v7377_v63  ;;  %5379 = vmatpush.bf16.msrb.mxu3 %v7405_v41  ;;  %v7369_v53 = vor.u32 %v7893_v9, %v7368_v1  ;;  %v7394_v26 = vld [vmem:[%s13227_s3 + $0x5e8] sm:$0xf0] }
 0x6ca   : > { %13516 = vst [vmem:[#allocation21_spill] sm:$0xff] %v12117_v50  ;;  %v4390_v31 = vrot.slane %v12115_v36, 6  ;;  %v13312_v55 = vrot.slane %v12115_v36, 7  ;;  %v4474_v40 = vsel %vm754_vm2, %v13517_v32, %v4461_v21  ;;  %v7397_v50 = vor.u32 %v7898_v34, %v7394_v26 }
 0x6cb   : > { %v4261_v3 = vpop.f32.mrf.mxu3  ;;  %v13311_v43 = vrot.slane %v12115_v36, 2  ;;  %v13518_v1 = vrot.slane %v12115_v36, 1 }
 0x6cc   : > { %v4262_v63 = vadd.f32 %v4261_v3, %v11790_v29  ;;  %v4401_v9 = vsel %vm680_vm4, %v4389_v2, %v4390_v31  ;;  %v12156_v60 = vsel %vm717_vm5, %v4425_v27, %v13312_v55  ;;  %5059 = vmatpush.bf16.msra.mxu1 %v7305_v51  ;;  %v13520_v3 = vld [vmem:[#allocation22_spill] sm:$0xff]  ;;  %v7296_v2 = vld [vmem:[%s13227_s3 + $0x520] sm:$0xf]  ;;  %v7875_v27 = vld [vmem:[%s13227_s3 + $0x524] sm:$0xf0] }
 0x6cd   : > { %v4473_v41 = vsel %vm754_vm2, %v4461_v21, %v13518_v1  ;;  %v4317_v32 = vpop.f32.mrf.mxu0  ;;  %v4509_v26 = vsel %vm791_vm3, %v4497_v11, %v13311_v43  ;;  %5113 = vmatpush.bf16.msra.mxu2 %v7369_v53  ;;  %5380 = vmatpush.bf16.msrb.mxu3 %v7397_v50  ;;  %v7360_v51 = vld [vmem:[%s13227_s3 + $0x5a0] sm:$0xf]  ;;  %v7297_v11 = vor.u32 %v7875_v27, %v7296_v2  ;;  %v7891_v50 = vld [vmem:[%s13227_s3 + $0x5a4] sm:$0xf0]  ;;  %v7896_v53 = vld [vmem:[%s13227_s3 + $0x5d4] sm:$0xf] }
 0x6ce   : > { %v12158_v34 = vpack.c.bf16 %v4473_v41, %v4474_v40  ;;  %v4339_v21 = vadd.f32 %v4262_v63, %v13520_v3  ;;  %v4318_v1 = vadd.f32 %v4317_v32, %v11792_v12  ;;  %v12175_v40 = vpack.c.bf16 %v4509_v26, %v4510_v47  ;;  %v7386_v63 = vld [vmem:[%s13227_s3 + $0x5d8] sm:$0xf0]  ;;  %v13522_v32 = vld [vmem:[#allocation41_spill] sm:$0xff]  ;;  %v7288_v43 = vld [vmem:[%s13227_s3 + $0x510] sm:$0xf] }
 0x6cf   : > { %v7361_v26 = vor.u32 %v7891_v50, %v7360_v51  ;;  %v7389_v3 = vor.u32 %v7896_v53, %v7386_v63  ;;  %v7352_v50 = vld [vmem:[%s13227_s3 + $0x590] sm:$0xf]  ;;  %v7889_v53 = vld [vmem:[%s13227_s3 + $0x594] sm:$0xf0]  ;;  %v7916_v63 = vld [vmem:[%s13227_s3 + $0x674] sm:$0xf] }
 0x6d0   : > { %13519 = vst [vmem:[#allocation26_spill] sm:$0xff] %v12158_v34  ;;  %5250 = vmatmul.bf16.gmra.mxu0 %v12158_v34  ;;  %v12187_v41 = vmul.f32 0.0, %v4339_v21  ;;  %v12190_v47 = vadd.f32 %v4318_v1, %v13522_v32  ;;  %5060 = vmatpush.bf16.msra.mxu1 %v7297_v11  ;;  %v7873_v21 = vld [vmem:[%s13227_s3 + $0x514] sm:$0xf0] }
 0x6d1   : > { %13521 = vst [vmem:[#allocation28_spill] sm:$0xff] %v12175_v40  ;;  %5114 = vmatpush.bf16.msra.mxu2 %v7361_v26  ;;  %5381 = vmatpush.bf16.msrb.mxu3 %v7389_v3  ;;  %v7289_v11 = vor.u32 %v7873_v21, %v7288_v43  ;;  %v7353_v26 = vor.u32 %v7889_v53, %v7352_v50  ;;  %v7466_v43 = vld [vmem:[%s13227_s3 + $0x678] sm:$0xf0]  ;;  %v7894_v3 = vld [vmem:[%s13227_s3 + $0x5c4] sm:$0xf] }
 0x6d2   : > { %13523 = vst [vmem:[#allocation7_spill] sm:$0xff] %v12190_v47  ;;  %v12194_v2 = vpack.c.bf16 %v12187_v41, %v12115_v36  ;;  %v4391_v1 = vrot.slane %v12187_v41, 6  ;;  %v7378_v21 = vld [vmem:[%s13227_s3 + $0x5c8] sm:$0xf0]  ;;  %v7280_v50 = vld [vmem:[%s13227_s3 + $0x500] sm:$0xf] }
 0x6d3   : > { %v4264_v51 = vpop.f32.mrf.mxu3  ;;  %v7381_v47 = vor.u32 %v7894_v3, %v7378_v21  ;;  %v7871_v53 = vld [vmem:[%s13227_s3 + $0x504] sm:$0xf0] }
 0x6d4   : > { %v4265_v32 = vadd.f32 %v4264_v51, %v11790_v29  ;;  %5201 = vmatmul.bf16.gmra.mxu3 %v12194_v2  ;;  %v4400_v55 = vsel %vm680_vm4, %v4390_v31, %v4391_v1  ;;  %5061 = vmatpush.bf16.msra.mxu1 %v7289_v11  ;;  %v7469_v51 = vor.u32 %v7916_v63, %v7466_v43  ;;  %v13524_v31 = vld [vmem:[#allocation43_spill] sm:$0xff]  ;;  %v7887_v21 = vld [vmem:[%s13227_s3 + $0x584] sm:$0xf0] }
 0x6d5   : > { %v4319_v27 = vpop.f32.mrf.mxu0  ;;  %v12235_v23 = vpack.c.bf16 %v4400_v55, %v4401_v9  ;;  %v2470_v35 = vadd.f32 %v13524_v31, %v13474_v17  ;;  %v13525_v11 = vld [vmem:[#allocation23_spill] sm:$0xff]  ;;  %5115 = vmatpush.bf16.msra.mxu2 %v7353_v26  ;;  %v7281_v3 = vor.u32 %v7871_v53, %v7280_v50  ;;  %v7458_v55 = vld [vmem:[%s13227_s3 + $0x668] sm:$0xf0]  ;;  %5382 = vmatpush.bf16.msrb.mxu3 %v7381_v47  ;;  %v7912_v26 = vld [vmem:[%s13227_s3 + $0x654] sm:$0xf]  ;;  %v4427_v47 = vrot.slane %v12187_v41, 7 }
 0x6d6   : > { %v4340_v63 = vadd.f32 %v4265_v32, %v13525_v11  ;;  %v4320_v43 = vadd.f32 %v4319_v27, %v11792_v12  ;;  %5433 = vmatpush.bf16.msra.mxu0 %v7469_v51  ;;  %v7345_v17 = vor.u32 %v7887_v21, %v7344_v59  ;;  %v7461_v9 = vor.u32 %v7914_v5, %v7458_v55  ;;  %v7892_v27 = vld [vmem:[%s13227_s3 + $0x5b4] sm:$0xf]  ;;  %v7370_v32 = vld [vmem:[%s13227_s3 + $0x5b8] sm:$0xf0]  ;;  %v7890_v59 = vld [vmem:[%s13227_s3 + $0x5a4] sm:$0xf] }
 0x6d7   : > { %v7373_v51 = vor.u32 %v7892_v27, %v7370_v32  ;;  %v7450_v5 = vld [vmem:[%s13227_s3 + $0x658] sm:$0xf0]  ;;  %v13527_v31 = vrot.slane %v12187_v41, 1  ;;  %v13528_v11 = vrot.slane %v12115_v36, 1  ;;  %v13529_v27 = vrot.slane %v12115_v36, 7 }
 0x6d8   : > { %v12259_v50 = vmul.f32 0.0, %v4340_v63  ;;  %v12261_v53 = vadd.f32 %v4320_v43, %v2470_v35  ;;  %5062 = vmatpush.bf16.msra.mxu1 %v7281_v3  ;;  %v7362_v35 = vld [vmem:[%s13227_s3 + $0x5a8] sm:$0xf0]  ;;  %v4499_v43 = vrot.slane %v12187_v41, 2  ;;  %v7453_v55 = vor.u32 %v7912_v26, %v7450_v5 }
 0x6d9   : > { %v4472_v63 = vsel %vm754_vm2, %v13528_v11, %v13527_v31  ;;  %5116 = vmatpush.bf16.msra.mxu2 %v7345_v17  ;;  %v4436_v32 = vsel %vm717_vm5, %v13529_v27, %v4427_v47  ;;  %5383 = vmatpush.bf16.msrb.mxu3 %v7373_v51  ;;  %v7365_v3 = vor.u32 %v7890_v59, %v7362_v35  ;;  %v13531_v5 = vrot.slane %v12187_v41, 1  ;;  %v7442_v41 = vld [vmem:[%s13227_s3 + $0x648] sm:$0xf0] }
 0x6da   : > { %13526 = vst [vmem:[#allocation31_spill] sm:$0xff] %v12261_v53  ;;  %v4392_v53 = vrot.slane %v12259_v50, 6  ;;  %5434 = vmatpush.bf16.msra.mxu0 %v7461_v9  ;;  %v12287_v31 = vpack.c.bf16 %v4436_v32, %v12156_v60  ;;  %v4428_v11 = vrot.slane %v12259_v50, 7  ;;  %v4500_v21 = vrot.slane %v12259_v50, 2 }
 0x6db   : > { %v4266_v49 = vpop.f32.mrf.mxu3  ;;  %v13530_v26 = vrot.slane %v12259_v50, 1  ;;  %v13532_v51 = vrot.slane %v12115_v36, 2 }
 0x6dc   : > { %v4267_v17 = vadd.f32 %v4266_v49, %v11790_v29  ;;  %v4399_v9 = vsel %vm680_vm4, %v4391_v1, %v4392_v53  ;;  %v7910_v49 = vld [vmem:[%s13227_s3 + $0x644] sm:$0xf]  ;;  %v4435_v32 = vsel %vm717_vm5, %v4427_v47, %v4428_v11  ;;  %v4507_v36 = vsel %vm791_vm3, %v4499_v43, %v4500_v21  ;;  %v13534_v1 = vld [vmem:[#allocation25_spill] sm:$0xff] }
 0x6dd   : > { %v4471_v27 = vsel %vm754_vm2, %v13531_v5, %v13530_v26  ;;  %v4508_v60 = vsel %vm791_vm3, %v13532_v51, %v4499_v43  ;;  %v4322_v59 = vpop.f32.mrf.mxu0  ;;  %5384 = vmatpush.bf16.msrb.mxu3 %v7365_v3  ;;  %v13536_v43 = vld [vmem:[#allocation45_spill] sm:$0xff]  ;;  %v7434_v3 = vld [vmem:[%s13227_s3 + $0x638] sm:$0xf0] }
 0x6de   : > { %v12304_v35 = vpack.c.bf16 %v4471_v27, %v4472_v63  ;;  %v4341_v26 = vadd.f32 %v4267_v17, %v13534_v1  ;;  %v4323_v5 = vadd.f32 %v4322_v59, %v11792_v12  ;;  %v7888_v63 = vld [vmem:[%s13227_s3 + $0x594] sm:$0xf]  ;;  %v7354_v27 = vld [vmem:[%s13227_s3 + $0x598] sm:$0xf0]  ;;  %v12324_v51 = vpack.c.bf16 %v4507_v36, %v4508_v60  ;;  %5435 = vmatpush.bf16.msra.mxu0 %v7453_v55  ;;  %v7886_v17 = vld [vmem:[%s13227_s3 + $0x584] sm:$0xf] }
 0x6df   : > { %v7357_v47 = vor.u32 %v7888_v63, %v7354_v27  ;;  %v7445_v12 = vor.u32 %v7910_v49, %v7442_v41  ;;  %v7346_v59 = vld [vmem:[%s13227_s3 + $0x588] sm:$0xf0]  ;;  %v7908_v60 = vld [vmem:[%s13227_s3 + $0x634] sm:$0xf] }
 0x6e0   : > { %13533 = vst [vmem:[#allocation30_spill] sm:$0xff] %v12304_v35  ;;  %5255 = vmatmul.bf16.gmra.mxu0 %v12304_v35  ;;  %v4375_v57 = vmul.f32 0.0, %v4341_v26  ;;  %v12328_v15 = vadd.f32 %v4323_v5, %v13536_v43  ;;  %v7349_v1 = vor.u32 %v7886_v17, %v7346_v59  ;;  %v7437_v63 = vor.u32 %v7908_v60, %v7434_v3  ;;  %v13538_v60 = vld [vmem:[#allocation27_spill] sm:$0xff] }
 0x6e1   : > { %13535 = vst [vmem:[#allocation33_spill] sm:$0xff] %v12324_v51  ;;  %5385 = vmatpush.bf16.msrb.mxu3 %v7357_v47  ;;  %v7426_v47 = vld [vmem:[%s13227_s3 + $0x628] sm:$0xf0] }
 0x6e2   : > { %13537 = vst [vmem:[#allocation34_spill] sm:$0xff] %v12328_v15  ;;  %v12343_v36 = vpack.c.bf16 %v4375_v57, %v12259_v50  ;;  %v4393_v55 = vrot.slane %v4375_v57, 6  ;;  %v4429_v49 = vrot.slane %v4375_v57, 7  ;;  %v4501_v26 = vrot.slane %v4375_v57, 2  ;;  %5436 = vmatpush.bf16.msra.mxu0 %v7445_v12  ;;  %v7906_v15 = vld [vmem:[%s13227_s3 + $0x624] sm:$0xf] }
 0x6e3   : > { %v4269_v41 = vpop.f32.mrf.mxu3  ;;  %v7429_v14 = vor.u32 %v7906_v15, %v7426_v47 }
 0x6e4   : > { %v4270_v5 = vadd.f32 %v4269_v41, %v11790_v29  ;;  %5206 = vmatmul.bf16.gmra.mxu3 %v12343_v36  ;;  %v4398_v27 = vsel %vm680_vm4, %v4392_v53, %v4393_v55  ;;  %v4434_v59 = vsel %vm717_vm5, %v4428_v11, %v4429_v49  ;;  %v4506_v12 = vsel %vm791_vm3, %v4500_v21, %v4501_v26  ;;  %v7418_v11 = vld [vmem:[%s13227_s3 + $0x618] sm:$0xf0] }
 0x6e5   : > { %v4324_v43 = vpop.f32.mrf.mxu0  ;;  %v12355_v17 = vpack.c.bf16 %v4398_v27, %v4399_v9  ;;  %v12362_v53 = vpack.c.bf16 %v4434_v59, %v4435_v32  ;;  %v4465_v41 = vrot.slane %v4375_v57, 1  ;;  %5386 = vmatpush.bf16.msrb.mxu3 %v7349_v1  ;;  %v7904_v9 = vld [vmem:[%s13227_s3 + $0x614] sm:$0xf]  ;;  %v13539_v32 = vrot.slane %v12259_v50, 1 }
 0x6e6   : > { %v4342_v3 = vadd.f32 %v4270_v5, %v13538_v60  ;;  %5437 = vmatpush.bf16.msra.mxu0 %v7437_v63  ;;  %v7421_v1 = vor.u32 %v7904_v9, %v7418_v11 }
 0x6e7   : > { %v4470_v57 = vsel %vm754_vm2, %v13539_v32, %v4465_v41 }
 0x6e8   : > { %v4376_v43 = vmul.f32 0.0, %v4342_v3  ;;  %v13541_v3 = vld [vmem:[#allocation29_spill] sm:$0xff] }
 0x6ea   : > { %v4466_v27 = vrot.slane %v4376_v43, 1  ;;  %v4394_v42 = vrot.slane %v4376_v43, 6  ;;  %v4430_v21 = vrot.slane %v4376_v43, 7  ;;  %v4502_v35 = vrot.slane %v4376_v43, 2  ;;  %5438 = vmatpush.bf16.msra.mxu0 %v7429_v14  ;;  %v7410_v14 = vld [vmem:[%s13227_s3 + $0x608] sm:$0xf0] }
 0x6eb   : > { %v4271_v5 = vpop.f32.mrf.mxu3 }
 0x6ec   : > { %v4272_v15 = vadd.f32 %v4271_v5, %v11790_v29  ;;  %v4469_v63 = vsel %vm754_vm2, %v4465_v41, %v4466_v27  ;;  %v4397_v47 = vsel %vm680_vm4, %v4393_v55, %v4394_v42  ;;  %v4433_v59 = vsel %vm717_vm5, %v4429_v49, %v4430_v21  ;;  %v7902_v29 = vld [vmem:[%s13227_s3 + $0x604] sm:$0xf] }
 0x6ed   : > { %v12381_v60 = vpack.c.bf16 %v4469_v63, %v4470_v57  ;;  %v4505_v50 = vsel %vm791_vm3, %v4501_v26, %v4502_v35  ;;  %v7413_v49 = vor.u32 %v7902_v29, %v7410_v14  ;;  %v13543_v57 = vrot.slane %v11801_v13, 6 }
 0x6ee   : > { %v4343_v32 = vadd.f32 %v4272_v15, %v13541_v3  ;;  %v12392_v41 = vpack.c.bf16 %v4505_v50, %v4506_v12  ;;  %5439 = vmatpush.bf16.msra.mxu0 %v7421_v1  ;;  %v13544_v12 = vrot.slane %v11801_v13, 7 }
 0x6ef   : > { %13540 = vst [vmem:[#allocation17_spill] sm:$0xff] %v12381_v60 }
 0x6f0   : > { %13542 = vst [vmem:[#allocation19_spill] sm:$0xff] %v12392_v41  ;;  %5260 = vmatmul.bf16.gmra.mxu0 %v12381_v60  ;;  %v4377_v55 = vmul.f32 0.0, %v4343_v32 }
 0x6f2   : > { %v4395_v9 = vrot.slane %v4377_v55, 6  ;;  %v4431_v11 = vrot.slane %v4377_v55, 7  ;;  %v12395_v26 = vpack.c.bf16 %v4377_v55, %v4376_v43  ;;  %v4503_v5 = vrot.slane %v4377_v55, 2  ;;  %5440 = vmatpush.bf16.msra.mxu0 %v7413_v49  ;;  %v7949_v49 = vld [vmem:[%s13227_s3 + $0x774] sm:$0xf0] }
 0x6f3   : > { %v4467_v43 = vrot.slane %v4377_v55, 1 }
 0x6f4   : > { %5211 = vmatmul.bf16.gmra.mxu3 %v12395_v26  ;;  %v4413_v15 = vsel %vm680_vm4, %v4395_v9, %v13543_v57  ;;  %v4449_v63 = vsel %vm717_vm5, %v4431_v11, %v13544_v12  ;;  %v4396_v3 = vsel %vm680_vm4, %v4394_v42, %v4395_v9  ;;  %v4432_v29 = vsel %vm717_vm5, %v4430_v21, %v4431_v11  ;;  %v7882_v12 = vld [vmem:[%s13227_s3 + $0x564] sm:$0xf] }
 0x6f5   : > { %v12407_v1 = vpack.c.bf16 %v11818_v58, %v4413_v15  ;;  %v4523_v50 = vpack.c.bf16 %v11824_v54, %v4449_v63  ;;  %v12412_v32 = vpack.c.bf16 %v4396_v3, %v4397_v47  ;;  %v4504_v14 = vsel %vm791_vm3, %v4502_v35, %v4503_v5  ;;  %v7330_v63 = vld [vmem:[%s13227_s3 + $0x568] sm:$0xf0] }
 0x6f6   : > { %v13545_v57 = vrot.slane %v11801_v13, 2  ;;  %v12423_v54 = vpack.c.bf16 %v4432_v29, %v4433_v59  ;;  %v4468_v42 = vsel %vm754_vm2, %v4466_v27, %v4467_v43  ;;  %v13546_v21 = vrot.slane %v11801_v13, 1  ;;  %v12442_v13 = vpop.f32.mrf.mxu3 }
 0x6f7   : > { %5063 = vmatmul.bf16.vlgmr.msra.gmra.mxu1 %v12407_v1  ;;  %5117 = vmatmul.bf16.vlgmr.msra.gmra.mxu2 %v4523_v50 }
 0x6f8   : > { %v4521_v58 = vsel %vm791_vm3, %v4503_v5, %v13545_v57  ;;  %v4485_v35 = vsel %vm754_vm2, %v4467_v43, %v13546_v21  ;;  %v7945_v21 = vld [vmem:[%s13227_s3 + $0x754] sm:$0xf0] }
 0x6f9   : > { %v12425_v55 = vpack.c.bf16 %v4521_v58, %v4504_v14  ;;  %v12433_v47 = vpack.c.bf16 %v4485_v35, %v4468_v42  ;;  %v7880_v58 = vld [vmem:[%s13227_s3 + $0x554] sm:$0xf]  ;;  %v7322_v42 = vld [vmem:[%s13227_s3 + $0x558] sm:$0xf0] }
 0x6fa   : > { %v12447_v27 = vpop.f32.mrf.mxu0 }
 0x6fb   : > { %13547 = vst [vmem:[#allocation5_spill] sm:$0xff] %v12433_v47 }
 0x6fe   : > { %v12445_v4 = vpop.f32.mrf.mxu3 }
 0x700   : > { %5265 = vmatmul.bf16.gmra.mxu0 %v12433_v47 }
 0x702   : > { %v12466_v9 = vpop.f32.mrf.mxu0 }
 0x704   : > { %5387 = vmatmul.bf16.vlgmr.msrb.gmra.mxu3 %v4523_v50  ;;  %v7947_v50 = vld [vmem:[%s13227_s3 + $0x764] sm:$0xf0] }
 0x707   : > { %5068 = vmatmul.bf16.gmra.mxu1 %v11871_v48  ;;  %5122 = vmatmul.bf16.gmra.mxu2 %v11873_v37 }
 0x70c   : > { %v12472_v15 = vpop.f32.mrf.mxu0 }
 0x710   : > { %5441 = vmatmul.bf16.vlgmr.msra.gmra.mxu0 %v11812_v19  ;;  %v7884_v19 = vld [vmem:[%s13227_s3 + $0x574] sm:$0xf] }
 0x714   : > { %5392 = vmatmul.bf16.gmra.mxu3 %v11873_v37  ;;  %v7338_v37 = vld [vmem:[%s13227_s3 + $0x578] sm:$0xf0]  ;;  %v12490_v29 = vpop.f32.mrf.mxu0 }
 0x715   : > { %v7341_v59 = vor.u32 %v7884_v19, %v7338_v37 }
 0x717   : > { %5073 = vmatmul.bf16.gmra.mxu1 %v11912_v44  ;;  %5127 = vmatmul.bf16.gmra.mxu2 %v11914_v46 }
 0x718   : > { %5325 = vmatpush.bf16.msrb.mxu2 %v7341_v59  ;;  %v7943_v59 = vld [vmem:[%s13227_s3 + $0x744] sm:$0xf0] }
 0x71c   : > { %v12498_v57 = vpop.f32.mrf.mxu0 }
 0x720   : > { %5446 = vmatmul.bf16.gmra.mxu0 %v11863_v18  ;;  %v12458_v18 = vpop.f32.mrf.mxu3 }
 0x724   : > { %5397 = vmatmul.bf16.gmra.mxu3 %v11914_v46  ;;  %v7592_v46 = vld [vmem:[%s13227_s3 + $0x770] sm:$0xf]  ;;  %v12515_v37 = vpop.f32.mrf.mxu0 }
 0x725   : > { %v7593_v11 = vor.u32 %v7949_v49, %v7592_v46  ;;  %v7878_v46 = vld [vmem:[%s13227_s3 + $0x544] sm:$0xf] }
 0x727   : > { %5078 = vmatmul.bf16.gmra.mxu1 %v11965_v24  ;;  %5132 = vmatmul.bf16.gmra.mxu2 %v11967_v30 }
 0x728   : > { %5271 = vmatpush.bf16.msrb.mxu1 %v7593_v11  ;;  %v12469_v5 = vpop.f32.mrf.mxu3  ;;  %v7314_v11 = vld [vmem:[%s13227_s3 + $0x548] sm:$0xf0] }
 0x730   : > { %5451 = vmatmul.bf16.gmra.mxu0 %v11904_v56  ;;  %v7333_v56 = vor.u32 %v7882_v12, %v7330_v63  ;;  %v12488_v3 = vpop.f32.mrf.mxu3  ;;  %v7560_v12 = vld [vmem:[%s13227_s3 + $0x730] sm:$0xf]  ;;  %v7941_v63 = vld [vmem:[%s13227_s3 + $0x734] sm:$0xf0] }
 0x732   : > { %5326 = vmatpush.bf16.msrb.mxu2 %v7333_v56  ;;  %v7876_v56 = vld [vmem:[%s13227_s3 + $0x534] sm:$0xf] }
 0x734   : > { %5402 = vmatmul.bf16.gmra.mxu3 %v11967_v30  ;;  %v7584_v30 = vld [vmem:[%s13227_s3 + $0x760] sm:$0xf] }
 0x735   : > { %v7585_v43 = vor.u32 %v7947_v50, %v7584_v30  ;;  %v7561_v30 = vor.u32 %v7941_v63, %v7560_v12  ;;  %v7306_v50 = vld [vmem:[%s13227_s3 + $0x538] sm:$0xf0]  ;;  %v7536_v63 = vld [vmem:[%s13227_s3 + $0x700] sm:$0xf] }
 0x736   : > { %v7290_v12 = vld [vmem:[%s13227_s3 + $0x518] sm:$0xf0] }
 0x737   : > { %5083 = vmatmul.bf16.gmra.mxu1 %v12018_v33  ;;  %5137 = vmatmul.bf16.gmra.mxu2 %v12020_v20 }
 0x738   : > { %5272 = vmatpush.bf16.msrb.mxu1 %v7585_v43  ;;  %v12496_v14 = vpop.f32.mrf.mxu3  ;;  %v7309_v43 = vor.u32 %v7876_v56, %v7306_v50  ;;  %v7935_v56 = vld [vmem:[%s13227_s3 + $0x704] sm:$0xf0] }
 0x740   : > { %5456 = vmatmul.bf16.gmra.mxu0 %v11957_v28  ;;  %v7325_v28 = vor.u32 %v7880_v58, %v7322_v42  ;;  %v12513_v19 = vpop.f32.mrf.mxu3  ;;  %v12546_v42 = vpop.f32.mrf.mxu0 }
 0x742   : > { %5327 = vmatpush.bf16.msrb.mxu2 %v7325_v28  ;;  %v7552_v28 = vld [vmem:[%s13227_s3 + $0x720] sm:$0xf] }
 0x744   : > { %5407 = vmatmul.bf16.gmra.mxu3 %v12020_v20  ;;  %v7576_v20 = vld [vmem:[%s13227_s3 + $0x750] sm:$0xf] }
 0x745   : > { %v7577_v35 = vor.u32 %v7945_v21, %v7576_v20  ;;  %v7939_v20 = vld [vmem:[%s13227_s3 + $0x724] sm:$0xf0]  ;;  %v7874_v21 = vld [vmem:[%s13227_s3 + $0x524] sm:$0xf] }
 0x747   : > { %5088 = vmatmul.bf16.gmra.mxu1 %v12085_v10  ;;  %5142 = vmatmul.bf16.gmra.mxu2 %v12104_v0 }
 0x748   : > { %5273 = vmatpush.bf16.msrb.mxu1 %v7577_v35  ;;  %v12544_v58 = vpop.f32.mrf.mxu3  ;;  %v7553_v35 = vor.u32 %v7939_v20, %v7552_v28  ;;  %v12588_v28 = vpop.f32.mrf.mxu0 }
 0x750   : > { %5461 = vmatmul.bf16.gmra.mxu0 %v12010_v61  ;;  %v7568_v61 = vld [vmem:[%s13227_s3 + $0x740] sm:$0xf]  ;;  %v12583_v50 = vpop.f32.mrf.mxu3 }
 0x751   : > { %v7569_v49 = vor.u32 %v7943_v59, %v7568_v61  ;;  %v7298_v61 = vld [vmem:[%s13227_s3 + $0x528] sm:$0xf0] }
 0x752   : > { %v7301_v59 = vor.u32 %v7874_v21, %v7298_v61  ;;  %v12600_v61 = vld [vmem:[%s13228_s4 + $0x4] sm:$0x3] }
 0x753   : > { %5274 = vmatpush.bf16.msrb.mxu1 %v7569_v49  ;;  %v7937_v49 = vld [vmem:[%s13227_s3 + $0x714] sm:$0xf0]  ;;  %13548 = vst [vmem:[#allocation6_spill] sm:$0xff] %v12600_v61 }
 0x754   : > { %5412 = vmatmul.bf16.gmra.mxu3 %v12104_v0  ;;  %v7317_v0 = vor.u32 %v7878_v46, %v7314_v11  ;;  %v7544_v46 = vld [vmem:[%s13227_s3 + $0x710] sm:$0xf]  ;;  %v7872_v11 = vld [vmem:[%s13227_s3 + $0x514] sm:$0xf] }
 0x756   : > { %5328 = vmatpush.bf16.msrb.mxu2 %v7317_v0  ;;  %v7545_v0 = vor.u32 %v7937_v49, %v7544_v46  ;;  %v12604_v46 = vperm.slane %v12600_v61, 0 }
 0x757   : > { %5093 = vmatmul.bf16.gmra.mxu1 %v12235_v23  ;;  %5147 = vmatmul.bf16.gmra.mxu2 %v12287_v31 }
 0x758   : > { %5275 = vmatpush.bf16.msrb.mxu1 %v7561_v30  ;;  %v7870_v30 = vld [vmem:[%s13227_s3 + $0x504] sm:$0xf]  ;;  %v12593_v21 = vpop.f32.mrf.mxu3 }
 0x75a   : > { %5329 = vmatpush.bf16.msrb.mxu2 %v7309_v43  ;;  %v7537_v43 = vor.u32 %v7935_v56, %v7536_v63 }
 0x75c   : > { %5276 = vmatpush.bf16.msrb.mxu1 %v7553_v35  ;;  %v12595_v35 = vpop.f32.mrf.mxu0 }
 0x75e   : > { %5330 = vmatpush.bf16.msrb.mxu2 %v7301_v59 }
 0x760   : > { %5466 = vmatmul.bf16.gmra.mxu0 %v12075_v8  ;;  %v7293_v8 = vor.u32 %v7872_v11, %v7290_v12  ;;  %5277 = vmatpush.bf16.msrb.mxu1 %v7545_v0  ;;  %v12609_v49 = vpop.f32.mrf.mxu3 }
 0x762   : > { %5331 = vmatpush.bf16.msrb.mxu2 %v7293_v8 }
 0x764   : > { %5417 = vmatmul.bf16.gmra.mxu3 %v12287_v31  ;;  %v7282_v31 = vld [vmem:[%s13227_s3 + $0x508] sm:$0xf0]  ;;  %5278 = vmatpush.bf16.msrb.mxu1 %v7537_v43  ;;  %v12611_v0 = vpop.f32.mrf.mxu0 }
 0x765   : > { %v7285_v20 = vor.u32 %v7870_v30, %v7282_v31 }
 0x767   : > { %5098 = vmatmul.bf16.gmra.mxu1 %v12355_v17  ;;  %5152 = vmatmul.bf16.gmra.mxu2 %v12362_v53 }
 0x768   : > { %5332 = vmatpush.bf16.msrb.mxu2 %v7285_v20  ;;  %v12619_v30 = vpop.f32.mrf.mxu3 }
 0x76c   : > { %v12622_v31 = vpop.f32.mrf.mxu0 }
 0x770   : > { %5471 = vmatmul.bf16.gmra.mxu0 %v12194_v2 }
 0x774   : > { %v5064_v59 = vpop.f32.mrf.mxu1  ;;  %5422 = vmatmul.bf16.gmra.mxu3 %v12362_v53 }
 0x775   : > { %v5065_v2 = vadd.f32 %v5064_v59, %v12604_v46 }
 0x777   : > { %5103 = vmatmul.bf16.gmra.mxu1 %v12412_v32  ;;  %5157 = vmatmul.bf16.gmra.mxu2 %v12423_v54 }
 0x77a   : > { %v5118_v11 = vpop.f32.mrf.mxu2 }
 0x77b   : > { %v12613_v12 = vadd.f32 %v5118_v11, %v5065_v2  ;;  %v12629_v11 = vpop.f32.mrf.mxu0 }
 0x77c   : > { %v5066_v8 = vpop.f32.mrf.mxu1  ;;  %13549 = vst [vmem:[#allocation8_spill] sm:$0xff] %v12629_v11 }
 0x77d   : > { %v5067_v53 = vadd.f32 %v5066_v8, %v12604_v46 }
 0x780   : > { %5476 = vmatmul.bf16.gmra.mxu0 %v12343_v36 }
 0x782   : > { %v5120_v63 = vpop.f32.mrf.mxu2 }
 0x783   : > { %v12617_v56 = vadd.f32 %v5120_v63, %v5067_v53 }
 0x784   : > { %v5069_v43 = vpop.f32.mrf.mxu1  ;;  %5427 = vmatmul.bf16.gmra.mxu3 %v12423_v54 }
 0x785   : > { %v5070_v20 = vadd.f32 %v5069_v43, %v12604_v46 }
 0x787   : > { %5279 = vmatmul.bf16.vlgmr.msrb.gmra.mxu1 %v11854_v39  ;;  %5333 = vmatmul.bf16.vlgmr.msrb.gmra.mxu2 %v12407_v1 }
 0x78a   : > { %v5123_v59 = vpop.f32.mrf.mxu2 }
 0x78b   : > { %v12627_v36 = vadd.f32 %v5123_v59, %v5070_v20 }
 0x78c   : > { %v5071_v2 = vpop.f32.mrf.mxu1 }
 0x78d   : > { %v5072_v8 = vadd.f32 %v5071_v2, %v12604_v46 }
 0x790   : > { %5481 = vmatmul.bf16.gmra.mxu0 %v12395_v26 }
 0x792   : > { %v5125_v53 = vpop.f32.mrf.mxu2 }
 0x793   : > { %v12633_v54 = vadd.f32 %v5125_v53, %v5072_v8 }
 0x794   : > { %v5074_v63 = vpop.f32.mrf.mxu1 }
 0x795   : > { %v5075_v1 = vadd.f32 %v5074_v63, %v12604_v46 }
 0x797   : > { %5284 = vmatmul.bf16.gmra.mxu1 %v11898_v22  ;;  %5338 = vmatmul.bf16.gmra.mxu2 %v11871_v48 }
 0x79a   : > { %v5128_v43 = vpop.f32.mrf.mxu2 }
 0x79b   : > { %v12638_v20 = vadd.f32 %v5128_v43, %v5075_v1 }
 0x79c   : > { %v5076_v59 = vpop.f32.mrf.mxu1 }
 0x79d   : > { %v5077_v47 = vadd.f32 %v5076_v59, %v12604_v46 }
 0x7a2   : > { %v5130_v61 = vpop.f32.mrf.mxu2 }
 0x7a3   : > { %v12641_v26 = vadd.f32 %v5130_v61, %v5077_v47  ;;  %v7594_v47 = vld [vmem:[%s13227_s3 + $0x778] sm:$0xf0] }
 0x7a4   : > { %v5079_v2 = vpop.f32.mrf.mxu1 }
 0x7a5   : > { %v5080_v8 = vadd.f32 %v5079_v2, %v12604_v46 }
 0x7a7   : > { %5289 = vmatmul.bf16.gmra.mxu1 %v11945_v38  ;;  %5343 = vmatmul.bf16.gmra.mxu2 %v11912_v44  ;;  %v7948_v44 = vld [vmem:[%s13227_s3 + $0x774] sm:$0xf] }
 0x7a8   : > { %v7597_v61 = vor.u32 %v7948_v44, %v7594_v47 }
 0x7aa   : > { %v5133_v53 = vpop.f32.mrf.mxu2  ;;  %5541 = vmatpush.bf16.msra.mxu2 %v7597_v61 }
 0x7ab   : > { %v12646_v48 = vadd.f32 %v5133_v53, %v5080_v8 }
 0x7ac   : > { %v5081_v63 = vpop.f32.mrf.mxu1 }
 0x7ad   : > { %v5082_v1 = vadd.f32 %v5081_v63, %v12604_v46 }
 0x7b2   : > { %v5135_v43 = vpop.f32.mrf.mxu2 }
 0x7b3   : > { %v12649_v60 = vadd.f32 %v5135_v43, %v5082_v1  ;;  %v7530_v1 = vld [vmem:[%s13227_s3 + $0x6f8] sm:$0xf0] }
 0x7b4   : > { %v5084_v59 = vpop.f32.mrf.mxu1 }
 0x7b5   : > { %v5085_v2 = vadd.f32 %v5084_v59, %v12604_v46 }
 0x7b7   : > { %5294 = vmatmul.bf16.gmra.mxu1 %v11998_v52  ;;  %5348 = vmatmul.bf16.gmra.mxu2 %v11965_v24  ;;  %v7932_v24 = vld [vmem:[%s13227_s3 + $0x6f4] sm:$0xf] }
 0x7b8   : > { %v7533_v43 = vor.u32 %v7932_v24, %v7530_v1  ;;  %v7946_v24 = vld [vmem:[%s13227_s3 + $0x764] sm:$0xf] }
 0x7ba   : > { %v5138_v8 = vpop.f32.mrf.mxu2  ;;  %5487 = vmatpush.bf16.msra.mxu1 %v7533_v43 }
 0x7bb   : > { %v12660_v53 = vadd.f32 %v5138_v8, %v5085_v2 }
 0x7bc   : > { %v5086_v63 = vpop.f32.mrf.mxu1 }
 0x7bd   : > { %v5087_v34 = vadd.f32 %v5086_v63, %v12604_v46  ;;  %v7930_v63 = vld [vmem:[%s13227_s3 + $0x6e4] sm:$0xf] }
 0x7c2   : > { %v5140_v44 = vpop.f32.mrf.mxu2 }
 0x7c3   : > { %v12669_v47 = vadd.f32 %v5140_v44, %v5087_v34  ;;  %v7586_v34 = vld [vmem:[%s13227_s3 + $0x768] sm:$0xf0] }
 0x7c4   : > { %v5089_v59 = vpop.f32.mrf.mxu1  ;;  %v7589_v1 = vor.u32 %v7946_v24, %v7586_v34 }
 0x7c5   : > { %v5090_v61 = vadd.f32 %v5089_v59, %v12604_v46 }
 0x7c6   : > { %5542 = vmatpush.bf16.msra.mxu2 %v7589_v1 }
 0x7c7   : > { %5299 = vmatmul.bf16.gmra.mxu1 %v12053_v45  ;;  %5353 = vmatmul.bf16.gmra.mxu2 %v12018_v33  ;;  %v7522_v33 = vld [vmem:[%s13227_s3 + $0x6e8] sm:$0xf0] }
 0x7c8   : > { %v7525_v43 = vor.u32 %v7930_v63, %v7522_v33  ;;  %v7944_v63 = vld [vmem:[%s13227_s3 + $0x754] sm:$0xf] }
 0x7c9   : > { %v7928_v33 = vld [vmem:[%s13227_s3 + $0x6d4] sm:$0xf] }
 0x7ca   : > { %v5143_v2 = vpop.f32.mrf.mxu2  ;;  %5488 = vmatpush.bf16.msra.mxu1 %v7525_v43 }
 0x7cb   : > { %v12674_v8 = vadd.f32 %v5143_v2, %v5090_v61 }
 0x7cc   : > { %v5091_v11 = vpop.f32.mrf.mxu1 }
 0x7cd   : > { %v5092_v44 = vadd.f32 %v5091_v11, %v12604_v46  ;;  %v7578_v11 = vld [vmem:[%s13227_s3 + $0x758] sm:$0xf0] }
 0x7ce   : > { %v7581_v1 = vor.u32 %v7944_v63, %v7578_v11  ;;  %v7506_v63 = vld [vmem:[%s13227_s3 + $0x6c8] sm:$0xf0] }
 0x7d0   : > { %5543 = vmatpush.bf16.msra.mxu2 %v7581_v1  ;;  %v7570_v1 = vld [vmem:[%s13227_s3 + $0x748] sm:$0xf0] }
 0x7d2   : > { %v5145_v59 = vpop.f32.mrf.mxu2 }
 0x7d3   : > { %v12689_v61 = vadd.f32 %v5145_v59, %v5092_v44 }
 0x7d4   : > { %v5094_v2 = vpop.f32.mrf.mxu1 }
 0x7d5   : > { %v5095_v45 = vadd.f32 %v5094_v2, %v12604_v46 }
 0x7d7   : > { %5304 = vmatmul.bf16.gmra.mxu1 %v12175_v40  ;;  %5358 = vmatmul.bf16.gmra.mxu2 %v12085_v10  ;;  %v7514_v10 = vld [vmem:[%s13227_s3 + $0x6d8] sm:$0xf0] }
 0x7da   : > { %v5148_v24 = vpop.f32.mrf.mxu2 }
 0x7db   : > { %v12694_v34 = vadd.f32 %v5148_v24, %v5095_v45  ;;  %v7517_v45 = vor.u32 %v7928_v33, %v7514_v10  ;;  %v7926_v24 = vld [vmem:[%s13227_s3 + $0x6c4] sm:$0xf]  ;;  %v7498_v33 = vld [vmem:[%s13227_s3 + $0x6b8] sm:$0xf0] }
 0x7dc   : > { %v5096_v62 = vpop.f32.mrf.mxu1  ;;  %v7509_v11 = vor.u32 %v7926_v24, %v7506_v63 }
 0x7dd   : > { %v5097_v43 = vadd.f32 %v5096_v62, %v12604_v46  ;;  %5489 = vmatpush.bf16.msra.mxu1 %v7517_v45  ;;  %v7942_v62 = vld [vmem:[%s13227_s3 + $0x744] sm:$0xf] }
 0x7de   : > { %v7573_v45 = vor.u32 %v7942_v62, %v7570_v1  ;;  %v7490_v62 = vld [vmem:[%s13227_s3 + $0x6a8] sm:$0xf0] }
 0x7e0   : > { %5544 = vmatpush.bf16.msra.mxu2 %v7573_v45 }
 0x7e1   : > { %5490 = vmatpush.bf16.msra.mxu1 %v7509_v11  ;;  %v7938_v11 = vld [vmem:[%s13227_s3 + $0x724] sm:$0xf] }
 0x7e2   : > { %v5150_v44 = vpop.f32.mrf.mxu2 }
 0x7e3   : > { %v12709_v59 = vadd.f32 %v5150_v44, %v5097_v43  ;;  %v7940_v43 = vld [vmem:[%s13227_s3 + $0x734] sm:$0xf]  ;;  %v7562_v44 = vld [vmem:[%s13227_s3 + $0x738] sm:$0xf0] }
 0x7e4   : > { %v5099_v2 = vpop.f32.mrf.mxu1  ;;  %v7565_v40 = vor.u32 %v7940_v43, %v7562_v44  ;;  %v7936_v43 = vld [vmem:[%s13227_s3 + $0x714] sm:$0xf]  ;;  %v7546_v44 = vld [vmem:[%s13227_s3 + $0x718] sm:$0xf0] }
 0x7e5   : > { %13550 = vst [vmem:[#allocation9_spill] sm:$0xff] %v12709_v59  ;;  %v5100_v10 = vadd.f32 %v5099_v2, %v12604_v46  ;;  %v7922_v2 = vld [vmem:[%s13227_s3 + $0x6a4] sm:$0xf] }
 0x7e6   : > { %5545 = vmatpush.bf16.msra.mxu2 %v7565_v40  ;;  %v7493_v1 = vor.u32 %v7922_v2, %v7490_v62  ;;  %v7920_v40 = vld [vmem:[%s13227_s3 + $0x694] sm:$0xf] }
 0x7e7   : > { %5309 = vmatmul.bf16.gmra.mxu1 %v12324_v51  ;;  %5363 = vmatmul.bf16.gmra.mxu2 %v12235_v23  ;;  %v7924_v23 = vld [vmem:[%s13227_s3 + $0x6b4] sm:$0xf] }
 0x7e8   : > { %v7501_v63 = vor.u32 %v7924_v23, %v7498_v33  ;;  %v7554_v23 = vld [vmem:[%s13227_s3 + $0x728] sm:$0xf0]  ;;  %v7482_v33 = vld [vmem:[%s13227_s3 + $0x698] sm:$0xf0] }
 0x7e9   : > { %v7557_v45 = vor.u32 %v7938_v11, %v7554_v23  ;;  %v7474_v11 = vld [vmem:[%s13227_s3 + $0x688] sm:$0xf0] }
 0x7ea   : > { %v5153_v24 = vpop.f32.mrf.mxu2  ;;  %5491 = vmatpush.bf16.msra.mxu1 %v7501_v63  ;;  %v7485_v63 = vor.u32 %v7920_v40, %v7482_v33  ;;  %v7538_v40 = vld [vmem:[%s13227_s3 + $0x708] sm:$0xf0] }
 0x7eb   : > { %v12738_v51 = vadd.f32 %v5153_v24, %v5100_v10  ;;  %5546 = vmatpush.bf16.msra.mxu2 %v7557_v45 }
 0x7ec   : > { %v5101_v59 = vpop.f32.mrf.mxu1 }
 0x7ed   : > { %13551 = vst [vmem:[#allocation10_spill] sm:$0xff] %v12738_v51  ;;  %v5102_v10 = vadd.f32 %v5101_v59, %v12604_v46  ;;  %v7549_v51 = vor.u32 %v7936_v43, %v7546_v44  ;;  %v7918_v59 = vld [vmem:[%s13227_s3 + $0x684] sm:$0xf]  ;;  %v5173_v44 = vadd.f32 %v12442_v13, %v12613_v12 }
 0x7ee   : > { %5492 = vmatpush.bf16.msra.mxu1 %v7493_v1  ;;  %v7934_v1 = vld [vmem:[%s13227_s3 + $0x704] sm:$0xf]  ;;  %v7477_v23 = vor.u32 %v7918_v59, %v7474_v11 }
 0x7ef   : > { %5547 = vmatpush.bf16.msra.mxu2 %v7549_v51  ;;  %v7541_v33 = vor.u32 %v7934_v1, %v7538_v40  ;;  %v5227_v59 = vadd.f32 %v12447_v27, %v5173_v44  ;;  %v5178_v27 = vadd.f32 %v12458_v18, %v12627_v36  ;;  %v5202_v44 = vpop.f32.mrf.mxu3 }
 0x7f1   : > { %v5232_v40 = vadd.f32 %v12472_v15, %v5178_v27  ;;  %v5183_v15 = vadd.f32 %v12488_v3, %v12638_v20 }
 0x7f2   : > { %v5155_v24 = vpop.f32.mrf.mxu2  ;;  %5493 = vmatpush.bf16.msra.mxu1 %v7485_v63 }
 0x7f3   : > { %v12765_v2 = vadd.f32 %v5155_v24, %v5102_v10  ;;  %5548 = vmatpush.bf16.msra.mxu2 %v7541_v33 }
 0x7f4   : > { %v5104_v62 = vpop.f32.mrf.mxu1 }
 0x7f6   : > { %5494 = vmatpush.bf16.msra.mxu1 %v7477_v23 }
 0x7f7   : > { %5314 = vmatmul.bf16.gmra.mxu1 %v12392_v41  ;;  %5368 = vmatmul.bf16.gmra.mxu2 %v12355_v17  ;;  %v5105_v17 = vadd.f32 %v5104_v62, %v12604_v46  ;;  %v5175_v62 = vadd.f32 %v12445_v4, %v12617_v56 }
 0x7f9   : > { %v5229_v13 = vadd.f32 %v12466_v9, %v5175_v62 }
 0x7fa   : > { %v5158_v10 = vpop.f32.mrf.mxu2 }
 0x7fb   : > { %v12782_v45 = vadd.f32 %v5158_v10, %v5105_v17  ;;  %v5237_v10 = vadd.f32 %v12498_v57, %v5183_v15  ;;  %v5188_v57 = vadd.f32 %v12513_v19, %v12646_v48 }
 0x7fc   : > { %v5106_v43 = vpop.f32.mrf.mxu1 }
 0x7fd   : > { %v5107_v24 = vadd.f32 %v5106_v43, %v12604_v46 }
 0x802   : > { %v5160_v51 = vpop.f32.mrf.mxu2 }
 0x803   : > { %v12787_v63 = vadd.f32 %v5160_v51, %v5107_v24  ;;  %v5242_v24 = vadd.f32 %v12546_v42, %v5188_v57  ;;  %v5204_v51 = vpop.f32.mrf.mxu3  ;;  %v5193_v42 = vadd.f32 %v12583_v50, %v12660_v53 }
 0x804   : > { %v5280_v11 = vpop.f32.mrf.mxu1 }
 0x805   : > { %v12790_v41 = vadd.f32 %v5280_v11, %v5227_v59 }
 0x807   : > { %5319 = vmatmul.bf16.gmra.mxu1 %v12425_v55  ;;  %5373 = vmatmul.bf16.gmra.mxu2 %v12412_v32  ;;  %v5180_v32 = vadd.f32 %v12469_v5, %v12633_v54 }
 0x809   : > { %v5234_v56 = vadd.f32 %v12490_v29, %v5180_v32 }
 0x80a   : > { %v12796_v1 = vpop.f32.mrf.mxu2 }
 0x80c   : > { %v5282_v46 = vpop.f32.mrf.mxu1 }
 0x80d   : > { %v12799_v12 = vadd.f32 %v5282_v46, %v5229_v13  ;;  %v5195_v13 = vadd.f32 %v12593_v21, %v12669_v47 }
 0x80f   : > { %v5249_v50 = vadd.f32 %v12611_v0, %v5195_v13  ;;  %v13553_v0 = vld [vmem:[#allocation24_spill] sm:$0xff] }
 0x812   : > { %v12803_v23 = vpop.f32.mrf.mxu2 }
 0x814   : > { %v5285_v17 = vpop.f32.mrf.mxu1 }
 0x815   : > { %v12806_v4 = vadd.f32 %v5285_v17, %v5232_v40 }
 0x817   : > { %5495 = vmatmul.bf16.vlgmr.msra.gmra.mxu1 %v11850_v6  ;;  %5549 = vmatmul.bf16.vlgmr.msra.gmra.mxu2 %v11854_v39  ;;  %v5185_v6 = vadd.f32 %v12496_v14, %v12641_v26 }
 0x819   : > { %v5239_v29 = vadd.f32 %v12515_v37, %v5185_v6  ;;  %v5203_v6 = vadd.f32 %v5202_v44, %v12694_v34  ;;  %v7957_v34 = vld [vmem:[%s13229_s5 + $0x174] sm:$0xf0] }
 0x81a   : > { %v12812_v9 = vpop.f32.mrf.mxu2 }
 0x81c   : > { %v5287_v33 = vpop.f32.mrf.mxu1 }
 0x81d   : > { %v12815_v18 = vadd.f32 %v5287_v33, %v5234_v56  ;;  %v13552_v56 = vld [vmem:[#allocation50_spill] sm:$0xff] }
 0x822   : > { %v12819_v36 = vpop.f32.mrf.mxu2 }
 0x824   : > { %v5290_v43 = vpop.f32.mrf.mxu1 }
 0x825   : > { %v12822_v5 = vadd.f32 %v5290_v43, %v5237_v10 }
 0x827   : > { %5500 = vmatmul.bf16.gmra.mxu1 %v11892_v25  ;;  %5554 = vmatmul.bf16.gmra.mxu2 %v11898_v22  ;;  %v5256_v25 = vpop.f32.mrf.mxu0  ;;  %v5190_v22 = vadd.f32 %v12544_v58, %v12649_v60  ;;  %v5247_v60 = vadd.f32 %v12595_v35, %v5193_v42  ;;  %v5198_v35 = vadd.f32 %v12609_v49, %v12674_v8  ;;  %v13554_v49 = vld [vmem:[#allocation8_spill] sm:$0xff] }
 0x829   : > { %v5244_v19 = vadd.f32 %v12588_v28, %v5190_v22  ;;  %v5252_v21 = vadd.f32 %v12622_v31, %v5198_v35  ;;  %v13556_v22 = vld [vmem:[#allocation26_spill] sm:$0xff] }
 0x82a   : > { %v12828_v39 = vpop.f32.mrf.mxu2 }
 0x82c   : > { %v5292_v54 = vpop.f32.mrf.mxu1 }
 0x82d   : > { %v12831_v3 = vadd.f32 %v5292_v54, %v5239_v29  ;;  %v5257_v54 = vadd.f32 %v5256_v25, %v5203_v6 }
 0x82f   : > { %v5258_v11 = vpop.f32.mrf.mxu0 }
 0x832   : > { %v12835_v20 = vpop.f32.mrf.mxu2 }
 0x834   : > { %v5295_v14 = vpop.f32.mrf.mxu1 }
 0x835   : > { %v12838_v26 = vadd.f32 %v5295_v14, %v5242_v24  ;;  %v13555_v24 = vld [vmem:[#allocation9_spill] sm:$0xff] }
 0x836   : > { %v5205_v14 = vadd.f32 %v5204_v51, %v13555_v24 }
 0x837   : > { %5505 = vmatmul.bf16.gmra.mxu1 %v11939_v16  ;;  %5559 = vmatmul.bf16.gmra.mxu2 %v11945_v38  ;;  %v5207_v38 = vpop.f32.mrf.mxu3  ;;  %v5261_v46 = vpop.f32.mrf.mxu0 }
 0x83a   : > { %v12844_v37 = vpop.f32.mrf.mxu2 }
 0x83c   : > { %v5297_v48 = vpop.f32.mrf.mxu1 }
 0x83d   : > { %v12847_v59 = vadd.f32 %v5297_v48, %v5244_v19  ;;  %v13557_v19 = vld [vmem:[#allocation28_spill] sm:$0xff]  ;;  %v7663_v48 = vld [vmem:[%s13229_s5 + $0x170] sm:$0xf] }
 0x83e   : > { %v7664_v44 = vor.u32 %v7957_v34, %v7663_v48 }
 0x83f   : > { %v5209_v40 = vpop.f32.mrf.mxu3 }
 0x840   : > { %6052 = vmatpush.bf16.msra.mxu3 %v7664_v44 }
 0x842   : > { %v12851_v62 = vpop.f32.mrf.mxu2 }
 0x844   : > { %v5300_v58 = vpop.f32.mrf.mxu1 }
 0x845   : > { %v12854_v16 = vadd.f32 %v5300_v58, %v5247_v60  ;;  %v5259_v60 = vadd.f32 %v5258_v11, %v5205_v14  ;;  %v7659_v11 = vld [vmem:[%s13229_s5 + $0x160] sm:$0xf] }
 0x847   : > { %5510 = vmatmul.bf16.gmra.mxu1 %v11992_v7  ;;  %5564 = vmatmul.bf16.gmra.mxu2 %v11998_v52  ;;  %v5263_v7 = vpop.f32.mrf.mxu0  ;;  %v5200_v52 = vadd.f32 %v12619_v30, %v12689_v61  ;;  %v5212_v15 = vpop.f32.mrf.mxu3 }
 0x848   : > { %v5213_v24 = vadd.f32 %v5212_v15, %v12782_v45 }
 0x849   : > { %v5254_v8 = vadd.f32 %v13554_v49, %v5200_v52  ;;  %v13559_v49 = vld [vmem:[#allocation30_spill] sm:$0xff] }
 0x84a   : > { %v12860_v28 = vpop.f32.mrf.mxu2 }
 0x84c   : > { %v5302_v53 = vpop.f32.mrf.mxu1 }
 0x84d   : > { %v12863_v27 = vadd.f32 %v5302_v53, %v5249_v50  ;;  %v13558_v50 = vld [vmem:[#allocation10_spill] sm:$0xff] }
 0x84e   : > { %v5208_v53 = vadd.f32 %v5207_v38, %v13558_v50  ;;  %v7956_v38 = vld [vmem:[%s13229_s5 + $0x164] sm:$0xf0]  ;;  %v13562_v50 = vld [vmem:[#allocation19_spill] sm:$0xff] }
 0x84f   : > { %v5266_v31 = vpop.f32.mrf.mxu0  ;;  %v5214_v30 = vpop.f32.mrf.mxu3 }
 0x852   : > { %v12867_v17 = vpop.f32.mrf.mxu2 }
 0x854   : > { %v5305_v47 = vpop.f32.mrf.mxu1 }
 0x855   : > { %v12870_v32 = vadd.f32 %v5305_v47, %v5252_v21  ;;  %v5262_v47 = vadd.f32 %v5261_v46, %v5208_v53  ;;  %v13563_v53 = vld [vmem:[#allocation6_spill] sm:$0xff] }
 0x857   : > { %5515 = vmatmul.bf16.gmra.mxu1 %v13552_v56  ;;  %5569 = vmatmul.bf16.gmra.mxu2 %v13553_v0  ;;  %v5268_v25 = vpop.f32.mrf.mxu0  ;;  %v5388_v13 = vpop.f32.mrf.mxu3  ;;  %v5210_v0 = vadd.f32 %v5209_v40, %v12765_v2 }
 0x85a   : > { %v12876_v33 = vpop.f32.mrf.mxu2 }
 0x85c   : > { %v5307_v10 = vpop.f32.mrf.mxu1 }
 0x85d   : > { %v12879_v43 = vadd.f32 %v5307_v10, %v5254_v8  ;;  %v13560_v8 = vld [vmem:[#allocation33_spill] sm:$0xff]  ;;  %v7660_v10 = vor.u32 %v7956_v38, %v7659_v11 }
 0x85f   : > { %v5442_v21 = vpop.f32.mrf.mxu0  ;;  %v5390_v6 = vpop.f32.mrf.mxu3  ;;  %6053 = vmatpush.bf16.msra.mxu3 %v7660_v10 }
 0x862   : > { %v12882_v29 = vpop.f32.mrf.mxu2 }
 0x864   : > { %v5310_v57 = vpop.f32.mrf.mxu1 }
 0x865   : > { %v12884_v61 = vadd.f32 %v5310_v57, %v5257_v54  ;;  %v5264_v54 = vadd.f32 %v5263_v7, %v5210_v0 }
 0x867   : > { %5520 = vmatmul.bf16.gmra.mxu1 %v13556_v22  ;;  %5574 = vmatmul.bf16.gmra.mxu2 %v13557_v19  ;;  %v5444_v2 = vpop.f32.mrf.mxu0  ;;  %v5393_v22 = vpop.f32.mrf.mxu3  ;;  %v5267_v19 = vadd.f32 %v5266_v31, %v5213_v24  ;;  %v7954_v24 = vld [vmem:[%s13229_s5 + $0x144] sm:$0xf0] }
 0x86a   : > { %v12895_v42 = vpop.f32.mrf.mxu2 }
 0x86c   : > { %v5312_v58 = vpop.f32.mrf.mxu1 }
 0x86d   : > { %v12897_v51 = vadd.f32 %v5312_v58, %v5259_v60  ;;  %v5215_v60 = vadd.f32 %v5214_v30, %v12787_v63  ;;  %v13561_v58 = vld [vmem:[#allocation17_spill] sm:$0xff] }
 0x86f   : > { %v5447_v44 = vpop.f32.mrf.mxu0  ;;  %v5269_v45 = vadd.f32 %v5268_v25, %v5215_v60  ;;  %v7955_v25 = vld [vmem:[%s13229_s5 + $0x154] sm:$0xf0] }
 0x872   : > { %v12900_v35 = vpop.f32.mrf.mxu2 }
 0x874   : > { %v5315_v52 = vpop.f32.mrf.mxu1 }
 0x875   : > { %v12902_v56 = vadd.f32 %v5315_v52, %v5262_v47  ;;  %v12928_v47 = vperm.slane %v13563_v53, 1  ;;  %v5395_v52 = vpop.f32.mrf.mxu3 }
 0x877   : > { %5525 = vmatmul.bf16.gmra.mxu1 %v13559_v49  ;;  %5579 = vmatmul.bf16.gmra.mxu2 %v13560_v8  ;;  %v5335_v31 = vadd.f32 %v12796_v1, %v12928_v47  ;;  %v12934_v49 = vpop.f32.mrf.mxu0  ;;  %v7655_v8 = vld [vmem:[%s13229_s5 + $0x150] sm:$0xf]  ;;  %v5337_v1 = vadd.f32 %v12803_v23, %v12928_v47 }
 0x878   : > { %v7656_v38 = vor.u32 %v7955_v25, %v7655_v8  ;;  %v7952_v8 = vld [vmem:[%s13229_s5 + $0x124] sm:$0xf0] }
 0x879   : > { %v5389_v30 = vadd.f32 %v5388_v13, %v5335_v31  ;;  %v7651_v13 = vld [vmem:[%s13229_s5 + $0x140] sm:$0xf]  ;;  %v5391_v23 = vadd.f32 %v5390_v6, %v5337_v1  ;;  %v5340_v31 = vadd.f32 %v12812_v9, %v12928_v47  ;;  %v7639_v9 = vld [vmem:[%s13229_s5 + $0x110] sm:$0xf] }
 0x87a   : > { %v12913_v46 = vpop.f32.mrf.mxu2  ;;  %6054 = vmatpush.bf16.msra.mxu3 %v7656_v38  ;;  %v7643_v6 = vld [vmem:[%s13229_s5 + $0x120] sm:$0xf] }
 0x87b   : > { %v7644_v25 = vor.u32 %v7952_v8, %v7643_v6 }
 0x87c   : > { %v5317_v57 = vpop.f32.mrf.mxu1 }
 0x87d   : > { %v12915_v40 = vadd.f32 %v5317_v57, %v5264_v54  ;;  %v12944_v10 = vpop.f32.mrf.mxu3  ;;  %v5443_v54 = vadd.f32 %v5442_v21, %v5389_v30  ;;  %v13564_v57 = vld [vmem:[#allocation5_spill] sm:$0xff]  ;;  %v5445_v30 = vadd.f32 %v5444_v2, %v5391_v23  ;;  %v7951_v2 = vld [vmem:[%s13229_s5 + $0x114] sm:$0xf0] }
 0x882   : > { %v12918_v14 = vpop.f32.mrf.mxu2 }
 0x884   : > { %v5320_v48 = vpop.f32.mrf.mxu1 }
 0x885   : > { %v12920_v34 = vadd.f32 %v5320_v48, %v5267_v19  ;;  %v7652_v19 = vor.u32 %v7954_v24, %v7651_v13  ;;  %v7640_v24 = vor.u32 %v7951_v2, %v7639_v9 }
 0x887   : > { %5530 = vmatmul.bf16.gmra.mxu1 %v13561_v58  ;;  %5584 = vmatmul.bf16.gmra.mxu2 %v13562_v50  ;;  %v12956_v58 = vpop.f32.mrf.mxu0  ;;  %v7953_v50 = vld [vmem:[%s13229_s5 + $0x134] sm:$0xf0] }
 0x888   : > { %6055 = vmatpush.bf16.msra.mxu3 %v7652_v19 }
 0x88a   : > { %v12925_v7 = vpop.f32.mrf.mxu2 }
 0x88c   : > { %v5322_v15 = vpop.f32.mrf.mxu1 }
 0x88d   : > { %v12930_v0 = vadd.f32 %v5322_v15, %v5269_v45 }
 0x892   : > { %v12936_v63 = vpop.f32.mrf.mxu2 }
 0x894   : > { %v5496_v11 = vpop.f32.mrf.mxu1 }
 0x895   : > { %v5497_v48 = vadd.f32 %v5496_v11, %v5443_v54  ;;  %v12972_v11 = vpop.f32.mrf.mxu3  ;;  %v5394_v54 = vadd.f32 %v5393_v22, %v5340_v31  ;;  %v5342_v22 = vadd.f32 %v12819_v36, %v12928_v47 }
 0x897   : > { %5535 = vmatmul.bf16.gmra.mxu1 %v13564_v57  ;;  %5589 = vmatmul.bf16.gmra.mxu2 %v12425_v55  ;;  %v7647_v55 = vld [vmem:[%s13229_s5 + $0x130] sm:$0xf] }
 0x898   : > { %v7648_v45 = vor.u32 %v7953_v50, %v7647_v55  ;;  %v7635_v55 = vld [vmem:[%s13229_s5 + $0x100] sm:$0xf]  ;;  %v7950_v50 = vld [vmem:[%s13229_s5 + $0x104] sm:$0xf0] }
 0x89a   : > { %v5550_v60 = vpop.f32.mrf.mxu2  ;;  %6056 = vmatpush.bf16.msra.mxu3 %v7648_v45  ;;  %v7636_v45 = vor.u32 %v7950_v50, %v7635_v55 }
 0x89b   : > { %v5551_v21 = vadd.f32 %v5550_v60, %v5497_v48  ;;  %v12980_v48 = vpop.f32.mrf.mxu0 }
 0x89c   : > { %v5498_v53 = vpop.f32.mrf.mxu1 }
 0x89d   : > { %v7598_v15 = vmul.f32 -1.442695, %v5551_v21  ;;  %v5499_v38 = vadd.f32 %v5498_v53, %v5445_v30  ;;  %v5448_v21 = vadd.f32 %v5447_v44, %v5394_v54  ;;  %v12990_v31 = vpop.f32.mrf.mxu3  ;;  %v5396_v30 = vadd.f32 %v5395_v52, %v5342_v22 }
 0x89e   : > { %6057 = vmatpush.bf16.msra.mxu3 %v7644_v25 }
 0x89f   : > { %8233 = vpow2.f32 %v7598_v15  ;;  %v5450_v9 = vadd.f32 %v12934_v49, %v5396_v30 }
 0x8a2   : > { %v5552_v1 = vpop.f32.mrf.mxu2  ;;  %6058 = vmatpush.bf16.msra.mxu3 %v7640_v24 }
 0x8a3   : > { %v5553_v57 = vadd.f32 %v5552_v1, %v5499_v38  ;;  %v5345_v38 = vadd.f32 %v12828_v39, %v12928_v47  ;;  %v12994_v54 = vpop.f32.mrf.mxu0 }
 0x8a4   : > { %v5501_v13 = vpop.f32.mrf.mxu1 }
 0x8a5   : > { %v8234_v19 = vpop.eup %8233  ;;  %v7599_v60 = vmul.f32 -1.442695, %v5553_v57  ;;  %v5502_v53 = vadd.f32 %v5501_v13, %v5448_v21  ;;  %v5399_v52 = vadd.f32 %v12944_v10, %v5345_v38  ;;  %v12999_v50 = vpop.f32.mrf.mxu3 }
 0x8a6   : > { %v5667_v23 = vadd.f32 1.0, %v8234_v19  ;;  %6059 = vmatpush.bf16.msra.mxu3 %v7636_v45 }
 0x8a7   : > { %8235 = vpow2.f32 %v7599_v60  ;;  %v5453_v30 = vadd.f32 %v12956_v58, %v5399_v52 }
 0x8a8   : > { %8237 = vrcp.f32 %v5667_v23  ;;  %v5696_v24 = vand.u32 2147483648, %v5667_v23  ;;  %v5694_v22 = vand.u32 2147483647, %v5667_v23  ;;  %vm5690_vm3 = vweird.f32 %v5667_v23 }
 0x8aa   : > { %v5555_v15 = vpop.f32.mrf.mxu2  ;;  %vm5695_vm5 = vcmp.eq.f32.partialorder %v5694_v22, 8.507059e+37 }
 0x8ab   : > { %v5556_v6 = vadd.f32 %v5555_v15, %v5502_v53  ;;  %v5347_v15 = vadd.f32 %v12835_v20, %v12928_v47 }
 0x8ac   : > { %v5503_v36 = vpop.f32.mrf.mxu1 }
 0x8ad   : > { %v8236_v8 = vpop.eup %8235  ;;  %v7600_v44 = vmul.f32 -1.442695, %v5556_v6  ;;  %v5504_v13 = vadd.f32 %v5503_v36, %v5450_v9  ;;  %v5401_v20 = vadd.f32 %v12972_v11, %v5347_v15 }
 0x8ae   : > { %v8238_v25 = vpop.eup %8237  ;;  %v5668_v1 = vadd.f32 1.0, %v8236_v8 }
 0x8af   : > { %v5686_v57 = vmul.f32 %v8238_v25, %v5667_v23  ;;  %8239 = vpow2.f32 %v7600_v44  ;;  %vm5691_vm2 = vweird.f32 %v8238_v25  ;;  %v13007_v23 = vpop.f32.mrf.mxu0  ;;  %v5455_v11 = vadd.f32 %v12980_v48, %v5401_v20 }
 0x8b0   : > { %8241 = vrcp.f32 %v5668_v1  ;;  %vm5692_vm4 = vmor %vm5690_vm3, %vm5691_vm2  ;;  %v5709_v52 = vand.u32 2147483647, %v5668_v1  ;;  %vm5705_vm7 = vweird.f32 %v5668_v1 }
 0x8b1   : > { %v5687_v2 = vsub.f32 1.0, %v5686_v57  ;;  %8243 = vtanh.f32 %v12790_v41  ;;  %v5697_v41 = vor.u32 1.1754944e-38, %v5696_v24 }
 0x8b2   : > { %v5557_v19 = vpop.f32.mrf.mxu2  ;;  %vm5710_vm9 = vcmp.eq.f32.partialorder %v5709_v52, 8.507059e+37 }
 0x8b3   : > { %v5688_v60 = vmul.f32 %v8238_v25, %v5687_v2  ;;  %v5558_v39 = vadd.f32 %v5557_v19, %v5504_v13  ;;  %v5711_v2 = vand.u32 2147483648, %v5668_v1 }
 0x8b4   : > { %v5506_v21 = vpop.f32.mrf.mxu1 }
 0x8b5   : > { %v8240_v55 = vpop.eup %8239  ;;  %v5689_v53 = vadd.f32 %v8238_v25, %v5688_v60  ;;  %v7601_v49 = vmul.f32 -1.442695, %v5558_v39  ;;  %v5507_v57 = vadd.f32 %v5506_v21, %v5453_v30  ;;  %v5350_v21 = vadd.f32 %v12844_v37, %v12928_v47 }
 0x8b6   : > { %v8242_v45 = vpop.eup %8241  ;;  %v13003_v10 = vadd.f32 1.0, %v8240_v55  ;;  %v5712_v55 = vor.u32 1.1754944e-38, %v5711_v2 }
 0x8b7   : > { %v5701_v6 = vmul.f32 %v8242_v45, %v5668_v1  ;;  %8245 = vpow2.f32 %v7601_v49  ;;  %v5693_v36 = vsel %vm5692_vm4, %v8238_v25, %v5689_v53  ;;  %v8244_v8 = vpop.eup %8243  ;;  %vm5706_vm6 = vweird.f32 %v8242_v45  ;;  %v13016_v53 = vpop.f32.mrf.mxu3 }
 0x8b8   : > { %8247 = vrcp.f32 %v13003_v10  ;;  %v5698_v44 = vsel %vm5695_vm5, %v5697_v41, %v5693_v36  ;;  %vm5707_vm8 = vmor %vm5705_vm7, %vm5706_vm6  ;;  %v5404_v36 = vadd.f32 %v12990_v31, %v5350_v21  ;;  %v5724_v48 = vand.u32 2147483647, %v13003_v10 }
 0x8b9   : > { %v5702_v38 = vsub.f32 1.0, %v5701_v6  ;;  %v5955_v9 = vmul.f32 %v8244_v8, %v5698_v44  ;;  %8249 = vtanh.f32 %v12799_v12  ;;  %v5726_v44 = vand.u32 2147483648, %v13003_v10 }
 0x8ba   : > { %v5560_v13 = vpop.f32.mrf.mxu2  ;;  %vm5720_vm11 = vweird.f32 %v13003_v10  ;;  %v5352_v31 = vadd.f32 %v12851_v62, %v12928_v47  ;;  %vm5725_vm13 = vcmp.eq.f32.partialorder %v5724_v48, 8.507059e+37 }
 0x8bb   : > { %v5703_v58 = vmul.f32 %v8242_v45, %v5702_v38  ;;  %v5561_v24 = vadd.f32 %v5560_v13, %v5507_v57  ;;  %v13024_v38 = vpop.f32.mrf.mxu0 }
 0x8bc   : > { %v5508_v25 = vpop.f32.mrf.mxu1 }
 0x8bd   : > { %v8246_v19 = vpop.eup %8245  ;;  %v5704_v60 = vadd.f32 %v8242_v45, %v5703_v58  ;;  %v7602_v22 = vmul.f32 -1.442695, %v5561_v24  ;;  %v5509_v6 = vadd.f32 %v5508_v25, %v5455_v11  ;;  %v5458_v25 = vadd.f32 %v12994_v54, %v5404_v36 }
 0x8be   : > { %v8248_v39 = vpop.eup %8247  ;;  %v13013_v12 = vadd.f32 1.0, %v8246_v19  ;;  %v5727_v19 = vor.u32 1.1754944e-38, %v5726_v44  ;;  %v5406_v54 = vadd.f32 %v12999_v50, %v5352_v31 }
 0x8bf   : > { %v5716_v49 = vmul.f32 %v8248_v39, %v13003_v10  ;;  %8251 = vpow2.f32 %v7602_v22  ;;  %v5708_v15 = vsel %vm5707_vm8, %v8242_v45, %v5704_v60  ;;  %v8250_v41 = vpop.eup %8249  ;;  %vm5721_vm10 = vweird.f32 %v8248_v39  ;;  %v13034_v10 = vpop.f32.mrf.mxu3 }
 0x8c0   : > { %8253 = vrcp.f32 %v13013_v12  ;;  %v5713_v1 = vsel %vm5710_vm9, %v5712_v55, %v5708_v15  ;;  %vm5722_vm12 = vmor %vm5720_vm11, %vm5721_vm10  ;;  %v5741_v15 = vand.u32 2147483648, %v13013_v12  ;;  %vm5735_vm15 = vweird.f32 %v13013_v12 }
 0x8c1   : > { %v5717_v30 = vsub.f32 1.0, %v5716_v49  ;;  %v5956_v37 = vmul.f32 %v8250_v41, %v5713_v1  ;;  %8255 = vtanh.f32 %v12806_v4  ;;  %v5460_v44 = vadd.f32 %v13007_v23, %v5406_v54 }
 0x8c2   : > { %v5562_v8 = vpop.f32.mrf.mxu2 }
 0x8c3   : > { %v5563_v57 = vadd.f32 %v5562_v8, %v5509_v6  ;;  %v5973_v45 = vpack.c.bf16 %v5956_v37, %v5955_v9  ;;  %v5718_v20 = vmul.f32 %v8248_v39, %v5717_v30  ;;  %v13040_v37 = vpop.f32.mrf.mxu0 }
 0x8c4   : > { %v5511_v2 = vpop.f32.mrf.mxu1 }
 0x8c5   : > { %v8252_v13 = vpop.eup %8251  ;;  %v7603_v58 = vmul.f32 -1.442695, %v5563_v57  ;;  %6060 = vmatmul.bf16.vlgmr.msra.gmra.mxu3 %v5973_v45  ;;  %v5719_v52 = vadd.f32 %v8248_v39, %v5718_v20  ;;  %v5512_v11 = vadd.f32 %v5511_v2, %v5458_v25  ;;  %v5742_v57 = vor.u32 1.1754944e-38, %v5741_v15 }
 0x8c6   : > { %v8254_v4 = vpop.eup %8253  ;;  %v13029_v24 = vadd.f32 1.0, %v8252_v13 }
 0x8c7   : > { %v5731_v9 = vmul.f32 %v8254_v4, %v13013_v12  ;;  %8257 = vpow2.f32 %v7603_v58  ;;  %v5723_v60 = vsel %vm5722_vm12, %v8248_v39, %v5719_v52  ;;  %v8256_v22 = vpop.eup %8255  ;;  %vm5736_vm14 = vweird.f32 %v8254_v4 }
 0x8c8   : > { %8259 = vrcp.f32 %v13029_v24  ;;  %v5728_v21 = vsel %vm5725_vm13, %v5727_v19, %v5723_v60  ;;  %v5739_v39 = vand.u32 2147483647, %v13013_v12  ;;  %vm5737_vm0 = vmor %vm5735_vm15, %vm5736_vm14  ;;  %v5754_v23 = vand.u32 2147483647, %v13029_v24  ;;  %v5413_v19 = vpop.f32.mrf.mxu3 }
 0x8c9   : > { %v5732_v55 = vsub.f32 1.0, %v5731_v9  ;;  %v5957_v62 = vmul.f32 %v8256_v22, %v5728_v21  ;;  %8261 = vtanh.f32 %v12815_v18  ;;  %v5355_v18 = vadd.f32 %v12860_v28, %v12928_v47 }
 0x8ca   : > { %v5565_v49 = vpop.f32.mrf.mxu2  ;;  %vm5740_vm1 = vcmp.eq.f32.partialorder %v5739_v39, 8.507059e+37  ;;  %v5756_v25 = vand.u32 2147483648, %v13029_v24  ;;  %vm5750_vm3 = vweird.f32 %v13029_v24  ;;  %vm5755_vm5 = vcmp.eq.f32.partialorder %v5754_v23, 8.507059e+37 }
 0x8cb   : > { %v5566_v41 = vadd.f32 %v5565_v49, %v5512_v11  ;;  %v5733_v1 = vmul.f32 %v8254_v4, %v5732_v55  ;;  %v5409_v28 = vadd.f32 %v13016_v53, %v5355_v18  ;;  %v5357_v53 = vadd.f32 %v12867_v17, %v12928_v47 }
 0x8cc   : > { %v5513_v30 = vpop.f32.mrf.mxu1  ;;  %v5757_v15 = vor.u32 1.1754944e-38, %v5756_v25 }
 0x8cd   : > { %v8258_v6 = vpop.eup %8257  ;;  %v7604_v36 = vmul.f32 -1.442695, %v5566_v41  ;;  %v5734_v8 = vadd.f32 %v8254_v4, %v5733_v1  ;;  %v5514_v58 = vadd.f32 %v5513_v30, %v5460_v44  ;;  %v5463_v49 = vadd.f32 %v13024_v38, %v5409_v28 }
 0x8ce   : > { %v8260_v48 = vpop.eup %8259  ;;  %v13045_v50 = vadd.f32 1.0, %v8258_v6  ;;  %v5411_v17 = vadd.f32 %v13034_v10, %v5357_v53 }
 0x8cf   : > { %v5746_v45 = vmul.f32 %v8260_v48, %v13029_v24  ;;  %8263 = vpow2.f32 %v7604_v36  ;;  %v5738_v20 = vsel %vm5737_vm0, %v8254_v4, %v5734_v8  ;;  %v8262_v2 = vpop.eup %8261  ;;  %vm5751_vm2 = vweird.f32 %v8260_v48 }
 0x8d0   : > { %8265 = vrcp.f32 %v13045_v50  ;;  %v5743_v13 = vsel %vm5740_vm1, %v5742_v57, %v5738_v20  ;;  %vm5752_vm4 = vmor %vm5750_vm3, %vm5751_vm2  ;;  %v5771_v8 = vand.u32 2147483648, %v13045_v50  ;;  %v5415_v20 = vpop.f32.mrf.mxu3  ;;  %vm5765_vm7 = vweird.f32 %v13045_v50 }
 0x8d1   : > { %v5747_v12 = vsub.f32 1.0, %v5746_v45  ;;  %v5958_v52 = vmul.f32 %v8262_v2, %v5743_v13  ;;  %8267 = vtanh.f32 %v12822_v5 }
 0x8d2   : > { %v5567_v31 = vpop.f32.mrf.mxu2 }
 0x8d3   : > { %v5568_v9 = vadd.f32 %v5567_v31, %v5514_v58  ;;  %v5974_v4 = vpack.c.bf16 %v5958_v52, %v5957_v62  ;;  %v5748_v60 = vmul.f32 %v8260_v48, %v5747_v12  ;;  %v5467_v62 = vpop.f32.mrf.mxu0  ;;  %v5465_v58 = vadd.f32 %v13040_v37, %v5411_v17 }
 0x8d4   : > { %v5516_v22 = vpop.f32.mrf.mxu1  ;;  %v5772_v52 = vor.u32 1.1754944e-38, %v5771_v8 }
 0x8d5   : > { %v8264_v21 = vpop.eup %8263  ;;  %v7605_v55 = vmul.f32 -1.442695, %v5568_v9  ;;  %6064 = vmatmul.bf16.gmra.mxu3 %v5974_v4  ;;  %v5749_v11 = vadd.f32 %v8260_v48, %v5748_v60  ;;  %v5517_v6 = vadd.f32 %v5516_v22, %v5463_v49 }
 0x8d6   : > { %v8266_v5 = vpop.eup %8265  ;;  %v13057_v54 = vadd.f32 1.0, %v8264_v21 }
 0x8d7   : > { %v5761_v41 = vmul.f32 %v8266_v5, %v13045_v50  ;;  %8269 = vpow2.f32 %v7605_v55  ;;  %v5753_v1 = vsel %vm5752_vm4, %v8260_v48, %v5749_v11  ;;  %v8268_v39 = vpop.eup %8267  ;;  %vm5766_vm6 = vweird.f32 %v8266_v5 }
 0x8d8   : > { %8271 = vrcp.f32 %v13057_v54  ;;  %v5758_v24 = vsel %vm5755_vm5, %v5757_v15, %v5753_v1  ;;  %v5769_v48 = vand.u32 2147483647, %v13045_v50  ;;  %vm5767_vm8 = vmor %vm5765_vm7, %vm5766_vm6  ;;  %v5784_v37 = vand.u32 2147483647, %v13057_v54 }
 0x8d9   : > { %v5762_v30 = vsub.f32 1.0, %v5761_v41  ;;  %v5959_v36 = vmul.f32 %v8268_v39, %v5758_v24  ;;  %8273 = vtanh.f32 %v12831_v3  ;;  %v5360_v3 = vadd.f32 %v12876_v33, %v12928_v47 }
 0x8da   : > { %v5570_v38 = vpop.f32.mrf.mxu2  ;;  %vm5770_vm9 = vcmp.eq.f32.partialorder %v5769_v48, 8.507059e+37  ;;  %v5786_v21 = vand.u32 2147483648, %v13057_v54  ;;  %vm5780_vm11 = vweird.f32 %v13057_v54  ;;  %vm5785_vm13 = vcmp.eq.f32.partialorder %v5784_v37, 8.507059e+37 }
 0x8db   : > { %v5571_v18 = vadd.f32 %v5570_v38, %v5517_v6  ;;  %v5763_v44 = vmul.f32 %v8266_v5, %v5762_v30  ;;  %v5469_v50 = vpop.f32.mrf.mxu0  ;;  %v5414_v33 = vadd.f32 %v5413_v19, %v5360_v3  ;;  %v5418_v30 = vpop.f32.mrf.mxu3 }
 0x8dc   : > { %v5518_v57 = vpop.f32.mrf.mxu1  ;;  %v5787_v24 = vor.u32 1.1754944e-38, %v5786_v21 }
 0x8dd   : > { %v8270_v45 = vpop.eup %8269  ;;  %v7606_v2 = vmul.f32 -1.442695, %v5571_v18  ;;  %v5764_v13 = vadd.f32 %v8266_v5, %v5763_v44  ;;  %v5519_v4 = vadd.f32 %v5518_v57, %v5465_v58  ;;  %v5468_v39 = vadd.f32 %v5467_v62, %v5414_v33 }
 0x8de   : > { %v8272_v12 = vpop.eup %8271  ;;  %v13069_v10 = vadd.f32 1.0, %v8270_v45 }
 0x8df   : > { %v5776_v28 = vmul.f32 %v8272_v12, %v13057_v54  ;;  %8275 = vpow2.f32 %v7606_v2  ;;  %v5768_v31 = vsel %vm5767_vm8, %v8266_v5, %v5764_v13  ;;  %v8274_v23 = vpop.eup %8273  ;;  %vm5781_vm10 = vweird.f32 %v8272_v12 }
 0x8e0   : > { %8277 = vrcp.f32 %v13069_v10  ;;  %v5773_v25 = vsel %vm5770_vm9, %v5772_v52, %v5768_v31  ;;  %vm5782_vm12 = vmor %vm5780_vm11, %vm5781_vm10  ;;  %v5801_v62 = vand.u32 2147483648, %v13069_v10  ;;  %v5799_v2 = vand.u32 2147483647, %v13069_v10 }
 0x8e1   : > { %v5777_v9 = vsub.f32 1.0, %v5776_v28  ;;  %v5960_v60 = vmul.f32 %v8274_v23, %v5773_v25  ;;  %8279 = vtanh.f32 %v12838_v26  ;;  %v5362_v26 = vadd.f32 %v12882_v29, %v12928_v47 }
 0x8e2   : > { %v5572_v22 = vpop.f32.mrf.mxu2  ;;  %vm5795_vm15 = vweird.f32 %v13069_v10  ;;  %v5802_v31 = vor.u32 1.1754944e-38, %v5801_v62  ;;  %vm5800_vm1 = vcmp.eq.f32.partialorder %v5799_v2, 8.507059e+37 }
 0x8e3   : > { %v5573_v55 = vadd.f32 %v5572_v22, %v5519_v4  ;;  %v5975_v11 = vpack.c.bf16 %v5960_v60, %v5959_v36  ;;  %v5778_v5 = vmul.f32 %v8272_v12, %v5777_v9  ;;  %v5416_v29 = vadd.f32 %v5415_v20, %v5362_v26  ;;  %v5472_v48 = vpop.f32.mrf.mxu0  ;;  %v5420_v60 = vpop.f32.mrf.mxu3 }
 0x8e4   : > { %v5521_v53 = vpop.f32.mrf.mxu1 }
 0x8e5   : > { %v8276_v49 = vpop.eup %8275  ;;  %v7607_v15 = vmul.f32 -1.442695, %v5573_v55  ;;  %6069 = vmatmul.bf16.gmra.mxu3 %v5975_v11  ;;  %v5779_v41 = vadd.f32 %v8272_v12, %v5778_v5  ;;  %v5522_v8 = vadd.f32 %v5521_v53, %v5468_v39  ;;  %v5470_v28 = vadd.f32 %v5469_v50, %v5416_v29 }
 0x8e6   : > { %v8278_v1 = vpop.eup %8277  ;;  %v13080_v19 = vadd.f32 1.0, %v8276_v49 }
 0x8e7   : > { %v5791_v6 = vmul.f32 %v8278_v1, %v13069_v10  ;;  %8281 = vpow2.f32 %v7607_v15  ;;  %v5783_v36 = vsel %vm5782_vm12, %v8272_v12, %v5779_v41  ;;  %v8280_v17 = vpop.eup %8279  ;;  %vm5796_vm14 = vweird.f32 %v8278_v1 }
 0x8e8   : > { %8283 = vrcp.f32 %v13080_v19  ;;  %v5788_v38 = vsel %vm5785_vm13, %v5787_v24, %v5783_v36  ;;  %vm5797_vm0 = vmor %vm5795_vm15, %vm5796_vm14  ;;  %v5814_v50 = vand.u32 2147483647, %v13080_v19  ;;  %v5816_v21 = vand.u32 2147483648, %v13080_v19 }
 0x8e9   : > { %v5792_v54 = vsub.f32 1.0, %v5791_v6  ;;  %v5961_v18 = vmul.f32 %v8280_v17, %v5788_v38  ;;  %8285 = vtanh.f32 %v12847_v59  ;;  %v5365_v59 = vadd.f32 %v12895_v42, %v12928_v47 }
 0x8ea   : > { %v5575_v44 = vpop.f32.mrf.mxu2  ;;  %vm5810_vm3 = vweird.f32 %v13080_v19  ;;  %vm5815_vm5 = vcmp.eq.f32.partialorder %v5814_v50, 8.507059e+37 }
 0x8eb   : > { %v5576_v57 = vadd.f32 %v5575_v44, %v5522_v8  ;;  %v5793_v45 = vmul.f32 %v8278_v1, %v5792_v54  ;;  %v5419_v42 = vadd.f32 %v5418_v30, %v5365_v59  ;;  %v5474_v15 = vpop.f32.mrf.mxu0  ;;  %v5817_v30 = vor.u32 1.1754944e-38, %v5816_v21  ;;  %v5423_v44 = vpop.f32.mrf.mxu3 }
 0x8ec   : > { %v5523_v13 = vpop.f32.mrf.mxu1 }
 0x8ed   : > { %v8282_v12 = vpop.eup %8281  ;;  %v7608_v3 = vmul.f32 -1.442695, %v5576_v57  ;;  %v5794_v58 = vadd.f32 %v8278_v1, %v5793_v45  ;;  %v5524_v33 = vadd.f32 %v5523_v13, %v5470_v28  ;;  %v5473_v24 = vadd.f32 %v5472_v48, %v5419_v42 }
 0x8ee   : > { %v8284_v52 = vpop.eup %8283  ;;  %v13090_v20 = vadd.f32 1.0, %v8282_v12 }
 0x8ef   : > { %v5806_v23 = vmul.f32 %v8284_v52, %v13080_v19  ;;  %8287 = vpow2.f32 %v7608_v3  ;;  %v5798_v25 = vsel %vm5797_vm0, %v8278_v1, %v5794_v58  ;;  %v8286_v9 = vpop.eup %8285  ;;  %vm5811_vm2 = vweird.f32 %v8284_v52 }
 0x8f0   : > { %8289 = vrcp.f32 %v13090_v20  ;;  %v5803_v4 = vsel %vm5800_vm1, %v5802_v31, %v5798_v25  ;;  %vm5812_vm4 = vmor %vm5810_vm3, %vm5811_vm2  ;;  %v5831_v29 = vand.u32 2147483648, %v13090_v20  ;;  %v5829_v57 = vand.u32 2147483647, %v13090_v20 }
 0x8f1   : > { %v5807_v10 = vsub.f32 1.0, %v5806_v23  ;;  %v5962_v22 = vmul.f32 %v8286_v9, %v5803_v4  ;;  %8291 = vtanh.f32 %v12854_v16  ;;  %v5367_v16 = vadd.f32 %v12900_v35, %v12928_v47 }
 0x8f2   : > { %v5577_v37 = vpop.f32.mrf.mxu2  ;;  %vm5825_vm7 = vweird.f32 %v13090_v20  ;;  %v5832_v59 = vor.u32 1.1754944e-38, %v5831_v29  ;;  %vm5830_vm9 = vcmp.eq.f32.partialorder %v5829_v57, 8.507059e+37  ;;  %v5375_v57 = vadd.f32 %v12925_v7, %v12928_v47 }
 0x8f3   : > { %v5578_v55 = vadd.f32 %v5577_v37, %v5524_v33  ;;  %v5976_v11 = vpack.c.bf16 %v5962_v22, %v5961_v18  ;;  %v5808_v5 = vmul.f32 %v8284_v52, %v5807_v10  ;;  %v5421_v35 = vadd.f32 %v5420_v60, %v5367_v16  ;;  %v5477_v28 = vpop.f32.mrf.mxu0 }
 0x8f4   : > { %v5526_v53 = vpop.f32.mrf.mxu1 }
 0x8f5   : > { %v8288_v49 = vpop.eup %8287  ;;  %v7609_v41 = vmul.f32 -1.442695, %v5578_v55  ;;  %6074 = vmatmul.bf16.gmra.mxu3 %v5976_v11  ;;  %v5809_v1 = vadd.f32 %v8284_v52, %v5808_v5  ;;  %v5527_v19 = vadd.f32 %v5526_v53, %v5473_v24  ;;  %v5425_v11 = vpop.f32.mrf.mxu3 }
 0x8f6   : > { %v8290_v26 = vpop.eup %8289  ;;  %v13100_v39 = vadd.f32 1.0, %v8288_v49 }
 0x8f7   : > { %v5821_v6 = vmul.f32 %v8290_v26, %v13090_v20  ;;  %8293 = vpow2.f32 %v7609_v41  ;;  %v5813_v36 = vsel %vm5812_vm4, %v8284_v52, %v5809_v1  ;;  %v8292_v17 = vpop.eup %8291  ;;  %vm5826_vm6 = vweird.f32 %v8290_v26 }
 0x8f8   : > { %8295 = vrcp.f32 %v13100_v39  ;;  %v5818_v38 = vsel %vm5815_vm5, %v5817_v30, %v5813_v36  ;;  %v5475_v52 = vadd.f32 %v5474_v15, %v5421_v35  ;;  %vm5827_vm8 = vmor %vm5825_vm7, %vm5826_vm6  ;;  %v5844_v33 = vand.u32 2147483647, %v13100_v39 }
 0x8f9   : > { %v5822_v54 = vsub.f32 1.0, %v5821_v6  ;;  %v5963_v8 = vmul.f32 %v8292_v17, %v5818_v38  ;;  %8297 = vtanh.f32 %v12863_v27  ;;  %v5370_v27 = vadd.f32 %v12913_v46, %v12928_v47 }
 0x8fa   : > { %v5580_v18 = vpop.f32.mrf.mxu2  ;;  %v5846_v22 = vand.u32 2147483648, %v13100_v39  ;;  %vm5840_vm11 = vweird.f32 %v13100_v39  ;;  %vm5845_vm13 = vcmp.eq.f32.partialorder %v5844_v33, 8.507059e+37 }
 0x8fb   : > { %v5581_v62 = vadd.f32 %v5580_v18, %v5527_v19  ;;  %v5823_v48 = vmul.f32 %v8290_v26, %v5822_v54  ;;  %v5424_v46 = vadd.f32 %v5423_v44, %v5370_v27  ;;  %v5479_v6 = vpop.f32.mrf.mxu0 }
 0x8fc   : > { %v5528_v45 = vpop.f32.mrf.mxu1  ;;  %v5847_v1 = vor.u32 1.1754944e-38, %v5846_v22 }
 0x8fd   : > { %v8294_v2 = vpop.eup %8293  ;;  %v7610_v13 = vmul.f32 -1.442695, %v5581_v62  ;;  %v5824_v12 = vadd.f32 %v8290_v26, %v5823_v48  ;;  %v5529_v4 = vadd.f32 %v5528_v45, %v5475_v52  ;;  %v5478_v41 = vadd.f32 %v5477_v28, %v5424_v46 }
 0x8fe   : > { %v8296_v3 = vpop.eup %8295  ;;  %v13110_v58 = vadd.f32 1.0, %v8294_v2 }
 0x8ff   : > { %v5836_v31 = vmul.f32 %v8296_v3, %v13100_v39  ;;  %8299 = vpow2.f32 %v7610_v13  ;;  %v5828_v23 = vsel %vm5827_vm8, %v8290_v26, %v5824_v12  ;;  %v8298_v25 = vpop.eup %8297  ;;  %vm5841_vm10 = vweird.f32 %v8296_v3  ;;  %v5428_v13 = vpop.f32.mrf.mxu3 }
 0x900   : > { %8301 = vrcp.f32 %v13110_v58  ;;  %v5833_v9 = vsel %vm5830_vm9, %v5832_v59, %v5828_v23  ;;  %vm5842_vm12 = vmor %vm5840_vm11, %vm5841_vm10  ;;  %v5861_v54 = vand.u32 2147483648, %v13110_v58  ;;  %v5859_v35 = vand.u32 2147483647, %v13110_v58 }
 0x901   : > { %v5837_v20 = vsub.f32 1.0, %v5836_v31  ;;  %v5964_v60 = vmul.f32 %v8298_v25, %v5833_v9  ;;  %8303 = vtanh.f32 %v12870_v32  ;;  %v5372_v32 = vadd.f32 %v12918_v14, %v12928_v47 }
 0x902   : > { %v5582_v10 = vpop.f32.mrf.mxu2  ;;  %vm5855_vm15 = vweird.f32 %v13110_v58  ;;  %v5862_v2 = vor.u32 1.1754944e-38, %v5861_v54  ;;  %vm5860_vm1 = vcmp.eq.f32.partialorder %v5859_v35, 8.507059e+37  ;;  %v5429_v7 = vadd.f32 %v5428_v13, %v5375_v57 }
 0x903   : > { %v5583_v42 = vadd.f32 %v5582_v10, %v5529_v4  ;;  %v5977_v37 = vpack.c.bf16 %v5964_v60, %v5963_v8  ;;  %v5838_v50 = vmul.f32 %v8296_v3, %v5837_v20  ;;  %v5426_v14 = vadd.f32 %v5425_v11, %v5372_v32  ;;  %v5482_v9 = vpop.f32.mrf.mxu0 }
 0x904   : > { %v5531_v21 = vpop.f32.mrf.mxu1 }
 0x905   : > { %v8300_v55 = vpop.eup %8299  ;;  %v7611_v5 = vmul.f32 -1.442695, %v5583_v42  ;;  %6079 = vmatmul.bf16.gmra.mxu3 %v5977_v37  ;;  %v5839_v53 = vadd.f32 %v8296_v3, %v5838_v50  ;;  %v5532_v36 = vadd.f32 %v5531_v21, %v5478_v41  ;;  %v5480_v45 = vadd.f32 %v5479_v6, %v5426_v14 }
 0x906   : > { %v8302_v49 = vpop.eup %8301  ;;  %v13120_v15 = vadd.f32 1.0, %v8300_v55  ;;  %v5483_v50 = vadd.f32 %v5482_v9, %v5429_v7 }
 0x907   : > { %v5851_v26 = vmul.f32 %v8302_v49, %v13110_v58  ;;  %8305 = vpow2.f32 %v7611_v5  ;;  %v5843_v16 = vsel %vm5842_vm12, %v8296_v3, %v5839_v53  ;;  %v8304_v24 = vpop.eup %8303  ;;  %vm5856_vm14 = vweird.f32 %v8302_v49 }
 0x908   : > { %8307 = vrcp.f32 %v13120_v15  ;;  %v5848_v30 = vsel %vm5845_vm13, %v5847_v1, %v5843_v16  ;;  %vm5857_vm0 = vmor %vm5855_vm15, %vm5856_vm14  ;;  %v5874_v23 = vand.u32 2147483647, %v13120_v15  ;;  %v5876_v25 = vand.u32 2147483648, %v13120_v15 }
 0x909   : > { %v5852_v39 = vsub.f32 1.0, %v5851_v26  ;;  %v5965_v17 = vmul.f32 %v8304_v24, %v5848_v30  ;;  %8309 = vtanh.f32 %v12879_v43  ;;  %vm5870_vm3 = vweird.f32 %v13120_v15 }
 0x90a   : > { %v5585_v38 = vpop.f32.mrf.mxu2  ;;  %v5877_v21 = vor.u32 1.1754944e-38, %v5876_v25  ;;  %vm5875_vm5 = vcmp.eq.f32.partialorder %v5874_v23, 8.507059e+37 }
 0x90b   : > { %v5586_v19 = vadd.f32 %v5585_v38, %v5532_v36  ;;  %v5853_v8 = vmul.f32 %v8302_v49, %v5852_v39  ;;  %v5484_v6 = vpop.f32.mrf.mxu0 }
 0x90c   : > { %v5533_v18 = vpop.f32.mrf.mxu1 }
 0x90d   : > { %v8306_v29 = vpop.eup %8305  ;;  %v7612_v44 = vmul.f32 -1.442695, %v5586_v19  ;;  %v5854_v62 = vadd.f32 %v8302_v49, %v5853_v8  ;;  %v5534_v59 = vadd.f32 %v5533_v18, %v5480_v45 }
 0x90e   : > { %v8308_v48 = vpop.eup %8307  ;;  %v13130_v43 = vadd.f32 1.0, %v8306_v29 }
 0x90f   : > { %v5866_v12 = vmul.f32 %v8308_v48, %v13120_v15  ;;  %8311 = vpow2.f32 %v7612_v44  ;;  %v5858_v3 = vsel %vm5857_vm0, %v8302_v49, %v5854_v62  ;;  %v8310_v27 = vpop.eup %8309  ;;  %vm5871_vm2 = vweird.f32 %v8308_v48  ;;  %v5430_v49 = vpop.f32.mrf.mxu3 }
 0x910   : > { %8313 = vrcp.f32 %v13130_v43  ;;  %v5863_v52 = vsel %vm5860_vm1, %v5862_v2, %v5858_v3  ;;  %vm5872_vm4 = vmor %vm5870_vm3, %vm5871_vm2  ;;  %v5891_v1 = vand.u32 2147483648, %v13130_v43  ;;  %v5889_v24 = vand.u32 2147483647, %v13130_v43 }
 0x911   : > { %v5867_v58 = vsub.f32 1.0, %v5866_v12  ;;  %v5966_v28 = vmul.f32 %v8310_v27, %v5863_v52  ;;  %8315 = vtanh.f32 %v12884_v61  ;;  %v5377_v61 = vadd.f32 %v12936_v63, %v12928_v47 }
 0x912   : > { %v5587_v31 = vpop.f32.mrf.mxu2  ;;  %vm5885_vm7 = vweird.f32 %v13130_v43  ;;  %vm5890_vm9 = vcmp.eq.f32.partialorder %v5889_v24, 8.507059e+37 }
 0x913   : > { %v5588_v20 = vadd.f32 %v5587_v31, %v5534_v59  ;;  %v5978_v4 = vpack.c.bf16 %v5966_v28, %v5965_v17  ;;  %v5868_v60 = vmul.f32 %v8308_v48, %v5867_v58  ;;  %v5431_v47 = vadd.f32 %v5430_v49, %v5377_v61 }
 0x914   : > { %v5536_v46 = vpop.f32.mrf.mxu1 }
 0x915   : > { %v8312_v10 = vpop.eup %8311  ;;  %v7613_v33 = vmul.f32 -1.442695, %v5588_v20  ;;  %6084 = vmatmul.bf16.gmra.mxu3 %v5978_v4  ;;  %v5869_v22 = vadd.f32 %v8308_v48, %v5868_v60  ;;  %v5537_v15 = vadd.f32 %v5536_v46, %v5483_v50  ;;  %v5485_v38 = vadd.f32 %v5484_v6, %v5431_v47 }
 0x916   : > { %v8314_v42 = vpop.eup %8313  ;;  %v13140_v37 = vadd.f32 1.0, %v8312_v10 }
 0x917   : > { %v5881_v55 = vmul.f32 %v8314_v42, %v13130_v43  ;;  %8317 = vpow2.f32 %v7613_v33  ;;  %v5873_v11 = vsel %vm5872_vm4, %v8308_v48, %v5869_v22  ;;  %v8316_v5 = vpop.eup %8315  ;;  %vm5886_vm6 = vweird.f32 %v8314_v42 }
 0x918   : > { %8319 = vrcp.f32 %v13140_v37  ;;  %v5878_v53 = vsel %vm5875_vm5, %v5877_v21, %v5873_v11  ;;  %vm5887_vm8 = vmor %vm5885_vm7, %vm5886_vm6  ;;  %v5904_v57 = vand.u32 2147483647, %v13140_v37  ;;  %v5906_v43 = vand.u32 2147483648, %v13140_v37 }
 0x919   : > { %v5882_v32 = vsub.f32 1.0, %v5881_v55  ;;  %v5967_v41 = vmul.f32 %v8316_v5, %v5878_v53  ;;  %8321 = vtanh.f32 %v12897_v51  ;;  %v5892_v51 = vor.u32 1.1754944e-38, %v5891_v1 }
 0x91a   : > { %v5590_v63 = vpop.f32.mrf.mxu2  ;;  %vm5900_vm11 = vweird.f32 %v13140_v37  ;;  %v5907_v59 = vor.u32 1.1754944e-38, %v5906_v43  ;;  %vm5905_vm13 = vcmp.eq.f32.partialorder %v5904_v57, 8.507059e+37 }
 0x91b   : > { %v5591_v26 = vadd.f32 %v5590_v63, %v5537_v15  ;;  %v5883_v16 = vmul.f32 %v8314_v42, %v5882_v32 }
 0x91c   : > { %v5538_v54 = vpop.f32.mrf.mxu1 }
 0x91d   : > { %v8318_v30 = vpop.eup %8317  ;;  %v7614_v39 = vmul.f32 -1.442695, %v5591_v26  ;;  %v5884_v36 = vadd.f32 %v8314_v42, %v5883_v16  ;;  %v5539_v44 = vadd.f32 %v5538_v54, %v5485_v38 }
 0x91e   : > { %v8320_v17 = vpop.eup %8319  ;;  %v5682_v14 = vadd.f32 1.0, %v8318_v30 }
 0x91f   : > { %v5896_v19 = vmul.f32 %v8320_v17, %v13140_v37  ;;  %8323 = vpow2.f32 %v7614_v39  ;;  %v5888_v8 = vsel %vm5887_vm8, %v8314_v42, %v5884_v36  ;;  %v8322_v35 = vpop.eup %8321  ;;  %vm5901_vm10 = vweird.f32 %v8320_v17 }
 0x920   : > { %8325 = vrcp.f32 %v5682_v14  ;;  %v5893_v18 = vsel %vm5890_vm9, %v5892_v51, %v5888_v8  ;;  %vm5902_vm12 = vmor %vm5900_vm11, %vm5901_vm10  ;;  %v5921_v9 = vand.u32 2147483648, %v5682_v14  ;;  %v5919_v4 = vand.u32 2147483647, %v5682_v14 }
 0x921   : > { %v5897_v29 = vsub.f32 1.0, %v5896_v19  ;;  %v5968_v62 = vmul.f32 %v8322_v35, %v5893_v18  ;;  %8327 = vtanh.f32 %v12902_v56  ;;  %vm5915_vm15 = vweird.f32 %v5682_v14  ;;  %v13565_v18 = vld [vmem:[#allocation40_spill] sm:$0xff] }
 0x922   : > { %v5592_v48 = vpop.f32.mrf.mxu2  ;;  %v5922_v22 = vor.u32 1.1754944e-38, %v5921_v9  ;;  %vm5920_vm1 = vcmp.eq.f32.partialorder %v5919_v4, 8.507059e+37  ;;  %v13570_v9 = vld [vmem:[#allocation47_spill] sm:$0xff] }
 0x923   : > { %v5593_v45 = vadd.f32 %v5592_v48, %v5539_v44  ;;  %v5979_v2 = vpack.c.bf16 %v5968_v62, %v5967_v41  ;;  %v5898_v13 = vmul.f32 %v8320_v17, %v5897_v29  ;;  %v13566_v48 = vld [vmem:[#allocation42_spill] sm:$0xff] }
 0x925   : > { %v8324_v12 = vpop.eup %8323  ;;  %v7615_v3 = vmul.f32 -1.442695, %v5593_v45  ;;  %6089 = vmatmul.bf16.gmra.mxu3 %v5979_v2  ;;  %v5899_v27 = vadd.f32 %v8320_v17, %v5898_v13  ;;  %v13567_v13 = vld [vmem:[#allocation52_spill] sm:$0xff] }
 0x926   : > { %v8326_v52 = vpop.eup %8325  ;;  %v5683_v58 = vadd.f32 1.0, %v8324_v12 }
 0x927   : > { %v5911_v56 = vmul.f32 %v8326_v52, %v5682_v14  ;;  %8329 = vpow2.f32 %v7615_v3  ;;  %v5903_v28 = vsel %vm5902_vm12, %v8320_v17, %v5899_v27  ;;  %v8328_v7 = vpop.eup %8327  ;;  %vm5916_vm14 = vweird.f32 %v8326_v52 }
 0x928   : > { %8331 = vrcp.f32 %v5683_v58  ;;  %v5908_v31 = vsel %vm5905_vm13, %v5907_v59, %v5903_v28  ;;  %vm5917_vm0 = vmor %vm5915_vm15, %vm5916_vm14  ;;  %v5934_v53 = vand.u32 2147483647, %v5683_v58  ;;  %vm5930_vm3 = vweird.f32 %v5683_v58 }
 0x929   : > { %v5912_v23 = vsub.f32 1.0, %v5911_v56  ;;  %v5969_v25 = vmul.f32 %v8328_v7, %v5908_v31  ;;  %8333 = vtanh.f32 %v12915_v40  ;;  %v5936_v40 = vand.u32 2147483648, %v5683_v58  ;;  %v13569_v7 = vld [vmem:[#allocation46_spill] sm:$0xff] }
 0x92a   : > { %vm5935_vm5 = vcmp.eq.f32.partialorder %v5934_v53, 8.507059e+37 }
 0x92b   : > { %v5913_v20 = vmul.f32 %v8326_v52, %v5912_v23  ;;  %v5937_v15 = vor.u32 1.1754944e-38, %v5936_v40  ;;  %v13573_v40 = vld [vmem:[#allocation51_spill] sm:$0xff] }
 0x92d   : > { %v8330_v60 = vpop.eup %8329  ;;  %v5914_v46 = vadd.f32 %v8326_v52, %v5913_v20 }
 0x92e   : > { %v8332_v10 = vpop.eup %8331  ;;  %v5684_v33 = vadd.f32 1.0, %v8330_v60 }
 0x92f   : > { %v5926_v42 = vmul.f32 %v8332_v10, %v5683_v58  ;;  %v5918_v61 = vsel %vm5917_vm0, %v8326_v52, %v5914_v46  ;;  %v8334_v37 = vpop.eup %8333  ;;  %vm5931_vm2 = vweird.f32 %v8332_v10  ;;  %v13568_v52 = vld [vmem:[#allocation44_spill] sm:$0xff] }
 0x930   : > { %8335 = vrcp.f32 %v5684_v33  ;;  %v5923_v50 = vsel %vm5920_vm1, %v5922_v22, %v5918_v61  ;;  %vm5932_vm4 = vmor %vm5930_vm3, %vm5931_vm2  ;;  %v5949_v30 = vand.u32 2147483647, %v5684_v33  ;;  %vm5945_vm7 = vweird.f32 %v5684_v33  ;;  %v13572_v61 = vld [vmem:[#allocation48_spill] sm:$0xff] }
 0x931   : > { %v5927_v21 = vsub.f32 1.0, %v5926_v42  ;;  %v5970_v55 = vmul.f32 %v8334_v37, %v5923_v50  ;;  %8337 = vtanh.f32 %v12920_v34  ;;  %v5951_v34 = vand.u32 2147483648, %v5684_v33 }
 0x932   : > { %8339 = vtanh.f32 %v12930_v0  ;;  %vm5950_vm9 = vcmp.eq.f32.partialorder %v5949_v30, 8.507059e+37  ;;  %v7632_v0 = vld [vmem:[%s13230_s6 + $0x4] sm:$0x3] }
 0x933   : > { %v5980_v11 = vpack.c.bf16 %v5970_v55, %v5969_v25  ;;  %v5928_v5 = vmul.f32 %v8332_v10, %v5927_v21  ;;  %v5952_v39 = vor.u32 1.1754944e-38, %v5951_v34  ;;  %v6002_v19 = vperm.slane %v7632_v0, 0  ;;  %v13576_v34 = vld [vmem:[#allocation32_spill] sm:$0xff] }
 0x935   : > { %6094 = vmatmul.bf16.gmra.mxu3 %v5980_v11  ;;  %v5929_v49 = vadd.f32 %v8332_v10, %v5928_v5 }
 0x936   : > { %v8336_v32 = vpop.eup %8335 }
 0x937   : > { %v5941_v41 = vmul.f32 %v8336_v32, %v5684_v33  ;;  %v5933_v47 = vsel %vm5932_vm4, %v8332_v10, %v5929_v49  ;;  %v8338_v63 = vpop.eup %8337  ;;  %vm5946_vm6 = vweird.f32 %v8336_v32  ;;  %v13571_v10 = vld [vmem:[#allocation49_spill] sm:$0xff]  ;;  %v13574_v49 = vld [vmem:[#allocation38_spill] sm:$0xff] }
 0x938   : > { %v5938_v1 = vsel %vm5935_vm5, %v5937_v15, %v5933_v47  ;;  %vm5947_vm8 = vmor %vm5945_vm7, %vm5946_vm6  ;;  %v8340_v17 = vpop.eup %8339 }
 0x939   : > { %v5942_v26 = vsub.f32 1.0, %v5941_v41  ;;  %v5971_v16 = vmul.f32 %v8338_v63, %v5938_v1 }
 0x93b   : > { %v5943_v24 = vmul.f32 %v8336_v32, %v5942_v26  ;;  %v13575_v26 = vld [vmem:[#allocation36_spill] sm:$0xff] }
 0x93d   : > { %v5944_v6 = vadd.f32 %v8336_v32, %v5943_v24 }
 0x93f   : > { %v5948_v36 = vsel %vm5947_vm8, %v8336_v32, %v5944_v6 }
 0x940   : > { %v5953_v14 = vsel %vm5950_vm9, %v5952_v39, %v5948_v36 }
 0x941   : > { %v5972_v38 = vmul.f32 %v8340_v17, %v5953_v14  ;;  %v13577_v14 = vld [vmem:[#allocation21_spill] sm:$0xff] }
 0x943   : > { %v5981_v54 = vpack.c.bf16 %v5972_v38, %v5971_v16 }
 0x945   : > { %6099 = vmatmul.bf16.gmra.mxu3 %v5981_v54  ;;  %v13578_v54 = vld [vmem:[#allocation7_spill] sm:$0xff] }
 0x948   : > { %v6061_v51 = vpop.f32.mrf.mxu3 }
 0x950   : > { %v6062_v8 = vpop.f32.mrf.mxu3 }
 0x951   : > { %v6063_v35 = vadd.f32 %v6062_v8, %v6002_v19 }
 0x953   : > { %v13160_v29 = vadd.f32 %v6063_v35, %v13565_v18 }
 0x958   : > { %v6065_v44 = vpop.f32.mrf.mxu3 }
 0x959   : > { %v6066_v62 = vadd.f32 %v6065_v44, %v6002_v19  ;;  %v13579_v44 = vld [vmem:[#allocation31_spill] sm:$0xff] }
 0x95b   : > { %v13163_v57 = vadd.f32 %v6066_v62, %v13566_v48  ;;  %v13580_v48 = vld [vmem:[#allocation34_spill] sm:$0xff] }
 0x95d   : > { %v6120_v43 = vpack.c.bf16 %v13163_v57, %v13160_v29 }
 0x960   : > { %v6067_v45 = vpop.f32.mrf.mxu3 }
 0x961   : > { %v6068_v2 = vadd.f32 %v6067_v45, %v6002_v19 }
 0x963   : > { %v6106_v12 = vadd.f32 %v6068_v2, %v13567_v13  ;;  %v6129_v13 = vld [vmem:[%s13232_s8] sm:$0xf] }
 0x968   : > { %v6070_v3 = vpop.f32.mrf.mxu3 }
 0x969   : > { %v6071_v27 = vadd.f32 %v6070_v3, %v6002_v19 }
 0x96b   : > { %v6107_v58 = vadd.f32 %v6071_v27, %v13568_v52 }
 0x96d   : > { %v6121_v59 = vpack.c.bf16 %v6107_v58, %v6106_v12  ;;  %v8421_v12 = vmov 0  }
 0x96e   : > { %8015 = vset.pattern.permute.xlu0 %v8421_v12 }
 0x96f   : > { %6132 = vperm.xlu0 %8015, %v6129_v13  }
 0x970   : > { %v6072_v56 = vpop.f32.mrf.mxu3 }
 0x971   : > { %v6073_v28 = vadd.f32 %v6072_v56, %v6002_v19 }
 0x973   : > { %v6108_v31 = vadd.f32 %v6073_v28, %v13569_v7 }
 0x978   : > { %v6075_v23 = vpop.f32.mrf.mxu3 }
 0x979   : > { %v6076_v25 = vadd.f32 %v6075_v23, %v6002_v19 }
 0x97b   : > { %v6109_v20 = vadd.f32 %v6076_v25, %v13570_v9 }
 0x97d   : > { %v6122_v4 = vpack.c.bf16 %v6109_v20, %v6108_v31 }
 0x980   : > { %v6077_v60 = vpop.f32.mrf.mxu3 }
 0x981   : > { %v6078_v46 = vadd.f32 %v6077_v60, %v6002_v19 }
 0x983   : > { %v6110_v33 = vadd.f32 %v6078_v46, %v13571_v10 }
 0x988   : > { %v6080_v22 = vpop.f32.mrf.mxu3 }
 0x989   : > { %v6081_v42 = vadd.f32 %v6080_v22, %v6002_v19 }
 0x98b   : > { %v6111_v37 = vadd.f32 %v6081_v42, %v13572_v61 }
 0x98d   : > { %v6123_v50 = vpack.c.bf16 %v6111_v37, %v6110_v33 }
 0x990   : > { %v6082_v21 = vpop.f32.mrf.mxu3 }
 0x991   : > { %v6083_v55 = vadd.f32 %v6082_v21, %v6002_v19 }
 0x993   : > { %v6112_v11 = vadd.f32 %v6083_v55, %v13573_v40 }
 0x998   : > { %v6085_v5 = vpop.f32.mrf.mxu3 }
 0x999   : > { %v6086_v53 = vadd.f32 %v6085_v5, %v6002_v19 }
 0x99b   : > { %v6113_v32 = vadd.f32 %v6086_v53, %v13574_v49 }
 0x99d   : > { %v6124_v15 = vpack.c.bf16 %v6113_v32, %v6112_v11 }
 0x9a0   : > { %v6087_v41 = vpop.f32.mrf.mxu3 }
 0x9a1   : > { %v6088_v47 = vadd.f32 %v6087_v41, %v6002_v19 }
 0x9a3   : > { %v6114_v16 = vadd.f32 %v6088_v47, %v13575_v26 }
 0x9a8   : > { %v6090_v63 = vpop.f32.mrf.mxu3 }
 0x9a9   : > { %v6091_v1 = vadd.f32 %v6090_v63, %v6002_v19 }
 0x9ab   : > { %v6115_v24 = vadd.f32 %v6091_v1, %v13576_v34 }
 0x9ad   : > { %v6125_v30 = vpack.c.bf16 %v6115_v24, %v6114_v16 }
 0x9b0   : > { %v6092_v6 = vpop.f32.mrf.mxu3 }
 0x9b1   : > { %v6093_v39 = vadd.f32 %v6092_v6, %v6002_v19 }
 0x9b3   : > { %v6116_v38 = vadd.f32 %v6093_v39, %v13577_v14 }
 0x9b8   : > { %v6095_v36 = vpop.f32.mrf.mxu3 }
 0x9b9   : > { %v6096_v17 = vadd.f32 %v6095_v36, %v6002_v19 }
 0x9bb   : > { %v6117_v51 = vadd.f32 %v6096_v17, %v13578_v54 }
 0x9bd   : > { %v6126_v0 = vpack.c.bf16 %v6117_v51, %v6116_v38 }
 0x9c0   : > { %v6097_v8 = vpop.f32.mrf.mxu3 }
 0x9c1   : > { %v6098_v35 = vadd.f32 %v6097_v8, %v6002_v19 }
 0x9c3   : > { %v6118_v62 = vadd.f32 %v6098_v35, %v13579_v44 }
 0x9c8   : > { %v6100_v18 = vpop.f32.mrf.mxu3 }
 0x9c9   : > { %v6101_v29 = vadd.f32 %v6100_v18, %v6002_v19  ;;  %v6128_v19 = vld [vmem:[%s13231_s7] sm:$0x3] }
 0x9cb   : > { %v6119_v57 = vadd.f32 %v6101_v29, %v13580_v48 }
 0x9cd   : > { %v6127_v45 = vpack.c.bf16 %v6119_v57, %v6118_v62 }
 0x9cf   : > { %6135 = vmatpush.bf16.xpose.msrb.mxu0 %v6127_v45 }
 0x9d0   : > { %v6102_v2 = vpop.f32.mrf.mxu3 }
 0x9d7   : > { %6136 = vmatpush.bf16.xpose.msrb.mxu0 %v6126_v0 }
 0x9df   : > { %6137 = vmatpush.bf16.xpose.msrb.mxu0 %v6125_v30 }
 0x9e1   : > { %v6133_v3 = vpop.permute.xlu0 %6132 }
 0x9e7   : > { %6138 = vmatpush.bf16.xpose.msrb.mxu0 %v6124_v15 }
 0x9ef   : > { %6139 = vmatpush.bf16.xpose.msrb.mxu0 %v6123_v50 }
 0x9f7   : > { %6140 = vmatpush.bf16.xpose.msrb.mxu0 %v6122_v4 }
 0x9ff   : > { %6141 = vmatpush.bf16.xpose.msrb.mxu0 %v6121_v59 }
 0xa07   : > { %6142 = vmatpush.bf16.xpose.msrb.mxu0 %v6120_v43 }
 0xa0e   : > { %6143 = vmatmul.bf16.vlgmr.msrb.gmra.mxu0 %v6128_v19 }
 0xa8b   : > { %v6144_v27 = vpop.f32.mrf.mxu0 }
 0xa8c   : > { %v6145_v52 = vadd.f32 %v6144_v27, %v6133_v3 }
 0xa8e   : > { %6148 = vst [vmem:[%s349_s28] sm:$0xf] %v6145_v52 }
 0xa8f   : > { %8368 = shalt.err (!%p8365_p5)
}
 0xa90   : > { %7959 = dma.vmem_to_hbm [thread:$0]  (%p8512_p4), %s6164_s15, 64, %s6166_s29, %s6150_s16  }
 0xa93   : > { %v6146_v43 = vpop.f32.mrf.mxu0 }
 0xa94 PF: > { %p7965_p6 = scmp.ge.s32.totalorder %s8419_s14, 2  ;;  %s6177_s23 = sand.u32 1, %s8399_s30  }
 0xa95   : > { %s6178_s27 = scalar_lea.sflag [#allocation3], %s6177_s23 }
 0xa96   : > { %p7962_p7 = pnand %p7965_p6, %p8519_p8 }
 0xa98   : > { %p7963_p9 = pneg %p7962_p7 }
 0xa9a   : > { %8394 = dma.done.wait (%p7963_p9), %s6178_s27, 64  }
 0xa9b   : > { %8396 = vsyncadd (%p7963_p9), %s6178_s27, 4294967232  ;;  %s22_s14 = sadd.s32 1, %s8419_s14   ;;  %s13581_s30 = smov %s8403_s10 }
 0xa9c   : > { %p19_p10 = scmp.ge.s32.totalorder %s22_s14, 4   ;;  %s13582_s10 = smov %s8407_s11 }
 0xa9d   : > { %s13583_s11 = smov %s8525_s22  ;;  %s13584_s12 = smov %s8415_s13 }
 0xa9e   : > { %s13585_s13 = smov %s13587_s17  ;;  %21 = sbr.rel (!%p19_p10) target bundleno = 6 (0x6), region = 99 }
 0xaa3   :  { %6184 = vsyncpa [#allocation3], 1 }
 0xaa4   :  { %6186 = vsyncpa [#allocation3 + $0x1], 1 }

</bundles_post_ra>
